<compile_context>
chip_gen: v5e
topology: v5e:2x2
jax: 0.10.0
libtpu: 0.0.40
codegen_flags: <defaults>
</compile_context>

<pallas_src>
import functools
import math

import jax
import jax.numpy as jnp
from jax.experimental import pallas as pl
from jax.experimental.pallas import tpu as pltpu

FILTER_SIZE = 64  # AffineCoupling hidden width (512 in the reference; reduced for small test)
LOG2PI = math.log(2.0 * math.pi)


# ----------------------------------------------------------------------------
# Pallas kernel bodies.  All GEMMs are (Cout, K) @ (K, Mt) with the flattened
# spatial axis on lanes; MXU inputs bf16, accumulation + epilogues f32.
# ----------------------------------------------------------------------------
def _gemm_bias_kernel(w_ref, b_ref, x_ref, o_ref, *, relu):
    acc = jnp.dot(w_ref[...].astype(jnp.bfloat16), x_ref[...].astype(jnp.bfloat16),
                  preferred_element_type=jnp.float32)
    acc = acc + b_ref[...]
    if relu:
        acc = jnp.maximum(acc, 0.0)
    o_ref[...] = acc.astype(o_ref.dtype)


def _coupling_net_kernel(w1_ref, b1_ref, w2_ref, b2_ref, x_ref, o_ref):
    # conv3x3 (as GEMM over prebuilt taps) + ReLU -> conv1x1 + ReLU, fused.
    h1 = jnp.dot(w1_ref[...], x_ref[...], preferred_element_type=jnp.float32)
    h1 = jnp.maximum(h1 + b1_ref[...], 0.0)
    h2 = jnp.dot(w2_ref[...], h1.astype(jnp.bfloat16), preferred_element_type=jnp.float32)
    h2 = jnp.maximum(h2 + b2_ref[...], 0.0)
    o_ref[...] = h2.astype(o_ref.dtype)


def _coupling_zero_fwd_kernel(w_ref, b_ref, x_ref, inb_ref, outb_ref, ls_ref):
    # ZeroConv2d GEMM + affine-coupling forward epilogue + log-s column sums.
    net = jnp.dot(w_ref[...], x_ref[...], preferred_element_type=jnp.float32) + b_ref[...]
    dh = inb_ref.shape[0]
    log_s = net[:dh, :]
    t = net[dh:, :]
    s = jax.nn.sigmoid(log_s + 2.0)
    outb_ref[...] = (inb_ref[...] + t) * s
    ls_ref[...] = jnp.sum(jnp.log(s), axis=0, keepdims=True)


def _coupling_zero_rev_kernel(w_ref, b_ref, x_ref, outb_ref, inb_ref):
    net = jnp.dot(w_ref[...], x_ref[...], preferred_element_type=jnp.float32) + b_ref[...]
    dh = outb_ref.shape[0]
    log_s = net[:dh, :]
    t = net[dh:, :]
    s = jax.nn.sigmoid(log_s + 2.0)
    inb_ref[...] = outb_ref[...] / s - t


def _prior_logp_kernel(w_ref, b_ref, x_ref, z_ref, lp_ref):
    # ZeroConv2d prior GEMM + Gaussian log-prob column sums.
    net = jnp.dot(w_ref[...], x_ref[...], preferred_element_type=jnp.float32) + b_ref[...]
    c = z_ref.shape[0]
    mean = net[:c, :]
    log_sd = net[c:, :]
    val = (-0.5 * LOG2PI - log_sd
           - 0.5 * (z_ref[...] - mean) ** 2 * jnp.exp(-2.0 * log_sd))
    lp_ref[...] = jnp.sum(val, axis=0, keepdims=True)


def _prior_sample_kernel(w_ref, b_ref, x_ref, eps_ref, z_ref):
    net = jnp.dot(w_ref[...], x_ref[...], preferred_element_type=jnp.float32) + b_ref[...]
    c = eps_ref.shape[0]
    mean = net[:c, :]
    log_sd = net[c:, :]
    z_ref[...] = mean + jnp.exp(log_sd) * eps_ref[...]


def _gauss_logp_kernel(z_ref, mean_ref, logsd_ref, lp_ref):
    log_sd = logsd_ref[...]
    val = (-0.5 * LOG2PI - log_sd
           - 0.5 * (z_ref[...] - mean_ref[...]) ** 2 * jnp.exp(-2.0 * log_sd))
    lp_ref[...] = jnp.sum(val, axis=0, keepdims=True)


def _gauss_sample_kernel(eps_ref, mean_ref, logsd_ref, z_ref):
    z_ref[...] = mean_ref[...] + jnp.exp(logsd_ref[...]) * eps_ref[...]


# ----------------------------------------------------------------------------
# Generic column-tiled runner (grid over the lane axis M).
# ----------------------------------------------------------------------------
def _col_tile(M):
    if M < 128:
        return M                               # single full block
    # lane-aligned (>=128), capped at 512, >=2 grid steps when possible
    return min(512, max(128, ((M // 2) // 128) * 128))


def _pad_cols(a, Mp):
    if a.shape[-1] == Mp:
        return a
    return jnp.pad(a, ((0, 0), (0, Mp - a.shape[-1])))


def _run_colwise(kernel, bcast_ins, col_ins, out_defs, M):
    """Run `kernel` over column (lane) tiles.

    bcast_ins: small 2-D arrays (weights / biases) passed whole to every step.
    col_ins:   (rows_i, M) arrays tiled along the lane axis.
    out_defs:  list of (rows, dtype) -> (rows, M) outputs tiled the same way.
    """
    tm = _col_tile(M)
    Mp = pl.cdiv(M, tm) * tm
    cols = [_pad_cols(a, Mp) for a in col_ins]
    grid = (Mp // tm,)
    in_specs = ([pl.BlockSpec(a.shape, lambda i: (0, 0)) for a in bcast_ins]
                + [pl.BlockSpec((a.shape[0], tm), lambda i: (0, i)) for a in cols])
    out_specs = tuple(pl.BlockSpec((r, tm), lambda i: (0, i)) for r, _ in out_defs)
    out_shape = tuple(jax.ShapeDtypeStruct((r, Mp), d) for r, d in out_defs)
    single = len(out_defs) == 1
    res = pl.pallas_call(
        kernel,
        grid=grid,
        in_specs=in_specs,
        out_specs=out_specs[0] if single else out_specs,
        out_shape=out_shape[0] if single else out_shape,
        compiler_params=pltpu.CompilerParams(dimension_semantics=("parallel",)),
    )(*bcast_ins, *cols)
    if single:
        return res[:, :M]
    return tuple(r[:, :M] for r in res)


# ----------------------------------------------------------------------------
# Kernel wrappers
# ----------------------------------------------------------------------------
def gemm_cm(w, b, x, relu=False):
    """(Cout, M) = w(Cout,K) @ x(K,M) + b(Cout,1), optional ReLU."""
    return _run_colwise(functools.partial(_gemm_bias_kernel, relu=relu),
                        [w, b], [x], [(w.shape[0], jnp.float32)], x.shape[1])


def coupling_net(patches1, fp):
    filt = fp["c0_b"].shape[0]
    w1 = fp["c0_w"].reshape(filt, -1).astype(jnp.bfloat16)
    b1 = fp["c0_b"][:, None]
    w2 = fp["c2_w"][:, :, 0, 0].astype(jnp.bfloat16)
    b2 = fp["c2_b"][:, None]
    return _run_colwise(_coupling_net_kernel, [w1, b1, w2, b2], [patches1],
                        [(filt, jnp.bfloat16)], patches1.shape[1])


def coupling_zero_fwd(wz, bz, patches2, in_b):
    dh = in_b.shape[0]
    return _run_colwise(_coupling_zero_fwd_kernel, [wz, bz], [patches2, in_b],
                        [(dh, jnp.float32), (1, jnp.float32)], patches2.shape[1])


def coupling_zero_rev(wz, bz, patches2, out_b):
    dh = out_b.shape[0]
    return _run_colwise(_coupling_zero_rev_kernel, [wz, bz], [patches2, out_b],
                        [(dh, jnp.float32)], patches2.shape[1])


def prior_logp(wp, bzp, patches, z):
    return _run_colwise(_prior_logp_kernel, [wp, bzp], [patches, z],
                        [(1, jnp.float32)], patches.shape[1])


def prior_sample(wp, bzp, patches, eps):
    return _run_colwise(_prior_sample_kernel, [wp, bzp], [patches, eps],
                        [(eps.shape[0], jnp.float32)], patches.shape[1])


def gauss_logp_plain(z, mean, log_sd):
    return _run_colwise(_gauss_logp_kernel, [], [z, mean, log_sd],
                        [(1, jnp.float32)], z.shape[1])


def gauss_sample_plain(eps, mean, log_sd):
    return _run_colwise(_gauss_sample_kernel, [], [eps, mean, log_sd],
                        [(eps.shape[0], jnp.float32)], eps.shape[1])


# ----------------------------------------------------------------------------
# JAX glue (layout, im2col taps, parameter folds)
# ----------------------------------------------------------------------------
def im2col3x3_cm(x, pad_value):
    """(C, N, H, W) -> (C*9, N*H*W) bf16 taps; K order matches
    torch weight.reshape(Cout, Cin*9) (cin-major, then kh, kw)."""
    C, N, H, W = x.shape
    xp = jnp.pad(x, ((0, 0), (0, 0), (1, 1), (1, 1)),
                 constant_values=pad_value).astype(jnp.bfloat16)
    taps = [xp[:, :, kh:kh + H, kw:kw + W] for kh in range(3) for kw in range(3)]
    return jnp.stack(taps, axis=1).reshape(C * 9, N * H * W)


def fold_zero_conv(w, b, scale):
    """ZeroConv2d: fold exp(scale*3) output gain into weight / bias."""
    e = jnp.exp(scale * 3.0)
    wz = (w * e[:, None, None, None]).reshape(w.shape[0], -1).astype(jnp.bfloat16)
    bz = (b * e)[:, None]
    return wz, bz


def zero_input_prior(prior, N, H, W):
    """ZeroConv2d on an all-zero input: only the 1-pixel pad of ones
    contributes, so output = bias + border correction (no GEMM over zeros)."""
    w, b, scale = prior["w"], prior["b"], prior["scale"]
    cout = w.shape[0]
    ind = jnp.zeros((H + 2, W + 2), jnp.float32)
    ind = ind.at[0, :].set(1.0).at[-1, :].set(1.0).at[:, 0].set(1.0).at[:, -1].set(1.0)
    taps = jnp.stack([ind[kh:kh + H, kw:kw + W] for kh in range(3) for kw in range(3)], 0)
    wsum = w.sum(axis=1).reshape(cout, 9)
    out = b[:, None, None] + jnp.einsum("ct,thw->chw", wsum, taps)
    out = out * jnp.exp(scale * 3.0)[:, None, None]
    out = jnp.broadcast_to(out[:, None, :, :], (cout, N, H, W))
    ch = cout // 2
    return out[:ch].reshape(ch, -1), out[ch:].reshape(ch, -1)   # mean, log_sd (C', M)


def squeeze_cm(x):
    C, N, H, W = x.shape
    x = x.reshape(C, N, H // 2, 2, W // 2, 2).transpose(0, 3, 5, 1, 2, 4)
    return x.reshape(C * 4, N, H // 2, W // 2)


def unsqueeze_cm(x):
    C4, N, H, W = x.shape
    x = x.reshape(C4 // 4, 2, 2, N, H, W).transpose(0, 3, 4, 1, 5, 2)
    return x.reshape(C4 // 4, N, H * 2, W * 2)


def invconv_weight(fp):
    D = fp["w_s"].shape[0]
    l_mask = jnp.tril(jnp.ones((D, D), jnp.float32), -1)
    u_mask = jnp.triu(jnp.ones((D, D), jnp.float32), 1)
    # w_p = I, s_sign = +1 (deterministic, well-conditioned LU factors)
    return ((fp["w_l"] * l_mask + jnp.eye(D, dtype=jnp.float32))
            @ (fp["w_u"] * u_mask + jnp.diag(jnp.exp(fp["w_s"]))))


# ----------------------------------------------------------------------------
# Glow components (channel-major)
# ----------------------------------------------------------------------------
def flow_fwd(x4, fp):
    C, N, H, W = x4.shape
    M = N * H * W
    x = x4.reshape(C, M)

    # ActNorm data-dependent init (first-call semantics, as in PyTorch) ...
    mean = x.mean(axis=1)
    std = jnp.sqrt(x.var(axis=1, ddof=1))      # torch.std default is unbiased
    loc = -mean
    scale = 1.0 / (std + 1e-6)
    det_act = H * W * jnp.sum(jnp.log(jnp.abs(scale)))

    # ... folded exactly into the 1x1 invertible conv:
    #   W (scale*(x+loc)) = (W*scale) x + W (scale*loc)
    wc = invconv_weight(fp)
    det_inv = H * W * jnp.sum(fp["w_s"])
    y = gemm_cm(wc * scale[None, :], (wc @ (scale * loc))[:, None], x)

    # Affine coupling (fused coupling net + ZeroConv2d + sigmoid/affine/logdet)
    dh = C // 2
    in_a, in_b = y[:dh], y[dh:]
    p1 = im2col3x3_cm(in_a.reshape(dh, N, H, W), 0.0)
    h2 = coupling_net(p1, fp)
    p2 = im2col3x3_cm(h2.reshape(h2.shape[0], N, H, W), 1.0)
    wz, bz = fold_zero_conv(fp["cz_w"], fp["cz_b"], fp["cz_scale"])
    out_b, ls_col = coupling_zero_fwd(wz, bz, p2, in_b)
    det_cpl = ls_col.reshape(N, H * W).sum(axis=1)

    out = jnp.concatenate([in_a, out_b], axis=0).reshape(C, N, H, W)
    return out, det_act + det_inv + det_cpl


def flow_rev(y4, fp):
    C, N, H, W = y4.shape
    M = N * H * W
    y = y4.reshape(C, M)
    dh = C // 2
    out_a, out_b = y[:dh], y[dh:]

    p1 = im2col3x3_cm(out_a.reshape(dh, N, H, W), 0.0)
    h2 = coupling_net(p1, fp)
    p2 = im2col3x3_cm(h2.reshape(h2.shape[0], N, H, W), 1.0)
    wz, bz = fold_zero_conv(fp["cz_w"], fp["cz_b"], fp["cz_scale"])
    in_b = coupling_zero_rev(wz, bz, p2, out_b)
    x1 = jnp.concatenate([out_a, in_b], axis=0)

    # invconv^-1 folded with actnorm^-1 (h's actnorms never run forward so
    # they stay at loc=0, scale=1 — fold is exact either way).
    winv = jnp.linalg.inv(invconv_weight(fp))
    wf = winv / fp["an_scale"][:, None]
    bf = (-fp["an_loc"])[:, None]
    x = gemm_cm(wf, bf, x1)
    return x.reshape(C, N, H, W)


def block_forward(x4, bp, split):
    out = squeeze_cm(x4)
    C, N, H, W = out.shape
    M = N * H * W
    logdet = 0.0
    for fp in bp["flows"]:
        out, det = flow_fwd(out, fp)
        logdet = logdet + det
    if split:
        ch = C // 2
        flat = out.reshape(C, M)
        keep, z_new = flat[:ch], flat[ch:]
        wp, bzp = fold_zero_conv(bp["prior"]["w"], bp["prior"]["b"], bp["prior"]["scale"])
        p = im2col3x3_cm(keep.reshape(ch, N, H, W), 1.0)
        lp_col = prior_logp(wp, bzp, p, z_new)
        log_p = lp_col.reshape(N, H * W).sum(axis=1)
        return keep.reshape(ch, N, H, W), logdet, log_p, z_new.reshape(ch, N, H, W)
    else:
        mean, log_sd = zero_input_prior(bp["prior"], N, H, W)
        lp_col = gauss_logp_plain(out.reshape(C, M), mean, log_sd)
        log_p = lp_col.reshape(N, H * W).sum(axis=1)
        return out, logdet, log_p, out


def block_reverse(output4, eps4, bp, split):
    C_, N, H, W = output4.shape
    M = N * H * W
    if split:
        wp, bzp = fold_zero_conv(bp["prior"]["w"], bp["prior"]["b"], bp["prior"]["scale"])
        p = im2col3x3_cm(output4, 1.0)
        z = prior_sample(wp, bzp, p, eps4.reshape(C_, M))
        inp = jnp.concatenate([output4.reshape(C_, M), z], axis=0).reshape(2 * C_, N, H, W)
    else:
        mean, log_sd = zero_input_prior(bp["prior"], N, H, W)
        z = gauss_sample_plain(eps4.reshape(C_, M), mean, log_sd)
        inp = z.reshape(C_, N, H, W)
    for fp in bp["flows"][::-1]:
        inp = flow_rev(inp, fp)
    return unsqueeze_cm(inp)


def glow_forward(x_cm, params):
    n = len(params)
    log_p_sum, logdet, out, z_outs = 0.0, 0.0, x_cm, []
    for bi, bp in enumerate(params):
        out, det, log_p, z_new = block_forward(out, bp, split=bi < n - 1)
        z_outs.append(z_new)
        logdet = logdet + det
        log_p_sum = log_p_sum + log_p
    return log_p_sum, logdet, z_outs


def glow_reverse(z_list, params):
    n = len(params)
    inp = None
    for i, bp in enumerate(params[::-1]):
        split = (n - 1 - i) < (n - 1)
        if i == 0:
            inp = block_reverse(z_list[-1], z_list[-1], bp, split)
        else:
            inp = block_reverse(inp, z_list[-(i + 1)], bp, split)
    return inp


def model_forward(x_nchw, g_params, h_params):
    """Model.forward: log_p, logdet, z = g(x); return (log_p, logdet, h(z)),
    where h = InvGlow whose forward is Glow.reverse."""
    x_cm = jnp.transpose(x_nchw, (1, 0, 2, 3))           # NCHW -> channel-major
    log_p, logdet, z_list = glow_forward(x_cm, g_params)
    recon_cm = glow_reverse(z_list, h_params)
    recon = jnp.transpose(recon_cm, (1, 0, 2, 3))         # back to NCHW
    return log_p, logdet, recon


# ----------------------------------------------------------------------------
# Deterministic parameter construction (synthetic; mirrors module shapes)
# ----------------------------------------------------------------------------
def init_glow_params(key, in_channel, n_flow, n_block, filter_size=FILTER_SIZE):
    blocks = []
    n_channel = in_channel
    for b in range(n_block):
        split = b < n_block - 1
        D = n_channel * 4
        flows = []
        for _ in range(n_flow):
            key, k0, k2, kl, ku, ks = jax.random.split(key, 6)
            flows.append(dict(
                an_loc=jnp.zeros((D,), jnp.float32),
                an_scale=jnp.ones((D,), jnp.float32),
                w_l=0.05 * jax.random.normal(kl, (D, D), jnp.float32),
                w_u=0.05 * jax.random.normal(ku, (D, D), jnp.float32),
                w_s=0.05 * jax.random.normal(ks, (D,), jnp.float32),
                c0_w=0.05 * jax.random.normal(k0, (filter_size, D // 2, 3, 3), jnp.float32),
                c0_b=jnp.zeros((filter_size,), jnp.float32),
                c2_w=0.05 * jax.random.normal(k2, (filter_size, filter_size, 1, 1), jnp.float32),
                c2_b=jnp.zeros((filter_size,), jnp.float32),
                # ZeroConv2d inside the coupling net is zero-initialized by design
                cz_w=jnp.zeros((D, filter_size, 3, 3), jnp.float32),
                cz_b=jnp.zeros((D,), jnp.float32),
                cz_scale=jnp.zeros((D,), jnp.float32),
            ))
        if split:
            pw = jnp.zeros((n_channel * 4, n_channel * 2, 3, 3), jnp.float32)
            pb = jnp.zeros((n_channel * 4,), jnp.float32)
            ps = jnp.zeros((n_channel * 4,), jnp.float32)
        else:
            pw = jnp.zeros((n_channel * 8, n_channel * 4, 3, 3), jnp.float32)
            pb = jnp.zeros((n_channel * 8,), jnp.float32)
            ps = jnp.zeros((n_channel * 8,), jnp.float32)
        blocks.append(dict(flows=flows, prior=dict(w=pw, b=pb, scale=ps)))
        if split:
            n_channel *= 2
    return blocks


if __name__ == "__main__":
    key = jax.random.PRNGKey(0)
    kx, kg, kh = jax.random.split(key, 3)

    # Small shapes consistent with the module: NCHW image, H,W divisible by 2**n_block.
    B, C, H, W = 2, 4, 16, 16
    n_flow, n_block = 2, 2

    x = jax.random.normal(kx, (B, C, H, W), jnp.float32)
    g_params = init_glow_params(kg, C, n_flow, n_block)   # self.g = Glow(...)
    h_params = init_glow_params(kh, C, n_flow, n_block)   # self.h = InvGlow(...)

    fwd = jax.jit(model_forward)
    log_p, logdet, recon = fwd(x, g_params, h_params)
    jax.block_until_ready((log_p, logdet, recon))

    assert log_p.shape == (B,)
    assert logdet.shape == (B,)
    assert recon.shape == (B, C, H, W)
    assert bool(jnp.all(jnp.isfinite(log_p)))
    assert bool(jnp.all(jnp.isfinite(logdet)))
    assert bool(jnp.all(jnp.isfinite(recon)))
    print("KERNEL_OK")
</pallas_src>

<mosaic_0001>
module attributes {stable_mosaic.version = 11 : i64} {
  func.func @_gemm_bias_kernel(%arg0: i32, %arg1: memref<16x16xf32, #tpu.memory_space<vmem>>, %arg2: memref<16x1xf32, #tpu.memory_space<vmem>>, %arg3: memref<16x128xf32, #tpu.memory_space<vmem>>, %arg4: memref<16x128xf32, #tpu.memory_space<vmem>>) attributes {dimension_semantics = [#tpu.dimension_semantics<parallel>], iteration_bounds = array<i64: 1>, scalar_prefetch = 0 : i64, scratch_operands = 0 : i64, tpu.core_type = #tpu.core_type<tc>, window_params = [{pipeline_mode = #tpu.pipeline_mode<synchronous>, transform_indices = @transform_0, window_bounds = array<i64: 16, 16>}, {pipeline_mode = #tpu.pipeline_mode<synchronous>, transform_indices = @transform_1, window_bounds = array<i64: 16, 1>}, {transform_indices = @transform_2, window_bounds = array<i64: 16, 128>}, {transform_indices = @transform_3, window_bounds = array<i64: 16, 128>}]} {
    %c0 = arith.constant 0 : index
    %c0_0 = arith.constant 0 : index
    %0 = vector.load %arg1[%c0, %c0_0] : memref<16x16xf32, #tpu.memory_space<vmem>>, vector<16x16xf32>
    %1 = arith.truncf %0 : vector<16x16xf32> to vector<16x16xbf16>
    %c0_1 = arith.constant 0 : index
    %c0_2 = arith.constant 0 : index
    %2 = vector.load %arg3[%c0_1, %c0_2] : memref<16x128xf32, #tpu.memory_space<vmem>>, vector<16x128xf32>
    %3 = arith.truncf %2 : vector<16x128xf32> to vector<16x128xbf16>
    %cst = arith.constant dense<0.000000e+00> : vector<16x128xf32>
    %4 = tpu.matmul %1, %3, %cst {dimension_numbers = #tpu.dot_dimension_numbers<[1], [0], [0], [1], [0, 0, 1, 1], [], []>} : vector<16x16xbf16>, vector<16x128xbf16>, vector<16x128xf32> -> vector<16x128xf32>
    %c0_3 = arith.constant 0 : index
    %c0_4 = arith.constant 0 : index
    %5 = vector.load %arg2[%c0_3, %c0_4] : memref<16x1xf32, #tpu.memory_space<vmem>>, vector<16x1xf32>
    %6 = vector.broadcast %5 : vector<16x1xf32> to vector<16x128xf32>
    %7 = arith.addf %4, %6 : vector<16x128xf32>
    %c0_5 = arith.constant 0 : index
    %c0_6 = arith.constant 0 : index
    %8 = vector.load %arg4[%c0_5, %c0_6] : memref<16x128xf32, #tpu.memory_space<vmem>>, vector<16x128xf32>
    tpu.vector_store %arg4[%c0_5, %c0_6], %7 {strides = array<i32>} : memref<16x128xf32, #tpu.memory_space<vmem>>, vector<16x128xf32>,
    return
  }
  func.func @transform_0(%arg0: i32) -> (i32, i32) {
    %c0_i32 = arith.constant 0 : i32
    %c0_i32_0 = arith.constant 0 : i32
    %c0_i32_1 = arith.constant 0 : i32
    return %c0_i32, %c0_i32_0 : i32, i32
  }
  func.func @transform_1(%arg0: i32) -> (i32, i32) {
    %c0_i32 = arith.constant 0 : i32
    %c0_i32_0 = arith.constant 0 : i32
    %c0_i32_1 = arith.constant 0 : i32
    return %c0_i32, %c0_i32_0 : i32, i32
  }
  func.func @transform_2(%arg0: i32) -> (i32, i32) {
    %c0_i32 = arith.constant 0 : i32
    %c0_i32_0 = arith.constant 0 : i32
    return %c0_i32, %arg0 : i32, i32
  }
  func.func @transform_3(%arg0: i32) -> (i32, i32) {
    %c0_i32 = arith.constant 0 : i32
    %c0_i32_0 = arith.constant 0 : i32
    return %c0_i32, %arg0 : i32, i32
  }
}

module attributes {stable_mosaic.version = 11 : i64} {
  func.func @_coupling_net_kernel(%arg0: i32, %arg1: memref<64x72xbf16, #tpu.memory_space<vmem>>, %arg2: memref<64x1xf32, #tpu.memory_space<vmem>>, %arg3: memref<64x64xbf16, #tpu.memory_space<vmem>>, %arg4: memref<64x1xf32, #tpu.memory_space<vmem>>, %arg5: memref<72x128xbf16, #tpu.memory_space<vmem>>, %arg6: memref<64x128xbf16, #tpu.memory_space<vmem>>) attributes {dimension_semantics = [#tpu.dimension_semantics<parallel>], iteration_bounds = array<i64: 1>, scalar_prefetch = 0 : i64, scratch_operands = 0 : i64, tpu.core_type = #tpu.core_type<tc>, window_params = [{pipeline_mode = #tpu.pipeline_mode<synchronous>, transform_indices = @transform_0, window_bounds = array<i64: 64, 72>}, {pipeline_mode = #tpu.pipeline_mode<synchronous>, transform_indices = @transform_1, window_bounds = array<i64: 64, 1>}, {pipeline_mode = #tpu.pipeline_mode<synchronous>, transform_indices = @transform_2, window_bounds = array<i64: 64, 64>}, {pipeline_mode = #tpu.pipeline_mode<synchronous>, transform_indices = @transform_3, window_bounds = array<i64: 64, 1>}, {transform_indices = @transform_4, window_bounds = array<i64: 72, 128>}, {transform_indices = @transform_5, window_bounds = array<i64: 64, 128>}]} {
    %c0 = arith.constant 0 : index
    %c0_0 = arith.constant 0 : index
    %0 = vector.load %arg1[%c0, %c0_0] : memref<64x72xbf16, #tpu.memory_space<vmem>>, vector<64x72xbf16>
    %c0_1 = arith.constant 0 : index
    %c0_2 = arith.constant 0 : index
    %1 = vector.load %arg5[%c0_1, %c0_2] : memref<72x128xbf16, #tpu.memory_space<vmem>>, vector<72x128xbf16>
    %cst = arith.constant dense<0.000000e+00> : vector<64x128xf32>
    %2 = tpu.matmul %0, %1, %cst {dimension_numbers = #tpu.dot_dimension_numbers<[1], [0], [0], [1], [0, 0, 1, 1], [], []>} : vector<64x72xbf16>, vector<72x128xbf16>, vector<64x128xf32> -> vector<64x128xf32>
    %c0_3 = arith.constant 0 : index
    %c0_4 = arith.constant 0 : index
    %3 = vector.load %arg2[%c0_3, %c0_4] : memref<64x1xf32, #tpu.memory_space<vmem>>, vector<64x1xf32>
    %4 = vector.broadcast %3 : vector<64x1xf32> to vector<64x128xf32>
    %5 = arith.addf %2, %4 : vector<64x128xf32>
    %cst_5 = arith.constant 0.000000e+00 : f32
    %6 = vector.broadcast %cst_5 : f32 to vector<64x128xf32>
    %7 = arith.maximumf %5, %6 : vector<64x128xf32>
    %c0_6 = arith.constant 0 : index
    %c0_7 = arith.constant 0 : index
    %8 = vector.load %arg3[%c0_6, %c0_7] : memref<64x64xbf16, #tpu.memory_space<vmem>>, vector<64x64xbf16>
    %9 = arith.truncf %7 : vector<64x128xf32> to vector<64x128xbf16>
    %cst_8 = arith.constant dense<0.000000e+00> : vector<64x128xf32>
    %10 = tpu.matmul %8, %9, %cst_8 {dimension_numbers = #tpu.dot_dimension_numbers<[1], [0], [0], [1], [0, 0, 1, 1], [], []>} : vector<64x64xbf16>, vector<64x128xbf16>, vector<64x128xf32> -> vector<64x128xf32>
    %c0_9 = arith.constant 0 : index
    %c0_10 = arith.constant 0 : index
    %11 = vector.load %arg4[%c0_9, %c0_10] : memref<64x1xf32, #tpu.memory_space<vmem>>, vector<64x1xf32>
    %12 = vector.broadcast %11 : vector<64x1xf32> to vector<64x128xf32>
    %13 = arith.addf %10, %12 : vector<64x128xf32>
    %cst_11 = arith.constant 0.000000e+00 : f32
    %14 = vector.broadcast %cst_11 : f32 to vector<64x128xf32>
    %15 = arith.maximumf %13, %14 : vector<64x128xf32>
    %16 = arith.truncf %15 : vector<64x128xf32> to vector<64x128xbf16>
    %c0_12 = arith.constant 0 : index
    %c0_13 = arith.constant 0 : index
    %17 = vector.load %arg6[%c0_12, %c0_13] : memref<64x128xbf16, #tpu.memory_space<vmem>>, vector<64x128xbf16>
    tpu.vector_store %arg6[%c0_12, %c0_13], %16 {strides = array<i32>} : memref<64x128xbf16, #tpu.memory_space<vmem>>, vector<64x128xbf16>,
    return
  }
  func.func @transform_0(%arg0: i32) -> (i32, i32) {
    %c0_i32 = arith.constant 0 : i32
    %c0_i32_0 = arith.constant 0 : i32
    %c0_i32_1 = arith.constant 0 : i32
    return %c0_i32, %c0_i32_0 : i32, i32
  }
  func.func @transform_1(%arg0: i32) -> (i32, i32) {
    %c0_i32 = arith.constant 0 : i32
    %c0_i32_0 = arith.constant 0 : i32
    %c0_i32_1 = arith.constant 0 : i32
    return %c0_i32, %c0_i32_0 : i32, i32
  }
  func.func @transform_2(%arg0: i32) -> (i32, i32) {
    %c0_i32 = arith.constant 0 : i32
    %c0_i32_0 = arith.constant 0 : i32
    %c0_i32_1 = arith.constant 0 : i32
    return %c0_i32, %c0_i32_0 : i32, i32
  }
  func.func @transform_3(%arg0: i32) -> (i32, i32) {
    %c0_i32 = arith.constant 0 : i32
    %c0_i32_0 = arith.constant 0 : i32
    %c0_i32_1 = arith.constant 0 : i32
    return %c0_i32, %c0_i32_0 : i32, i32
  }
  func.func @transform_4(%arg0: i32) -> (i32, i32) {
    %c0_i32 = arith.constant 0 : i32
    %c0_i32_0 = arith.constant 0 : i32
    return %c0_i32, %arg0 : i32, i32
  }
  func.func @transform_5(%arg0: i32) -> (i32, i32) {
    %c0_i32 = arith.constant 0 : i32
    %c0_i32_0 = arith.constant 0 : i32
    return %c0_i32, %arg0 : i32, i32
  }
}

module attributes {stable_mosaic.version = 11 : i64} {
  func.func @_coupling_zero_fwd_kernel(%arg0: i32, %arg1: memref<16x576xbf16, #tpu.memory_space<vmem>>, %arg2: memref<16x1xf32, #tpu.memory_space<vmem>>, %arg3: memref<576x128xbf16, #tpu.memory_space<vmem>>, %arg4: memref<8x128xf32, #tpu.memory_space<vmem>>, %arg5: memref<8x128xf32, #tpu.memory_space<vmem>>, %arg6: memref<1x128xf32, #tpu.memory_space<vmem>>) attributes {dimension_semantics = [#tpu.dimension_semantics<parallel>], iteration_bounds = array<i64: 1>, scalar_prefetch = 0 : i64, scratch_operands = 0 : i64, tpu.core_type = #tpu.core_type<tc>, window_params = [{pipeline_mode = #tpu.pipeline_mode<synchronous>, transform_indices = @transform_0, window_bounds = array<i64: 16, 576>}, {pipeline_mode = #tpu.pipeline_mode<synchronous>, transform_indices = @transform_1, window_bounds = array<i64: 16, 1>}, {transform_indices = @transform_2, window_bounds = array<i64: 576, 128>}, {transform_indices = @transform_3, window_bounds = array<i64: 8, 128>}, {transform_indices = @transform_4, window_bounds = array<i64: 8, 128>}, {transform_indices = @transform_5, window_bounds = array<i64: 1, 128>}]} {
    %c0 = arith.constant 0 : index
    %c0_0 = arith.constant 0 : index
    %0 = vector.load %arg1[%c0, %c0_0] : memref<16x576xbf16, #tpu.memory_space<vmem>>, vector<16x576xbf16>
    %c0_1 = arith.constant 0 : index
    %c0_2 = arith.constant 0 : index
    %1 = vector.load %arg3[%c0_1, %c0_2] : memref<576x128xbf16, #tpu.memory_space<vmem>>, vector<576x128xbf16>
    %cst = arith.constant dense<0.000000e+00> : vector<16x128xf32>
    %2 = tpu.matmul %0, %1, %cst {dimension_numbers = #tpu.dot_dimension_numbers<[1], [0], [0], [1], [0, 0, 1, 1], [], []>} : vector<16x576xbf16>, vector<576x128xbf16>, vector<16x128xf32> -> vector<16x128xf32>
    %c0_3 = arith.constant 0 : index
    %c0_4 = arith.constant 0 : index
    %3 = vector.load %arg2[%c0_3, %c0_4] : memref<16x1xf32, #tpu.memory_space<vmem>>, vector<16x1xf32>
    %4 = vector.broadcast %3 : vector<16x1xf32> to vector<16x128xf32>
    %5 = arith.addf %2, %4 : vector<16x128xf32>
    %6 = vector.extract_strided_slice %5 {offsets = [0, 0], sizes = [8, 128], strides = [1, 1]} : vector<16x128xf32> to vector<8x128xf32>
    %7 = vector.extract_strided_slice %5 {offsets = [8, 0], sizes = [8, 128], strides = [1, 1]} : vector<16x128xf32> to vector<8x128xf32>
    %cst_5 = arith.constant 2.000000e+00 : f32
    %8 = vector.broadcast %cst_5 : f32 to vector<8x128xf32>
    %9 = arith.addf %6, %8 : vector<8x128xf32>
    %10 = arith.negf %9 : vector<8x128xf32>
    %11 = math.exp %10 : vector<8x128xf32>
    %cst_6 = arith.constant 1.000000e+00 : f32
    %12 = vector.broadcast %cst_6 : f32 to vector<8x128xf32>
    %13 = arith.addf %12, %11 : vector<8x128xf32>
    %14 = arith.divf %12, %13 : vector<8x128xf32>
    %c0_7 = arith.constant 0 : index
    %c0_8 = arith.constant 0 : index
    %15 = vector.load %arg4[%c0_7, %c0_8] : memref<8x128xf32, #tpu.memory_space<vmem>>, vector<8x128xf32>
    %16 = arith.addf %15, %7 : vector<8x128xf32>
    %17 = arith.mulf %16, %14 : vector<8x128xf32>
    %c0_9 = arith.constant 0 : index
    %c0_10 = arith.constant 0 : index
    %18 = vector.load %arg5[%c0_9, %c0_10] : memref<8x128xf32, #tpu.memory_space<vmem>>, vector<8x128xf32>
    tpu.vector_store %arg5[%c0_9, %c0_10], %17 {strides = array<i32>} : memref<8x128xf32, #tpu.memory_space<vmem>>, vector<8x128xf32>,
    %19 = math.log %14 : vector<8x128xf32>
    %cst_11 = arith.constant dense<0.000000e+00> : vector<128xf32>
    %20 = vector.multi_reduction <add>, %19, %cst_11 [0] : vector<8x128xf32> to vector<128xf32>
    %21 = vector.shape_cast %20 : vector<128xf32> to vector<1x128xf32>
    %c0_12 = arith.constant 0 : index
    %c0_13 = arith.constant 0 : index
    %22 = vector.load %arg6[%c0_12, %c0_13] : memref<1x128xf32, #tpu.memory_space<vmem>>, vector<1x128xf32>
    tpu.vector_store %arg6[%c0_12, %c0_13], %21 {strides = array<i32>} : memref<1x128xf32, #tpu.memory_space<vmem>>, vector<1x128xf32>,
    return
  }
  func.func @transform_0(%arg0: i32) -> (i32, i32) {
    %c0_i32 = arith.constant 0 : i32
    %c0_i32_0 = arith.constant 0 : i32
    %c0_i32_1 = arith.constant 0 : i32
    return %c0_i32, %c0_i32_0 : i32, i32
  }
  func.func @transform_1(%arg0: i32) -> (i32, i32) {
    %c0_i32 = arith.constant 0 : i32
    %c0_i32_0 = arith.constant 0 : i32
    %c0_i32_1 = arith.constant 0 : i32
    return %c0_i32, %c0_i32_0 : i32, i32
  }
  func.func @transform_2(%arg0: i32) -> (i32, i32) {
    %c0_i32 = arith.constant 0 : i32
    %c0_i32_0 = arith.constant 0 : i32
    return %c0_i32, %arg0 : i32, i32
  }
  func.func @transform_3(%arg0: i32) -> (i32, i32) {
    %c0_i32 = arith.constant 0 : i32
    %c0_i32_0 = arith.constant 0 : i32
    return %c0_i32, %arg0 : i32, i32
  }
  func.func @transform_4(%arg0: i32) -> (i32, i32) {
    %c0_i32 = arith.constant 0 : i32
    %c0_i32_0 = arith.constant 0 : i32
    return %c0_i32, %arg0 : i32, i32
  }
  func.func @transform_5(%arg0: i32) -> (i32, i32) {
    %c0_i32 = arith.constant 0 : i32
    %c0_i32_0 = arith.constant 0 : i32
    return %c0_i32, %arg0 : i32, i32
  }
}

module attributes {stable_mosaic.version = 11 : i64} {
  func.func @_prior_logp_kernel(%arg0: i32, %arg1: memref<16x72xbf16, #tpu.memory_space<vmem>>, %arg2: memref<16x1xf32, #tpu.memory_space<vmem>>, %arg3: memref<72x128xbf16, #tpu.memory_space<vmem>>, %arg4: memref<8x128xf32, #tpu.memory_space<vmem>>, %arg5: memref<1x128xf32, #tpu.memory_space<vmem>>) attributes {dimension_semantics = [#tpu.dimension_semantics<parallel>], iteration_bounds = array<i64: 1>, scalar_prefetch = 0 : i64, scratch_operands = 0 : i64, tpu.core_type = #tpu.core_type<tc>, window_params = [{pipeline_mode = #tpu.pipeline_mode<synchronous>, transform_indices = @transform_0, window_bounds = array<i64: 16, 72>}, {pipeline_mode = #tpu.pipeline_mode<synchronous>, transform_indices = @transform_1, window_bounds = array<i64: 16, 1>}, {transform_indices = @transform_2, window_bounds = array<i64: 72, 128>}, {transform_indices = @transform_3, window_bounds = array<i64: 8, 128>}, {transform_indices = @transform_4, window_bounds = array<i64: 1, 128>}]} {
    %c0 = arith.constant 0 : index
    %c0_0 = arith.constant 0 : index
    %0 = vector.load %arg1[%c0, %c0_0] : memref<16x72xbf16, #tpu.memory_space<vmem>>, vector<16x72xbf16>
    %c0_1 = arith.constant 0 : index
    %c0_2 = arith.constant 0 : index
    %1 = vector.load %arg3[%c0_1, %c0_2] : memref<72x128xbf16, #tpu.memory_space<vmem>>, vector<72x128xbf16>
    %cst = arith.constant dense<0.000000e+00> : vector<16x128xf32>
    %2 = tpu.matmul %0, %1, %cst {dimension_numbers = #tpu.dot_dimension_numbers<[1], [0], [0], [1], [0, 0, 1, 1], [], []>} : vector<16x72xbf16>, vector<72x128xbf16>, vector<16x128xf32> -> vector<16x128xf32>
    %c0_3 = arith.constant 0 : index
    %c0_4 = arith.constant 0 : index
    %3 = vector.load %arg2[%c0_3, %c0_4] : memref<16x1xf32, #tpu.memory_space<vmem>>, vector<16x1xf32>
    %4 = vector.broadcast %3 : vector<16x1xf32> to vector<16x128xf32>
    %5 = arith.addf %2, %4 : vector<16x128xf32>
    %6 = vector.extract_strided_slice %5 {offsets = [0, 0], sizes = [8, 128], strides = [1, 1]} : vector<16x128xf32> to vector<8x128xf32>
    %7 = vector.extract_strided_slice %5 {offsets = [8, 0], sizes = [8, 128], strides = [1, 1]} : vector<16x128xf32> to vector<8x128xf32>
    %cst_5 = arith.constant -0.918938517 : f32
    %8 = vector.broadcast %cst_5 : f32 to vector<8x128xf32>
    %9 = arith.subf %8, %7 : vector<8x128xf32>
    %c0_6 = arith.constant 0 : index
    %c0_7 = arith.constant 0 : index
    %10 = vector.load %arg4[%c0_6, %c0_7] : memref<8x128xf32, #tpu.memory_space<vmem>>, vector<8x128xf32>
    %11 = arith.subf %10, %6 : vector<8x128xf32>
    %12 = arith.mulf %11, %11 : vector<8x128xf32>
    %cst_8 = arith.constant 5.000000e-01 : f32
    %13 = vector.broadcast %cst_8 : f32 to vector<8x128xf32>
    %14 = arith.mulf %13, %12 : vector<8x128xf32>
    %cst_9 = arith.constant -2.000000e+00 : f32
    %15 = vector.broadcast %cst_9 : f32 to vector<8x128xf32>
    %16 = arith.mulf %15, %7 : vector<8x128xf32>
    %17 = math.exp %16 : vector<8x128xf32>
    %18 = arith.mulf %14, %17 : vector<8x128xf32>
    %19 = arith.subf %9, %18 : vector<8x128xf32>
    %cst_10 = arith.constant dense<0.000000e+00> : vector<128xf32>
    %20 = vector.multi_reduction <add>, %19, %cst_10 [0] : vector<8x128xf32> to vector<128xf32>
    %21 = vector.shape_cast %20 : vector<128xf32> to vector<1x128xf32>
    %c0_11 = arith.constant 0 : index
    %c0_12 = arith.constant 0 : index
    %22 = vector.load %arg5[%c0_11, %c0_12] : memref<1x128xf32, #tpu.memory_space<vmem>>, vector<1x128xf32>
    tpu.vector_store %arg5[%c0_11, %c0_12], %21 {strides = array<i32>} : memref<1x128xf32, #tpu.memory_space<vmem>>, vector<1x128xf32>,
    return
  }
  func.func @transform_0(%arg0: i32) -> (i32, i32) {
    %c0_i32 = arith.constant 0 : i32
    %c0_i32_0 = arith.constant 0 : i32
    %c0_i32_1 = arith.constant 0 : i32
    return %c0_i32, %c0_i32_0 : i32, i32
  }
  func.func @transform_1(%arg0: i32) -> (i32, i32) {
    %c0_i32 = arith.constant 0 : i32
    %c0_i32_0 = arith.constant 0 : i32
    %c0_i32_1 = arith.constant 0 : i32
    return %c0_i32, %c0_i32_0 : i32, i32
  }
  func.func @transform_2(%arg0: i32) -> (i32, i32) {
    %c0_i32 = arith.constant 0 : i32
    %c0_i32_0 = arith.constant 0 : i32
    return %c0_i32, %arg0 : i32, i32
  }
  func.func @transform_3(%arg0: i32) -> (i32, i32) {
    %c0_i32 = arith.constant 0 : i32
    %c0_i32_0 = arith.constant 0 : i32
    return %c0_i32, %arg0 : i32, i32
  }
  func.func @transform_4(%arg0: i32) -> (i32, i32) {
    %c0_i32 = arith.constant 0 : i32
    %c0_i32_0 = arith.constant 0 : i32
    return %c0_i32, %arg0 : i32, i32
  }
}

module attributes {stable_mosaic.version = 11 : i64} {
  func.func @_gemm_bias_kernel(%arg0: i32, %arg1: memref<32x32xf32, #tpu.memory_space<vmem>>, %arg2: memref<32x1xf32, #tpu.memory_space<vmem>>, %arg3: memref<32x32xf32, #tpu.memory_space<vmem>>, %arg4: memref<32x32xf32, #tpu.memory_space<vmem>>) attributes {dimension_semantics = [#tpu.dimension_semantics<parallel>], iteration_bounds = array<i64: 1>, scalar_prefetch = 0 : i64, scratch_operands = 0 : i64, tpu.core_type = #tpu.core_type<tc>, window_params = [{pipeline_mode = #tpu.pipeline_mode<synchronous>, transform_indices = @transform_0, window_bounds = array<i64: 32, 32>}, {pipeline_mode = #tpu.pipeline_mode<synchronous>, transform_indices = @transform_1, window_bounds = array<i64: 32, 1>}, {transform_indices = @transform_2, window_bounds = array<i64: 32, 32>}, {transform_indices = @transform_3, window_bounds = array<i64: 32, 32>}]} {
    %c0 = arith.constant 0 : index
    %c0_0 = arith.constant 0 : index
    %0 = vector.load %arg1[%c0, %c0_0] : memref<32x32xf32, #tpu.memory_space<vmem>>, vector<32x32xf32>
    %1 = arith.truncf %0 : vector<32x32xf32> to vector<32x32xbf16>
    %c0_1 = arith.constant 0 : index
    %c0_2 = arith.constant 0 : index
    %2 = vector.load %arg3[%c0_1, %c0_2] : memref<32x32xf32, #tpu.memory_space<vmem>>, vector<32x32xf32>
    %3 = arith.truncf %2 : vector<32x32xf32> to vector<32x32xbf16>
    %cst = arith.constant dense<0.000000e+00> : vector<32x32xf32>
    %4 = tpu.matmul %1, %3, %cst {dimension_numbers = #tpu.dot_dimension_numbers<[1], [0], [0], [1], [0, 0, 1, 1], [], []>} : vector<32x32xbf16>, vector<32x32xbf16>, vector<32x32xf32> -> vector<32x32xf32>
    %c0_3 = arith.constant 0 : index
    %c0_4 = arith.constant 0 : index
    %5 = vector.load %arg2[%c0_3, %c0_4] : memref<32x1xf32, #tpu.memory_space<vmem>>, vector<32x1xf32>
    %6 = vector.broadcast %5 : vector<32x1xf32> to vector<32x32xf32>
    %7 = arith.addf %4, %6 : vector<32x32xf32>
    %c0_5 = arith.constant 0 : index
    %c0_6 = arith.constant 0 : index
    %8 = vector.load %arg4[%c0_5, %c0_6] : memref<32x32xf32, #tpu.memory_space<vmem>>, vector<32x32xf32>
    tpu.vector_store %arg4[%c0_5, %c0_6], %7 {strides = array<i32>} : memref<32x32xf32, #tpu.memory_space<vmem>>, vector<32x32xf32>,
    return
  }
  func.func @transform_0(%arg0: i32) -> (i32, i32) {
    %c0_i32 = arith.constant 0 : i32
    %c0_i32_0 = arith.constant 0 : i32
    %c0_i32_1 = arith.constant 0 : i32
    return %c0_i32, %c0_i32_0 : i32, i32
  }
  func.func @transform_1(%arg0: i32) -> (i32, i32) {
    %c0_i32 = arith.constant 0 : i32
    %c0_i32_0 = arith.constant 0 : i32
    %c0_i32_1 = arith.constant 0 : i32
    return %c0_i32, %c0_i32_0 : i32, i32
  }
  func.func @transform_2(%arg0: i32) -> (i32, i32) {
    %c0_i32 = arith.constant 0 : i32
    %c0_i32_0 = arith.constant 0 : i32
    return %c0_i32, %arg0 : i32, i32
  }
  func.func @transform_3(%arg0: i32) -> (i32, i32) {
    %c0_i32 = arith.constant 0 : i32
    %c0_i32_0 = arith.constant 0 : i32
    return %c0_i32, %arg0 : i32, i32
  }
}

module attributes {stable_mosaic.version = 11 : i64} {
  func.func @_coupling_net_kernel(%arg0: i32, %arg1: memref<64x144xbf16, #tpu.memory_space<vmem>>, %arg2: memref<64x1xf32, #tpu.memory_space<vmem>>, %arg3: memref<64x64xbf16, #tpu.memory_space<vmem>>, %arg4: memref<64x1xf32, #tpu.memory_space<vmem>>, %arg5: memref<144x32xbf16, #tpu.memory_space<vmem>>, %arg6: memref<64x32xbf16, #tpu.memory_space<vmem>>) attributes {dimension_semantics = [#tpu.dimension_semantics<parallel>], iteration_bounds = array<i64: 1>, scalar_prefetch = 0 : i64, scratch_operands = 0 : i64, tpu.core_type = #tpu.core_type<tc>, window_params = [{pipeline_mode = #tpu.pipeline_mode<synchronous>, transform_indices = @transform_0, window_bounds = array<i64: 64, 144>}, {pipeline_mode = #tpu.pipeline_mode<synchronous>, transform_indices = @transform_1, window_bounds = array<i64: 64, 1>}, {pipeline_mode = #tpu.pipeline_mode<synchronous>, transform_indices = @transform_2, window_bounds = array<i64: 64, 64>}, {pipeline_mode = #tpu.pipeline_mode<synchronous>, transform_indices = @transform_3, window_bounds = array<i64: 64, 1>}, {transform_indices = @transform_4, window_bounds = array<i64: 144, 32>}, {transform_indices = @transform_5, window_bounds = array<i64: 64, 32>}]} {
    %c0 = arith.constant 0 : index
    %c0_0 = arith.constant 0 : index
    %0 = vector.load %arg1[%c0, %c0_0] : memref<64x144xbf16, #tpu.memory_space<vmem>>, vector<64x144xbf16>
    %c0_1 = arith.constant 0 : index
    %c0_2 = arith.constant 0 : index
    %1 = vector.load %arg5[%c0_1, %c0_2] : memref<144x32xbf16, #tpu.memory_space<vmem>>, vector<144x32xbf16>
    %cst = arith.constant dense<0.000000e+00> : vector<64x32xf32>
    %2 = tpu.matmul %0, %1, %cst {dimension_numbers = #tpu.dot_dimension_numbers<[1], [0], [0], [1], [0, 0, 1, 1], [], []>} : vector<64x144xbf16>, vector<144x32xbf16>, vector<64x32xf32> -> vector<64x32xf32>
    %c0_3 = arith.constant 0 : index
    %c0_4 = arith.constant 0 : index
    %3 = vector.load %arg2[%c0_3, %c0_4] : memref<64x1xf32, #tpu.memory_space<vmem>>, vector<64x1xf32>
    %4 = vector.broadcast %3 : vector<64x1xf32> to vector<64x32xf32>
    %5 = arith.addf %2, %4 : vector<64x32xf32>
    %cst_5 = arith.constant 0.000000e+00 : f32
    %6 = vector.broadcast %cst_5 : f32 to vector<64x32xf32>
    %7 = arith.maximumf %5, %6 : vector<64x32xf32>
    %c0_6 = arith.constant 0 : index
    %c0_7 = arith.constant 0 : index
    %8 = vector.load %arg3[%c0_6, %c0_7] : memref<64x64xbf16, #tpu.memory_space<vmem>>, vector<64x64xbf16>
    %9 = arith.truncf %7 : vector<64x32xf32> to vector<64x32xbf16>
    %cst_8 = arith.constant dense<0.000000e+00> : vector<64x32xf32>
    %10 = tpu.matmul %8, %9, %cst_8 {dimension_numbers = #tpu.dot_dimension_numbers<[1], [0], [0], [1], [0, 0, 1, 1], [], []>} : vector<64x64xbf16>, vector<64x32xbf16>, vector<64x32xf32> -> vector<64x32xf32>
    %c0_9 = arith.constant 0 : index
    %c0_10 = arith.constant 0 : index
    %11 = vector.load %arg4[%c0_9, %c0_10] : memref<64x1xf32, #tpu.memory_space<vmem>>, vector<64x1xf32>
    %12 = vector.broadcast %11 : vector<64x1xf32> to vector<64x32xf32>
    %13 = arith.addf %10, %12 : vector<64x32xf32>
    %cst_11 = arith.constant 0.000000e+00 : f32
    %14 = vector.broadcast %cst_11 : f32 to vector<64x32xf32>
    %15 = arith.maximumf %13, %14 : vector<64x32xf32>
    %16 = arith.truncf %15 : vector<64x32xf32> to vector<64x32xbf16>
    %c0_12 = arith.constant 0 : index
    %c0_13 = arith.constant 0 : index
    %17 = vector.load %arg6[%c0_12, %c0_13] : memref<64x32xbf16, #tpu.memory_space<vmem>>, vector<64x32xbf16>
    tpu.vector_store %arg6[%c0_12, %c0_13], %16 {strides = array<i32>} : memref<64x32xbf16, #tpu.memory_space<vmem>>, vector<64x32xbf16>,
    return
  }
  func.func @transform_0(%arg0: i32) -> (i32, i32) {
    %c0_i32 = arith.constant 0 : i32
    %c0_i32_0 = arith.constant 0 : i32
    %c0_i32_1 = arith.constant 0 : i32
    return %c0_i32, %c0_i32_0 : i32, i32
  }
  func.func @transform_1(%arg0: i32) -> (i32, i32) {
    %c0_i32 = arith.constant 0 : i32
    %c0_i32_0 = arith.constant 0 : i32
    %c0_i32_1 = arith.constant 0 : i32
    return %c0_i32, %c0_i32_0 : i32, i32
  }
  func.func @transform_2(%arg0: i32) -> (i32, i32) {
    %c0_i32 = arith.constant 0 : i32
    %c0_i32_0 = arith.constant 0 : i32
    %c0_i32_1 = arith.constant 0 : i32
    return %c0_i32, %c0_i32_0 : i32, i32
  }
  func.func @transform_3(%arg0: i32) -> (i32, i32) {
    %c0_i32 = arith.constant 0 : i32
    %c0_i32_0 = arith.constant 0 : i32
    %c0_i32_1 = arith.constant 0 : i32
    return %c0_i32, %c0_i32_0 : i32, i32
  }
  func.func @transform_4(%arg0: i32) -> (i32, i32) {
    %c0_i32 = arith.constant 0 : i32
    %c0_i32_0 = arith.constant 0 : i32
    return %c0_i32, %arg0 : i32, i32
  }
  func.func @transform_5(%arg0: i32) -> (i32, i32) {
    %c0_i32 = arith.constant 0 : i32
    %c0_i32_0 = arith.constant 0 : i32
    return %c0_i32, %arg0 : i32, i32
  }
}

module attributes {stable_mosaic.version = 11 : i64} {
  func.func @_coupling_zero_fwd_kernel(%arg0: i32, %arg1: memref<32x576xbf16, #tpu.memory_space<vmem>>, %arg2: memref<32x1xf32, #tpu.memory_space<vmem>>, %arg3: memref<576x32xbf16, #tpu.memory_space<vmem>>, %arg4: memref<16x32xf32, #tpu.memory_space<vmem>>, %arg5: memref<16x32xf32, #tpu.memory_space<vmem>>, %arg6: memref<1x32xf32, #tpu.memory_space<vmem>>) attributes {dimension_semantics = [#tpu.dimension_semantics<parallel>], iteration_bounds = array<i64: 1>, scalar_prefetch = 0 : i64, scratch_operands = 0 : i64, tpu.core_type = #tpu.core_type<tc>, window_params = [{pipeline_mode = #tpu.pipeline_mode<synchronous>, transform_indices = @transform_0, window_bounds = array<i64: 32, 576>}, {pipeline_mode = #tpu.pipeline_mode<synchronous>, transform_indices = @transform_1, window_bounds = array<i64: 32, 1>}, {transform_indices = @transform_2, window_bounds = array<i64: 576, 32>}, {transform_indices = @transform_3, window_bounds = array<i64: 16, 32>}, {transform_indices = @transform_4, window_bounds = array<i64: 16, 32>}, {transform_indices = @transform_5, window_bounds = array<i64: 1, 32>}]} {
    %c0 = arith.constant 0 : index
    %c0_0 = arith.constant 0 : index
    %0 = vector.load %arg1[%c0, %c0_0] : memref<32x576xbf16, #tpu.memory_space<vmem>>, vector<32x576xbf16>
    %c0_1 = arith.constant 0 : index
    %c0_2 = arith.constant 0 : index
    %1 = vector.load %arg3[%c0_1, %c0_2] : memref<576x32xbf16, #tpu.memory_space<vmem>>, vector<576x32xbf16>
    %cst = arith.constant dense<0.000000e+00> : vector<32x32xf32>
    %2 = tpu.matmul %0, %1, %cst {dimension_numbers = #tpu.dot_dimension_numbers<[1], [0], [0], [1], [0, 0, 1, 1], [], []>} : vector<32x576xbf16>, vector<576x32xbf16>, vector<32x32xf32> -> vector<32x32xf32>
    %c0_3 = arith.constant 0 : index
    %c0_4 = arith.constant 0 : index
    %3 = vector.load %arg2[%c0_3, %c0_4] : memref<32x1xf32, #tpu.memory_space<vmem>>, vector<32x1xf32>
    %4 = vector.broadcast %3 : vector<32x1xf32> to vector<32x32xf32>
    %5 = arith.addf %2, %4 : vector<32x32xf32>
    %6 = vector.extract_strided_slice %5 {offsets = [0, 0], sizes = [16, 32], strides = [1, 1]} : vector<32x32xf32> to vector<16x32xf32>
    %7 = vector.extract_strided_slice %5 {offsets = [16, 0], sizes = [16, 32], strides = [1, 1]} : vector<32x32xf32> to vector<16x32xf32>
    %cst_5 = arith.constant 2.000000e+00 : f32
    %8 = vector.broadcast %cst_5 : f32 to vector<16x32xf32>
    %9 = arith.addf %6, %8 : vector<16x32xf32>
    %10 = arith.negf %9 : vector<16x32xf32>
    %11 = math.exp %10 : vector<16x32xf32>
    %cst_6 = arith.constant 1.000000e+00 : f32
    %12 = vector.broadcast %cst_6 : f32 to vector<16x32xf32>
    %13 = arith.addf %12, %11 : vector<16x32xf32>
    %14 = arith.divf %12, %13 : vector<16x32xf32>
    %c0_7 = arith.constant 0 : index
    %c0_8 = arith.constant 0 : index
    %15 = vector.load %arg4[%c0_7, %c0_8] : memref<16x32xf32, #tpu.memory_space<vmem>>, vector<16x32xf32>
    %16 = arith.addf %15, %7 : vector<16x32xf32>
    %17 = arith.mulf %16, %14 : vector<16x32xf32>
    %c0_9 = arith.constant 0 : index
    %c0_10 = arith.constant 0 : index
    %18 = vector.load %arg5[%c0_9, %c0_10] : memref<16x32xf32, #tpu.memory_space<vmem>>, vector<16x32xf32>
    tpu.vector_store %arg5[%c0_9, %c0_10], %17 {strides = array<i32>} : memref<16x32xf32, #tpu.memory_space<vmem>>, vector<16x32xf32>,
    %19 = math.log %14 : vector<16x32xf32>
    %cst_11 = arith.constant dense<0.000000e+00> : vector<32xf32>
    %20 = vector.multi_reduction <add>, %19, %cst_11 [0] : vector<16x32xf32> to vector<32xf32>
    %21 = vector.shape_cast %20 : vector<32xf32> to vector<1x32xf32>
    %c0_12 = arith.constant 0 : index
    %c0_13 = arith.constant 0 : index
    %22 = vector.load %arg6[%c0_12, %c0_13] : memref<1x32xf32, #tpu.memory_space<vmem>>, vector<1x32xf32>
    tpu.vector_store %arg6[%c0_12, %c0_13], %21 {strides = array<i32>} : memref<1x32xf32, #tpu.memory_space<vmem>>, vector<1x32xf32>,
    return
  }
  func.func @transform_0(%arg0: i32) -> (i32, i32) {
    %c0_i32 = arith.constant 0 : i32
    %c0_i32_0 = arith.constant 0 : i32
    %c0_i32_1 = arith.constant 0 : i32
    return %c0_i32, %c0_i32_0 : i32, i32
  }
  func.func @transform_1(%arg0: i32) -> (i32, i32) {
    %c0_i32 = arith.constant 0 : i32
    %c0_i32_0 = arith.constant 0 : i32
    %c0_i32_1 = arith.constant 0 : i32
    return %c0_i32, %c0_i32_0 : i32, i32
  }
  func.func @transform_2(%arg0: i32) -> (i32, i32) {
    %c0_i32 = arith.constant 0 : i32
    %c0_i32_0 = arith.constant 0 : i32
    return %c0_i32, %arg0 : i32, i32
  }
  func.func @transform_3(%arg0: i32) -> (i32, i32) {
    %c0_i32 = arith.constant 0 : i32
    %c0_i32_0 = arith.constant 0 : i32
    return %c0_i32, %arg0 : i32, i32
  }
  func.func @transform_4(%arg0: i32) -> (i32, i32) {
    %c0_i32 = arith.constant 0 : i32
    %c0_i32_0 = arith.constant 0 : i32
    return %c0_i32, %arg0 : i32, i32
  }
  func.func @transform_5(%arg0: i32) -> (i32, i32) {
    %c0_i32 = arith.constant 0 : i32
    %c0_i32_0 = arith.constant 0 : i32
    return %c0_i32, %arg0 : i32, i32
  }
}

module attributes {stable_mosaic.version = 11 : i64} {
  func.func @_gauss_logp_kernel(%arg0: i32, %arg1: memref<32x32xf32, #tpu.memory_space<vmem>>, %arg2: memref<32x32xf32, #tpu.memory_space<vmem>>, %arg3: memref<32x32xf32, #tpu.memory_space<vmem>>, %arg4: memref<1x32xf32, #tpu.memory_space<vmem>>) attributes {dimension_semantics = [#tpu.dimension_semantics<parallel>], iteration_bounds = array<i64: 1>, scalar_prefetch = 0 : i64, scratch_operands = 0 : i64, tpu.core_type = #tpu.core_type<tc>, window_params = [{transform_indices = @transform_0, window_bounds = array<i64: 32, 32>}, {transform_indices = @transform_1, window_bounds = array<i64: 32, 32>}, {transform_indices = @transform_2, window_bounds = array<i64: 32, 32>}, {transform_indices = @transform_3, window_bounds = array<i64: 1, 32>}]} {
    %c0 = arith.constant 0 : index
    %c0_0 = arith.constant 0 : index
    %0 = vector.load %arg3[%c0, %c0_0] : memref<32x32xf32, #tpu.memory_space<vmem>>, vector<32x32xf32>
    %cst = arith.constant -0.918938517 : f32
    %1 = vector.broadcast %cst : f32 to vector<32x32xf32>
    %2 = arith.subf %1, %0 : vector<32x32xf32>
    %c0_1 = arith.constant 0 : index
    %c0_2 = arith.constant 0 : index
    %3 = vector.load %arg1[%c0_1, %c0_2] : memref<32x32xf32, #tpu.memory_space<vmem>>, vector<32x32xf32>
    %c0_3 = arith.constant 0 : index
    %c0_4 = arith.constant 0 : index
    %4 = vector.load %arg2[%c0_3, %c0_4] : memref<32x32xf32, #tpu.memory_space<vmem>>, vector<32x32xf32>
    %5 = arith.subf %3, %4 : vector<32x32xf32>
    %6 = arith.mulf %5, %5 : vector<32x32xf32>
    %cst_5 = arith.constant 5.000000e-01 : f32
    %7 = vector.broadcast %cst_5 : f32 to vector<32x32xf32>
    %8 = arith.mulf %7, %6 : vector<32x32xf32>
    %cst_6 = arith.constant -2.000000e+00 : f32
    %9 = vector.broadcast %cst_6 : f32 to vector<32x32xf32>
    %10 = arith.mulf %9, %0 : vector<32x32xf32>
    %11 = math.exp %10 : vector<32x32xf32>
    %12 = arith.mulf %8, %11 : vector<32x32xf32>
    %13 = arith.subf %2, %12 : vector<32x32xf32>
    %cst_7 = arith.constant dense<0.000000e+00> : vector<32xf32>
    %14 = vector.multi_reduction <add>, %13, %cst_7 [0] : vector<32x32xf32> to vector<32xf32>
    %15 = vector.shape_cast %14 : vector<32xf32> to vector<1x32xf32>
    %c0_8 = arith.constant 0 : index
    %c0_9 = arith.constant 0 : index
    %16 = vector.load %arg4[%c0_8, %c0_9] : memref<1x32xf32, #tpu.memory_space<vmem>>, vector<1x32xf32>
    tpu.vector_store %arg4[%c0_8, %c0_9], %15 {strides = array<i32>} : memref<1x32xf32, #tpu.memory_space<vmem>>, vector<1x32xf32>,
    return
  }
  func.func @transform_0(%arg0: i32) -> (i32, i32) {
    %c0_i32 = arith.constant 0 : i32
    %c0_i32_0 = arith.constant 0 : i32
    return %c0_i32, %arg0 : i32, i32
  }
  func.func @transform_1(%arg0: i32) -> (i32, i32) {
    %c0_i32 = arith.constant 0 : i32
    %c0_i32_0 = arith.constant 0 : i32
    return %c0_i32, %arg0 : i32, i32
  }
  func.func @transform_2(%arg0: i32) -> (i32, i32) {
    %c0_i32 = arith.constant 0 : i32
    %c0_i32_0 = arith.constant 0 : i32
    return %c0_i32, %arg0 : i32, i32
  }
  func.func @transform_3(%arg0: i32) -> (i32, i32) {
    %c0_i32 = arith.constant 0 : i32
    %c0_i32_0 = arith.constant 0 : i32
    return %c0_i32, %arg0 : i32, i32
  }
}

module attributes {stable_mosaic.version = 11 : i64} {
  func.func @_coupling_zero_rev_kernel(%arg0: i32, %arg1: memref<32x576xbf16, #tpu.memory_space<vmem>>, %arg2: memref<32x1xf32, #tpu.memory_space<vmem>>, %arg3: memref<576x32xbf16, #tpu.memory_space<vmem>>, %arg4: memref<16x32xf32, #tpu.memory_space<vmem>>, %arg5: memref<16x32xf32, #tpu.memory_space<vmem>>) attributes {dimension_semantics = [#tpu.dimension_semantics<parallel>], iteration_bounds = array<i64: 1>, scalar_prefetch = 0 : i64, scratch_operands = 0 : i64, tpu.core_type = #tpu.core_type<tc>, window_params = [{pipeline_mode = #tpu.pipeline_mode<synchronous>, transform_indices = @transform_0, window_bounds = array<i64: 32, 576>}, {pipeline_mode = #tpu.pipeline_mode<synchronous>, transform_indices = @transform_1, window_bounds = array<i64: 32, 1>}, {transform_indices = @transform_2, window_bounds = array<i64: 576, 32>}, {transform_indices = @transform_3, window_bounds = array<i64: 16, 32>}, {transform_indices = @transform_4, window_bounds = array<i64: 16, 32>}]} {
    %c0 = arith.constant 0 : index
    %c0_0 = arith.constant 0 : index
    %0 = vector.load %arg1[%c0, %c0_0] : memref<32x576xbf16, #tpu.memory_space<vmem>>, vector<32x576xbf16>
    %c0_1 = arith.constant 0 : index
    %c0_2 = arith.constant 0 : index
    %1 = vector.load %arg3[%c0_1, %c0_2] : memref<576x32xbf16, #tpu.memory_space<vmem>>, vector<576x32xbf16>
    %cst = arith.constant dense<0.000000e+00> : vector<32x32xf32>
    %2 = tpu.matmul %0, %1, %cst {dimension_numbers = #tpu.dot_dimension_numbers<[1], [0], [0], [1], [0, 0, 1, 1], [], []>} : vector<32x576xbf16>, vector<576x32xbf16>, vector<32x32xf32> -> vector<32x32xf32>
    %c0_3 = arith.constant 0 : index
    %c0_4 = arith.constant 0 : index
    %3 = vector.load %arg2[%c0_3, %c0_4] : memref<32x1xf32, #tpu.memory_space<vmem>>, vector<32x1xf32>
    %4 = vector.broadcast %3 : vector<32x1xf32> to vector<32x32xf32>
    %5 = arith.addf %2, %4 : vector<32x32xf32>
    %6 = vector.extract_strided_slice %5 {offsets = [0, 0], sizes = [16, 32], strides = [1, 1]} : vector<32x32xf32> to vector<16x32xf32>
    %7 = vector.extract_strided_slice %5 {offsets = [16, 0], sizes = [16, 32], strides = [1, 1]} : vector<32x32xf32> to vector<16x32xf32>
    %cst_5 = arith.constant 2.000000e+00 : f32
    %8 = vector.broadcast %cst_5 : f32 to vector<16x32xf32>
    %9 = arith.addf %6, %8 : vector<16x32xf32>
    %10 = arith.negf %9 : vector<16x32xf32>
    %11 = math.exp %10 : vector<16x32xf32>
    %cst_6 = arith.constant 1.000000e+00 : f32
    %12 = vector.broadcast %cst_6 : f32 to vector<16x32xf32>
    %13 = arith.addf %12, %11 : vector<16x32xf32>
    %14 = arith.divf %12, %13 : vector<16x32xf32>
    %c0_7 = arith.constant 0 : index
    %c0_8 = arith.constant 0 : index
    %15 = vector.load %arg4[%c0_7, %c0_8] : memref<16x32xf32, #tpu.memory_space<vmem>>, vector<16x32xf32>
    %16 = arith.divf %15, %14 : vector<16x32xf32>
    %17 = arith.subf %16, %7 : vector<16x32xf32>
    %c0_9 = arith.constant 0 : index
    %c0_10 = arith.constant 0 : index
    %18 = vector.load %arg5[%c0_9, %c0_10] : memref<16x32xf32, #tpu.memory_space<vmem>>, vector<16x32xf32>
    tpu.vector_store %arg5[%c0_9, %c0_10], %17 {strides = array<i32>} : memref<16x32xf32, #tpu.memory_space<vmem>>, vector<16x32xf32>,
    return
  }
  func.func @transform_0(%arg0: i32) -> (i32, i32) {
    %c0_i32 = arith.constant 0 : i32
    %c0_i32_0 = arith.constant 0 : i32
    %c0_i32_1 = arith.constant 0 : i32
    return %c0_i32, %c0_i32_0 : i32, i32
  }
  func.func @transform_1(%arg0: i32) -> (i32, i32) {
    %c0_i32 = arith.constant 0 : i32
    %c0_i32_0 = arith.constant 0 : i32
    %c0_i32_1 = arith.constant 0 : i32
    return %c0_i32, %c0_i32_0 : i32, i32
  }
  func.func @transform_2(%arg0: i32) -> (i32, i32) {
    %c0_i32 = arith.constant 0 : i32
    %c0_i32_0 = arith.constant 0 : i32
    return %c0_i32, %arg0 : i32, i32
  }
  func.func @transform_3(%arg0: i32) -> (i32, i32) {
    %c0_i32 = arith.constant 0 : i32
    %c0_i32_0 = arith.constant 0 : i32
    return %c0_i32, %arg0 : i32, i32
  }
  func.func @transform_4(%arg0: i32) -> (i32, i32) {
    %c0_i32 = arith.constant 0 : i32
    %c0_i32_0 = arith.constant 0 : i32
    return %c0_i32, %arg0 : i32, i32
  }
}

module attributes {stable_mosaic.version = 11 : i64} {
  func.func @_gauss_sample_kernel(%arg0: i32, %arg1: memref<32x32xf32, #tpu.memory_space<vmem>>, %arg2: memref<32x32xf32, #tpu.memory_space<vmem>>, %arg3: memref<32x32xf32, #tpu.memory_space<vmem>>, %arg4: memref<32x32xf32, #tpu.memory_space<vmem>>) attributes {dimension_semantics = [#tpu.dimension_semantics<parallel>], iteration_bounds = array<i64: 1>, scalar_prefetch = 0 : i64, scratch_operands = 0 : i64, tpu.core_type = #tpu.core_type<tc>, window_params = [{transform_indices = @transform_0, window_bounds = array<i64: 32, 32>}, {transform_indices = @transform_1, window_bounds = array<i64: 32, 32>}, {transform_indices = @transform_2, window_bounds = array<i64: 32, 32>}, {transform_indices = @transform_3, window_bounds = array<i64: 32, 32>}]} {
    %c0 = arith.constant 0 : index
    %c0_0 = arith.constant 0 : index
    %0 = vector.load %arg2[%c0, %c0_0] : memref<32x32xf32, #tpu.memory_space<vmem>>, vector<32x32xf32>
    %c0_1 = arith.constant 0 : index
    %c0_2 = arith.constant 0 : index
    %1 = vector.load %arg3[%c0_1, %c0_2] : memref<32x32xf32, #tpu.memory_space<vmem>>, vector<32x32xf32>
    %2 = math.exp %1 : vector<32x32xf32>
    %c0_3 = arith.constant 0 : index
    %c0_4 = arith.constant 0 : index
    %3 = vector.load %arg1[%c0_3, %c0_4] : memref<32x32xf32, #tpu.memory_space<vmem>>, vector<32x32xf32>
    %4 = arith.mulf %2, %3 : vector<32x32xf32>
    %5 = arith.addf %0, %4 : vector<32x32xf32>
    %c0_5 = arith.constant 0 : index
    %c0_6 = arith.constant 0 : index
    %6 = vector.load %arg4[%c0_5, %c0_6] : memref<32x32xf32, #tpu.memory_space<vmem>>, vector<32x32xf32>
    tpu.vector_store %arg4[%c0_5, %c0_6], %5 {strides = array<i32>} : memref<32x32xf32, #tpu.memory_space<vmem>>, vector<32x32xf32>,
    return
  }
  func.func @transform_0(%arg0: i32) -> (i32, i32) {
    %c0_i32 = arith.constant 0 : i32
    %c0_i32_0 = arith.constant 0 : i32
    return %c0_i32, %arg0 : i32, i32
  }
  func.func @transform_1(%arg0: i32) -> (i32, i32) {
    %c0_i32 = arith.constant 0 : i32
    %c0_i32_0 = arith.constant 0 : i32
    return %c0_i32, %arg0 : i32, i32
  }
  func.func @transform_2(%arg0: i32) -> (i32, i32) {
    %c0_i32 = arith.constant 0 : i32
    %c0_i32_0 = arith.constant 0 : i32
    return %c0_i32, %arg0 : i32, i32
  }
  func.func @transform_3(%arg0: i32) -> (i32, i32) {
    %c0_i32 = arith.constant 0 : i32
    %c0_i32_0 = arith.constant 0 : i32
    return %c0_i32, %arg0 : i32, i32
  }
}

module attributes {stable_mosaic.version = 11 : i64} {
  func.func @_coupling_zero_rev_kernel(%arg0: i32, %arg1: memref<16x576xbf16, #tpu.memory_space<vmem>>, %arg2: memref<16x1xf32, #tpu.memory_space<vmem>>, %arg3: memref<576x128xbf16, #tpu.memory_space<vmem>>, %arg4: memref<8x128xf32, #tpu.memory_space<vmem>>, %arg5: memref<8x128xf32, #tpu.memory_space<vmem>>) attributes {dimension_semantics = [#tpu.dimension_semantics<parallel>], iteration_bounds = array<i64: 1>, scalar_prefetch = 0 : i64, scratch_operands = 0 : i64, tpu.core_type = #tpu.core_type<tc>, window_params = [{pipeline_mode = #tpu.pipeline_mode<synchronous>, transform_indices = @transform_0, window_bounds = array<i64: 16, 576>}, {pipeline_mode = #tpu.pipeline_mode<synchronous>, transform_indices = @transform_1, window_bounds = array<i64: 16, 1>}, {transform_indices = @transform_2, window_bounds = array<i64: 576, 128>}, {transform_indices = @transform_3, window_bounds = array<i64: 8, 128>}, {transform_indices = @transform_4, window_bounds = array<i64: 8, 128>}]} {
    %c0 = arith.constant 0 : index
    %c0_0 = arith.constant 0 : index
    %0 = vector.load %arg1[%c0, %c0_0] : memref<16x576xbf16, #tpu.memory_space<vmem>>, vector<16x576xbf16>
    %c0_1 = arith.constant 0 : index
    %c0_2 = arith.constant 0 : index
    %1 = vector.load %arg3[%c0_1, %c0_2] : memref<576x128xbf16, #tpu.memory_space<vmem>>, vector<576x128xbf16>
    %cst = arith.constant dense<0.000000e+00> : vector<16x128xf32>
    %2 = tpu.matmul %0, %1, %cst {dimension_numbers = #tpu.dot_dimension_numbers<[1], [0], [0], [1], [0, 0, 1, 1], [], []>} : vector<16x576xbf16>, vector<576x128xbf16>, vector<16x128xf32> -> vector<16x128xf32>
    %c0_3 = arith.constant 0 : index
    %c0_4 = arith.constant 0 : index
    %3 = vector.load %arg2[%c0_3, %c0_4] : memref<16x1xf32, #tpu.memory_space<vmem>>, vector<16x1xf32>
    %4 = vector.broadcast %3 : vector<16x1xf32> to vector<16x128xf32>
    %5 = arith.addf %2, %4 : vector<16x128xf32>
    %6 = vector.extract_strided_slice %5 {offsets = [0, 0], sizes = [8, 128], strides = [1, 1]} : vector<16x128xf32> to vector<8x128xf32>
    %7 = vector.extract_strided_slice %5 {offsets = [8, 0], sizes = [8, 128], strides = [1, 1]} : vector<16x128xf32> to vector<8x128xf32>
    %cst_5 = arith.constant 2.000000e+00 : f32
    %8 = vector.broadcast %cst_5 : f32 to vector<8x128xf32>
    %9 = arith.addf %6, %8 : vector<8x128xf32>
    %10 = arith.negf %9 : vector<8x128xf32>
    %11 = math.exp %10 : vector<8x128xf32>
    %cst_6 = arith.constant 1.000000e+00 : f32
    %12 = vector.broadcast %cst_6 : f32 to vector<8x128xf32>
    %13 = arith.addf %12, %11 : vector<8x128xf32>
    %14 = arith.divf %12, %13 : vector<8x128xf32>
    %c0_7 = arith.constant 0 : index
    %c0_8 = arith.constant 0 : index
    %15 = vector.load %arg4[%c0_7, %c0_8] : memref<8x128xf32, #tpu.memory_space<vmem>>, vector<8x128xf32>
    %16 = arith.divf %15, %14 : vector<8x128xf32>
    %17 = arith.subf %16, %7 : vector<8x128xf32>
    %c0_9 = arith.constant 0 : index
    %c0_10 = arith.constant 0 : index
    %18 = vector.load %arg5[%c0_9, %c0_10] : memref<8x128xf32, #tpu.memory_space<vmem>>, vector<8x128xf32>
    tpu.vector_store %arg5[%c0_9, %c0_10], %17 {strides = array<i32>} : memref<8x128xf32, #tpu.memory_space<vmem>>, vector<8x128xf32>,
    return
  }
  func.func @transform_0(%arg0: i32) -> (i32, i32) {
    %c0_i32 = arith.constant 0 : i32
    %c0_i32_0 = arith.constant 0 : i32
    %c0_i32_1 = arith.constant 0 : i32
    return %c0_i32, %c0_i32_0 : i32, i32
  }
  func.func @transform_1(%arg0: i32) -> (i32, i32) {
    %c0_i32 = arith.constant 0 : i32
    %c0_i32_0 = arith.constant 0 : i32
    %c0_i32_1 = arith.constant 0 : i32
    return %c0_i32, %c0_i32_0 : i32, i32
  }
  func.func @transform_2(%arg0: i32) -> (i32, i32) {
    %c0_i32 = arith.constant 0 : i32
    %c0_i32_0 = arith.constant 0 : i32
    return %c0_i32, %arg0 : i32, i32
  }
  func.func @transform_3(%arg0: i32) -> (i32, i32) {
    %c0_i32 = arith.constant 0 : i32
    %c0_i32_0 = arith.constant 0 : i32
    return %c0_i32, %arg0 : i32, i32
  }
  func.func @transform_4(%arg0: i32) -> (i32, i32) {
    %c0_i32 = arith.constant 0 : i32
    %c0_i32_0 = arith.constant 0 : i32
    return %c0_i32, %arg0 : i32, i32
  }
}

module attributes {stable_mosaic.version = 11 : i64} {
  func.func @_prior_sample_kernel(%arg0: i32, %arg1: memref<16x72xbf16, #tpu.memory_space<vmem>>, %arg2: memref<16x1xf32, #tpu.memory_space<vmem>>, %arg3: memref<72x128xbf16, #tpu.memory_space<vmem>>, %arg4: memref<8x128xf32, #tpu.memory_space<vmem>>, %arg5: memref<8x128xf32, #tpu.memory_space<vmem>>) attributes {dimension_semantics = [#tpu.dimension_semantics<parallel>], iteration_bounds = array<i64: 1>, scalar_prefetch = 0 : i64, scratch_operands = 0 : i64, tpu.core_type = #tpu.core_type<tc>, window_params = [{pipeline_mode = #tpu.pipeline_mode<synchronous>, transform_indices = @transform_0, window_bounds = array<i64: 16, 72>}, {pipeline_mode = #tpu.pipeline_mode<synchronous>, transform_indices = @transform_1, window_bounds = array<i64: 16, 1>}, {transform_indices = @transform_2, window_bounds = array<i64: 72, 128>}, {transform_indices = @transform_3, window_bounds = array<i64: 8, 128>}, {transform_indices = @transform_4, window_bounds = array<i64: 8, 128>}]} {
    %c0 = arith.constant 0 : index
    %c0_0 = arith.constant 0 : index
    %0 = vector.load %arg1[%c0, %c0_0] : memref<16x72xbf16, #tpu.memory_space<vmem>>, vector<16x72xbf16>
    %c0_1 = arith.constant 0 : index
    %c0_2 = arith.constant 0 : index
    %1 = vector.load %arg3[%c0_1, %c0_2] : memref<72x128xbf16, #tpu.memory_space<vmem>>, vector<72x128xbf16>
    %cst = arith.constant dense<0.000000e+00> : vector<16x128xf32>
    %2 = tpu.matmul %0, %1, %cst {dimension_numbers = #tpu.dot_dimension_numbers<[1], [0], [0], [1], [0, 0, 1, 1], [], []>} : vector<16x72xbf16>, vector<72x128xbf16>, vector<16x128xf32> -> vector<16x128xf32>
    %c0_3 = arith.constant 0 : index
    %c0_4 = arith.constant 0 : index
    %3 = vector.load %arg2[%c0_3, %c0_4] : memref<16x1xf32, #tpu.memory_space<vmem>>, vector<16x1xf32>
    %4 = vector.broadcast %3 : vector<16x1xf32> to vector<16x128xf32>
    %5 = arith.addf %2, %4 : vector<16x128xf32>
    %6 = vector.extract_strided_slice %5 {offsets = [0, 0], sizes = [8, 128], strides = [1, 1]} : vector<16x128xf32> to vector<8x128xf32>
    %7 = vector.extract_strided_slice %5 {offsets = [8, 0], sizes = [8, 128], strides = [1, 1]} : vector<16x128xf32> to vector<8x128xf32>
    %8 = math.exp %7 : vector<8x128xf32>
    %c0_5 = arith.constant 0 : index
    %c0_6 = arith.constant 0 : index
    %9 = vector.load %arg4[%c0_5, %c0_6] : memref<8x128xf32, #tpu.memory_space<vmem>>, vector<8x128xf32>
    %10 = arith.mulf %8, %9 : vector<8x128xf32>
    %11 = arith.addf %6, %10 : vector<8x128xf32>
    %c0_7 = arith.constant 0 : index
    %c0_8 = arith.constant 0 : index
    %12 = vector.load %arg5[%c0_7, %c0_8] : memref<8x128xf32, #tpu.memory_space<vmem>>, vector<8x128xf32>
    tpu.vector_store %arg5[%c0_7, %c0_8], %11 {strides = array<i32>} : memref<8x128xf32, #tpu.memory_space<vmem>>, vector<8x128xf32>,
    return
  }
  func.func @transform_0(%arg0: i32) -> (i32, i32) {
    %c0_i32 = arith.constant 0 : i32
    %c0_i32_0 = arith.constant 0 : i32
    %c0_i32_1 = arith.constant 0 : i32
    return %c0_i32, %c0_i32_0 : i32, i32
  }
  func.func @transform_1(%arg0: i32) -> (i32, i32) {
    %c0_i32 = arith.constant 0 : i32
    %c0_i32_0 = arith.constant 0 : i32
    %c0_i32_1 = arith.constant 0 : i32
    return %c0_i32, %c0_i32_0 : i32, i32
  }
  func.func @transform_2(%arg0: i32) -> (i32, i32) {
    %c0_i32 = arith.constant 0 : i32
    %c0_i32_0 = arith.constant 0 : i32
    return %c0_i32, %arg0 : i32, i32
  }
  func.func @transform_3(%arg0: i32) -> (i32, i32) {
    %c0_i32 = arith.constant 0 : i32
    %c0_i32_0 = arith.constant 0 : i32
    return %c0_i32, %arg0 : i32, i32
  }
  func.func @transform_4(%arg0: i32) -> (i32, i32) {
    %c0_i32 = arith.constant 0 : i32
    %c0_i32_0 = arith.constant 0 : i32
    return %c0_i32, %arg0 : i32, i32
  }
}

</mosaic_0001>

<bundles_post_ra>
// kernel: mul.122
= control target key start
LH: loop header
LB: loop body
LE: loop exit
PB: predicated region body
PF: predicated region fallthrough
CT: control target
= control target key end

     0   :  { %s34_s0 = inlined_call_operand.vmem [shape: f32[16], index: 0, kind: input, shape index: {}]   ;;  %s35_s1 = inlined_call_operand.vmem [shape: f32[16], index: 1, kind: input, shape index: {}]   ;;  %s36_s2 = inlined_call_operand.vmem [shape: f32[16], index: 2, kind: output, shape index: {}]  }
   0x1   :  { %v3_v0 = vld [vmem:[%s34_s0] sm:$0x1] }
   0x2   :  { %v4_v1 = vld [vmem:[%s35_s1] sm:$0x1] }
   0x3   :  { %v7_v2 = vmul.f32 %v4_v1, %v3_v0 }
   0x5   :  { %9 = vst [vmem:[%s36_s2] sm:$0x1] %v7_v2 }

// kernel: model_forward.28
= control target key start
LH: loop header
LB: loop body
LE: loop exit
PB: predicated region body
PF: predicated region fallthrough
CT: control target
= control target key end

     0   :  { %v60_v3 = vmov 0   ;;  %vm33_vm0 = vcmask 130048   ;;  %s105_s2 = inlined_call_operand.vmem [shape: f32[16,128], index: 2, kind: input, shape index: {}]   ;;  %s106_s0 = inlined_call_operand.vmem [shape: f32[16,16], index: 0, kind: input, shape index: {}]   ;;  %s107_s1 = inlined_call_operand.vmem [shape: f32[16,1], index: 1, kind: input, shape index: {}]   ;;  %s108_s3 = inlined_call_operand.vmem [shape: f32[16,128], index: 3, kind: output, shape index: {}]  }
   0x1   :  { %v18_v0 = vld [vmem:[%s105_s2] sm:$0xff]  ;;  %v19_v1 = vld [vmem:[%s105_s2 + $0x8] sm:$0xff]  ;;  %59 = vset.pattern.permute.xlu0 %v60_v3 }
   0x2   :  { %v15_v2 = vld [vmem:[%s106_s0] sm:$0xff]  ;;  %v20_v4 = vpack.c.bf16 %v19_v1, %v18_v0  ;;  %v16_v5 = vld [vmem:[%s106_s0 + $0x8] sm:$0xff] }
   0x3   :  { %v21_v6 = vld [vmem:[%s107_s1] sm:$0xff]  ;;  %v17_v7 = vpack.c.bf16 %v16_v5, %v15_v2  ;;  %v22_v8 = vld [vmem:[%s107_s1 + $0x8] sm:$0xff] }
   0x4   :  { %25 = vperm.xlu0 %59, %v21_v6   ;;  %44 = vmatpush.bf16.msra.mxu0 %v20_v4 }
   0x7   :  { %57 = vmatmul.msk.bf16.vlgmr.msra.gmra.mxu0 %vm33_vm0, %v17_v7 }
   0xc   :  { %30 = vperm.xlu0 %59, %v22_v8  }
  0x76   :  { %v26_v9 = vpop.permute.xlu0 %25 }
  0x7e   :  { %v31_v12 = vpop.permute.xlu0 %30 }
  0x84   :  { %v46_v10 = vpop.f32.mrf.mxu0 }
  0x85   :  { %v47_v11 = vadd.f32 %v46_v10, %v26_v9 }
  0x87   :  { %51 = vst [vmem:[%s108_s3] sm:$0xff] %v47_v11 }
  0x8c   :  { %v48_v13 = vpop.f32.mrf.mxu0 }
  0x8d   :  { %v49_v14 = vadd.f32 %v48_v13, %v31_v12 }
  0x8f   :  { %52 = vst [vmem:[%s108_s3 + $0x8] sm:$0xff] %v49_v14 }

// kernel: model_forward.29
= control target key start
LH: loop header
LB: loop body
LE: loop exit
PB: predicated region body
PF: predicated region fallthrough
CT: control target
= control target key end

     0   :  { %v441_v1 = vmov 0   ;;  %vm146_vm0 = vcmask 1043456   ;;  %vm133_vm1 = vcmask 588800   ;;  %vm267_vm2 = vcmask 523264   ;;  %s575_s4 = inlined_call_operand.vmem [shape: bf16[72,128], index: 4, kind: input, shape index: {}]   ;;  %s576_s1 = inlined_call_operand.vmem [shape: f32[64,1], index: 1, kind: input, shape index: {}]   ;;  %s577_s0 = inlined_call_operand.vmem [shape: bf16[64,72], index: 0, kind: input, shape index: {}]   ;;  %s578_s3 = inlined_call_operand.vmem [shape: f32[64,1], index: 3, kind: input, shape index: {}]   ;;  %s579_s2 = inlined_call_operand.vmem [shape: bf16[64,64], index: 2, kind: input, shape index: {}]   ;;  %s580_s5 = inlined_call_operand.vmem [shape: bf16[64,128], index: 5, kind: output, shape index: {}]  }
   0x1   :  { %v37_v0 = vld [vmem:[%s575_s4 + $0x20] sm:$0xf]  ;;  %438 = vset.pattern.permute.xlu0 %v441_v1  ;;  %439 = vset.pattern.permute.xlu1 %v441_v1  ;;  %v44_v3 = vld [vmem:[%s576_s1 + $0x30] sm:$0xff]  ;;  %v400_v7 = vld [vmem:[%s575_s4 + $0x18] sm:$0xff] }
   0x2   :  { %v123_v2 = vunpack.c.l.b16 %v37_v0  ;;  %440 = vset.pattern.permute.xlu2 %v441_v1  ;;  %78 = vperm.xlu0 %438, %v44_v3   ;;  %v42_v4 = vld [vmem:[%s576_s1 + $0x20] sm:$0xff]  ;;  %v45_v8 = vld [vmem:[%s576_s1 + $0x38] sm:$0xff]  ;;  %v43_v9 = vld [vmem:[%s576_s1 + $0x28] sm:$0xff] }
   0x3   :  { %68 = vperm.xlu1 %439, %v42_v4   ;;  %v399_v10 = vld [vmem:[%s575_s4 + $0x10] sm:$0xff]  ;;  %v398_v12 = vld [vmem:[%s575_s4 + $0x8] sm:$0xff]  ;;  %v38_v13 = vld [vmem:[%s576_s1] sm:$0xff] }
   0x4   :  { %v128_v5 = vpack.c.b16 %v123_v2, %v123_v2  ;;  %v40_v11 = vld [vmem:[%s576_s1 + $0x10] sm:$0xff]  ;;  %v39_v14 = vld [vmem:[%s576_s1 + $0x8] sm:$0xff]  ;;  %v41_v15 = vld [vmem:[%s576_s1 + $0x18] sm:$0xff] }
   0x5   :  { %58 = vperm.xlu2 %440, %v40_v11   ;;  %v397_v16 = vld [vmem:[%s575_s4] sm:$0xff]  ;;  %v395_v17 = vld [vmem:[%s577_s0 + $0x10] sm:$0xff]  ;;  %v200_v19 = vld [vmem:[%s578_s3 + $0x8] sm:$0xff] }
   0x6   :  { %v148_v6 = vsel %vm146_vm0, %v128_v5, 0  ;;  %v393_v18 = vld [vmem:[%s577_s0] sm:$0xff]  ;;  %v201_v20 = vld [vmem:[%s578_s3 + $0x10] sm:$0xff]  ;;  %v204_v23 = vld [vmem:[%s578_s3 + $0x28] sm:$0xff] }
   0x7   :  { %428 = vmatpush.bf16.msra.mxu2 %v148_v6  ;;  %153 = vmatpush.bf16.msra.mxu0 %v148_v6  ;;  %v199_v21 = vld [vmem:[%s578_s3] sm:$0xff]  ;;  %v202_v24 = vld [vmem:[%s578_s3 + $0x18] sm:$0xff]  ;;  %v394_v26 = vld [vmem:[%s577_s0 + $0x8] sm:$0xff] }
   0x8   :  { %v203_v22 = vld [vmem:[%s578_s3 + $0x20] sm:$0xff]  ;;  %v396_v25 = vld [vmem:[%s577_s0 + $0x18] sm:$0xff]  ;;  %v205_v28 = vld [vmem:[%s578_s3 + $0x30] sm:$0xff] }
   0x9   :  { %v206_v27 = vld [vmem:[%s578_s3 + $0x38] sm:$0xff]  ;;  %v401_v1 = vld [vmem:[%s579_s2] sm:$0xff]  ;;  %v402_v2 = vld [vmem:[%s579_s2 + $0x8] sm:$0xff] }
   0xa   :  { %83 = vperm.xlu0 %438, %v45_v8   ;;  %v403_v3 = vld [vmem:[%s579_s2 + $0x10] sm:$0xff]  ;;  %v404_v4 = vld [vmem:[%s579_s2 + $0x18] sm:$0xff] }
   0xb   :  { %429 = vmatpush.bf16.msra.mxu2 %v400_v7  ;;  %154 = vmatpush.bf16.msra.mxu0 %v400_v7 }
   0xc   :  { %73 = vperm.xlu1 %439, %v43_v9  }
   0xd   :  { %63 = vperm.xlu2 %440, %v41_v15  }
   0xf   :  { %430 = vmatpush.bf16.msra.mxu2 %v399_v10  ;;  %155 = vmatpush.bf16.msra.mxu0 %v399_v10 }
  0x12   :  { %48 = vperm.xlu0 %438, %v38_v13  }
  0x13   :  { %431 = vmatpush.bf16.msra.mxu2 %v398_v12  ;;  %156 = vmatpush.bf16.msra.mxu0 %v398_v12 }
  0x14   :  { %53 = vperm.xlu1 %439, %v39_v14  }
  0x15   :  { %209 = vperm.xlu2 %440, %v199_v21  }
  0x17   :  { %432 = vmatpush.bf16.msra.mxu2 %v397_v16  ;;  %157 = vmatpush.bf16.msra.mxu0 %v397_v16 }
  0x1a   :  { %371 = vmatmul.msk.bf16.vlgmr.msra.gmra.mxu2 %vm133_vm1, %v395_v17  ;;  %369 = vmatmul.msk.bf16.vlgmr.msra.gmra.mxu0 %vm133_vm1, %v393_v18 }
  0x1b   :  { %214 = vperm.xlu0 %438, %v200_v19  }
  0x1c   :  { %219 = vperm.xlu1 %439, %v201_v20  }
  0x1d   :  { %224 = vperm.xlu2 %440, %v202_v24  }
  0x23   :  { %229 = vperm.xlu0 %438, %v203_v22  }
  0x24   :  { %234 = vperm.xlu1 %439, %v204_v23  }
  0x25   :  { %239 = vperm.xlu2 %440, %v205_v28  }
  0x2a   :  { %372 = vmatmul.msk.bf16.gmra.mxu2 %vm133_vm1, %v396_v25  ;;  %370 = vmatmul.msk.bf16.gmra.mxu0 %vm133_vm1, %v394_v26 }
  0x2b   :  { %244 = vperm.xlu0 %438, %v206_v27  }
  0x5f   :  { %v59_v37 = vpop.permute.xlu2 %58 }
  0x67   :  { %v64_v48 = vpop.permute.xlu2 %63 }
  0x6f   :  { %v210_v6 = vpop.permute.xlu2 %209 }
  0x74   :  { %v79_v33 = vpop.permute.xlu0 %78 }
  0x75   :  { %v69_v34 = vpop.permute.xlu1 %68 }
  0x77   :  { %v225_v17 = vpop.permute.xlu2 %224 }
  0x7c   :  { %v84_v38 = vpop.permute.xlu0 %83 }
  0x7e   :  { %v74_v39 = vpop.permute.xlu1 %73 }
  0x84   :  { %v49_v53 = vpop.permute.xlu0 %48 }
  0x86   :  { %v54_v56 = vpop.permute.xlu1 %53 }
  0x8d   :  { %v215_v9 = vpop.permute.xlu0 %214 }
  0x8e   :  { %v220_v14 = vpop.permute.xlu1 %219 }
  0x95   :  { %v230_v24 = vpop.permute.xlu0 %229 }
  0x96   :  { %v235_v26 = vpop.permute.xlu1 %234 }
  0x97   :  { %v159_v29 = vpop.f32.mrf.mxu0 }
  0x98   :  { %v160_v55 = vadd.f32 %v159_v29, %v49_v53 }
  0x9a   :  { %v179_v61 = vmax.f32 %v160_v55, 0.0 }
  0x9d   :  { %v169_v30 = vpop.f32.mrf.mxu2 }
  0x9e   :  { %v170_v45 = vadd.f32 %v169_v30, %v69_v34 }
  0x9f   :  { %v161_v31 = vpop.f32.mrf.mxu0 }
  0xa0   :  { %v183_v54 = vmax.f32 %v170_v45, 0.0  ;;  %v162_v57 = vadd.f32 %v161_v31, %v54_v56 }
  0xa2   :  { %v180_v62 = vmax.f32 %v162_v57, 0.0 }
  0xa4   :  { %v195_v0 = vpack.c.bf16 %v180_v62, %v179_v61 }
  0xa5   :  { %v171_v32 = vpop.f32.mrf.mxu2 }
  0xa6   :  { %v172_v42 = vadd.f32 %v171_v32, %v74_v39 }
  0xa7   :  { %v164_v35 = vpop.f32.mrf.mxu0 }
  0xa8   :  { %v184_v49 = vmax.f32 %v172_v42, 0.0  ;;  %v165_v50 = vadd.f32 %v164_v35, %v59_v37  ;;  %v245_v35 = vpop.permute.xlu0 %244 }
  0xaa   :  { %v181_v58 = vmax.f32 %v165_v50, 0.0  ;;  %v197_v60 = vpack.c.bf16 %v184_v49, %v183_v54 }
  0xad   :  { %v174_v36 = vpop.f32.mrf.mxu2 }
  0xae   :  { %v175_v40 = vadd.f32 %v174_v36, %v79_v33  ;;  %v240_v33 = vpop.permute.xlu2 %239 }
  0xaf   :  { %v166_v44 = vpop.f32.mrf.mxu0 }
  0xb0   :  { %v185_v46 = vmax.f32 %v175_v40, 0.0  ;;  %v167_v51 = vadd.f32 %v166_v44, %v64_v48 }
  0xb2   :  { %v182_v59 = vmax.f32 %v167_v51, 0.0 }
  0xb4   :  { %v196_v63 = vpack.c.bf16 %v182_v59, %v181_v58 }
  0xb5   :  { %v176_v41 = vpop.f32.mrf.mxu2 }
  0xb6   :  { %v177_v43 = vadd.f32 %v176_v41, %v84_v38 }
  0xb8   :  { %v186_v47 = vmax.f32 %v177_v43, 0.0 }
  0xba   :  { %v198_v52 = vpack.c.bf16 %v186_v47, %v185_v46 }
  0xbc   :  { %284 = vmatpush.bf16.msra.mxu1 %v198_v52  ;;  %433 = vmatpush.bf16.msra.mxu3 %v198_v52 }
  0xc0   :  { %285 = vmatpush.bf16.msra.mxu1 %v197_v60  ;;  %434 = vmatpush.bf16.msra.mxu3 %v197_v60 }
  0xc4   :  { %286 = vmatpush.bf16.msra.mxu1 %v196_v63  ;;  %435 = vmatpush.bf16.msra.mxu3 %v196_v63 }
  0xc8   :  { %287 = vmatpush.bf16.msra.mxu1 %v195_v0  ;;  %436 = vmatpush.bf16.msra.mxu3 %v195_v0 }
  0xcb   :  { %389 = vmatmul.msk.bf16.vlgmr.msra.gmra.mxu1 %vm267_vm2, %v401_v1  ;;  %390 = vmatmul.msk.bf16.vlgmr.msra.gmra.mxu3 %vm267_vm2, %v402_v2 }
  0xdb   :  { %391 = vmatmul.msk.bf16.gmra.mxu3 %vm267_vm2, %v403_v3 }
  0xeb   :  { %392 = vmatmul.msk.bf16.gmra.mxu3 %vm267_vm2, %v404_v4 }
 0x148   :  { %v289_v5 = vpop.f32.mrf.mxu1 }
 0x149   :  { %v290_v8 = vadd.f32 %v289_v5, %v210_v6 }
 0x14b   :  { %v309_v12 = vmax.f32 %v290_v8, 0.0 }
 0x14e   :  { %v294_v7 = vpop.f32.mrf.mxu3 }
 0x14f   :  { %v295_v15 = vadd.f32 %v294_v7, %v220_v14 }
 0x150   :  { %v291_v10 = vpop.f32.mrf.mxu1 }
 0x151   :  { %v292_v11 = vadd.f32 %v291_v10, %v215_v9  ;;  %v311_v20 = vmax.f32 %v295_v15, 0.0 }
 0x153   :  { %v310_v13 = vmax.f32 %v292_v11, 0.0 }
 0x155   :  { %v408_v16 = vpack.c.bf16 %v310_v13, %v309_v12 }
 0x156   :  { %v296_v18 = vpop.f32.mrf.mxu3 }
 0x157   :  { %409 = vst [vmem:[%s580_s5] sm:$0xff] %v408_v16   ;;  %v297_v19 = vadd.f32 %v296_v18, %v225_v17 }
 0x159   :  { %v312_v21 = vmax.f32 %v297_v19, 0.0 }
 0x15b   :  { %v413_v22 = vpack.c.bf16 %v312_v21, %v311_v20 }
 0x15d   :  { %425 = vst [vmem:[%s580_s5 + $0x8] sm:$0xff] %v413_v22  }
 0x15e   :  { %v299_v23 = vpop.f32.mrf.mxu3 }
 0x15f   :  { %v300_v25 = vadd.f32 %v299_v23, %v230_v24 }
 0x161   :  { %v313_v29 = vmax.f32 %v300_v25, 0.0 }
 0x166   :  { %v301_v27 = vpop.f32.mrf.mxu3 }
 0x167   :  { %v302_v28 = vadd.f32 %v301_v27, %v235_v26 }
 0x169   :  { %v314_v30 = vmax.f32 %v302_v28, 0.0 }
 0x16b   :  { %v418_v31 = vpack.c.bf16 %v314_v30, %v313_v29 }
 0x16d   :  { %426 = vst [vmem:[%s580_s5 + $0x10] sm:$0xff] %v418_v31  }
 0x16e   :  { %v304_v32 = vpop.f32.mrf.mxu3 }
 0x16f   :  { %v305_v34 = vadd.f32 %v304_v32, %v240_v33 }
 0x171   :  { %v315_v38 = vmax.f32 %v305_v34, 0.0 }
 0x176   :  { %v306_v36 = vpop.f32.mrf.mxu3 }
 0x177   :  { %v307_v37 = vadd.f32 %v306_v36, %v245_v35 }
 0x179   :  { %v316_v39 = vmax.f32 %v307_v37, 0.0 }
 0x17b   :  { %v423_v40 = vpack.c.bf16 %v316_v39, %v315_v38 }
 0x17d   :  { %427 = vst [vmem:[%s580_s5 + $0x18] sm:$0xff] %v423_v40  }

// kernel: model_forward.30
= control target key start
LH: loop header
LB: loop body
LE: loop exit
PB: predicated region body
PF: predicated region fallthrough
CT: control target
= control target key end

     0   :  { %v681_v12 = vmov 0   ;;  %vm351_vm0 = vcmask 523264   ;;  %s865_s2 = inlined_call_operand.vmem [shape: bf16[576,128], index: 2, kind: input, shape index: {}]   ;;  %s866_s1 = inlined_call_operand.vmem [shape: f32[16,1], index: 1, kind: input, shape index: {}]   ;;  %s867_s0 = inlined_call_operand.vmem [shape: bf16[16,576], index: 0, kind: input, shape index: {}]   ;;  %s868_s3 = inlined_call_operand.vmem [shape: f32[8,128], index: 3, kind: input, shape index: {}]   ;;  %s869_s4 = inlined_call_operand.vmem [shape: f32[8,128], index: 4, kind: output, shape index: {0}]   ;;  %s870_s5 = inlined_call_operand.vmem [shape: f32[1,128], index: 5, kind: output, shape index: {1}]  }
   0x1   :  { %v644_v0 = vld [vmem:[%s865_s2 + $0x38] sm:$0xff]  ;;  %v643_v4 = vld [vmem:[%s865_s2 + $0x30] sm:$0xff]  ;;  %v642_v8 = vld [vmem:[%s865_s2 + $0x28] sm:$0xff]  ;;  %674 = vset.pattern.permute.xlu0 %v681_v12 }
   0x2   :  { %v660_v1 = vld [vmem:[%s865_s2 + $0xb8] sm:$0xff]  ;;  %355 = vmatpush.bf16.msra.mxu0 %v644_v0  ;;  %v659_v5 = vld [vmem:[%s865_s2 + $0xb0] sm:$0xff]  ;;  %v658_v9 = vld [vmem:[%s865_s2 + $0xa8] sm:$0xff] }
   0x3   :  { %v668_v2 = vld [vmem:[%s865_s2 + $0xf8] sm:$0xff]  ;;  %383 = vmatpush.bf16.msra.mxu2 %v660_v1  ;;  %v667_v6 = vld [vmem:[%s865_s2 + $0xf0] sm:$0xff]  ;;  %v666_v10 = vld [vmem:[%s865_s2 + $0xe8] sm:$0xff] }
   0x4   :  { %v652_v3 = vld [vmem:[%s865_s2 + $0x78] sm:$0xff]  ;;  %397 = vmatpush.bf16.msra.mxu3 %v668_v2  ;;  %v651_v7 = vld [vmem:[%s865_s2 + $0x70] sm:$0xff]  ;;  %v650_v11 = vld [vmem:[%s865_s2 + $0x68] sm:$0xff] }
   0x5   :  { %369 = vmatpush.bf16.msra.mxu1 %v652_v3  ;;  %v641_v13 = vld [vmem:[%s865_s2 + $0x20] sm:$0xff]  ;;  %v640_v17 = vld [vmem:[%s865_s2 + $0x18] sm:$0xff]  ;;  %v639_v22 = vld [vmem:[%s865_s2 + $0x10] sm:$0xff] }
   0x6   :  { %356 = vmatpush.bf16.msra.mxu0 %v643_v4  ;;  %v657_v14 = vld [vmem:[%s865_s2 + $0xa0] sm:$0xff]  ;;  %v656_v18 = vld [vmem:[%s865_s2 + $0x98] sm:$0xff]  ;;  %v655_v23 = vld [vmem:[%s865_s2 + $0x90] sm:$0xff] }
   0x7   :  { %384 = vmatpush.bf16.msra.mxu2 %v659_v5  ;;  %v665_v15 = vld [vmem:[%s865_s2 + $0xe0] sm:$0xff]  ;;  %v664_v20 = vld [vmem:[%s865_s2 + $0xd8] sm:$0xff]  ;;  %v663_v24 = vld [vmem:[%s865_s2 + $0xd0] sm:$0xff] }
   0x8   :  { %398 = vmatpush.bf16.msra.mxu3 %v667_v6  ;;  %v649_v16 = vld [vmem:[%s865_s2 + $0x60] sm:$0xff]  ;;  %v648_v21 = vld [vmem:[%s865_s2 + $0x58] sm:$0xff]  ;;  %v647_v25 = vld [vmem:[%s865_s2 + $0x50] sm:$0xff] }
   0x9   :  { %370 = vmatpush.bf16.msra.mxu1 %v651_v7  ;;  %v98_v19 = vld [vmem:[%s866_s1] sm:$0xff]  ;;  %v99_v26 = vld [vmem:[%s866_s1 + $0x8] sm:$0xff]  ;;  %v634_v36 = vld [vmem:[%s867_s0 + $0x10] sm:$0xf0] }
   0xa   :  { %357 = vmatpush.bf16.msra.mxu0 %v642_v8  ;;  %102 = vperm.xlu0 %674, %v98_v19   ;;  %v638_v27 = vld [vmem:[%s865_s2 + $0x8] sm:$0xff]  ;;  %v637_v31 = vld [vmem:[%s865_s2] sm:$0xff]  ;;  %v635_v38 = vld [vmem:[%s867_s0 + $0x18] sm:$0xf0] }
   0xb   :  { %385 = vmatpush.bf16.msra.mxu2 %v658_v9  ;;  %v654_v28 = vld [vmem:[%s865_s2 + $0x88] sm:$0xff]  ;;  %v653_v32 = vld [vmem:[%s865_s2 + $0x80] sm:$0xff]  ;;  %v470_v42 = vld [vmem:[%s867_s0 + $0x14] sm:$0xf0] }
   0xc   :  { %399 = vmatpush.bf16.msra.mxu3 %v666_v10  ;;  %v662_v29 = vld [vmem:[%s865_s2 + $0xc8] sm:$0xff]  ;;  %v661_v33 = vld [vmem:[%s865_s2 + $0xc0] sm:$0xff]  ;;  %v672_v43 = vld [vmem:[%s865_s2 + $0x118] sm:$0xff] }
   0xd   :  { %371 = vmatpush.bf16.msra.mxu1 %v650_v11  ;;  %v646_v30 = vld [vmem:[%s865_s2 + $0x48] sm:$0xff]  ;;  %v645_v34 = vld [vmem:[%s865_s2 + $0x40] sm:$0xff]  ;;  %v671_v48 = vld [vmem:[%s865_s2 + $0x110] sm:$0xff] }
   0xe   :  { %358 = vmatpush.bf16.msra.mxu0 %v641_v13  ;;  %v468_v35 = vld [vmem:[%s867_s0] sm:$0xf]  ;;  %v476_v37 = vld [vmem:[%s867_s0 + $0x8] sm:$0xf]  ;;  %v633_v39 = vld [vmem:[%s867_s0 + $0xc] sm:$0xf] }
   0xf   :  { %386 = vmatpush.bf16.msra.mxu2 %v657_v14  ;;  %v478_v40 = vld [vmem:[%s867_s0 + $0x1c] sm:$0xf0]  ;;  %v632_v41 = vld [vmem:[%s867_s0 + $0x4] sm:$0xf]  ;;  %v469_v44 = vor.u32 %v634_v36, %v468_v35  ;;  %v477_v45 = vor.u32 %v635_v38, %v476_v37  ;;  %v670_v49 = vld [vmem:[%s865_s2 + $0x108] sm:$0xff] }
  0x10   :  { %400 = vmatpush.bf16.msra.mxu3 %v665_v15  ;;  %v481_v46 = vor.u32 %v633_v39, %v478_v40  ;;  %v473_v47 = vor.u32 %v632_v41, %v470_v42  ;;  %v669_v50 = vld [vmem:[%s865_s2 + $0x100] sm:$0xff]  ;;  %v484_v51 = vld [vmem:[%s867_s0 + $0x10] sm:$0xf] }
  0x11   :  { %372 = vmatpush.bf16.msra.mxu1 %v649_v16  ;;  %v636_v52 = vld [vmem:[%s867_s0 + $0x20] sm:$0xf0] }
  0x12   :  { %359 = vmatpush.bf16.msra.mxu0 %v640_v17  ;;  %107 = vperm.xlu0 %674, %v99_v26   ;;  %v485_v53 = vor.u32 %v636_v52, %v484_v51 }
  0x13   :  { %387 = vmatpush.bf16.msra.mxu2 %v656_v18 }
  0x14   :  { %401 = vmatpush.bf16.msra.mxu3 %v664_v20 }
  0x15   :  { %373 = vmatpush.bf16.msra.mxu1 %v648_v21 }
  0x16   :  { %360 = vmatpush.bf16.msra.mxu0 %v639_v22  ;;  %v445_v22 = vld [vmem:[%s868_s3] sm:$0xff] }
  0x17   :  { %388 = vmatpush.bf16.msra.mxu2 %v655_v23 }
  0x18   :  { %402 = vmatpush.bf16.msra.mxu3 %v663_v24 }
  0x19   :  { %374 = vmatpush.bf16.msra.mxu1 %v647_v25 }
  0x1a   :  { %361 = vmatpush.bf16.msra.mxu0 %v638_v27 }
  0x1b   :  { %389 = vmatpush.bf16.msra.mxu2 %v654_v28 }
  0x1c   :  { %403 = vmatpush.bf16.msra.mxu3 %v662_v29 }
  0x1d   :  { %375 = vmatpush.bf16.msra.mxu1 %v646_v30 }
  0x1e   :  { %362 = vmatpush.bf16.msra.mxu0 %v637_v31 }
  0x1f   :  { %390 = vmatpush.bf16.msra.mxu2 %v653_v32 }
  0x20   :  { %404 = vmatpush.bf16.msra.mxu3 %v661_v33 }
  0x21   :  { %376 = vmatpush.bf16.msra.mxu1 %v645_v34  ;;  %363 = vmatmul.bf16.vlgmr.msra.gmra.mxu0 %v469_v44 }
  0x22   :  { %415 = vmatpush.bf16.msrb.mxu0 %v672_v43  ;;  %391 = vmatmul.bf16.vlgmr.msra.gmra.mxu2 %v477_v45 }
  0x23   :  { %405 = vmatmul.bf16.vlgmr.msra.gmra.mxu3 %v481_v46 }
  0x24   :  { %377 = vmatmul.bf16.vlgmr.msra.gmra.mxu1 %v473_v47 }
  0x26   :  { %416 = vmatpush.bf16.msrb.mxu0 %v671_v48 }
  0x2a   :  { %417 = vmatpush.bf16.msrb.mxu0 %v670_v49 }
  0x2e   :  { %418 = vmatpush.bf16.msrb.mxu0 %v669_v50 }
  0x31   :  { %630 = vmatmul.msk.bf16.vlgmr.msrb.gmra.mxu0 %vm351_vm0, %v485_v53 }
  0x7c   :  { %v103_v55 = vpop.permute.xlu0 %102 }
  0x84   :  { %v108_v4 = vpop.permute.xlu0 %107 }
  0x9e   :  { %v364_v54 = vpop.f32.mrf.mxu0 }
  0x9f   :  { %v365_v56 = vadd.f32 %v364_v54, %v103_v55 }
  0xa1   :  { %v378_v57 = vpop.f32.mrf.mxu1 }
  0xa2   :  { %v379_v60 = vadd.f32 %v378_v57, %v365_v56 }
  0xa5   :  { %v392_v58 = vpop.f32.mrf.mxu2 }
  0xa6   :  { %v366_v59 = vpop.f32.mrf.mxu0  ;;  %v393_v61 = vadd.f32 %v392_v58, %v379_v60  ;;  %v406_v62 = vpop.f32.mrf.mxu3 }
  0xa7   :  { %v367_v7 = vadd.f32 %v366_v59, %v108_v4 }
  0xa8   :  { %v407_v63 = vadd.f32 %v406_v62, %v393_v61 }
  0xa9   :  { %v380_v8 = vpop.f32.mrf.mxu1 }
  0xaa   :  { %v381_v10 = vadd.f32 %v380_v8, %v367_v7 }
  0xad   :  { %v394_v9 = vpop.f32.mrf.mxu2 }
  0xae   :  { %v420_v0 = vpop.f32.mrf.mxu0  ;;  %v395_v11 = vadd.f32 %v394_v9, %v381_v10  ;;  %v408_v14 = vpop.f32.mrf.mxu3 }
  0xaf   :  { %v421_v1 = vadd.f32 %v420_v0, %v407_v63 }
  0xb0   :  { %v409_v16 = vadd.f32 %v408_v14, %v395_v11 }
  0xb1   :  { %v425_v2 = vadd.f32 2.0, %v421_v1 }
  0xb3   :  { %v631_v3 = vmul.f32 -1.442695, %v425_v2 }
  0xb5   :  { %675 = vpow2.f32 %v631_v3 }
  0xb6   :  { %v422_v15 = vpop.f32.mrf.mxu0 }
  0xb7   :  { %v423_v19 = vadd.f32 %v422_v15, %v409_v16 }
  0xb9   :  { %v446_v26 = vadd.f32 %v445_v22, %v423_v19 }
  0xbb   :  { %v676_v5 = vpop.eup %675 }
  0xbc   :  { %v429_v6 = vadd.f32 1.0, %v676_v5 }
  0xbe   :  { %677 = vrcp.f32 %v429_v6  ;;  %v441_v18 = vand.u32 2147483648, %v429_v6  ;;  %v439_v21 = vand.u32 2147483647, %v429_v6  ;;  %vm435_vm2 = vweird.f32 %v429_v6 }
  0xc0   :  { %v442_v24 = vor.u32 1.1754944e-38, %v441_v18  ;;  %vm440_vm4 = vcmp.eq.f32.partialorder %v439_v21, 8.507059e+37 }
  0xc4   :  { %v678_v12 = vpop.eup %677 }
  0xc5   :  { %v431_v13 = vmul.f32 %v678_v12, %v429_v6  ;;  %vm436_vm1 = vweird.f32 %v678_v12 }
  0xc6   :  { %vm437_vm3 = vmor %vm435_vm2, %vm436_vm1 }
  0xc7   :  { %v432_v17 = vsub.f32 1.0, %v431_v13 }
  0xc9   :  { %v433_v20 = vmul.f32 %v678_v12, %v432_v17 }
  0xcb   :  { %v434_v23 = vadd.f32 %v678_v12, %v433_v20 }
  0xcd   :  { %v438_v25 = vsel %vm437_vm3, %v678_v12, %v434_v23 }
  0xce   :  { %v443_v27 = vsel %vm440_vm4, %v442_v24, %v438_v25 }
  0xcf   :  { %v447_v28 = vmul.f32 %v446_v26, %v443_v27  ;;  %679 = vlog2.f32 %v443_v27 }
  0xd1   :  { %448 = vst [vmem:[%s869_s4] sm:$0xff] %v447_v28 }
  0xd5   :  { %v680_v29 = vpop.eup %679 }
  0xd6   :  { %v450_v30 = vmul.f32 0.6931472, %v680_v29 }
  0xd8   :  { %v451_v31 = vrot.slane %v450_v30, 4 }
  0xda   :  { %v452_v32 = vadd.f32 %v451_v31, %v450_v30 }
  0xdc   :  { %v453_v33 = vrot.slane %v452_v32, 2 }
  0xde   :  { %v454_v34 = vadd.f32 %v453_v33, %v452_v32 }
  0xe0   :  { %v455_v35 = vrot.slane %v454_v34, 1 }
  0xe2   :  { %v456_v36 = vadd.f32 %v455_v35, %v454_v34 }
  0xe4   :  { %457 = vst [vmem:[%s870_s5] sm:$0x1] %v456_v36 }

// kernel: model_forward.34
= control target key start
LH: loop header
LB: loop body
LE: loop exit
PB: predicated region body
PF: predicated region fallthrough
CT: control target
= control target key end

     0   :  { %v146_v1 = vmov 0   ;;  %vm77_vm0 = vcmask 1043456   ;;  %vm73_vm1 = vcmask 588800   ;;  %s202_s2 = inlined_call_operand.vmem [shape: bf16[72,128], index: 2, kind: input, shape index: {}]   ;;  %s203_s1 = inlined_call_operand.vmem [shape: f32[16,1], index: 1, kind: input, shape index: {}]   ;;  %s204_s0 = inlined_call_operand.vmem [shape: bf16[16,72], index: 0, kind: input, shape index: {}]   ;;  %s205_s3 = inlined_call_operand.vmem [shape: f32[8,128], index: 3, kind: input, shape index: {}]   ;;  %s206_s4 = inlined_call_operand.vmem [shape: f32[1,128], index: 4, kind: output, shape index: {}]  }
   0x1   :  { %v28_v0 = vld [vmem:[%s202_s2 + $0x20] sm:$0xf]  ;;  %143 = vset.pattern.permute.xlu0 %v146_v1  ;;  %v30_v3 = vld [vmem:[%s203_s1 + $0x8] sm:$0xff]  ;;  %v141_v6 = vld [vmem:[%s202_s2 + $0x18] sm:$0xff] }
   0x2   :  { %v63_v2 = vunpack.c.l.b16 %v28_v0  ;;  %38 = vperm.xlu0 %143, %v30_v3   ;;  %v29_v7 = vld [vmem:[%s203_s1] sm:$0xff]  ;;  %v140_v8 = vld [vmem:[%s202_s2 + $0x10] sm:$0xff]  ;;  %v139_v9 = vld [vmem:[%s202_s2 + $0x8] sm:$0xff] }
   0x3   :  { %v138_v10 = vld [vmem:[%s202_s2] sm:$0xff] }
   0x4   :  { %v68_v4 = vpack.c.b16 %v63_v2, %v63_v2  ;;  %v137_v11 = vld [vmem:[%s204_s0] sm:$0xff] }
   0x5   :  { %v96_v17 = vld [vmem:[%s205_s3] sm:$0xff] }
   0x6   :  { %v79_v5 = vsel %vm77_vm0, %v68_v4, 0 }
   0x7   :  { %84 = vmatpush.bf16.msra.mxu0 %v79_v5 }
   0xa   :  { %33 = vperm.xlu0 %143, %v29_v7  }
   0xb   :  { %85 = vmatpush.bf16.msra.mxu0 %v141_v6 }
   0xf   :  { %86 = vmatpush.bf16.msra.mxu0 %v140_v8 }
  0x13   :  { %87 = vmatpush.bf16.msra.mxu0 %v139_v9 }
  0x17   :  { %88 = vmatpush.bf16.msra.mxu0 %v138_v10 }
  0x1a   :  { %136 = vmatmul.msk.bf16.vlgmr.msra.gmra.mxu0 %vm73_vm1, %v137_v11 }
  0x74   :  { %v39_v12 = vpop.permute.xlu0 %38 }
  0x7c   :  { %v34_v14 = vpop.permute.xlu0 %33 }
  0x97   :  { %v90_v13 = vpop.f32.mrf.mxu0 }
  0x98   :  { %v91_v15 = vadd.f32 %v90_v13, %v34_v14 }
  0x9a   :  { %v97_v20 = vsub.f32 %v96_v17, %v91_v15 }
  0x9c   :  { %v98_v22 = vmul.f32 %v97_v20, %v97_v20 }
  0x9e   :  { %v99_v23 = vmul.f32 0.5, %v98_v22 }
  0x9f   :  { %v92_v16 = vpop.f32.mrf.mxu0 }
  0xa0   :  { %v93_v18 = vadd.f32 %v92_v16, %v39_v12 }
  0xa2   :  { %v100_v19 = vmul.f32 -2.0, %v93_v18  ;;  %v95_v25 = vsub.f32 -0.9189385, %v93_v18 }
  0xa4   :  { %v101_v21 = vmul.f32 1.442695, %v100_v19 }
  0xa6   :  { %144 = vpow2.f32 %v101_v21 }
  0xac   :  { %v145_v24 = vpop.eup %144 }
  0xad   :  { %v103_v26 = vmul.f32 %v145_v24, %v99_v23 }
  0xaf   :  { %v104_v27 = vsub.f32 %v95_v25, %v103_v26 }
  0xb1   :  { %v105_v28 = vrot.slane %v104_v27, 4 }
  0xb3   :  { %v106_v29 = vadd.f32 %v105_v28, %v104_v27 }
  0xb5   :  { %v107_v30 = vrot.slane %v106_v29, 2 }
  0xb7   :  { %v108_v31 = vadd.f32 %v107_v30, %v106_v29 }
  0xb9   :  { %v109_v32 = vrot.slane %v108_v31, 1 }
  0xbb   :  { %v110_v33 = vadd.f32 %v109_v32, %v108_v31 }
  0xbd   :  { %111 = vst [vmem:[%s206_s4] sm:$0x1] %v110_v33 }

// kernel: mul.158
= control target key start
LH: loop header
LB: loop body
LE: loop exit
PB: predicated region body
PF: predicated region fallthrough
CT: control target
= control target key end

     0   :  { %s34_s0 = inlined_call_operand.vmem [shape: f32[32], index: 0, kind: input, shape index: {}]   ;;  %s35_s1 = inlined_call_operand.vmem [shape: f32[32], index: 1, kind: input, shape index: {}]   ;;  %s36_s2 = inlined_call_operand.vmem [shape: f32[32], index: 2, kind: output, shape index: {}]  }
   0x1   :  { %v3_v0 = vld [vmem:[%s34_s0] sm:$0x1] }
   0x2   :  { %v4_v1 = vld [vmem:[%s35_s1] sm:$0x1] }
   0x3   :  { %v7_v2 = vmul.f32 %v4_v1, %v3_v0 }
   0x5   :  { %9 = vst [vmem:[%s36_s2] sm:$0x1] %v7_v2 }

// kernel: model_forward.35
= control target key start
LH: loop header
LB: loop body
LE: loop exit
PB: predicated region body
PF: predicated region fallthrough
CT: control target
= control target key end

     0   :  { %v92_v3 = vmov 0   ;;  %vm51_vm0 = vcmask 261120   ;;  %s167_s2 = inlined_call_operand.vmem [shape: f32[32,32], index: 2, kind: input, shape index: {}]   ;;  %s168_s0 = inlined_call_operand.vmem [shape: f32[32,32], index: 0, kind: input, shape index: {}]   ;;  %s169_s1 = inlined_call_operand.vmem [shape: f32[32,1], index: 1, kind: input, shape index: {}]   ;;  %s170_s3 = inlined_call_operand.vmem [shape: f32[32,32], index: 3, kind: output, shape index: {}]  }
   0x1   :  { %v23_v0 = vld [vmem:[%s167_s2 + $0x10] sm:$0xff]  ;;  %v24_v1 = vld [vmem:[%s167_s2 + $0x18] sm:$0xff]  ;;  %v21_v2 = vld [vmem:[%s167_s2] sm:$0xff]  ;;  %91 = vset.pattern.permute.xlu1 %v92_v3  ;;  %90 = vset.pattern.permute.xlu0 %v92_v3 }
   0x2   :  { %v26_v4 = vpack.c.bf16 %v24_v1, %v23_v0  ;;  %v22_v5 = vld [vmem:[%s167_s2 + $0x8] sm:$0xff]  ;;  %v15_v6 = vld [vmem:[%s168_s0] sm:$0xff]  ;;  %v29_v8 = vld [vmem:[%s169_s1 + $0x10] sm:$0xff] }
   0x3   :  { %v16_v7 = vld [vmem:[%s168_s0 + $0x8] sm:$0xff]  ;;  %v25_v9 = vpack.c.bf16 %v22_v5, %v21_v2  ;;  %v17_v10 = vld [vmem:[%s168_s0 + $0x10] sm:$0xff]  ;;  %v18_v11 = vld [vmem:[%s168_s0 + $0x18] sm:$0xff]  ;;  %43 = vperm.xlu1 %91, %v29_v8  }
   0x4   :  { %64 = vmatpush.bf16.msra.mxu0 %v26_v4  ;;  %87 = vmatpush.bf16.msra.mxu1 %v26_v4  ;;  %v27_v12 = vld [vmem:[%s169_s1] sm:$0xff]  ;;  %v19_v13 = vpack.c.bf16 %v16_v7, %v15_v6  ;;  %v20_v14 = vpack.c.bf16 %v18_v11, %v17_v10  ;;  %v30_v15 = vld [vmem:[%s169_s1 + $0x18] sm:$0xff]  ;;  %v28_v16 = vld [vmem:[%s169_s1 + $0x8] sm:$0xff] }
   0x5   :  { %33 = vperm.xlu0 %90, %v27_v12  }
   0x8   :  { %65 = vmatpush.bf16.msra.mxu0 %v25_v9  ;;  %88 = vmatpush.bf16.msra.mxu1 %v25_v9 }
   0xb   :  { %85 = vmatmul.msk.bf16.vlgmr.msra.gmra.mxu0 %vm51_vm0, %v19_v13  ;;  %86 = vmatmul.msk.bf16.vlgmr.msra.gmra.mxu1 %vm51_vm0, %v20_v14 }
   0xc   :  { %48 = vperm.xlu1 %91, %v30_v15  }
   0xd   :  { %38 = vperm.xlu0 %90, %v28_v16  }
  0x75   :  { %v44_v17 = vpop.permute.xlu1 %43 }
  0x77   :  { %v34_v18 = vpop.permute.xlu0 %33 }
  0x7e   :  { %v49_v23 = vpop.permute.xlu1 %48 }
  0x7f   :  { %v39_v24 = vpop.permute.xlu0 %38 }
  0x88   :  { %v67_v19 = vpop.f32.mrf.mxu0  ;;  %v72_v20 = vpop.f32.mrf.mxu1 }
  0x89   :  { %v68_v21 = vadd.f32 %v67_v19, %v34_v18  ;;  %v73_v22 = vadd.f32 %v72_v20, %v44_v17 }
  0x8b   :  { %77 = vst.msk [vmem:[%s170_s3] sm:$0xff] %vm51_vm0, %v68_v21 }
  0x8c   :  { %79 = vst.msk [vmem:[%s170_s3 + $0x10] sm:$0xff] %vm51_vm0, %v73_v22 }
  0x90   :  { %v69_v25 = vpop.f32.mrf.mxu0  ;;  %v74_v26 = vpop.f32.mrf.mxu1 }
  0x91   :  { %v70_v27 = vadd.f32 %v69_v25, %v39_v24  ;;  %v75_v28 = vadd.f32 %v74_v26, %v49_v23 }
  0x93   :  { %78 = vst.msk [vmem:[%s170_s3 + $0x8] sm:$0xff] %vm51_vm0, %v70_v27 }
  0x94   :  { %80 = vst.msk [vmem:[%s170_s3 + $0x18] sm:$0xff] %vm51_vm0, %v75_v28 }

// kernel: model_forward.36
= control target key start
LH: loop header
LB: loop body
LE: loop exit
PB: predicated region body
PF: predicated region fallthrough
CT: control target
= control target key end

     0   :  { %v540_v1 = vmov 0   ;;  %vm185_vm0 = vcmask 130048   ;;  %vm344_vm1 = vcmask 523264   ;;  %vm402_vm2 = vcmask 257024   ;;  %s742_s4 = inlined_call_operand.vmem [shape: bf16[144,32], index: 4, kind: input, shape index: {}]   ;;  %s743_s0 = inlined_call_operand.vmem [shape: bf16[64,144], index: 0, kind: input, shape index: {}]   ;;  %s744_s1 = inlined_call_operand.vmem [shape: f32[64,1], index: 1, kind: input, shape index: {}]   ;;  %s745_s3 = inlined_call_operand.vmem [shape: f32[64,1], index: 3, kind: input, shape index: {}]   ;;  %s746_s2 = inlined_call_operand.vmem [shape: bf16[64,64], index: 2, kind: input, shape index: {}]   ;;  %s747_s5 = inlined_call_operand.vmem [shape: bf16[64,32], index: 5, kind: output, shape index: {}]  }
   0x1   :  { %v522_v0 = vld [vmem:[%s742_s4 + $0x38] sm:$0xff]  ;;  %537 = vset.pattern.permute.xlu0 %v540_v1  ;;  %538 = vset.pattern.permute.xlu1 %v540_v1  ;;  %v523_v2 = vld [vmem:[%s742_s4 + $0x40] sm:$0xff]  ;;  %v521_v4 = vld [vmem:[%s742_s4 + $0x30] sm:$0xff] }
   0x2   :  { %v507_v3 = vld [vmem:[%s743_s0 + $0x4] sm:$0xf]  ;;  %539 = vset.pattern.permute.xlu2 %v540_v1  ;;  %198 = vmatpush.bf16.msra.mxu0 %v522_v0  ;;  %v419_v5 = vld [vmem:[%s743_s0 + $0x8] sm:$0xf0]  ;;  %v53_v7 = vld [vmem:[%s744_s1 + $0x30] sm:$0xff] }
   0x3   :  { %528 = vmatpush.bf16.msra.mxu3 %v522_v0  ;;  %234 = vmatpush.bf16.msra.mxu1 %v523_v2  ;;  %v422_v6 = vor.u32 %v507_v3, %v419_v5  ;;  %v520_v8 = vld [vmem:[%s742_s4 + $0x28] sm:$0xff]  ;;  %v51_v9 = vld [vmem:[%s744_s1 + $0x20] sm:$0xff]  ;;  %v54_v10 = vld [vmem:[%s744_s1 + $0x38] sm:$0xff] }
   0x4   :  { %87 = vperm.xlu0 %537, %v53_v7   ;;  %77 = vperm.xlu1 %538, %v51_v9   ;;  %v519_v11 = vld [vmem:[%s742_s4 + $0x20] sm:$0xff]  ;;  %v52_v12 = vld [vmem:[%s744_s1 + $0x28] sm:$0xff]  ;;  %v518_v13 = vld [vmem:[%s742_s4 + $0x18] sm:$0xff] }
   0x5   :  { %v509_v14 = vld [vmem:[%s743_s0 + $0x14] sm:$0xf]  ;;  %v427_v15 = vld [vmem:[%s743_s0 + $0x18] sm:$0xf0]  ;;  %v47_v16 = vld [vmem:[%s744_s1] sm:$0xff] }
   0x6   :  { %199 = vmatpush.bf16.msra.mxu0 %v521_v4  ;;  %483 = vmatmul.msk.bf16.vlgmr.msra.gmra.mxu1 %vm185_vm0, %v422_v6  ;;  %v517_v17 = vld [vmem:[%s742_s4 + $0x10] sm:$0xff]  ;;  %v430_v18 = vor.u32 %v509_v14, %v427_v15  ;;  %v48_v19 = vld [vmem:[%s744_s1 + $0x8] sm:$0xff]  ;;  %v515_v21 = vld [vmem:[%s742_s4] sm:$0xff] }
   0x7   :  { %529 = vmatpush.bf16.msra.mxu3 %v521_v4  ;;  %v516_v20 = vld [vmem:[%s742_s4 + $0x8] sm:$0xff]  ;;  %v417_v22 = vld [vmem:[%s743_s0] sm:$0xf]  ;;  %v425_v24 = vld [vmem:[%s743_s0 + $0x10] sm:$0xf] }
   0x8   :  { %v508_v23 = vld [vmem:[%s743_s0 + $0x4] sm:$0xf0]  ;;  %v510_v25 = vld [vmem:[%s743_s0 + $0x14] sm:$0xf0]  ;;  %v511_v28 = vld [vmem:[%s743_s0 + $0x24] sm:$0xf] }
   0x9   :  { %v418_v26 = vor.u32 %v508_v23, %v417_v22  ;;  %v426_v27 = vor.u32 %v510_v25, %v425_v24  ;;  %v435_v29 = vld [vmem:[%s743_s0 + $0x28] sm:$0xf0]  ;;  %v49_v31 = vld [vmem:[%s744_s1 + $0x10] sm:$0xff]  ;;  %v280_v34 = vld [vmem:[%s745_s3 + $0x20] sm:$0xff] }
   0xa   :  { %200 = vmatpush.bf16.msra.mxu0 %v520_v8  ;;  %v277_v30 = vld [vmem:[%s745_s3 + $0x8] sm:$0xff]  ;;  %67 = vperm.xlu2 %539, %v49_v31   ;;  %v278_v32 = vld [vmem:[%s745_s3 + $0x10] sm:$0xff]  ;;  %v438_v33 = vor.u32 %v511_v28, %v435_v29  ;;  %v50_v35 = vld [vmem:[%s744_s1 + $0x18] sm:$0xff] }
   0xb   :  { %530 = vmatpush.bf16.msra.mxu3 %v520_v8  ;;  %v281_v36 = vld [vmem:[%s745_s3 + $0x28] sm:$0xff]  ;;  %v433_v37 = vld [vmem:[%s743_s0 + $0x20] sm:$0xf]  ;;  %v283_v40 = vld [vmem:[%s745_s3 + $0x38] sm:$0xff] }
   0xc   :  { %92 = vperm.xlu0 %537, %v54_v10   ;;  %82 = vperm.xlu1 %538, %v52_v12   ;;  %v512_v38 = vld [vmem:[%s743_s0 + $0x24] sm:$0xf0]  ;;  %v276_v41 = vld [vmem:[%s745_s3] sm:$0xff]  ;;  %v513_v42 = vld [vmem:[%s743_s0 + $0x34] sm:$0xf] }
   0xd   :  { %v434_v39 = vor.u32 %v512_v38, %v433_v37  ;;  %v443_v43 = vld [vmem:[%s743_s0 + $0x38] sm:$0xf0]  ;;  %v441_v46 = vld [vmem:[%s743_s0 + $0x30] sm:$0xf]  ;;  %v514_v47 = vld [vmem:[%s743_s0 + $0x34] sm:$0xf0] }
   0xe   :  { %201 = vmatpush.bf16.msra.mxu0 %v519_v11  ;;  %v446_v44 = vor.u32 %v513_v42, %v443_v43  ;;  %v279_v45 = vld [vmem:[%s745_s3 + $0x18] sm:$0xff]  ;;  %v442_v48 = vor.u32 %v514_v47, %v441_v46  ;;  %v282_v49 = vld [vmem:[%s745_s3 + $0x30] sm:$0xff]  ;;  %v524_v38 = vld [vmem:[%s746_s2] sm:$0xff] }
   0xf   :  { %531 = vmatpush.bf16.msra.mxu3 %v519_v11 }
  0x12   :  { %202 = vmatpush.bf16.msra.mxu0 %v518_v13  ;;  %72 = vperm.xlu2 %539, %v50_v35  }
  0x13   :  { %532 = vmatpush.bf16.msra.mxu3 %v518_v13 }
  0x14   :  { %57 = vperm.xlu0 %537, %v47_v16   ;;  %62 = vperm.xlu1 %538, %v48_v19  }
  0x16   :  { %203 = vmatpush.bf16.msra.mxu0 %v517_v17  ;;  %484 = vmatmul.msk.bf16.gmra.mxu1 %vm185_vm0, %v430_v18 }
  0x17   :  { %533 = vmatpush.bf16.msra.mxu3 %v517_v17 }
  0x1a   :  { %204 = vmatpush.bf16.msra.mxu0 %v516_v20  ;;  %286 = vperm.xlu2 %539, %v276_v41   ;;  %v527_v41 = vld [vmem:[%s746_s2 + $0x18] sm:$0xff] }
  0x1b   :  { %534 = vmatpush.bf16.msra.mxu3 %v516_v20 }
  0x1c   :  { %291 = vperm.xlu0 %537, %v277_v30   ;;  %296 = vperm.xlu1 %538, %v278_v32  }
  0x1e   :  { %205 = vmatpush.bf16.msra.mxu0 %v515_v21 }
  0x1f   :  { %535 = vmatpush.bf16.msra.mxu3 %v515_v21 }
  0x21   :  { %206 = vmatmul.bf16.vlgmr.msra.gmra.mxu0 %v418_v26 }
  0x22   :  { %211 = vmatmul.bf16.vlgmr.msra.gmra.mxu3 %v426_v27  ;;  %301 = vperm.xlu2 %539, %v279_v45  }
  0x24   :  { %306 = vperm.xlu0 %537, %v280_v34   ;;  %311 = vperm.xlu1 %538, %v281_v36  }
  0x26   :  { %485 = vmatmul.msk.bf16.gmra.mxu1 %vm185_vm0, %v438_v33 }
  0x2a   :  { %316 = vperm.xlu2 %539, %v282_v49  }
  0x2c   :  { %321 = vperm.xlu0 %537, %v283_v40   ;;  %v526_v40 = vld [vmem:[%s746_s2 + $0x10] sm:$0xff] }
  0x32   :  { %216 = vmatmul.bf16.gmra.mxu3 %v434_v39  ;;  %v525_v39 = vld [vmem:[%s746_s2 + $0x8] sm:$0xff] }
  0x36   :  { %486 = vmatmul.msk.bf16.gmra.mxu1 %vm185_vm0, %v446_v44 }
  0x42   :  { %221 = vmatmul.bf16.gmra.mxu3 %v442_v48 }
  0x64   :  { %v68_v62 = vpop.permute.xlu2 %67 }
  0x6c   :  { %v73_v6 = vpop.permute.xlu2 %72 }
  0x74   :  { %v287_v42 = vpop.permute.xlu2 %286 }
  0x76   :  { %v78_v59 = vpop.permute.xlu1 %77  ;;  %v88_v61 = vpop.permute.xlu0 %87 }
  0x7e   :  { %v83_v1 = vpop.permute.xlu1 %82  ;;  %v93_v3 = vpop.permute.xlu0 %92 }
  0x83   :  { %v236_v50 = vpop.f32.mrf.mxu1 }
  0x86   :  { %v63_v15 = vpop.permute.xlu1 %62  ;;  %v58_v21 = vpop.permute.xlu0 %57 }
  0x8b   :  { %v238_v51 = vpop.f32.mrf.mxu1 }
  0x8e   :  { %v292_v47 = vpop.permute.xlu0 %291 }
  0x93   :  { %v241_v52 = vpop.f32.mrf.mxu1 }
  0x9b   :  { %v243_v54 = vpop.f32.mrf.mxu1 }
  0x9e   :  { %v207_v2 = vpop.f32.mrf.mxu0 }
  0x9f   :  { %v208_v26 = vadd.f32 %v207_v2, %v58_v21 }
  0xa1   :  { %v237_v32 = vadd.f32 %v236_v50, %v208_v26 }
  0xa3   :  { %v246_v56 = vpop.f32.mrf.mxu1  ;;  %v256_v36 = vmax.f32 %v237_v32, 0.0 }
  0xa5   :  { %v212_v53 = vpop.f32.mrf.mxu3 }
  0xa6   :  { %v209_v16 = vpop.f32.mrf.mxu0  ;;  %v213_v17 = vadd.f32 %v212_v53, %v68_v62  ;;  %v307_v62 = vpop.permute.xlu0 %306 }
  0xa7   :  { %v210_v22 = vadd.f32 %v209_v16, %v63_v15 }
  0xa8   :  { %v242_v27 = vadd.f32 %v241_v52, %v213_v17  ;;  %v297_v52 = vpop.permute.xlu1 %296 }
  0xa9   :  { %v239_v29 = vadd.f32 %v238_v51, %v210_v22 }
  0xaa   :  { %v258_v33 = vmax.f32 %v242_v27, 0.0 }
  0xab   :  { %v248_v58 = vpop.f32.mrf.mxu1  ;;  %v257_v34 = vmax.f32 %v239_v29, 0.0 }
  0xad   :  { %v214_v55 = vpop.f32.mrf.mxu3  ;;  %v272_v37 = vpack.c.bf16 %v257_v34, %v256_v36 }
  0xae   :  { %v215_v12 = vadd.f32 %v214_v55, %v73_v6 }
  0xb0   :  { %v244_v23 = vadd.f32 %v243_v54, %v215_v12 }
  0xb2   :  { %v259_v30 = vmax.f32 %v244_v23, 0.0 }
  0xb3   :  { %v251_v63 = vpop.f32.mrf.mxu1 }
  0xb4   :  { %v273_v35 = vpack.c.bf16 %v259_v30, %v258_v33 }
  0xb5   :  { %v217_v57 = vpop.f32.mrf.mxu3 }
  0xb6   :  { %v218_v8 = vadd.f32 %v217_v57, %v78_v59  ;;  %v302_v57 = vpop.permute.xlu2 %301 }
  0xb8   :  { %v247_v18 = vadd.f32 %v246_v56, %v218_v8 }
  0xba   :  { %v260_v28 = vmax.f32 %v247_v18, 0.0 }
  0xbb   :  { %v253_v11 = vpop.f32.mrf.mxu1 }
  0xbd   :  { %v219_v60 = vpop.f32.mrf.mxu3 }
  0xbe   :  { %v220_v5 = vadd.f32 %v219_v60, %v83_v1  ;;  %v317_v8 = vpop.permute.xlu2 %316 }
  0xc0   :  { %v249_v13 = vadd.f32 %v248_v58, %v220_v5 }
  0xc2   :  { %v261_v24 = vmax.f32 %v249_v13, 0.0  ;;  %v322_v13 = vpop.permute.xlu0 %321 }
  0xc4   :  { %v274_v31 = vpack.c.bf16 %v261_v24, %v260_v28 }
  0xc5   :  { %v222_v0 = vpop.f32.mrf.mxu3 }
  0xc6   :  { %v223_v4 = vadd.f32 %v222_v0, %v88_v61 }
  0xc8   :  { %v252_v10 = vadd.f32 %v251_v63, %v223_v4 }
  0xca   :  { %v262_v19 = vmax.f32 %v252_v10, 0.0 }
  0xcd   :  { %v224_v7 = vpop.f32.mrf.mxu3 }
  0xce   :  { %v225_v9 = vadd.f32 %v224_v7, %v93_v3  ;;  %v312_v3 = vpop.permute.xlu1 %311 }
  0xd0   :  { %v254_v14 = vadd.f32 %v253_v11, %v225_v9 }
  0xd2   :  { %v263_v20 = vmax.f32 %v254_v14, 0.0 }
  0xd4   :  { %v275_v25 = vpack.c.bf16 %v263_v20, %v262_v19 }
  0xd6   :  { %361 = vmatpush.bf16.msra.mxu2 %v275_v25 }
  0xda   :  { %362 = vmatpush.bf16.msra.mxu2 %v274_v31 }
  0xde   :  { %363 = vmatpush.bf16.msra.mxu2 %v273_v35 }
  0xe2   :  { %364 = vmatpush.bf16.msra.mxu2 %v272_v37 }
  0xe5   :  { %503 = vmatmul.msk.bf16.vlgmr.msra.gmra.mxu2 %vm344_vm1, %v524_v38 }
  0xf5   :  { %504 = vmatmul.msk.bf16.gmra.mxu2 %vm344_vm1, %v525_v39 }
 0x105   :  { %505 = vmatmul.msk.bf16.gmra.mxu2 %vm344_vm1, %v526_v40 }
 0x115   :  { %506 = vmatmul.msk.bf16.gmra.mxu2 %vm344_vm1, %v527_v41 }
 0x168   :  { %v366_v43 = vpop.f32.mrf.mxu2 }
 0x169   :  { %v367_v44 = vadd.f32 %v366_v43, %v287_v42 }
 0x16b   :  { %v386_v45 = vmax.f32 %v367_v44, 0.0 }
 0x16d   :  { %v394_v46 = vpack.c.bf16 %v386_v45, %v386_v45 }
 0x16f   :  { %403 = vst.msk [vmem:[%s747_s5] sm:$0xf] %vm402_vm2, %v394_v46 }
 0x170   :  { %v368_v48 = vpop.f32.mrf.mxu2 }
 0x171   :  { %v369_v49 = vadd.f32 %v368_v48, %v292_v47 }
 0x173   :  { %v387_v50 = vmax.f32 %v369_v49, 0.0 }
 0x175   :  { %v395_v51 = vpack.c.bf16 %v387_v50, %v387_v50 }
 0x177   :  { %404 = vst.msk [vmem:[%s747_s5 + $0x4] sm:$0xf] %vm402_vm2, %v395_v51 }
 0x178   :  { %v371_v53 = vpop.f32.mrf.mxu2 }
 0x179   :  { %v372_v54 = vadd.f32 %v371_v53, %v297_v52 }
 0x17b   :  { %v388_v55 = vmax.f32 %v372_v54, 0.0 }
 0x17d   :  { %v396_v56 = vpack.c.bf16 %v388_v55, %v388_v55 }
 0x17f   :  { %405 = vst.msk [vmem:[%s747_s5 + $0x8] sm:$0xf] %vm402_vm2, %v396_v56 }
 0x180   :  { %v373_v58 = vpop.f32.mrf.mxu2 }
 0x181   :  { %v374_v59 = vadd.f32 %v373_v58, %v302_v57 }
 0x183   :  { %v389_v60 = vmax.f32 %v374_v59, 0.0 }
 0x185   :  { %v397_v61 = vpack.c.bf16 %v389_v60, %v389_v60 }
 0x187   :  { %406 = vst.msk [vmem:[%s747_s5 + $0xc] sm:$0xf] %vm402_vm2, %v397_v61 }
 0x188   :  { %v376_v63 = vpop.f32.mrf.mxu2 }
 0x189   :  { %v377_v0 = vadd.f32 %v376_v63, %v307_v62 }
 0x18b   :  { %v390_v1 = vmax.f32 %v377_v0, 0.0 }
 0x18d   :  { %v398_v2 = vpack.c.bf16 %v390_v1, %v390_v1 }
 0x18f   :  { %407 = vst.msk [vmem:[%s747_s5 + $0x10] sm:$0xf] %vm402_vm2, %v398_v2 }
 0x190   :  { %v378_v4 = vpop.f32.mrf.mxu2 }
 0x191   :  { %v379_v5 = vadd.f32 %v378_v4, %v312_v3 }
 0x193   :  { %v391_v6 = vmax.f32 %v379_v5, 0.0 }
 0x195   :  { %v399_v7 = vpack.c.bf16 %v391_v6, %v391_v6 }
 0x197   :  { %408 = vst.msk [vmem:[%s747_s5 + $0x14] sm:$0xf] %vm402_vm2, %v399_v7 }
 0x198   :  { %v381_v9 = vpop.f32.mrf.mxu2 }
 0x199   :  { %v382_v10 = vadd.f32 %v381_v9, %v317_v8 }
 0x19b   :  { %v392_v11 = vmax.f32 %v382_v10, 0.0 }
 0x19d   :  { %v400_v12 = vpack.c.bf16 %v392_v11, %v392_v11 }
 0x19f   :  { %409 = vst.msk [vmem:[%s747_s5 + $0x18] sm:$0xf] %vm402_vm2, %v400_v12 }
 0x1a0   :  { %v383_v14 = vpop.f32.mrf.mxu2 }
 0x1a1   :  { %v384_v15 = vadd.f32 %v383_v14, %v322_v13 }
 0x1a3   :  { %v393_v16 = vmax.f32 %v384_v15, 0.0 }
 0x1a5   :  { %v401_v17 = vpack.c.bf16 %v393_v16, %v393_v16 }
 0x1a7   :  { %410 = vst.msk [vmem:[%s747_s5 + $0x1c] sm:$0xf] %vm402_vm2, %v401_v17 }

// kernel: model_forward.37
= control target key start
LH: loop header
LB: loop body
LE: loop exit
PB: predicated region body
PF: predicated region fallthrough
CT: control target
= control target key end

     0   :  { %v821_v8 = vmov 0   ;;  %vm394_vm0 = vcmask 523264   ;;  %vm542_vm5 = vcmask 261120   ;;  %vm558_vm10 = vcmask 253952   ;;  %s1051_s2 = inlined_call_operand.vmem [shape: bf16[576,32], index: 2, kind: input, shape index: {}]   ;;  %s1052_s1 = inlined_call_operand.vmem [shape: f32[32,1], index: 1, kind: input, shape index: {}]   ;;  %s1053_s0 = inlined_call_operand.vmem [shape: bf16[32,576], index: 0, kind: input, shape index: {}]   ;;  %s1054_s3 = inlined_call_operand.vmem [shape: f32[16,32], index: 3, kind: input, shape index: {}]   ;;  %s1055_s4 = inlined_call_operand.vmem [shape: f32[16,32], index: 4, kind: output, shape index: {0}]   ;;  %s1056_s5 = inlined_call_operand.vmem [shape: f32[1,32], index: 5, kind: output, shape index: {1}]  }
   0x1   :  { %v773_v0 = vld [vmem:[%s1051_s2 + $0x38] sm:$0xff]  ;;  %v772_v4 = vld [vmem:[%s1051_s2 + $0x30] sm:$0xff]  ;;  %807 = vset.pattern.permute.xlu0 %v821_v8  ;;  %808 = vset.pattern.permute.xlu1 %v821_v8  ;;  %v771_v9 = vld [vmem:[%s1051_s2 + $0x28] sm:$0xff] }
   0x2   :  { %v781_v1 = vld [vmem:[%s1051_s2 + $0x78] sm:$0xff]  ;;  %401 = vmatpush.bf16.msra.mxu0 %v773_v0  ;;  %v780_v5 = vld [vmem:[%s1051_s2 + $0x70] sm:$0xff]  ;;  %v779_v10 = vld [vmem:[%s1051_s2 + $0x68] sm:$0xff] }
   0x3   :  { %v789_v2 = vld [vmem:[%s1051_s2 + $0xb8] sm:$0xff]  ;;  %420 = vmatpush.bf16.msra.mxu1 %v781_v1  ;;  %v788_v6 = vld [vmem:[%s1051_s2 + $0xb0] sm:$0xff]  ;;  %v787_v11 = vld [vmem:[%s1051_s2 + $0xa8] sm:$0xff] }
   0x4   :  { %v797_v3 = vld [vmem:[%s1051_s2 + $0xf8] sm:$0xff]  ;;  %439 = vmatpush.bf16.msra.mxu2 %v789_v2  ;;  %v796_v7 = vld [vmem:[%s1051_s2 + $0xf0] sm:$0xff]  ;;  %v795_v12 = vld [vmem:[%s1051_s2 + $0xe8] sm:$0xff] }
   0x5   :  { %458 = vmatpush.bf16.msra.mxu3 %v797_v3  ;;  %v770_v13 = vld [vmem:[%s1051_s2 + $0x20] sm:$0xff]  ;;  %v769_v17 = vld [vmem:[%s1051_s2 + $0x18] sm:$0xff]  ;;  %v768_v22 = vld [vmem:[%s1051_s2 + $0x10] sm:$0xff] }
   0x6   :  { %402 = vmatpush.bf16.msra.mxu0 %v772_v4  ;;  %v778_v14 = vld [vmem:[%s1051_s2 + $0x60] sm:$0xff]  ;;  %v777_v18 = vld [vmem:[%s1051_s2 + $0x58] sm:$0xff]  ;;  %v776_v23 = vld [vmem:[%s1051_s2 + $0x50] sm:$0xff] }
   0x7   :  { %421 = vmatpush.bf16.msra.mxu1 %v780_v5  ;;  %v786_v15 = vld [vmem:[%s1051_s2 + $0xa0] sm:$0xff]  ;;  %v785_v20 = vld [vmem:[%s1051_s2 + $0x98] sm:$0xff]  ;;  %v784_v24 = vld [vmem:[%s1051_s2 + $0x90] sm:$0xff] }
   0x8   :  { %440 = vmatpush.bf16.msra.mxu2 %v788_v6  ;;  %v794_v16 = vld [vmem:[%s1051_s2 + $0xe0] sm:$0xff]  ;;  %v793_v21 = vld [vmem:[%s1051_s2 + $0xd8] sm:$0xff]  ;;  %v792_v25 = vld [vmem:[%s1051_s2 + $0xd0] sm:$0xff] }
   0x9   :  { %459 = vmatpush.bf16.msra.mxu3 %v796_v7  ;;  %v104_v19 = vld [vmem:[%s1052_s1] sm:$0xff]  ;;  %v106_v26 = vld [vmem:[%s1052_s1 + $0x10] sm:$0xff]  ;;  %v105_v27 = vld [vmem:[%s1052_s1 + $0x8] sm:$0xff] }
   0xa   :  { %403 = vmatpush.bf16.msra.mxu0 %v771_v9  ;;  %110 = vperm.xlu0 %807, %v104_v19   ;;  %v767_v28 = vld [vmem:[%s1051_s2 + $0x8] sm:$0xff]  ;;  %v766_v32 = vld [vmem:[%s1051_s2] sm:$0xff]  ;;  %v758_v37 = vld [vmem:[%s1053_s0 + $0x10] sm:$0xf0] }
   0xb   :  { %422 = vmatpush.bf16.msra.mxu1 %v779_v10  ;;  %120 = vperm.xlu1 %808, %v106_v26   ;;  %v775_v29 = vld [vmem:[%s1051_s2 + $0x48] sm:$0xff]  ;;  %v774_v33 = vld [vmem:[%s1051_s2 + $0x40] sm:$0xff]  ;;  %v572_v39 = vld [vmem:[%s1053_s0 + $0x14] sm:$0xf0] }
   0xc   :  { %441 = vmatpush.bf16.msra.mxu2 %v787_v11  ;;  %v783_v30 = vld [vmem:[%s1051_s2 + $0x88] sm:$0xff]  ;;  %v782_v34 = vld [vmem:[%s1051_s2 + $0x80] sm:$0xff]  ;;  %v759_v41 = vld [vmem:[%s1053_s0 + $0x18] sm:$0xf0] }
   0xd   :  { %460 = vmatpush.bf16.msra.mxu3 %v795_v12  ;;  %v791_v31 = vld [vmem:[%s1051_s2 + $0xc8] sm:$0xff]  ;;  %v790_v35 = vld [vmem:[%s1051_s2 + $0xc0] sm:$0xff]  ;;  %v801_v44 = vld [vmem:[%s1051_s2 + $0x118] sm:$0xff] }
   0xe   :  { %404 = vmatpush.bf16.msra.mxu0 %v770_v13  ;;  %v570_v36 = vld [vmem:[%s1053_s0] sm:$0xf]  ;;  %v756_v38 = vld [vmem:[%s1053_s0 + $0x4] sm:$0xf]  ;;  %v578_v40 = vld [vmem:[%s1053_s0 + $0x8] sm:$0xf] }
   0xf   :  { %423 = vmatpush.bf16.msra.mxu1 %v778_v14  ;;  %v757_v42 = vld [vmem:[%s1053_s0 + $0xc] sm:$0xf]  ;;  %v580_v43 = vld [vmem:[%s1053_s0 + $0x1c] sm:$0xf0]  ;;  %v571_v45 = vor.u32 %v758_v37, %v570_v36  ;;  %v575_v46 = vor.u32 %v756_v38, %v572_v39  ;;  %v579_v47 = vor.u32 %v759_v41, %v578_v40  ;;  %v800_v49 = vld [vmem:[%s1051_s2 + $0x110] sm:$0xff] }
  0x10   :  { %442 = vmatpush.bf16.msra.mxu2 %v786_v15  ;;  %v583_v48 = vor.u32 %v757_v42, %v580_v43  ;;  %v107_v50 = vld [vmem:[%s1052_s1 + $0x18] sm:$0xff]  ;;  %v799_v51 = vld [vmem:[%s1051_s2 + $0x108] sm:$0xff]  ;;  %v798_v52 = vld [vmem:[%s1051_s2 + $0x100] sm:$0xff] }
  0x11   :  { %461 = vmatpush.bf16.msra.mxu3 %v794_v16  ;;  %v590_v53 = vld [vmem:[%s1053_s0 + $0x28] sm:$0xf]  ;;  %v763_v54 = vld [vmem:[%s1053_s0 + $0x38] sm:$0xf0]  ;;  %v761_v55 = vld [vmem:[%s1053_s0 + $0x2c] sm:$0xf] }
  0x12   :  { %405 = vmatpush.bf16.msra.mxu0 %v769_v17  ;;  %115 = vperm.xlu0 %807, %v105_v27   ;;  %v592_v56 = vld [vmem:[%s1053_s0 + $0x3c] sm:$0xf0]  ;;  %v598_v57 = vld [vmem:[%s1053_s0 + $0x30] sm:$0xf]  ;;  %v764_v58 = vld [vmem:[%s1053_s0 + $0x40] sm:$0xf0]  ;;  %v591_v61 = vor.u32 %v763_v54, %v590_v53 }
  0x13   :  { %424 = vmatpush.bf16.msra.mxu1 %v777_v18  ;;  %125 = vperm.xlu1 %808, %v107_v50   ;;  %v762_v59 = vld [vmem:[%s1053_s0 + $0x34] sm:$0xf]  ;;  %v600_v60 = vld [vmem:[%s1053_s0 + $0x44] sm:$0xf0]  ;;  %v595_v62 = vor.u32 %v761_v55, %v592_v56  ;;  %v599_v63 = vor.u32 %v764_v58, %v598_v57  ;;  %v586_v1 = vld [vmem:[%s1053_s0 + $0x10] sm:$0xf] }
  0x14   :  { %443 = vmatpush.bf16.msra.mxu2 %v785_v20  ;;  %v603_v0 = vor.u32 %v762_v59, %v600_v60  ;;  %v760_v2 = vld [vmem:[%s1053_s0 + $0x20] sm:$0xf0]  ;;  %v606_v3 = vld [vmem:[%s1053_s0 + $0x38] sm:$0xf]  ;;  %v765_v4 = vld [vmem:[%s1053_s0 + $0x48] sm:$0xf0] }
  0x15   :  { %462 = vmatpush.bf16.msra.mxu3 %v793_v21  ;;  %v587_v5 = vor.u32 %v760_v2, %v586_v1  ;;  %v607_v6 = vor.u32 %v765_v4, %v606_v3  ;;  %v536_v60 = vld [vmem:[%s1054_s3] sm:$0xff] }
  0x16   :  { %406 = vmatpush.bf16.msra.mxu0 %v768_v22 }
  0x17   :  { %425 = vmatpush.bf16.msra.mxu1 %v776_v23 }
  0x18   :  { %444 = vmatpush.bf16.msra.mxu2 %v784_v24 }
  0x19   :  { %463 = vmatpush.bf16.msra.mxu3 %v792_v25 }
  0x1a   :  { %407 = vmatpush.bf16.msra.mxu0 %v767_v28 }
  0x1b   :  { %426 = vmatpush.bf16.msra.mxu1 %v775_v29 }
  0x1c   :  { %445 = vmatpush.bf16.msra.mxu2 %v783_v30 }
  0x1d   :  { %464 = vmatpush.bf16.msra.mxu3 %v791_v31 }
  0x1e   :  { %408 = vmatpush.bf16.msra.mxu0 %v766_v32 }
  0x1f   :  { %427 = vmatpush.bf16.msra.mxu1 %v774_v33 }
  0x20   :  { %446 = vmatpush.bf16.msra.mxu2 %v782_v34 }
  0x21   :  { %465 = vmatpush.bf16.msra.mxu3 %v790_v35  ;;  %409 = vmatmul.bf16.vlgmr.msra.gmra.mxu0 %v571_v45 }
  0x22   :  { %481 = vmatpush.bf16.msrb.mxu0 %v801_v44  ;;  %428 = vmatmul.bf16.vlgmr.msra.gmra.mxu1 %v575_v46 }
  0x23   :  { %802 = vmatpush.bf16.msrb.mxu1 %v801_v44  ;;  %447 = vmatmul.bf16.vlgmr.msra.gmra.mxu2 %v579_v47 }
  0x24   :  { %466 = vmatmul.bf16.vlgmr.msra.gmra.mxu3 %v583_v48 }
  0x26   :  { %482 = vmatpush.bf16.msrb.mxu0 %v800_v49 }
  0x27   :  { %803 = vmatpush.bf16.msrb.mxu1 %v800_v49 }
  0x2a   :  { %483 = vmatpush.bf16.msrb.mxu0 %v799_v51 }
  0x2b   :  { %804 = vmatpush.bf16.msrb.mxu1 %v799_v51 }
  0x2e   :  { %484 = vmatpush.bf16.msrb.mxu0 %v798_v52 }
  0x2f   :  { %805 = vmatpush.bf16.msrb.mxu1 %v798_v52 }
  0x31   :  { %414 = vmatmul.bf16.gmra.mxu0 %v591_v61 }
  0x32   :  { %433 = vmatmul.bf16.gmra.mxu1 %v595_v62 }
  0x33   :  { %452 = vmatmul.bf16.gmra.mxu2 %v599_v63 }
  0x34   :  { %471 = vmatmul.bf16.gmra.mxu3 %v603_v0 }
  0x41   :  { %752 = vmatmul.msk.bf16.vlgmr.msrb.gmra.mxu0 %vm394_vm0, %v587_v5 }
  0x42   :  { %753 = vmatmul.msk.bf16.vlgmr.msrb.gmra.mxu1 %vm394_vm0, %v607_v6 }
  0x7c   :  { %v111_v10 = vpop.permute.xlu0 %110 }
  0x7d   :  { %v121_v33 = vpop.permute.xlu1 %120 }
  0x84   :  { %v116_v17 = vpop.permute.xlu0 %115 }
  0x85   :  { %v126_v43 = vpop.permute.xlu1 %125 }
  0x9e   :  { %v410_v7 = vpop.f32.mrf.mxu0 }
  0x9f   :  { %v429_v9 = vpop.f32.mrf.mxu1  ;;  %v411_v12 = vadd.f32 %v410_v7, %v111_v10 }
  0xa1   :  { %v430_v16 = vadd.f32 %v429_v9, %v411_v12 }
  0xa6   :  { %v412_v8 = vpop.f32.mrf.mxu0  ;;  %v448_v13 = vpop.f32.mrf.mxu2 }
  0xa7   :  { %v431_v14 = vpop.f32.mrf.mxu1  ;;  %v467_v18 = vpop.f32.mrf.mxu3  ;;  %v449_v19 = vadd.f32 %v448_v13, %v430_v16  ;;  %v413_v20 = vadd.f32 %v412_v8, %v116_v17 }
  0xa9   :  { %v468_v21 = vadd.f32 %v467_v18, %v449_v19  ;;  %v432_v24 = vadd.f32 %v431_v14, %v413_v20  ;;  %v537_v14 = vld [vmem:[%s1054_s3 + $0x8] sm:$0xff] }
  0xae   :  { %v415_v11 = vpop.f32.mrf.mxu0  ;;  %v450_v22 = vpop.f32.mrf.mxu2 }
  0xaf   :  { %v434_v26 = vpop.f32.mrf.mxu1  ;;  %v451_v27 = vadd.f32 %v450_v22, %v432_v24  ;;  %v469_v29 = vpop.f32.mrf.mxu3  ;;  %v416_v40 = vadd.f32 %v415_v11, %v121_v33 }
  0xb1   :  { %v470_v31 = vadd.f32 %v469_v29, %v451_v27  ;;  %v435_v42 = vadd.f32 %v434_v26, %v416_v40 }
  0xb6   :  { %v417_v15 = vpop.f32.mrf.mxu0  ;;  %v453_v41 = vpop.f32.mrf.mxu2 }
  0xb7   :  { %v436_v36 = vpop.f32.mrf.mxu1  ;;  %v472_v44 = vpop.f32.mrf.mxu3  ;;  %v454_v46 = vadd.f32 %v453_v41, %v435_v42  ;;  %v418_v48 = vadd.f32 %v417_v15, %v126_v43 }
  0xb9   :  { %v473_v52 = vadd.f32 %v472_v44, %v454_v46  ;;  %v437_v54 = vadd.f32 %v436_v36, %v418_v48 }
  0xbe   :  { %v486_v23 = vpop.f32.mrf.mxu0  ;;  %v455_v55 = vpop.f32.mrf.mxu2 }
  0xbf   :  { %v487_v25 = vadd.f32 %v486_v23, %v468_v21  ;;  %v491_v49 = vpop.f32.mrf.mxu1  ;;  %v456_v61 = vadd.f32 %v455_v55, %v437_v54  ;;  %v474_v0 = vpop.f32.mrf.mxu3 }
  0xc0   :  { %v492_v57 = vadd.f32 %v491_v49, %v473_v52 }
  0xc1   :  { %v496_v28 = vadd.f32 2.0, %v487_v25  ;;  %v475_v7 = vadd.f32 %v474_v0, %v456_v61 }
  0xc2   :  { %v538_v3 = vadd.f32 %v536_v60, %v492_v57 }
  0xc3   :  { %v754_v30 = vmul.f32 -1.442695, %v496_v28 }
  0xc5   :  { %809 = vpow2.f32 %v754_v30 }
  0xc6   :  { %v488_v32 = vpop.f32.mrf.mxu0 }
  0xc7   :  { %v489_v34 = vadd.f32 %v488_v32, %v470_v31  ;;  %v493_v6 = vpop.f32.mrf.mxu1 }
  0xc8   :  { %v494_v11 = vadd.f32 %v493_v6, %v475_v7 }
  0xc9   :  { %v497_v35 = vadd.f32 2.0, %v489_v34 }
  0xca   :  { %v539_v18 = vadd.f32 %v537_v14, %v494_v11 }
  0xcb   :  { %v810_v37 = vpop.eup %809  ;;  %v755_v38 = vmul.f32 -1.442695, %v497_v35 }
  0xcc   :  { %v504_v39 = vadd.f32 1.0, %v810_v37 }
  0xcd   :  { %811 = vpow2.f32 %v755_v38 }
  0xce   :  { %813 = vrcp.f32 %v504_v39  ;;  %v517_v56 = vand.u32 2147483648, %v504_v39  ;;  %v515_v59 = vand.u32 2147483647, %v504_v39  ;;  %vm511_vm2 = vweird.f32 %v504_v39 }
  0xd0   :  { %v518_v1 = vor.u32 1.1754944e-38, %v517_v56  ;;  %vm516_vm4 = vcmp.eq.f32.partialorder %v515_v59, 8.507059e+37 }
  0xd3   :  { %v812_v45 = vpop.eup %811 }
  0xd4   :  { %v814_v47 = vpop.eup %813  ;;  %v505_v50 = vadd.f32 1.0, %v812_v45 }
  0xd5   :  { %v507_v51 = vmul.f32 %v814_v47, %v504_v39  ;;  %vm512_vm1 = vweird.f32 %v814_v47 }
  0xd6   :  { %815 = vrcp.f32 %v505_v50  ;;  %vm513_vm3 = vmor %vm511_vm2, %vm512_vm1  ;;  %v532_v10 = vand.u32 2147483648, %v505_v50  ;;  %v530_v13 = vand.u32 2147483647, %v505_v50  ;;  %vm526_vm7 = vweird.f32 %v505_v50 }
  0xd7   :  { %v508_v53 = vsub.f32 1.0, %v507_v51 }
  0xd8   :  { %v533_v16 = vor.u32 1.1754944e-38, %v532_v10  ;;  %vm531_vm9 = vcmp.eq.f32.partialorder %v530_v13, 8.507059e+37 }
  0xd9   :  { %v509_v58 = vmul.f32 %v814_v47, %v508_v53 }
  0xdb   :  { %v510_v62 = vadd.f32 %v814_v47, %v509_v58 }
  0xdc   :  { %v816_v63 = vpop.eup %815 }
  0xdd   :  { %v514_v2 = vsel %vm513_vm3, %v814_v47, %v510_v62  ;;  %v522_v4 = vmul.f32 %v816_v63, %v505_v50  ;;  %vm527_vm6 = vweird.f32 %v816_v63 }
  0xde   :  { %v519_v5 = vsel %vm516_vm4, %v518_v1, %v514_v2  ;;  %vm528_vm8 = vmor %vm526_vm7, %vm527_vm6 }
  0xdf   :  { %v540_v8 = vmul.f32 %v538_v3, %v519_v5  ;;  %v523_v9 = vsub.f32 1.0, %v522_v4  ;;  %817 = vlog2.f32 %v519_v5 }
  0xe1   :  { %543 = vst.msk [vmem:[%s1055_s4] sm:$0xff] %vm542_vm5, %v540_v8  ;;  %v524_v12 = vmul.f32 %v816_v63, %v523_v9 }
  0xe3   :  { %v525_v15 = vadd.f32 %v816_v63, %v524_v12 }
  0xe5   :  { %v529_v17 = vsel %vm528_vm8, %v816_v63, %v525_v15  ;;  %v818_v21 = vpop.eup %817 }
  0xe6   :  { %v534_v19 = vsel %vm531_vm9, %v533_v16, %v529_v17  ;;  %v546_v22 = vmul.f32 0.6931472, %v818_v21 }
  0xe7   :  { %v541_v20 = vmul.f32 %v539_v18, %v534_v19  ;;  %819 = vlog2.f32 %v534_v19 }
  0xe8   :  { %v549_v25 = vsel %vm542_vm5, %v546_v22, 0.0 }
  0xe9   :  { %544 = vst.msk [vmem:[%s1055_s4 + $0x8] sm:$0xff] %vm542_vm5, %v541_v20 }
  0xed   :  { %v820_v23 = vpop.eup %819 }
  0xee   :  { %v548_v24 = vmul.f32 0.6931472, %v820_v23 }
  0xf0   :  { %v550_v26 = vsel %vm542_vm5, %v548_v24, 0.0 }
  0xf1   :  { %v551_v27 = vadd.f32 %v550_v26, %v549_v25 }
  0xf3   :  { %v552_v28 = vrot.slane %v551_v27, 4 }
  0xf5   :  { %v553_v29 = vadd.f32 %v552_v28, %v551_v27 }
  0xf7   :  { %v554_v30 = vrot.slane %v553_v29, 2 }
  0xf9   :  { %v555_v31 = vadd.f32 %v554_v30, %v553_v29 }
  0xfb   :  { %v556_v32 = vrot.slane %v555_v31, 1 }
  0xfd   :  { %v557_v33 = vadd.f32 %v556_v32, %v555_v31 }
  0xff   :  { %559 = vst.msk [vmem:[%s1056_s5] sm:$0x1] %vm558_vm10, %v557_v33 }

// kernel: custom-call.28
= control target key start
LH: loop header
LB: loop body
LE: loop exit
PB: predicated region body
PF: predicated region fallthrough
CT: control target
= control target key end

     0   :  { %5 = vsyncpa [#allocation4], 0  ;;  %s888_s0 = inlined_call_operand.vmem [shape: f32[16,16], index: 0, kind: input, shape index: {}]   ;;  %s889_s1 = inlined_call_operand.vmem [shape: f32[16,16], index: 1, kind: output, shape index: {0}]   ;;  %s890_s2 = inlined_call_operand.hbm [shape: s32[16], index: 2, kind: output, shape index: {1}]   ;;  %s891_s3 = inlined_call_operand.vmem [shape: s32[16], index: 3, kind: output, shape index: {2}]  }
   0x1   :  { %s15_s14 = scalar_lea.vmem %s888_s0, 8 }
   0x2   :  { %p466_p0 = scmp.gt.s32.totalorder %s888_s0, %s15_s14 }
   0x3   :  { %s761_s17 = smov (!%p466_p0), [#allocation0]   ;;  %s765_s20 = smov (!%p466_p0), %s888_s0  }
   0x4   :  { %467 = sbr.rel (%p466_p0) target bundleno = 17 (0x11), region = 157 }
   0x9 LB: > { %v49_v0 = vld [vmem:[%s767_s20] sm:$0xff]  ;;  %s51_s20 = scalar_lea.vmem %s767_s20, 8   ;;  %s767_s20 = sphi %s765_s20, %s51_s20   ;;  %s763_s17 = sphi %s761_s17, %s52_s17  }
   0xa   : > { %50 = vst [vmem:[%s763_s17] sm:$0xff] %v49_v0  ;;  %s52_s17 = scalar_lea.vmem %s763_s17, 8   ;;  %p46_p1 = scmp.gt.s32.totalorder %s51_s20, %s15_s14 }
   0xc   :  { %48 = sbr.rel (!%p46_p1) target bundleno = 9 (0x9), region = 163 }
  0x11 PF:  { %v62_v1 = vld [vmem:[#allocation0] sm:$0xff]  ;;  %v66_v2 = vld [vmem:[#allocation0 + $0x8] sm:$0xff]  ;;  %v69_v3 = vlaneseq  ;;  %v785_v5 = vmov 0   ;;  %s769_s0 = smov 0  }
  0x12   :  { %63 = vst [vmem:[#allocation1] sm:$0xff] %v62_v1 }
  0x13   :  { %67 = vst [vmem:[#allocation1 + $0x8] sm:$0xff] %v66_v2  ;;  %v817_v4 = vshrl.u32 %v69_v3, 7 }
  0x14   :  { %68 = vst [vmem:[#allocation2] sm:$0x1] %v785_v5 }
  0x15 LB: > { %s524_s21 = sshll.u32 %s771_s0, 3  ;;  %s77_s0 = sadd.s32 1, %s771_s0   ;;  %s771_s0 = sphi %s769_s0, %s77_s0  }
  0x16   : > { %v81_v6 = vstv %s524_s21  ;;  %s79_s22 = scalar_lea.vmem [#allocation7], %s524_s21  ;;  %p74_p2 = scmp.ge.s32.totalorder %s77_s0, 2  }
  0x17   : > { %v82_v7 = vadd.s32 %v81_v6, %v817_v4  ;;  %s820_s23 = smov (%p74_p2), 0  }
  0x18   :  { %76 = sbr.rel (!%p74_p2) target bundleno = 21 (0x15), region = 174 }
  0x19   : > { %83 = vst [vmem:[%s79_s22] sm:$0xff] %v82_v7 }
  0x1d LB: > { %v94_v8 = vld [vmem:[#allocation1] sm:$0xff]  ;;  %v106_v9 = vld [vmem:[#allocation1 + $0x8] sm:$0xff]  ;;  %v826_v10 = vadd.s32 8, %v817_v4  ;;  %v829_v12 = vstv %s775_s23  ;;  %s152_s24 = ssub.s32 128, %s775_s23  ;;  %v840_v46 = vand.u32 127, %v69_v3  ;;  %s164_s26 = scalar_lea.vmem [#allocation1], %s775_s23  ;;  %s775_s23 = sphi %s820_s23, %s89_s23  }
  0x1e   : > { %v95_v11 = vand.u32 2147483647, %v94_v8  ;;  %v107_v13 = vand.u32 2147483647, %v106_v9  ;;  %vm98_vm0 = vcmp.ge.s32.totalorder %v817_v4, %v829_v12  ;;  %v161_v47 = vld [vmem:[#allocation2] ss:$0 sm:$0xff] }
  0x1f   : > { %vm110_vm3 = vcmp.ge.s32.totalorder %v826_v10, %v829_v12  ;;  %vm159_vm13 = vcmp.eq.s32.totalorder %v840_v46, %v829_v12  ;;  %v166_v48 = vld [vmem:[%s164_s26] ss:$0 sm:$0xff]  ;;  %s170_s28 = scalar_lea.vmem [#allocation7], %s775_s23  ;;  %vm218_vm15 = vcmp.gt.s32.totalorder %v826_v10, %v829_v12  ;;  %s89_s23 = sadd.s32 1, %s775_s23  }
  0x20   : > { %vm526_vm1 = vcmp.gt.f32.partialorder %v95_v11, -inf  ;;  %v172_v52 = vld [vmem:[%s170_s28] ss:$0 sm:$0xff]  ;;  %p86_p3 = scmp.ge.s32.totalorder %s89_s23, 16  }
  0x21   : > { %vm102_vm2 = vmand %vm98_vm0, %vm526_vm1  ;;  %vm190_vm0 = vcmp.gt.s32.totalorder %v817_v4, %v829_v12  ;;  %s777_s5 = smov (%p86_p3), %s889_s1   ;;  %s781_s6 = smov (%p86_p3), [#allocation1]  }
  0x22   : > { %v103_v14 = vsel %vm102_vm2, %v817_v4, %v829_v12  ;;  %v104_v15 = vsel %vm102_vm2, %v95_v11, -inf }
  0x23   : > { %vm113_vm4 = vcmp.lt.f32.partialorder %v104_v15, %v107_v13 }
  0x24   : > { %vm114_vm5 = vmand %vm110_vm3, %vm113_vm4 }
  0x25   : > { %v115_v16 = vsel %vm114_vm5, %v826_v10, %v103_v14  ;;  %v116_v17 = vsel %vm114_vm5, %v107_v13, %v104_v15 }
  0x26   : > { %v117_v18 = vrot.slane %v116_v17, 1  ;;  %v118_v19 = vrot.slane %v115_v16, 1 }
  0x28   : > { %vm119_vm6 = vcmp.ge.f32.partialorder %v117_v18, %v116_v17  ;;  %v122_v20 = vrot.slane %v117_v18, 1  ;;  %v123_v21 = vrot.slane %v118_v19, 1 }
  0x29   : > { %v120_v22 = vsel %vm119_vm6, %v117_v18, %v116_v17  ;;  %v121_v23 = vsel %vm119_vm6, %v118_v19, %v115_v16 }
  0x2a   : > { %vm124_vm7 = vcmp.ge.f32.partialorder %v122_v20, %v120_v22  ;;  %v127_v24 = vrot.slane %v122_v20, 1  ;;  %v128_v25 = vrot.slane %v123_v21, 1 }
  0x2b   : > { %v125_v26 = vsel %vm124_vm7, %v122_v20, %v120_v22  ;;  %v126_v27 = vsel %vm124_vm7, %v123_v21, %v121_v23 }
  0x2c   : > { %vm129_vm8 = vcmp.ge.f32.partialorder %v127_v24, %v125_v26  ;;  %v132_v28 = vrot.slane %v127_v24, 1  ;;  %v133_v29 = vrot.slane %v128_v25, 1 }
  0x2d   : > { %v130_v30 = vsel %vm129_vm8, %v127_v24, %v125_v26  ;;  %v131_v31 = vsel %vm129_vm8, %v128_v25, %v126_v27 }
  0x2e   : > { %vm134_vm9 = vcmp.ge.f32.partialorder %v132_v28, %v130_v30  ;;  %v137_v32 = vrot.slane %v132_v28, 1  ;;  %v138_v33 = vrot.slane %v133_v29, 1 }
  0x2f   : > { %v135_v34 = vsel %vm134_vm9, %v132_v28, %v130_v30  ;;  %v136_v35 = vsel %vm134_vm9, %v133_v29, %v131_v31  ;;  %vm235_vm9 = vmand %vm218_vm15, %vm159_vm13 }
  0x30   : > { %vm139_vm10 = vcmp.ge.f32.partialorder %v137_v32, %v135_v34  ;;  %v142_v36 = vrot.slane %v137_v32, 1  ;;  %v143_v37 = vrot.slane %v138_v33, 1 }
  0x31   : > { %v140_v38 = vsel %vm139_vm10, %v137_v32, %v135_v34  ;;  %v141_v39 = vsel %vm139_vm10, %v138_v33, %v136_v35 }
  0x32   : > { %vm144_vm11 = vcmp.ge.f32.partialorder %v142_v36, %v140_v38  ;;  %v147_v40 = vrot.slane %v142_v36, 1  ;;  %v148_v41 = vrot.slane %v143_v37, 1 }
  0x33   : > { %v145_v42 = vsel %vm144_vm11, %v142_v36, %v140_v38  ;;  %v146_v43 = vsel %vm144_vm11, %v143_v37, %v141_v39  ;;  %vm207_vm11 = vmand %vm190_vm0, %vm159_vm13 }
  0x34   : > { %vm149_vm12 = vcmp.ge.f32.partialorder %v147_v40, %v145_v42 }
  0x35   : > { %v151_v44 = vsel %vm149_vm12, %v148_v41, %v146_v43  ;;  %vm182_vm12 = vcmp.gt.s32.totalorder %v840_v46, %v829_v12 }
  0x36   : > { %153 = vrot.lane.b32.xlu0 %v151_v44, %s152_s24 }
  0xa8   : > { %v154_v45 = vpop.permute.xlu0 %153 }
  0xa9   : > { %534 = vpush %v154_v45 }
  0xda   : > { %s535_s25 = spop %534 }
  0xdb   : > { %v160_v49 = vstv %s535_s25  ;;  %s165_s27 = scalar_lea.vmem [#allocation1], %s535_s25  ;;  %s171_s29 = scalar_lea.vmem [#allocation7], %s535_s25 }
  0xdc   : > { %v162_v50 = vsel %vm159_vm13, %v160_v49, %v161_v47  ;;  %v167_v51 = vld [vmem:[%s165_s27] ss:$0 sm:$0xff] }
  0xdd   : > { %163 = vst [vmem:[#allocation2] sm:$0x1] %v162_v50  ;;  %v173_v53 = vld [vmem:[%s171_s29] ss:$0 sm:$0xff]  ;;  %vm176_vm14 = vcmp.ne.f32.partialorder %v167_v51, 0.0  ;;  %v183_v10 = vsel %vm182_vm12, %v167_v51, 0.0 }
  0xde   : > { %168 = vst [vmem:[%s165_s27] sm:$0x1] %v166_v48  ;;  %vm177_vm1 = vmand %vm159_vm13, %vm176_vm14 }
  0xdf   : > { %169 = vst [vmem:[%s164_s26] sm:$0x1] %v167_v51  ;;  %v178_v54 = vsel %vm177_vm1, %v167_v51, 1.0 }
  0xe0   : > { %174 = vst [vmem:[%s171_s29] sm:$0x1] %v172_v52  ;;  %v219_v55 = vsel %vm218_vm15, %v178_v54, 1.0  ;;  %v191_v56 = vsel %vm190_vm0, %v178_v54, 1.0 }
  0xe1   : > { %175 = vst [vmem:[%s170_s28] sm:$0x1] %v173_v53  ;;  %667 = vrcp.f32 %v219_v55  ;;  %v231_v62 = vand.u32 2147483648, %v219_v55  ;;  %v229_v1 = vand.u32 2147483647, %v219_v55  ;;  %v203_v2 = vand.u32 2147483648, %v191_v56 }
  0xe2   : > { %669 = vrcp.f32 %v191_v56  ;;  %v201_v6 = vand.u32 2147483647, %v191_v56  ;;  %vm225_vm4 = vweird.f32 %v219_v55  ;;  %vm197_vm6 = vweird.f32 %v191_v56 }
  0xe3   : > { %v232_v8 = vor.u32 1.1754944e-38, %v231_v62  ;;  %vm230_vm7 = vcmp.eq.f32.partialorder %v229_v1, 8.507059e+37  ;;  %v204_v13 = vor.u32 1.1754944e-38, %v203_v2 }
  0xe4   : > { %vm202_vm10 = vcmp.eq.f32.partialorder %v201_v6, 8.507059e+37  ;;  %v294_v12 = vld [vmem:[#allocation2] sm:$0x1] (%p86_p3) }
  0xe5   :  { %297 = vst [vmem:[#allocation3] sm:$0x1] (%p86_p3), %v294_v12 }
  0xe6   : > { %v215_v14 = vld [vmem:[#allocation1 + $0x8] sm:$0xff]  ;;  %v187_v18 = vld [vmem:[#allocation1] sm:$0xff] }
  0xe7   : > { %v668_v57 = vpop.eup %667 }
  0xe8   : > { %v670_v58 = vpop.eup %669  ;;  %v221_v59 = vmul.f32 %v668_v57, %v219_v55  ;;  %vm226_vm2 = vweird.f32 %v668_v57  ;;  %v242_v29 = vld [vmem:[#allocation7] sm:$0xff] (%p86_p3)  ;;  %v244_v30 = vld [vmem:[#allocation7 + $0x8] sm:$0xff] (%p86_p3) }
  0xe9   : > { %v193_v60 = vmul.f32 %v670_v58, %v191_v56  ;;  %vm198_vm3 = vweird.f32 %v670_v58  ;;  %vm227_vm5 = vmor %vm225_vm4, %vm226_vm2 }
  0xea   : > { %v222_v61 = vsub.f32 1.0, %v221_v59  ;;  %vm199_vm8 = vmor %vm197_vm6, %vm198_vm3 }
  0xeb   : > { %v194_v63 = vsub.f32 1.0, %v193_v60 }
  0xec   : > { %v223_v0 = vmul.f32 %v668_v57, %v222_v61 }
  0xed   : > { %v195_v5 = vmul.f32 %v670_v58, %v194_v63 }
  0xee   : > { %v224_v7 = vadd.f32 %v668_v57, %v223_v0 }
  0xef   : > { %v196_v9 = vadd.f32 %v670_v58, %v195_v5 }
  0xf0   : > { %v228_v11 = vsel %vm227_vm5, %v668_v57, %v224_v7 }
  0xf1   : > { %v233_v15 = vsel %vm230_vm7, %v232_v8, %v228_v11  ;;  %v200_v16 = vsel %vm199_vm8, %v670_v58, %v196_v9 }
  0xf2   : > { %v234_v17 = vmul.f32 %v233_v15, %v215_v14  ;;  %v205_v19 = vsel %vm202_vm10, %v204_v13, %v200_v16 }
  0xf3   : > { %v206_v20 = vmul.f32 %v205_v19, %v187_v18 }
  0xf4   : > { %v236_v21 = vsel %vm235_vm9, %v234_v17, 0.0 }
  0xf5   : > { %237 = vadd.xlane.f32.xlu1 %v236_v21  ;;  %v208_v22 = vsel %vm207_vm11, %v206_v20, 0.0 }
  0xf6   : > { %209 = vadd.xlane.f32.xlu0 %v208_v22 }
 0x11f   :  { %259 = vxpose.xlu0.b32.start [1/2] (short) (narrow) (%p86_p3), %v242_v29, 8 }
 0x127   :  { %260 = vxpose.xlu0.b32.end [2/2] (short) (narrow) (%p86_p3), %v244_v30, 8 }
 0x168   : > { %v238_v23 = vpop.xlane.xlu1 %237 }
 0x169   : > { %v239_v24 = vmul.f32 %v238_v23, %v183_v10  ;;  %v210_v25 = vpop.xlane.xlu0 %209 }
 0x16a   : > { %v211_v26 = vmul.f32 %v210_v25, %v183_v10  ;;  %88 = sbr.rel (!%p86_p3) target bundleno = 29 (0x1d), region = 185 }
 0x16b   : > { %v240_v27 = vsub.f32 %v234_v17, %v239_v24 }
 0x16c   : > { %v212_v28 = vsub.f32 %v206_v20, %v211_v26 }
 0x16d   : > { %241 = vst [vmem:[#allocation1 + $0x8] sm:$0xff] %v240_v27 }
 0x16e   : > { %213 = vst [vmem:[#allocation1] sm:$0xff] %v212_v28 }
 0x1c3   :  { %v275_v31 = vpop.trf.xlu0 }
 0x1c4   :  { %291 = vst [vmem:[#allocation5] sm:$0x1] %v275_v31 }
 0x1cb   :  { %v300_v32 = vld [vmem:[#allocation5] sm:$0x1] }
 0x1cc   :  { %303 = vst [vmem:[#allocation6] sm:$0x1] %v300_v32 }
 0x1cd LB: > { %v347_v33 = vld [vmem:[%s783_s6] sm:$0xff]  ;;  %s349_s6 = scalar_lea.vmem %s783_s6, 8   ;;  %s783_s6 = sphi %s781_s6, %s349_s6   ;;  %s779_s5 = sphi %s777_s5, %s350_s5  }
 0x1ce   : > { %348 = vst [vmem:[%s779_s5] sm:$0xff] %v347_v33  ;;  %s350_s5 = scalar_lea.vmem %s779_s5, 8   ;;  %p344_p4 = scmp.gt.s32.totalorder %s349_s6, [#allocation1 + $0x8] }
 0x1cf   :  { %s367_s9 = sshll.u32 (%p344_p4), %s890_s2, 4  ;;  %s786_s10 = smov (%p344_p4), [#allocation3]   ;;  %s368_s9 = int_to_ptr.hbm [resolvable:$true] %s367_s9 }
 0x1d0   :  { %346 = sbr.rel (!%p344_p4) target bundleno = 461 (0x1cd), region = 207  ;;  %s365_s1 = sshll.u32 (%p344_p4), %s786_s10, 4  ;;  %s366_s1 = int_to_ptr.vmem [resolvable:$true] %s365_s1 }
 0x1d1   :  { %370 = dma.vmem_to_hbm [thread:$0]  (%p344_p4), %s366_s1, 16, %s368_s9, [#allocation4]  }
 0x1d3   :  { %v427_v3 = vld [vmem:[#allocation6] sm:$0x1] (%p344_p4) }
 0x1d4   :  { %428 = vst [vmem:[%s891_s3] sm:$0x1] (%p344_p4), %v427_v3 }
 0x1d5   :  { %759 = dma.done.wait [#allocation4], 16  }
 0x1d6   :  { %760 = vsyncadd [#allocation4], 4294967280 }
 0x1d7   :  { %435 = vsyncpa [#allocation4], 1 }

// kernel: model_forward.41
= control target key start
LH: loop header
LB: loop body
LE: loop exit
PB: predicated region body
PF: predicated region fallthrough
CT: control target
= control target key end

     0   :  { %vm62_vm0 = vcmask 261120   ;;  %vm76_vm1 = vcmask 253952   ;;  %s149_s0 = inlined_call_operand.vmem [shape: f32[32,32], index: 0, kind: input, shape index: {}]   ;;  %s150_s2 = inlined_call_operand.vmem [shape: f32[32,32], index: 2, kind: input, shape index: {}]   ;;  %s151_s1 = inlined_call_operand.vmem [shape: f32[32,32], index: 1, kind: input, shape index: {}]   ;;  %s152_s3 = inlined_call_operand.vmem [shape: f32[1,32], index: 3, kind: output, shape index: {}]  }
   0x1   :  { %v14_v0 = vld [vmem:[%s150_s2] sm:$0xff]  ;;  %v15_v1 = vld [vmem:[%s150_s2 + $0x8] sm:$0xff]  ;;  %v16_v2 = vld [vmem:[%s150_s2 + $0x10] sm:$0xff] }
   0x2   :  { %v17_v3 = vld [vmem:[%s150_s2 + $0x18] sm:$0xff]  ;;  %v22_v4 = vld [vmem:[%s149_s0] sm:$0xff]  ;;  %v23_v5 = vld [vmem:[%s149_s0 + $0x8] sm:$0xff]  ;;  %v42_v10 = vmul.f32 -2.0, %v14_v0  ;;  %v43_v11 = vmul.f32 -2.0, %v15_v1  ;;  %v44_v12 = vmul.f32 -2.0, %v16_v2 }
   0x3   :  { %v24_v6 = vld [vmem:[%s149_s0 + $0x10] sm:$0xff]  ;;  %v25_v7 = vld [vmem:[%s149_s0 + $0x18] sm:$0xff]  ;;  %v26_v8 = vld [vmem:[%s151_s1] sm:$0xff]  ;;  %v45_v17 = vmul.f32 -2.0, %v17_v3  ;;  %v18_v30 = vsub.f32 -0.9189385, %v14_v0 }
   0x4   :  { %v27_v9 = vld [vmem:[%s151_s1 + $0x8] sm:$0xff]  ;;  %v28_v13 = vld [vmem:[%s151_s1 + $0x10] sm:$0xff]  ;;  %v29_v14 = vld [vmem:[%s151_s1 + $0x18] sm:$0xff]  ;;  %v30_v15 = vsub.f32 %v22_v4, %v26_v8  ;;  %v46_v20 = vmul.f32 1.442695, %v42_v10 }
   0x5   :  { %v31_v16 = vsub.f32 %v23_v5, %v27_v9  ;;  %v32_v18 = vsub.f32 %v24_v6, %v28_v13  ;;  %v33_v19 = vsub.f32 %v25_v7, %v29_v14  ;;  %v48_v21 = vmul.f32 1.442695, %v43_v11 }
   0x6   :  { %v34_v22 = vmul.f32 %v30_v15, %v30_v15  ;;  %v50_v23 = vmul.f32 1.442695, %v44_v12  ;;  %v52_v24 = vmul.f32 1.442695, %v45_v17  ;;  %82 = vpow2.f32 %v46_v20 }
   0x7   :  { %v35_v25 = vmul.f32 %v31_v16, %v31_v16  ;;  %v36_v26 = vmul.f32 %v32_v18, %v32_v18  ;;  %84 = vpow2.f32 %v48_v21  ;;  %v37_v27 = vmul.f32 %v33_v19, %v33_v19 }
   0x8   :  { %86 = vpow2.f32 %v50_v23  ;;  %v38_v28 = vmul.f32 0.5, %v34_v22  ;;  %v19_v33 = vsub.f32 -0.9189385, %v15_v1  ;;  %v20_v36 = vsub.f32 -0.9189385, %v16_v2 }
   0x9   :  { %88 = vpow2.f32 %v52_v24  ;;  %v39_v29 = vmul.f32 0.5, %v35_v25  ;;  %v40_v31 = vmul.f32 0.5, %v36_v26  ;;  %v41_v34 = vmul.f32 0.5, %v37_v27 }
   0xa   :  { %v21_v39 = vsub.f32 -0.9189385, %v17_v3 }
   0xc   :  { %v83_v32 = vpop.eup %82 }
   0xd   :  { %v85_v35 = vpop.eup %84  ;;  %v54_v37 = vmul.f32 %v83_v32, %v38_v28 }
   0xe   :  { %v87_v38 = vpop.eup %86  ;;  %v55_v40 = vmul.f32 %v85_v35, %v39_v29 }
   0xf   :  { %v89_v41 = vpop.eup %88  ;;  %v56_v42 = vmul.f32 %v87_v38, %v40_v31  ;;  %v58_v43 = vsub.f32 %v18_v30, %v54_v37 }
  0x10   :  { %v57_v44 = vmul.f32 %v89_v41, %v41_v34  ;;  %v59_v45 = vsub.f32 %v19_v33, %v55_v40 }
  0x11   :  { %v60_v46 = vsub.f32 %v20_v36, %v56_v42  ;;  %v63_v47 = vsel %vm62_vm0, %v58_v43, 0.0 }
  0x12   :  { %v61_v48 = vsub.f32 %v21_v39, %v57_v44  ;;  %v64_v49 = vsel %vm62_vm0, %v59_v45, 0.0 }
  0x13   :  { %v65_v50 = vadd.f32 %v64_v49, %v63_v47  ;;  %v66_v51 = vsel %vm62_vm0, %v60_v46, 0.0 }
  0x14   :  { %v68_v52 = vsel %vm62_vm0, %v61_v48, 0.0 }
  0x15   :  { %v67_v53 = vadd.f32 %v66_v51, %v65_v50 }
  0x17   :  { %v69_v54 = vadd.f32 %v68_v52, %v67_v53 }
  0x19   :  { %v70_v55 = vrot.slane %v69_v54, 4 }
  0x1b   :  { %v71_v56 = vadd.f32 %v70_v55, %v69_v54 }
  0x1d   :  { %v72_v57 = vrot.slane %v71_v56, 2 }
  0x1f   :  { %v73_v58 = vadd.f32 %v72_v57, %v71_v56 }
  0x21   :  { %v74_v59 = vrot.slane %v73_v58, 1 }
  0x23   :  { %v75_v60 = vadd.f32 %v74_v59, %v73_v58 }
  0x25   :  { %77 = vst.msk [vmem:[%s152_s3] sm:$0x1] %vm76_vm1, %v75_v60 }

// kernel: custom-call.30
= control target key start
LH: loop header
LB: loop body
LE: loop exit
PB: predicated region body
PF: predicated region fallthrough
CT: control target
= control target key end

     0   :  { %v39_v0 = vlaneseq  ;;  %v386_v18 = vmov -1.0   ;;  %v387_v61 = vmov 0.0   ;;  %s469_s0 = inlined_call_operand.vmem [shape: f32[1,16,16], index: 0, kind: input, shape index: {}]   ;;  %s470_s1 = inlined_call_operand.vmem [shape: f32[1,16,16], index: 1, kind: output, shape index: {}]  }
   0x1   :  { %v32_v1 = vld [vmem:[%s469_s0] sm:$0xff]  ;;  %v34_v39 = vld [vmem:[%s469_s0 + $0x8] sm:$0xff] }
   0x2   :  { %v401_v2 = vand.u32 127, %v39_v0  ;;  %v43_v3 = vshrl.u32 %v39_v0, 7 }
   0x4   :  { %vm45_vm0 = vcmp.eq.s32.totalorder %v43_v3, %v401_v2  ;;  %vm41_vm1 = vcmp.lt.s32.totalorder %v401_v2, 16  ;;  %vm50_vm2 = vcmp.ge.s32.totalorder %v43_v3, %v401_v2  ;;  %vm106_vm8 = vcmp.eq.s32.totalorder %v401_v2, 0 }
   0x5   :  { %v47_v4 = vsel %vm45_vm0, %v32_v1, 0.0  ;;  %vm51_vm3 = vmand %vm50_vm2, %vm41_vm1  ;;  %vm103_vm9 = vcmp.eq.s32.totalorder %v401_v2, %v43_v3  ;;  %v107_v19 = vsel %vm106_vm8, 1.0, %v386_v18  ;;  %vm121_vm10 = vcmp.eq.s32.totalorder %v401_v2, 1 }
   0x6   :  { %48 = vadd.xlane.f32.xlu0 %v47_v4  ;;  %v52_v13 = vsel %vm51_vm3, %v32_v1, 0.0  ;;  %v108_v20 = vsel %vm103_vm9, %v107_v19, 0.0  ;;  %vm131_vm11 = vcmp.eq.s32.totalorder %v401_v2, 2  ;;  %vm141_vm12 = vcmp.eq.s32.totalorder %v401_v2, 3 }
   0x7   :  { %v73_v40 = vadd.s32 8, %v43_v3  ;;  %vm151_vm14 = vcmp.eq.s32.totalorder %v401_v2, 4  ;;  %vm161_vm8 = vcmp.eq.s32.totalorder %v401_v2, 5  ;;  %vm181_vm9 = vcmp.eq.s32.totalorder %v401_v2, 7 }
   0x9   :  { %vm74_vm13 = vcmp.eq.s32.totalorder %v73_v40, %v401_v2  ;;  %vm79_vm15 = vcmp.ge.s32.totalorder %v73_v40, %v401_v2 }
   0xa   :  { %v76_v41 = vsel %vm74_vm13, %v34_v39, 0.0  ;;  %vm80_vm3 = vmand %vm79_vm15, %vm41_vm1  ;;  %vm171_vm1 = vcmp.eq.s32.totalorder %v401_v2, 6  ;;  %vm233_vm13 = vcmp.eq.s32.totalorder %v401_v2, 11  ;;  %vm261_vm15 = vcmp.eq.s32.totalorder %v401_v2, 13 }
   0xb   :  { %v81_v56 = vsel %vm80_vm3, %v34_v39, 0.0  ;;  %vm289_vm3 = vcmp.eq.s32.totalorder %v401_v2, 15 }
  0x79   :  { %v404_v5 = vpop.xlane.xlu0 %48 }
  0x7a   :  { %382 = vrcp.f32 %v404_v5  ;;  %v64_v9 = vand.u32 2147483648, %v404_v5  ;;  %v62_v11 = vand.u32 2147483647, %v404_v5  ;;  %vm58_vm5 = vweird.f32 %v404_v5 }
  0x7c   :  { %v65_v14 = vor.u32 1.1754944e-38, %v64_v9  ;;  %vm63_vm7 = vcmp.eq.f32.partialorder %v62_v11, 8.507059e+37 }
  0x80   :  { %v383_v6 = vpop.eup %382 }
  0x81   :  { %v54_v7 = vmul.f32 %v383_v6, %v404_v5  ;;  %vm59_vm4 = vweird.f32 %v383_v6 }
  0x82   :  { %vm60_vm6 = vmor %vm58_vm5, %vm59_vm4 }
  0x83   :  { %v55_v8 = vsub.f32 1.0, %v54_v7 }
  0x85   :  { %v56_v10 = vmul.f32 %v383_v6, %v55_v8 }
  0x87   :  { %v57_v12 = vadd.f32 %v383_v6, %v56_v10 }
  0x89   :  { %v61_v15 = vsel %vm60_vm6, %v383_v6, %v57_v12 }
  0x8a   :  { %v417_v16 = vsel %vm63_vm7, %v65_v14, %v61_v15  ;;  %vm114_vm7 = vcmp.eq.s32.totalorder %v401_v2, %v73_v40 }
  0x8b   :  { %v67_v17 = vmul.f32 %v417_v16, %v52_v13  ;;  %v115_v62 = vsel %vm114_vm7, -1.0, %v387_v61 }
  0x8d   :  { %68 = vst [vmem:[#allocation2] sm:$0xff] %v67_v17 }
  0x94   :  { %v117_v21 = vld [vmem:[#allocation2 + $0x1] ss:$0 sm:$0xff]  ;;  %v127_v24 = vld [vmem:[#allocation2 + $0x2] ss:$0 sm:$0xff]  ;;  %v137_v29 = vld [vmem:[#allocation2 + $0x3] ss:$0 sm:$0xff] }
  0x95   :  { %v118_v22 = vxor.u32 2147483648, %v117_v21  ;;  %v128_v26 = vxor.u32 2147483648, %v127_v24  ;;  %v138_v31 = vxor.u32 2147483648, %v137_v29  ;;  %v147_v34 = vld [vmem:[#allocation2 + $0x4] ss:$0 sm:$0xff] }
  0x96   :  { %v148_v36 = vxor.u32 2147483648, %v147_v34  ;;  %v157_v42 = vld [vmem:[#allocation2 + $0x5] ss:$0 sm:$0xff]  ;;  %v167_v60 = vld [vmem:[#allocation2 + $0x6] ss:$0 sm:$0xff] }
  0x97   :  { %v122_v23 = vmul.f32 %v118_v22, %v108_v20  ;;  %v158_v44 = vxor.u32 2147483648, %v157_v42  ;;  %v168_v1 = vxor.u32 2147483648, %v167_v60  ;;  %v177_v8 = vld [vmem:[#allocation2 + $0x7] ss:$0 sm:$0xff] }
  0x98   :  { %v178_v10 = vxor.u32 2147483648, %v177_v8 }
  0x99   :  { %123 = vadd.xlane.f32.xlu0 %v122_v23 }
 0x10c   :  { %v124_v25 = vpop.xlane.xlu0 %123 }
 0x10d   :  { %v125_v27 = vsel %vm121_vm10, %v124_v25, %v108_v20  ;;  %vm191_vm10 = vcmp.eq.s32.totalorder %v401_v2, 8 }
 0x10e   :  { %v132_v28 = vmul.f32 %v128_v26, %v125_v27 }
 0x110   :  { %133 = vadd.xlane.f32.xlu1 %v132_v28 }
 0x183   :  { %v134_v30 = vpop.xlane.xlu1 %133 }
 0x184   :  { %v135_v32 = vsel %vm131_vm11, %v134_v30, %v125_v27  ;;  %vm205_vm11 = vcmp.eq.s32.totalorder %v401_v2, 9 }
 0x185   :  { %v142_v33 = vmul.f32 %v138_v31, %v135_v32 }
 0x187   :  { %143 = vadd.xlane.f32.xlu1 %v142_v33 }
 0x18f   :  { %77 = vadd.xlane.f32.xlu1 %v76_v41 }
 0x1fa   :  { %v144_v35 = vpop.xlane.xlu1 %143 }
 0x1fb   :  { %v145_v37 = vsel %vm141_vm12, %v144_v35, %v135_v32  ;;  %vm219_vm12 = vcmp.eq.s32.totalorder %v401_v2, 10 }
 0x1fc   :  { %v152_v38 = vmul.f32 %v148_v36, %v145_v37 }
 0x1fe   :  { %153 = vadd.xlane.f32.xlu2 %v152_v38 }
 0x202   :  { %v430_v47 = vpop.xlane.xlu1 %77 }
 0x203   :  { %384 = vrcp.f32 %v430_v47  ;;  %v93_v50 = vand.u32 2147483648, %v430_v47  ;;  %vm87_vm0 = vweird.f32 %v430_v47  ;;  %v91_v52 = vand.u32 2147483647, %v430_v47 }
 0x205   :  { %v94_v54 = vor.u32 1.1754944e-38, %v93_v50  ;;  %vm92_vm6 = vcmp.eq.f32.partialorder %v91_v52, 8.507059e+37 }
 0x209   :  { %v385_v48 = vpop.eup %384 }
 0x20a   :  { %v83_v49 = vmul.f32 %v385_v48, %v430_v47  ;;  %vm88_vm2 = vweird.f32 %v385_v48 }
 0x20b   :  { %vm89_vm4 = vmor %vm87_vm0, %vm88_vm2  ;;  %vm275_vm2 = vcmp.eq.s32.totalorder %v401_v2, 14 }
 0x20c   :  { %v84_v51 = vsub.f32 1.0, %v83_v49 }
 0x20e   :  { %v85_v53 = vmul.f32 %v385_v48, %v84_v51 }
 0x210   :  { %v86_v55 = vadd.f32 %v385_v48, %v85_v53 }
 0x212   :  { %v90_v57 = vsel %vm89_vm4, %v385_v48, %v86_v55 }
 0x213   :  { %v442_v58 = vsel %vm92_vm6, %v94_v54, %v90_v57 }
 0x214   :  { %v96_v59 = vmul.f32 %v442_v58, %v81_v56 }
 0x216   :  { %97 = vst [vmem:[#allocation2 + $0x8] sm:$0xff] %v96_v59 }
 0x21d   :  { %v187_v63 = vld [vmem:[#allocation2 + $0x8] ss:$0 sm:$0xff]  ;;  %v201_v17 = vld [vmem:[#allocation2 + $0x9] ss:$0 sm:$0xff]  ;;  %v215_v25 = vld [vmem:[#allocation2 + $0xa] ss:$0 sm:$0xff] }
 0x21e   :  { %v188_v3 = vxor.u32 2147483648, %v187_v63  ;;  %v202_v19 = vxor.u32 2147483648, %v201_v17  ;;  %v216_v27 = vxor.u32 2147483648, %v215_v25  ;;  %v229_v33 = vld [vmem:[#allocation2 + $0xb] ss:$0 sm:$0xff] }
 0x21f   :  { %v230_v35 = vxor.u32 2147483648, %v229_v33  ;;  %v243_v41 = vld [vmem:[#allocation2 + $0xc] ss:$0 sm:$0xff]  ;;  %v257_v50 = vld [vmem:[#allocation2 + $0xd] ss:$0 sm:$0xff] }
 0x220   :  { %v196_v7 = vmul.f32 %v188_v3, %v115_v62  ;;  %v258_v52 = vxor.u32 2147483648, %v257_v50  ;;  %v271_v59 = vld [vmem:[#allocation2 + $0xe] ss:$0 sm:$0xff] }
 0x221   :  { %v272_v61 = vxor.u32 2147483648, %v271_v59 }
 0x222   :  { %197 = vadd.xlane.f32.xlu1 %v196_v7 }
 0x271   :  { %v154_v43 = vpop.xlane.xlu2 %153 }
 0x272   :  { %v155_v45 = vsel %vm151_vm14, %v154_v43, %v145_v37  ;;  %v244_v43 = vxor.u32 2147483648, %v243_v41  ;;  %vm247_vm14 = vcmp.eq.s32.totalorder %v401_v2, 12 }
 0x273   :  { %v162_v46 = vmul.f32 %v158_v44, %v155_v45 }
 0x275   :  { %163 = vadd.xlane.f32.xlu2 %v162_v46 }
 0x295   :  { %v198_v18 = vpop.xlane.xlu1 %197 }
 0x296   :  { %v199_v20 = vsel %vm191_vm10, %v198_v18, %v115_v62 }
 0x297   :  { %v210_v21 = vmul.f32 %v202_v19, %v199_v20 }
 0x2e8   :  { %v164_v0 = vpop.xlane.xlu2 %163 }
 0x2e9   :  { %v165_v4 = vsel %vm161_vm8, %v164_v0, %v155_v45 }
 0x2ea   :  { %v172_v6 = vmul.f32 %v168_v1, %v165_v4 }
 0x2ec   :  { %173 = vadd.xlane.f32.xlu0 %v172_v6 }
 0x35f   :  { %v174_v9 = vpop.xlane.xlu0 %173 }
 0x360   :  { %v175_v11 = vsel %vm171_vm1, %v174_v9, %v165_v4  ;;  %v285_v4 = vld [vmem:[#allocation2 + $0xf] ss:$0 sm:$0xff] }
 0x361   :  { %v182_v12 = vmul.f32 %v178_v10, %v175_v11  ;;  %v286_v7 = vxor.u32 2147483648, %v285_v4 }
 0x363   :  { %183 = vadd.xlane.f32.xlu2 %v182_v12 }
 0x3d6   :  { %v184_v13 = vpop.xlane.xlu2 %183 }
 0x3d7   :  { %v185_v14 = vsel %vm181_vm9, %v184_v13, %v175_v11 }
 0x3d8   :  { %v192_v15 = vmul.f32 %v188_v3, %v185_v14 }
 0x3da   :  { %193 = vadd.xlane.f32.xlu0 %v192_v15 }
 0x3e2   :  { %211 = vadd.xlane.f32.xlu0 %v210_v21 }
 0x44d   :  { %v194_v22 = vpop.xlane.xlu0 %193 }
 0x44e   :  { %v195_v23 = vsel %vm191_vm10, %v194_v22, %v185_v14 }
 0x44f   :  { %v206_v24 = vmul.f32 %v202_v19, %v195_v23 }
 0x451   :  { %207 = vadd.xlane.f32.xlu2 %v206_v24 }
 0x455   :  { %v212_v26 = vpop.xlane.xlu0 %211 }
 0x456   :  { %v213_v28 = vsel %vm205_vm11, %v212_v26, %v199_v20 }
 0x457   :  { %v224_v29 = vmul.f32 %v216_v27, %v213_v28 }
 0x459   :  { %225 = vadd.xlane.f32.xlu2 %v224_v29 }
 0x4c4   :  { %v208_v30 = vpop.xlane.xlu2 %207 }
 0x4c5   :  { %v209_v31 = vsel %vm205_vm11, %v208_v30, %v195_v23 }
 0x4c6   :  { %v220_v32 = vmul.f32 %v216_v27, %v209_v31 }
 0x4c8   :  { %221 = vadd.xlane.f32.xlu1 %v220_v32 }
 0x4cc   :  { %v226_v34 = vpop.xlane.xlu2 %225 }
 0x4cd   :  { %v227_v36 = vsel %vm219_vm12, %v226_v34, %v213_v28 }
 0x4ce   :  { %v238_v37 = vmul.f32 %v230_v35, %v227_v36 }
 0x4d0   :  { %239 = vadd.xlane.f32.xlu1 %v238_v37 }
 0x53b   :  { %v222_v38 = vpop.xlane.xlu1 %221 }
 0x53c   :  { %v223_v39 = vsel %vm219_vm12, %v222_v38, %v209_v31 }
 0x53d   :  { %v234_v40 = vmul.f32 %v230_v35, %v223_v39 }
 0x53f   :  { %235 = vadd.xlane.f32.xlu0 %v234_v40 }
 0x543   :  { %v240_v42 = vpop.xlane.xlu1 %239 }
 0x544   :  { %v241_v44 = vsel %vm233_vm13, %v240_v42, %v227_v36 }
 0x545   :  { %v252_v45 = vmul.f32 %v244_v43, %v241_v44 }
 0x547   :  { %253 = vadd.xlane.f32.xlu0 %v252_v45 }
 0x5b2   :  { %v236_v46 = vpop.xlane.xlu0 %235 }
 0x5b3   :  { %v237_v48 = vsel %vm233_vm13, %v236_v46, %v223_v39 }
 0x5b4   :  { %v248_v49 = vmul.f32 %v244_v43, %v237_v48 }
 0x5b6   :  { %249 = vadd.xlane.f32.xlu2 %v248_v49 }
 0x5ba   :  { %v254_v51 = vpop.xlane.xlu0 %253 }
 0x5bb   :  { %v255_v53 = vsel %vm247_vm14, %v254_v51, %v241_v44 }
 0x5bc   :  { %v266_v54 = vmul.f32 %v258_v52, %v255_v53 }
 0x5be   :  { %267 = vadd.xlane.f32.xlu2 %v266_v54 }
 0x629   :  { %v250_v55 = vpop.xlane.xlu2 %249 }
 0x62a   :  { %v251_v56 = vsel %vm247_vm14, %v250_v55, %v237_v48 }
 0x62b   :  { %v262_v57 = vmul.f32 %v258_v52, %v251_v56 }
 0x62d   :  { %263 = vadd.xlane.f32.xlu1 %v262_v57 }
 0x631   :  { %v268_v60 = vpop.xlane.xlu2 %267 }
 0x632   :  { %v269_v62 = vsel %vm261_vm15, %v268_v60, %v255_v53 }
 0x633   :  { %v280_v63 = vmul.f32 %v272_v61, %v269_v62 }
 0x635   :  { %281 = vadd.xlane.f32.xlu1 %v280_v63 }
 0x6a0   :  { %v264_v0 = vpop.xlane.xlu1 %263 }
 0x6a1   :  { %v265_v1 = vsel %vm261_vm15, %v264_v0, %v251_v56 }
 0x6a2   :  { %v276_v3 = vmul.f32 %v272_v61, %v265_v1 }
 0x6a4   :  { %277 = vadd.xlane.f32.xlu0 %v276_v3 }
 0x6a8   :  { %v282_v6 = vpop.xlane.xlu1 %281 }
 0x6a9   :  { %v283_v8 = vsel %vm275_vm2, %v282_v6, %v269_v62 }
 0x6aa   :  { %v294_v9 = vmul.f32 %v286_v7, %v283_v8 }
 0x6ac   :  { %295 = vadd.xlane.f32.xlu0 %v294_v9 }
 0x717   :  { %v278_v10 = vpop.xlane.xlu0 %277 }
 0x718   :  { %v279_v11 = vsel %vm275_vm2, %v278_v10, %v265_v1 }
 0x719   :  { %v290_v12 = vmul.f32 %v286_v7, %v279_v11 }
 0x71b   :  { %291 = vadd.xlane.f32.xlu2 %v290_v12 }
 0x71f   :  { %v296_v13 = vpop.xlane.xlu0 %295 }
 0x720   :  { %v297_v14 = vsel %vm289_vm3, %v296_v13, %v283_v8 }
 0x721   :  { %v330_v15 = vmul.f32 %v297_v14, %v442_v58 }
 0x723   :  { %v332_v17 = vsel %vm87_vm0, %v297_v14, %v330_v15 }
 0x724   :  { %368 = vst [vmem:[%s470_s1 + $0x8] sm:$0xff] %v332_v17 }
 0x78e   :  { %v292_v18 = vpop.xlane.xlu2 %291 }
 0x78f   :  { %v293_v19 = vsel %vm289_vm3, %v292_v18, %v279_v11 }
 0x790   :  { %v312_v20 = vmul.f32 %v293_v19, %v417_v16 }
 0x792   :  { %v314_v21 = vsel %vm58_vm5, %v293_v19, %v312_v20 }
 0x793   :  { %366 = vst [vmem:[%s470_s1] sm:$0xff] %v314_v21 }

// kernel: custom-call.29
= control target key start
LH: loop header
LB: loop body
LE: loop exit
PB: predicated region body
PF: predicated region fallthrough
CT: control target
= control target key end

     0   :  { %v39_v0 = vlaneseq  ;;  %v385_v19 = vmov -1.0   ;;  %s502_s0 = inlined_call_operand.vmem [shape: f32[1,16,16], index: 0, kind: input, shape index: {}]   ;;  %s503_s1 = inlined_call_operand.vmem [shape: f32[1,16,16], index: 1, kind: output, shape index: {}]  }
   0x1   :  { %v34_v3 = vld [vmem:[%s502_s0 + $0x8] sm:$0xff]  ;;  %v32_v35 = vld [vmem:[%s502_s0] sm:$0xff] }
   0x2   :  { %v397_v1 = vand.u32 127, %v39_v0  ;;  %v399_v2 = vshrl.u32 %v39_v0, 7 }
   0x4   :  { %v73_v4 = vadd.s32 8, %v399_v2  ;;  %vm41_vm1 = vcmp.lt.s32.totalorder %v397_v1, 16  ;;  %vm113_vm8 = vcmp.eq.s32.totalorder %v397_v1, 15  ;;  %vm121_vm10 = vcmp.eq.s32.totalorder %v397_v1, 14 }
   0x5   :  { %v114_v20 = vsel %vm113_vm8, 1.0, %v385_v19  ;;  %vm131_vm11 = vcmp.eq.s32.totalorder %v397_v1, 13  ;;  %vm45_vm12 = vcmp.eq.s32.totalorder %v399_v2, %v397_v1  ;;  %vm141_vm13 = vcmp.eq.s32.totalorder %v397_v1, 12 }
   0x6   :  { %vm74_vm0 = vcmp.eq.s32.totalorder %v73_v4, %v397_v1  ;;  %vm79_vm2 = vcmp.le.s32.totalorder %v73_v4, %v397_v1  ;;  %vm110_vm9 = vcmp.eq.s32.totalorder %v397_v1, %v73_v4  ;;  %v47_v36 = vsel %vm45_vm12, %v32_v35, 0.0 }
   0x7   :  { %v76_v5 = vsel %vm74_vm0, %v34_v3, 0.0  ;;  %vm80_vm3 = vmand %vm79_vm2, %vm41_vm1  ;;  %v115_v21 = vsel %vm110_vm9, %v114_v20, 0.0  ;;  %vm50_vm14 = vcmp.le.s32.totalorder %v399_v2, %v397_v1  ;;  %vm171_vm8 = vcmp.eq.s32.totalorder %v397_v1, 9 }
   0x8   :  { %77 = vadd.xlane.f32.xlu0 %v76_v5  ;;  %v81_v14 = vsel %vm80_vm3, %v34_v3, 0.0  ;;  %vm51_vm2 = vmand %vm50_vm14, %vm41_vm1  ;;  %vm161_vm1 = vcmp.eq.s32.totalorder %v397_v1, 10  ;;  %v386_v5 = vmov 0.0   ;;  %vm191_vm9 = vcmp.eq.s32.totalorder %v397_v1, 7 }
   0x9   :  { %v52_v51 = vsel %vm51_vm2, %v32_v35, 0.0  ;;  %vm219_vm12 = vcmp.eq.s32.totalorder %v397_v1, 5  ;;  %vm247_vm14 = vcmp.eq.s32.totalorder %v397_v1, 3  ;;  %vm275_vm2 = vcmp.eq.s32.totalorder %v397_v1, 1 }
  0x7b   :  { %v406_v6 = vpop.xlane.xlu0 %77 }
  0x7c   :  { %381 = vrcp.f32 %v406_v6  ;;  %v93_v10 = vand.u32 2147483648, %v406_v6  ;;  %v91_v12 = vand.u32 2147483647, %v406_v6  ;;  %vm87_vm5 = vweird.f32 %v406_v6 }
  0x7e   :  { %v94_v15 = vor.u32 1.1754944e-38, %v93_v10  ;;  %vm92_vm7 = vcmp.eq.f32.partialorder %v91_v12, 8.507059e+37 }
  0x82   :  { %v382_v7 = vpop.eup %381 }
  0x83   :  { %v83_v8 = vmul.f32 %v382_v7, %v406_v6  ;;  %vm88_vm4 = vweird.f32 %v382_v7 }
  0x84   :  { %vm89_vm6 = vmor %vm87_vm5, %vm88_vm4 }
  0x85   :  { %v84_v9 = vsub.f32 1.0, %v83_v8 }
  0x87   :  { %v85_v11 = vmul.f32 %v382_v7, %v84_v9 }
  0x89   :  { %v86_v13 = vadd.f32 %v382_v7, %v85_v11 }
  0x8b   :  { %v90_v16 = vsel %vm89_vm6, %v382_v7, %v86_v13  ;;  %vm151_vm6 = vcmp.eq.s32.totalorder %v397_v1, 11 }
  0x8c   :  { %v419_v17 = vsel %vm92_vm7, %v94_v15, %v90_v16  ;;  %vm103_vm7 = vcmp.eq.s32.totalorder %v397_v1, %v399_v2 }
  0x8d   :  { %v96_v18 = vmul.f32 %v419_v17, %v81_v14  ;;  %v104_v7 = vsel %vm103_vm7, -1.0, %v386_v5 }
  0x8f   :  { %97 = vst [vmem:[#allocation2 + $0x8] sm:$0xff] %v96_v18 }
  0x96   :  { %v117_v22 = vld [vmem:[#allocation2 + $0xe] ss:$0 sm:$0xff]  ;;  %v127_v25 = vld [vmem:[#allocation2 + $0xd] ss:$0 sm:$0xff]  ;;  %v137_v30 = vld [vmem:[#allocation2 + $0xc] ss:$0 sm:$0xff] }
  0x97   :  { %v118_v23 = vxor.u32 2147483648, %v117_v22  ;;  %v128_v27 = vxor.u32 2147483648, %v127_v25  ;;  %v138_v32 = vxor.u32 2147483648, %v137_v30  ;;  %v147_v37 = vld [vmem:[#allocation2 + $0xb] ss:$0 sm:$0xff] }
  0x98   :  { %v148_v39 = vxor.u32 2147483648, %v147_v37  ;;  %v157_v55 = vld [vmem:[#allocation2 + $0xa] ss:$0 sm:$0xff]  ;;  %v167_v60 = vld [vmem:[#allocation2 + $0x9] ss:$0 sm:$0xff] }
  0x99   :  { %v122_v24 = vmul.f32 %v118_v23, %v115_v21  ;;  %v158_v57 = vxor.u32 2147483648, %v157_v55  ;;  %v168_v62 = vxor.u32 2147483648, %v167_v60  ;;  %v177_v9 = vld [vmem:[#allocation2 + $0x8] ss:$0 sm:$0xff] }
  0x9a   :  { %v178_v11 = vxor.u32 2147483648, %v177_v9 }
  0x9b   :  { %123 = vadd.xlane.f32.xlu0 %v122_v24 }
 0x10e   :  { %v124_v26 = vpop.xlane.xlu0 %123 }
 0x10f   :  { %v125_v28 = vsel %vm121_vm10, %v124_v26, %v115_v21  ;;  %vm181_vm10 = vcmp.eq.s32.totalorder %v397_v1, 8 }
 0x110   :  { %v132_v29 = vmul.f32 %v128_v27, %v125_v28 }
 0x112   :  { %133 = vadd.xlane.f32.xlu1 %v132_v29 }
 0x185   :  { %v134_v31 = vpop.xlane.xlu1 %133 }
 0x186   :  { %v135_v33 = vsel %vm131_vm11, %v134_v31, %v125_v28  ;;  %vm205_vm11 = vcmp.eq.s32.totalorder %v397_v1, 6 }
 0x187   :  { %v142_v34 = vmul.f32 %v138_v32, %v135_v33 }
 0x189   :  { %143 = vadd.xlane.f32.xlu1 %v142_v34 }
 0x191   :  { %48 = vadd.xlane.f32.xlu1 %v47_v36 }
 0x1fc   :  { %v144_v38 = vpop.xlane.xlu1 %143 }
 0x1fd   :  { %v145_v40 = vsel %vm141_vm13, %v144_v38, %v135_v33  ;;  %vm233_vm13 = vcmp.eq.s32.totalorder %v397_v1, 4 }
 0x1fe   :  { %v152_v41 = vmul.f32 %v148_v39, %v145_v40 }
 0x200   :  { %153 = vadd.xlane.f32.xlu2 %v152_v41 }
 0x204   :  { %v432_v42 = vpop.xlane.xlu1 %48 }
 0x205   :  { %383 = vrcp.f32 %v432_v42  ;;  %v64_v45 = vand.u32 2147483648, %v432_v42  ;;  %vm58_vm15 = vweird.f32 %v432_v42  ;;  %v62_v47 = vand.u32 2147483647, %v432_v42 }
 0x207   :  { %v65_v49 = vor.u32 1.1754944e-38, %v64_v45  ;;  %vm63_vm4 = vcmp.eq.f32.partialorder %v62_v47, 8.507059e+37 }
 0x20b   :  { %v384_v43 = vpop.eup %383 }
 0x20c   :  { %v54_v44 = vmul.f32 %v384_v43, %v432_v42  ;;  %vm59_vm0 = vweird.f32 %v384_v43 }
 0x20d   :  { %vm60_vm3 = vmor %vm58_vm15, %vm59_vm0  ;;  %vm261_vm0 = vcmp.eq.s32.totalorder %v397_v1, 2 }
 0x20e   :  { %v55_v46 = vsub.f32 1.0, %v54_v44 }
 0x210   :  { %v56_v48 = vmul.f32 %v384_v43, %v55_v46 }
 0x212   :  { %v57_v50 = vadd.f32 %v384_v43, %v56_v48 }
 0x214   :  { %v61_v52 = vsel %vm60_vm3, %v384_v43, %v57_v50  ;;  %vm288_vm3 = vcmp.eq.s32.totalorder %v397_v1, 0 }
 0x215   :  { %v445_v53 = vsel %vm63_vm4, %v65_v49, %v61_v52 }
 0x216   :  { %v67_v54 = vmul.f32 %v445_v53, %v52_v51 }
 0x218   :  { %68 = vst [vmem:[#allocation2] sm:$0xff] %v67_v54 }
 0x21f   :  { %v187_v0 = vld [vmem:[#allocation2 + $0x7] ss:$0 sm:$0xff]  ;;  %v201_v14 = vld [vmem:[#allocation2 + $0x6] ss:$0 sm:$0xff]  ;;  %v215_v22 = vld [vmem:[#allocation2 + $0x5] ss:$0 sm:$0xff] }
 0x220   :  { %v188_v4 = vxor.u32 2147483648, %v187_v0  ;;  %v202_v15 = vxor.u32 2147483648, %v201_v14  ;;  %v216_v24 = vxor.u32 2147483648, %v215_v22  ;;  %v229_v30 = vld [vmem:[#allocation2 + $0x4] ss:$0 sm:$0xff] }
 0x221   :  { %v230_v32 = vxor.u32 2147483648, %v229_v30  ;;  %v243_v38 = vld [vmem:[#allocation2 + $0x3] ss:$0 sm:$0xff]  ;;  %v257_v47 = vld [vmem:[#allocation2 + $0x2] ss:$0 sm:$0xff] }
 0x222   :  { %v192_v8 = vmul.f32 %v188_v4, %v104_v7  ;;  %v258_v49 = vxor.u32 2147483648, %v257_v47  ;;  %v284_v0 = vld [vmem:[#allocation2] ss:$0 sm:$0xff] }
 0x273   :  { %v154_v56 = vpop.xlane.xlu2 %153 }
 0x274   :  { %v155_v58 = vsel %vm151_vm6, %v154_v56, %v145_v40  ;;  %v244_v40 = vxor.u32 2147483648, %v243_v38  ;;  %v271_v56 = vld [vmem:[#allocation2 + $0x1] ss:$0 sm:$0xff] }
 0x275   :  { %v162_v59 = vmul.f32 %v158_v57, %v155_v58 }
 0x277   :  { %163 = vadd.xlane.f32.xlu2 %v162_v59 }
 0x2ea   :  { %v164_v61 = vpop.xlane.xlu2 %163 }
 0x2eb   :  { %v165_v63 = vsel %vm161_vm1, %v164_v61, %v155_v58  ;;  %v272_v58 = vxor.u32 2147483648, %v271_v56 }
 0x2ec   :  { %v172_v3 = vmul.f32 %v168_v62, %v165_v63 }
 0x2ee   :  { %173 = vadd.xlane.f32.xlu0 %v172_v3 }
 0x2f6   :  { %193 = vadd.xlane.f32.xlu0 %v192_v8 }
 0x361   :  { %v174_v10 = vpop.xlane.xlu0 %173 }
 0x362   :  { %v175_v12 = vsel %vm171_vm8, %v174_v10, %v165_v63 }
 0x363   :  { %v182_v13 = vmul.f32 %v178_v11, %v175_v12 }
 0x365   :  { %183 = vadd.xlane.f32.xlu2 %v182_v13 }
 0x369   :  { %v194_v16 = vpop.xlane.xlu0 %193 }
 0x36a   :  { %v195_v2 = vsel %vm191_vm9, %v194_v16, %v104_v7 }
 0x36b   :  { %v206_v18 = vmul.f32 %v202_v15, %v195_v2 }
 0x36d   :  { %207 = vadd.xlane.f32.xlu2 %v206_v18 }
 0x3d8   :  { %v184_v19 = vpop.xlane.xlu2 %183 }
 0x3d9   :  { %v185_v20 = vsel %vm181_vm10, %v184_v19, %v175_v12 }
 0x3da   :  { %v196_v21 = vmul.f32 %v188_v4, %v185_v20  ;;  %v285_v4 = vxor.u32 2147483648, %v284_v0 }
 0x3dc   :  { %197 = vadd.xlane.f32.xlu1 %v196_v21 }
 0x3e0   :  { %v208_v23 = vpop.xlane.xlu2 %207 }
 0x3e1   :  { %v209_v25 = vsel %vm205_vm11, %v208_v23, %v195_v2 }
 0x3e2   :  { %v220_v26 = vmul.f32 %v216_v24, %v209_v25 }
 0x3e4   :  { %221 = vadd.xlane.f32.xlu1 %v220_v26 }
 0x44f   :  { %v198_v27 = vpop.xlane.xlu1 %197 }
 0x450   :  { %v199_v28 = vsel %vm191_vm9, %v198_v27, %v185_v20 }
 0x451   :  { %v210_v29 = vmul.f32 %v202_v15, %v199_v28 }
 0x453   :  { %211 = vadd.xlane.f32.xlu0 %v210_v29 }
 0x457   :  { %v222_v31 = vpop.xlane.xlu1 %221 }
 0x458   :  { %v223_v33 = vsel %vm219_vm12, %v222_v31, %v209_v25 }
 0x459   :  { %v234_v34 = vmul.f32 %v230_v32, %v223_v33 }
 0x45b   :  { %235 = vadd.xlane.f32.xlu0 %v234_v34 }
 0x4c6   :  { %v212_v35 = vpop.xlane.xlu0 %211 }
 0x4c7   :  { %v213_v36 = vsel %vm205_vm11, %v212_v35, %v199_v28 }
 0x4c8   :  { %v224_v37 = vmul.f32 %v216_v24, %v213_v36 }
 0x4ca   :  { %225 = vadd.xlane.f32.xlu2 %v224_v37 }
 0x4ce   :  { %v236_v39 = vpop.xlane.xlu0 %235 }
 0x4cf   :  { %v237_v41 = vsel %vm233_vm13, %v236_v39, %v223_v33 }
 0x4d0   :  { %v248_v43 = vmul.f32 %v244_v40, %v237_v41 }
 0x4d2   :  { %249 = vadd.xlane.f32.xlu2 %v248_v43 }
 0x53d   :  { %v226_v44 = vpop.xlane.xlu2 %225 }
 0x53e   :  { %v227_v45 = vsel %vm219_vm12, %v226_v44, %v213_v36 }
 0x53f   :  { %v238_v46 = vmul.f32 %v230_v32, %v227_v45 }
 0x541   :  { %239 = vadd.xlane.f32.xlu1 %v238_v46 }
 0x545   :  { %v250_v48 = vpop.xlane.xlu2 %249 }
 0x546   :  { %v251_v50 = vsel %vm247_vm14, %v250_v48, %v237_v41 }
 0x547   :  { %v262_v51 = vmul.f32 %v258_v49, %v251_v50 }
 0x549   :  { %263 = vadd.xlane.f32.xlu1 %v262_v51 }
 0x5b4   :  { %v240_v52 = vpop.xlane.xlu1 %239 }
 0x5b5   :  { %v241_v54 = vsel %vm233_vm13, %v240_v52, %v227_v45 }
 0x5b6   :  { %v252_v55 = vmul.f32 %v244_v40, %v241_v54 }
 0x5b8   :  { %253 = vadd.xlane.f32.xlu0 %v252_v55 }
 0x5bc   :  { %v264_v57 = vpop.xlane.xlu1 %263 }
 0x5bd   :  { %v265_v59 = vsel %vm261_vm0, %v264_v57, %v251_v50 }
 0x5be   :  { %v276_v60 = vmul.f32 %v272_v58, %v265_v59 }
 0x5c0   :  { %277 = vadd.xlane.f32.xlu0 %v276_v60 }
 0x62b   :  { %v254_v61 = vpop.xlane.xlu0 %253 }
 0x62c   :  { %v255_v62 = vsel %vm247_vm14, %v254_v61, %v241_v54 }
 0x62d   :  { %v266_v63 = vmul.f32 %v258_v49, %v255_v62 }
 0x62f   :  { %267 = vadd.xlane.f32.xlu2 %v266_v63 }
 0x633   :  { %v278_v3 = vpop.xlane.xlu0 %277 }
 0x634   :  { %v279_v5 = vsel %vm275_vm2, %v278_v3, %v265_v59 }
 0x635   :  { %v289_v7 = vmul.f32 %v285_v4, %v279_v5 }
 0x637   :  { %290 = vadd.xlane.f32.xlu2 %v289_v7 }
 0x6a2   :  { %v268_v8 = vpop.xlane.xlu2 %267 }
 0x6a3   :  { %v269_v9 = vsel %vm261_vm0, %v268_v8, %v255_v62 }
 0x6a4   :  { %v280_v10 = vmul.f32 %v272_v58, %v269_v9 }
 0x6a6   :  { %281 = vadd.xlane.f32.xlu1 %v280_v10 }
 0x6aa   :  { %v291_v11 = vpop.xlane.xlu2 %290 }
 0x6ab   :  { %v292_v12 = vsel %vm288_vm3, %v291_v11, %v279_v5 }
 0x6ac   :  { %v311_v13 = vmul.f32 %v292_v12, %v445_v53 }
 0x6ae   :  { %v313_v14 = vsel %vm58_vm15, %v292_v12, %v311_v13 }
 0x6af   :  { %365 = vst [vmem:[%s503_s1] sm:$0xff] %v313_v14 }
 0x719   :  { %v282_v15 = vpop.xlane.xlu1 %281 }
 0x71a   :  { %v283_v16 = vsel %vm275_vm2, %v282_v15, %v269_v9 }
 0x71b   :  { %v293_v2 = vmul.f32 %v285_v4, %v283_v16 }
 0x71d   :  { %294 = vadd.xlane.f32.xlu0 %v293_v2 }
 0x790   :  { %v295_v18 = vpop.xlane.xlu0 %294 }
 0x791   :  { %v296_v19 = vsel %vm288_vm3, %v295_v18, %v283_v16 }
 0x792   :  { %v329_v20 = vmul.f32 %v296_v19, %v419_v17 }
 0x794   :  { %v331_v53 = vsel %vm87_vm5, %v296_v19, %v329_v20 }
 0x795   :  { %367 = vst [vmem:[%s503_s1 + $0x8] sm:$0xff] %v331_v53 }

// kernel: custom-call.34
= control target key start
LH: loop header
LB: loop body
LE: loop exit
PB: predicated region body
PF: predicated region fallthrough
CT: control target
= control target key end

     0   :  { %5 = vsyncpa [#allocation4], 0  ;;  %s1064_s0 = inlined_call_operand.vmem [shape: f32[32,32], index: 0, kind: input, shape index: {}]   ;;  %s1065_s1 = inlined_call_operand.vmem [shape: f32[32,32], index: 1, kind: output, shape index: {0}]   ;;  %s1066_s2 = inlined_call_operand.hbm [shape: s32[32], index: 2, kind: output, shape index: {1}]   ;;  %s1067_s3 = inlined_call_operand.vmem [shape: s32[32], index: 3, kind: output, shape index: {2}]  }
   0x1   :  { %s15_s14 = scalar_lea.vmem %s1064_s0, 24 }
   0x2   :  { %p556_p0 = scmp.gt.s32.totalorder %s1064_s0, %s15_s14 }
   0x3   :  { %s855_s17 = smov (!%p556_p0), [#allocation0]   ;;  %s859_s20 = smov (!%p556_p0), %s1064_s0  }
   0x4   :  { %557 = sbr.rel (%p556_p0) target bundleno = 17 (0x11), region = 165 }
   0x9 LB: > { %v49_v0 = vld [vmem:[%s861_s20] sm:$0xff]  ;;  %s51_s20 = scalar_lea.vmem %s861_s20, 8   ;;  %s861_s20 = sphi %s859_s20, %s51_s20   ;;  %s857_s17 = sphi %s855_s17, %s52_s17  }
   0xa   : > { %50 = vst [vmem:[%s857_s17] sm:$0xff] %v49_v0  ;;  %s52_s17 = scalar_lea.vmem %s857_s17, 8   ;;  %p46_p1 = scmp.gt.s32.totalorder %s51_s20, %s15_s14 }
   0xc   :  { %48 = sbr.rel (!%p46_p1) target bundleno = 9 (0x9), region = 171 }
  0x11 PF:  { %v62_v1 = vld [vmem:[#allocation0] sm:$0xff]  ;;  %v66_v2 = vld [vmem:[#allocation0 + $0x8] sm:$0xff]  ;;  %v70_v3 = vld [vmem:[#allocation0 + $0x10] sm:$0xff]  ;;  %v77_v4 = vlaneseq  ;;  %v879_v7 = vmov 0   ;;  %s863_s0 = smov 0  }
  0x12   :  { %63 = vst [vmem:[#allocation1] sm:$0xff] %v62_v1  ;;  %v74_v5 = vld [vmem:[#allocation0 + $0x18] sm:$0xff] }
  0x13   :  { %67 = vst [vmem:[#allocation1 + $0x8] sm:$0xff] %v66_v2  ;;  %v911_v6 = vshrl.u32 %v77_v4, 7 }
  0x14   :  { %71 = vst [vmem:[#allocation1 + $0x10] sm:$0xff] %v70_v3 }
  0x15   :  { %75 = vst [vmem:[#allocation1 + $0x18] sm:$0xff] %v74_v5 }
  0x16   :  { %76 = vst [vmem:[#allocation2] sm:$0x1] %v879_v7 }
  0x17 LB: > { %s614_s21 = sshll.u32 %s865_s0, 3  ;;  %s85_s0 = sadd.s32 1, %s865_s0   ;;  %s865_s0 = sphi %s863_s0, %s85_s0  }
  0x18   : > { %v89_v8 = vstv %s614_s21  ;;  %s87_s22 = scalar_lea.vmem [#allocation7], %s614_s21  ;;  %p82_p2 = scmp.ge.s32.totalorder %s85_s0, 4  }
  0x19   : > { %v90_v9 = vadd.s32 %v89_v8, %v911_v6  ;;  %s914_s23 = smov (%p82_p2), 0  }
  0x1a   :  { %84 = sbr.rel (!%p82_p2) target bundleno = 23 (0x17), region = 182 }
  0x1b   : > { %91 = vst [vmem:[%s87_s22] sm:$0xff] %v90_v9 }
  0x1f LB: > { %v102_v10 = vld [vmem:[#allocation1] sm:$0xff]  ;;  %v114_v11 = vld [vmem:[#allocation1 + $0x8] sm:$0xff]  ;;  %v920_v12 = vadd.s32 8, %v911_v6  ;;  %v923_v14 = vstv %s869_s23  ;;  %v126_v16 = vld [vmem:[#allocation1 + $0x10] sm:$0xff]  ;;  %v928_v17 = vadd.s32 16, %v911_v6  ;;  %v935_v22 = vadd.s32 24, %v911_v6  ;;  %s869_s23 = sphi %s914_s23, %s97_s23  }
  0x20   : > { %v103_v13 = vand.u32 2147483647, %v102_v10  ;;  %v115_v15 = vand.u32 2147483647, %v114_v11  ;;  %vm106_vm0 = vcmp.ge.s32.totalorder %v911_v6, %v923_v14  ;;  %v127_v20 = vand.u32 2147483647, %v126_v16 }
  0x21   : > { %vm118_vm3 = vcmp.ge.s32.totalorder %v920_v12, %v923_v14  ;;  %v138_v21 = vld [vmem:[#allocation1 + $0x18] sm:$0xff]  ;;  %vm130_vm6 = vcmp.ge.s32.totalorder %v928_v17, %v923_v14  ;;  %vm142_vm9 = vcmp.ge.s32.totalorder %v935_v22, %v923_v14  ;;  %s184_s24 = ssub.s32 128, %s869_s23  ;;  %v946_v58 = vand.u32 127, %v77_v4  ;;  %v193_v60 = vld [vmem:[#allocation2] ss:$0 sm:$0xff]  ;;  %s196_s26 = scalar_lea.vmem [#allocation1], %s869_s23 }
  0x22   : > { %vm616_vm1 = vcmp.gt.f32.partialorder %v103_v13, -inf  ;;  %v139_v25 = vand.u32 2147483647, %v138_v21  ;;  %v198_v61 = vld [vmem:[%s196_s26] ss:$0 sm:$0xff]  ;;  %s202_s28 = scalar_lea.vmem [#allocation7], %s869_s23 }
  0x23   : > { %vm110_vm2 = vmand %vm106_vm0, %vm616_vm1  ;;  %v204_v1 = vld [vmem:[%s202_s28] ss:$0 sm:$0xff]  ;;  %s97_s23 = sadd.s32 1, %s869_s23  }
  0x24   : > { %v111_v18 = vsel %vm110_vm2, %v911_v6, %v923_v14  ;;  %v112_v19 = vsel %vm110_vm2, %v103_v13, -inf  ;;  %p94_p3 = scmp.ge.s32.totalorder %s97_s23, 32  }
  0x25   : > { %vm121_vm4 = vcmp.lt.f32.partialorder %v112_v19, %v115_v15  ;;  %s871_s5 = smov (%p94_p3), %s1065_s1   ;;  %s875_s6 = smov (%p94_p3), [#allocation1]  }
  0x26   : > { %vm122_vm5 = vmand %vm118_vm3, %vm121_vm4  ;;  %vm950_vm3 = vcmp.eq.s32.totalorder %v946_v58, %v923_v14 }
  0x27   : > { %v123_v23 = vsel %vm122_vm5, %v920_v12, %v111_v18  ;;  %v124_v24 = vsel %vm122_vm5, %v115_v15, %v112_v19  ;;  %vm306_vm5 = vcmp.gt.s32.totalorder %v935_v22, %v923_v14 }
  0x28   : > { %vm133_vm7 = vcmp.lt.f32.partialorder %v124_v24, %v127_v20 }
  0x29   : > { %vm134_vm8 = vmand %vm130_vm6, %vm133_vm7  ;;  %vm250_vm6 = vcmp.gt.s32.totalorder %v920_v12, %v923_v14  ;;  %vm222_vm7 = vcmp.gt.s32.totalorder %v911_v6, %v923_v14 }
  0x2a   : > { %v135_v26 = vsel %vm134_vm8, %v928_v17, %v123_v23  ;;  %v136_v27 = vsel %vm134_vm8, %v127_v20, %v124_v24 }
  0x2b   : > { %vm145_vm10 = vcmp.lt.f32.partialorder %v136_v27, %v139_v25 }
  0x2c   : > { %vm146_vm11 = vmand %vm142_vm9, %vm145_vm10  ;;  %vm1068_vm9 = vcmp.gt.s32.totalorder %v928_v17, %v923_v14 }
  0x2d   : > { %v147_v28 = vsel %vm146_vm11, %v935_v22, %v135_v26  ;;  %v148_v29 = vsel %vm146_vm11, %v139_v25, %v136_v27 }
  0x2e   : > { %v149_v30 = vrot.slane %v148_v29, 1  ;;  %v150_v31 = vrot.slane %v147_v28, 1 }
  0x30   : > { %vm151_vm12 = vcmp.ge.f32.partialorder %v149_v30, %v148_v29  ;;  %v154_v32 = vrot.slane %v149_v30, 1  ;;  %v155_v33 = vrot.slane %v150_v31, 1 }
  0x31   : > { %v152_v34 = vsel %vm151_vm12, %v149_v30, %v148_v29  ;;  %v153_v35 = vsel %vm151_vm12, %v150_v31, %v147_v28 }
  0x32   : > { %vm156_vm13 = vcmp.ge.f32.partialorder %v154_v32, %v152_v34  ;;  %v159_v36 = vrot.slane %v154_v32, 1  ;;  %v160_v37 = vrot.slane %v155_v33, 1 }
  0x33   : > { %v157_v38 = vsel %vm156_vm13, %v154_v32, %v152_v34  ;;  %v158_v39 = vsel %vm156_vm13, %v155_v33, %v153_v35 }
  0x34   : > { %vm161_vm14 = vcmp.ge.f32.partialorder %v159_v36, %v157_v38  ;;  %v164_v40 = vrot.slane %v159_v36, 1  ;;  %v165_v41 = vrot.slane %v160_v37, 1 }
  0x35   : > { %v162_v42 = vsel %vm161_vm14, %v159_v36, %v157_v38  ;;  %v163_v43 = vsel %vm161_vm14, %v160_v37, %v158_v39 }
  0x36   : > { %vm166_vm15 = vcmp.ge.f32.partialorder %v164_v40, %v162_v42  ;;  %v169_v44 = vrot.slane %v164_v40, 1  ;;  %v170_v45 = vrot.slane %v165_v41, 1 }
  0x37   : > { %v167_v46 = vsel %vm166_vm15, %v164_v40, %v162_v42  ;;  %v168_v47 = vsel %vm166_vm15, %v165_v41, %v163_v43 }
  0x38   : > { %vm171_vm0 = vcmp.ge.f32.partialorder %v169_v44, %v167_v46  ;;  %v174_v48 = vrot.slane %v169_v44, 1  ;;  %v175_v49 = vrot.slane %v170_v45, 1 }
  0x39   : > { %v172_v50 = vsel %vm171_vm0, %v169_v44, %v167_v46  ;;  %v173_v51 = vsel %vm171_vm0, %v170_v45, %v168_v47  ;;  %vm1002_vm0 = vmand %vm306_vm5, %vm950_vm3 }
  0x3a   : > { %vm176_vm1 = vcmp.ge.f32.partialorder %v174_v48, %v172_v50  ;;  %v179_v52 = vrot.slane %v174_v48, 1  ;;  %v180_v53 = vrot.slane %v175_v49, 1 }
  0x3b   : > { %v177_v54 = vsel %vm176_vm1, %v174_v48, %v172_v50  ;;  %v178_v55 = vsel %vm176_vm1, %v175_v49, %v173_v51 }
  0x3c   : > { %vm181_vm2 = vcmp.ge.f32.partialorder %v179_v52, %v177_v54 }
  0x3d   : > { %v183_v56 = vsel %vm181_vm2, %v180_v53, %v178_v55  ;;  %vm1011_vm2 = vmand %vm250_vm6, %vm950_vm3 }
  0x3e   : > { %185 = vrot.lane.b32.xlu0 %v183_v56, %s184_s24 }
  0xb0   : > { %v186_v57 = vpop.permute.xlu0 %185 }
  0xb1   : > { %624 = vpush %v186_v57 }
  0xe2   : > { %s625_s25 = spop %624 }
  0xe3   : > { %v192_v62 = vstv %s625_s25  ;;  %s197_s27 = scalar_lea.vmem [#allocation1], %s625_s25  ;;  %s203_s29 = scalar_lea.vmem [#allocation7], %s625_s25 }
  0xe4   : > { %v194_v63 = vsel %vm950_vm3, %v192_v62, %v193_v60  ;;  %v957_v0 = vld [vmem:[%s197_s27] ss:$0 sm:$0xff] }
  0xe5   : > { %195 = vst [vmem:[#allocation2] sm:$0x1] %v194_v63  ;;  %v205_v2 = vld [vmem:[%s203_s29] ss:$0 sm:$0xff]  ;;  %vm208_vm4 = vcmp.ne.f32.partialorder %v957_v0, 0.0 }
  0xe6   : > { %200 = vst [vmem:[%s197_s27] sm:$0x1] %v198_v61  ;;  %vm209_vm8 = vmand %vm950_vm3, %vm208_vm4 }
  0xe7   : > { %201 = vst [vmem:[%s196_s26] sm:$0x1] %v957_v0  ;;  %v210_v3 = vsel %vm209_vm8, %v957_v0, 1.0 }
  0xe8   : > { %206 = vst [vmem:[%s203_s29] sm:$0x1] %v204_v1  ;;  %v307_v5 = vsel %vm306_vm5, %v210_v3, 1.0  ;;  %v251_v7 = vsel %vm250_vm6, %v210_v3, 1.0  ;;  %v223_v8 = vsel %vm222_vm7, %v210_v3, 1.0  ;;  %v985_v9 = vsel %vm1068_vm9, %v210_v3, 1.0 }
  0xe9   : > { %207 = vst [vmem:[%s202_s28] sm:$0x1] %v205_v2  ;;  %757 = vrcp.f32 %v307_v5  ;;  %v317_v10 = vand.u32 2147483647, %v307_v5  ;;  %v319_v11 = vand.u32 2147483648, %v307_v5  ;;  %v261_v15 = vand.u32 2147483647, %v251_v7 }
  0xea   : > { %759 = vrcp.f32 %v251_v7  ;;  %v263_v16 = vand.u32 2147483648, %v251_v7  ;;  %vm313_vm10 = vweird.f32 %v307_v5  ;;  %vm257_vm11 = vweird.f32 %v251_v7 }
  0xeb   : > { %761 = vrcp.f32 %v223_v8  ;;  %vm988_vm12 = vcmp.eq.f32.partialorder %v317_v10, 8.507059e+37  ;;  %v320_v25 = vor.u32 1.1754944e-38, %v319_v11  ;;  %vm992_vm13 = vcmp.eq.f32.partialorder %v261_v15, 8.507059e+37 }
  0xec   : > { %763 = vrcp.f32 %v985_v9  ;;  %v264_v30 = vor.u32 1.1754944e-38, %v263_v16  ;;  %vm229_vm14 = vweird.f32 %v223_v8  ;;  %v233_v36 = vand.u32 2147483647, %v223_v8 }
  0xed   : > { %v235_v37 = vand.u32 2147483648, %v223_v8  ;;  %vm285_vm8 = vweird.f32 %v985_v9  ;;  %v289_v42 = vand.u32 2147483647, %v985_v9  ;;  %v291_v43 = vand.u32 2147483648, %v985_v9 }
  0xee   : > { %v303_v46 = vld [vmem:[#allocation1 + $0x18] sm:$0xff]  ;;  %v247_v51 = vld [vmem:[#allocation1 + $0x8] sm:$0xff]  ;;  %v219_v57 = vld [vmem:[#allocation1] sm:$0xff] }
  0xef   : > { %v758_v13 = vpop.eup %757  ;;  %v236_v49 = vor.u32 1.1754944e-38, %v235_v37  ;;  %v292_v1 = vor.u32 1.1754944e-38, %v291_v43 }
  0xf0   : > { %v760_v18 = vpop.eup %759  ;;  %v309_v19 = vmul.f32 %v758_v13, %v307_v5  ;;  %vm314_vm15 = vweird.f32 %v758_v13 }
  0xf1   : > { %v762_v20 = vpop.eup %761  ;;  %v253_v21 = vmul.f32 %v760_v18, %v251_v7  ;;  %vm258_vm1 = vweird.f32 %v760_v18  ;;  %vm315_vm5 = vmor %vm313_vm10, %vm314_vm15  ;;  %vm234_vm15 = vcmp.eq.f32.partialorder %v233_v36, 8.507059e+37  ;;  %v275_v7 = vld [vmem:[#allocation1 + $0x10] sm:$0xff] }
  0xf2   : > { %v310_v23 = vsub.f32 1.0, %v309_v19  ;;  %v225_v26 = vmul.f32 %v762_v20, %v223_v8  ;;  %v764_v27 = vpop.eup %763  ;;  %vm230_vm4 = vweird.f32 %v762_v20  ;;  %vm259_vm9 = vmor %vm257_vm11, %vm258_vm1 }
  0xf3   : > { %v254_v28 = vsub.f32 1.0, %v253_v21  ;;  %v281_v33 = vmul.f32 %v764_v27, %v985_v9  ;;  %vm286_vm6 = vweird.f32 %v764_v27  ;;  %vm231_vm10 = vmor %vm229_vm14, %vm230_vm4  ;;  %vm214_vm14 = vcmp.gt.s32.totalorder %v946_v58, %v923_v14  ;;  %v332_v58 = vld [vmem:[#allocation7 + $0x8] sm:$0xff] (%p94_p3) }
  0xf4   : > { %v311_v31 = vmul.f32 %v758_v13, %v310_v23  ;;  %v226_v32 = vsub.f32 1.0, %v225_v26  ;;  %vm1031_vm11 = vmand %vm222_vm7, %vm950_vm3  ;;  %vm290_vm7 = vcmp.eq.f32.partialorder %v289_v42, 8.507059e+37  ;;  %v215_v10 = vsel %vm214_vm14, %v957_v0, 0.0  ;;  %v334_v0 = vld [vmem:[#allocation7 + $0x10] sm:$0xff] (%p94_p3)  ;;  %v384_v26 = vld [vmem:[#allocation2] sm:$0x1] (%p94_p3) }
  0xf5   : > { %v255_v35 = vmul.f32 %v760_v18, %v254_v28  ;;  %v282_v22 = vsub.f32 1.0, %v281_v33  ;;  %387 = vst [vmem:[#allocation3] sm:$0x1] (%p94_p3), %v384_v26 }
  0xf6   : > { %v312_v38 = vadd.f32 %v758_v13, %v311_v31  ;;  %v227_v40 = vmul.f32 %v762_v20, %v226_v32 }
  0xf7   : > { %v256_v41 = vadd.f32 %v760_v18, %v255_v35  ;;  %v283_v45 = vmul.f32 %v764_v27, %v282_v22 }
  0xf8   : > { %v316_v44 = vsel %vm315_vm5, %v758_v13, %v312_v38  ;;  %v228_v12 = vadd.f32 %v762_v20, %v227_v40 }
  0xf9   : > { %v321_v47 = vsel %vm988_vm12, %v320_v25, %v316_v44  ;;  %v260_v48 = vsel %vm259_vm9, %v760_v18, %v256_v41  ;;  %v284_v55 = vadd.f32 %v764_v27, %v283_v45  ;;  %vm287_vm9 = vmor %vm285_vm8, %vm286_vm6  ;;  %vm1081_vm12 = vcmp.gt.s32.totalorder %v928_v17, %v923_v14  ;;  %v330_v14 = vld [vmem:[#allocation7] sm:$0xff] (%p94_p3)  ;;  %v336_v25 = vld [vmem:[#allocation7 + $0x18] sm:$0xff] (%p94_p3) }
  0xfa   : > { %v322_v50 = vmul.f32 %v321_v47, %v303_v46  ;;  %v265_v52 = vsel %vm992_vm13, %v264_v30, %v260_v48  ;;  %v232_v53 = vsel %vm231_vm10, %v762_v20, %v228_v12  ;;  %vm295_vm13 = vmand %vm1081_vm12, %vm950_vm3 }
  0xfb   : > { %v266_v56 = vmul.f32 %v265_v52, %v247_v51  ;;  %v237_v60 = vsel %vm234_vm15, %v236_v49, %v232_v53  ;;  %v288_v63 = vsel %vm287_vm9, %v764_v27, %v284_v55 }
  0xfc   : > { %v324_v61 = vsel %vm1002_vm0, %v322_v50, 0.0  ;;  %v238_v62 = vmul.f32 %v237_v60, %v219_v57  ;;  %v293_v5 = vsel %vm290_vm7, %v292_v1, %v288_v63 }
  0xfd   : > { %325 = vadd.xlane.f32.xlu2 %v324_v61  ;;  %v268_v2 = vsel %vm1011_vm2, %v266_v56, 0.0  ;;  %v294_v8 = vmul.f32 %v293_v5, %v275_v7 }
  0xfe   : > { %269 = vadd.xlane.f32.xlu1 %v268_v2  ;;  %v240_v3 = vsel %vm1031_vm11, %v238_v62, 0.0 }
  0xff   : > { %241 = vadd.xlane.f32.xlu0 %v240_v3  ;;  %v296_v9 = vsel %vm295_vm13, %v294_v8, 0.0 }
 0x106   : > { %297 = vadd.xlane.f32.xlu1 %v296_v9 }
 0x128   :  { %349 = vxpose.xlu0.b32.start [1/4] (short) (narrow) (%p94_p3), %v330_v14, 8 }
 0x130   :  { %350 = vxpose.xlu0.b32.cont [2/4] (short) (narrow) (%p94_p3), %v332_v58, 8 }
 0x138   :  { %351 = vxpose.xlu0.b32.cont [3/4] (short) (narrow) (%p94_p3), %v334_v0, 8 }
 0x140   :  { %352 = vxpose.xlu0.b32.end [4/4] (short) (narrow) (%p94_p3), %v336_v25, 8 }
 0x170   : > { %v326_v11 = vpop.xlane.xlu2 %325 }
 0x171   : > { %v327_v13 = vmul.f32 %v326_v11, %v215_v10  ;;  %v270_v15 = vpop.xlane.xlu1 %269 }
 0x172   : > { %v271_v16 = vmul.f32 %v270_v15, %v215_v10  ;;  %v242_v18 = vpop.xlane.xlu0 %241 }
 0x173   : > { %v328_v19 = vsub.f32 %v322_v50, %v327_v13  ;;  %v243_v20 = vmul.f32 %v242_v18, %v215_v10 }
 0x174   : > { %v272_v21 = vsub.f32 %v266_v56, %v271_v16 }
 0x175   : > { %329 = vst [vmem:[#allocation1 + $0x18] sm:$0xff] %v328_v19  ;;  %v244_v59 = vsub.f32 %v238_v62, %v243_v20 }
 0x176   : > { %273 = vst [vmem:[#allocation1 + $0x8] sm:$0xff] %v272_v21 }
 0x177   : > { %245 = vst [vmem:[#allocation1] sm:$0xff] %v244_v59 }
 0x179   : > { %v298_v17 = vpop.xlane.xlu1 %297 }
 0x17a   : > { %v299_v23 = vmul.f32 %v298_v17, %v215_v10 }
 0x17c   : > { %v300_v24 = vsub.f32 %v294_v8, %v299_v23  ;;  %96 = sbr.rel (!%p94_p3) target bundleno = 31 (0x1f), region = 193 }
 0x17e   : > { %301 = vst [vmem:[#allocation1 + $0x10] sm:$0xff] %v300_v24 }
 0x1cc   :  { %v365_v27 = vpop.trf.xlu0 }
 0x1cd   :  { %381 = vst [vmem:[#allocation5] sm:$0x1] %v365_v27 }
 0x1d4   :  { %v390_v28 = vld [vmem:[#allocation5] sm:$0x1] }
 0x1d5   :  { %393 = vst [vmem:[#allocation6] sm:$0x1] %v390_v28 }
 0x1d6 LB: > { %v437_v4 = vld [vmem:[%s877_s6] sm:$0xff]  ;;  %s439_s6 = scalar_lea.vmem %s877_s6, 8   ;;  %s877_s6 = sphi %s875_s6, %s439_s6   ;;  %s873_s5 = sphi %s871_s5, %s440_s5  }
 0x1d7   : > { %438 = vst [vmem:[%s873_s5] sm:$0xff] %v437_v4  ;;  %s440_s5 = scalar_lea.vmem %s873_s5, 8   ;;  %p434_p4 = scmp.gt.s32.totalorder %s439_s6, [#allocation1 + $0x18] }
 0x1d8   :  { %s457_s9 = sshll.u32 (%p434_p4), %s1066_s2, 4  ;;  %s880_s10 = smov (%p434_p4), [#allocation3]   ;;  %s458_s9 = int_to_ptr.hbm [resolvable:$true] %s457_s9 }
 0x1d9   :  { %436 = sbr.rel (!%p434_p4) target bundleno = 470 (0x1d6), region = 215  ;;  %s455_s1 = sshll.u32 (%p434_p4), %s880_s10, 4  ;;  %s456_s1 = int_to_ptr.vmem [resolvable:$true] %s455_s1 }
 0x1da   :  { %460 = dma.vmem_to_hbm [thread:$0]  (%p434_p4), %s456_s1, 16, %s458_s9, [#allocation4]  }
 0x1dc   :  { %v517_v6 = vld [vmem:[#allocation6] sm:$0x1] (%p434_p4) }
 0x1dd   :  { %518 = vst [vmem:[%s1067_s3] sm:$0x1] (%p434_p4), %v517_v6 }
 0x1de   :  { %853 = dma.done.wait [#allocation4], 16  }
 0x1df   :  { %854 = vsyncadd [#allocation4], 4294967280 }
 0x1e0   :  { %525 = vsyncpa [#allocation4], 1 }

// kernel: custom-call.36
= control target key start
LH: loop header
LB: loop body
LE: loop exit
PB: predicated region body
PF: predicated region fallthrough
CT: control target
= control target key end

     0   :  { %v47_v0 = vlaneseq  ;;  %v836_v18 = vmov -1.0   ;;  %v837_v61 = vmov 0.0   ;;  %s1040_s0 = inlined_call_operand.vmem [shape: f32[1,32,32], index: 0, kind: input, shape index: {}]   ;;  %s1041_s1 = inlined_call_operand.vmem [shape: f32[1,32,32], index: 1, kind: output, shape index: {}]  }
   0x1   :  { %v36_v1 = vld [vmem:[%s1040_s0] sm:$0xff]  ;;  %v38_v39 = vld [vmem:[%s1040_s0 + $0x8] sm:$0xff] }
   0x2   :  { %v851_v2 = vand.u32 127, %v47_v0  ;;  %v853_v3 = vshrl.u32 %v47_v0, 7 }
   0x4   :  { %vm53_vm0 = vcmp.eq.s32.totalorder %v853_v3, %v851_v2  ;;  %vm49_vm1 = vcmp.lt.s32.totalorder %v851_v2, 32  ;;  %vm58_vm2 = vcmp.ge.s32.totalorder %v853_v3, %v851_v2  ;;  %vm172_vm8 = vcmp.eq.s32.totalorder %v851_v2, 0 }
   0x5   :  { %v55_v4 = vsel %vm53_vm0, %v36_v1, 0.0  ;;  %vm59_vm3 = vmand %vm58_vm2, %vm49_vm1  ;;  %vm169_vm9 = vcmp.eq.s32.totalorder %v851_v2, %v853_v3  ;;  %v173_v19 = vsel %vm172_vm8, 1.0, %v836_v18  ;;  %vm201_vm10 = vcmp.eq.s32.totalorder %v851_v2, 1 }
   0x6   :  { %56 = vadd.xlane.f32.xlu0 %v55_v4  ;;  %v60_v13 = vsel %vm59_vm3, %v36_v1, 0.0  ;;  %v174_v20 = vsel %vm169_vm9, %v173_v19, 0.0  ;;  %vm211_vm11 = vcmp.eq.s32.totalorder %v851_v2, 2  ;;  %vm221_vm12 = vcmp.eq.s32.totalorder %v851_v2, 3 }
   0x7   :  { %v81_v40 = vadd.s32 8, %v853_v3  ;;  %vm231_vm14 = vcmp.eq.s32.totalorder %v851_v2, 4  ;;  %vm241_vm8 = vcmp.eq.s32.totalorder %v851_v2, 5  ;;  %vm251_vm9 = vcmp.eq.s32.totalorder %v851_v2, 6 }
   0x9   :  { %vm82_vm13 = vcmp.eq.s32.totalorder %v81_v40, %v851_v2  ;;  %vm87_vm15 = vcmp.ge.s32.totalorder %v81_v40, %v851_v2 }
   0xa   :  { %v84_v41 = vsel %vm82_vm13, %v38_v39, 0.0  ;;  %vm88_vm3 = vmand %vm87_vm15, %vm49_vm1  ;;  %vm299_vm13 = vcmp.eq.s32.totalorder %v851_v2, 10  ;;  %vm327_vm15 = vcmp.eq.s32.totalorder %v851_v2, 12 }
   0xb   :  { %v89_v56 = vsel %vm88_vm3, %v38_v39, 0.0  ;;  %vm341_vm3 = vcmp.eq.s32.totalorder %v851_v2, 13 }
  0x79   :  { %v857_v5 = vpop.xlane.xlu0 %56 }
  0x7a   :  { %828 = vrcp.f32 %v857_v5  ;;  %v72_v9 = vand.u32 2147483648, %v857_v5  ;;  %v70_v11 = vand.u32 2147483647, %v857_v5  ;;  %vm66_vm5 = vweird.f32 %v857_v5 }
  0x7c   :  { %v73_v14 = vor.u32 1.1754944e-38, %v72_v9  ;;  %vm71_vm7 = vcmp.eq.f32.partialorder %v70_v11, 8.507059e+37 }
  0x80   :  { %v829_v6 = vpop.eup %828 }
  0x81   :  { %v62_v7 = vmul.f32 %v829_v6, %v857_v5  ;;  %vm67_vm4 = vweird.f32 %v829_v6 }
  0x82   :  { %vm68_vm6 = vmor %vm66_vm5, %vm67_vm4 }
  0x83   :  { %v63_v8 = vsub.f32 1.0, %v62_v7 }
  0x85   :  { %v64_v10 = vmul.f32 %v829_v6, %v63_v8 }
  0x87   :  { %v65_v12 = vadd.f32 %v829_v6, %v64_v10 }
  0x89   :  { %v69_v15 = vsel %vm68_vm6, %v829_v6, %v65_v12 }
  0x8a   :  { %v871_v16 = vsel %vm71_vm7, %v73_v14, %v69_v15  ;;  %vm180_vm7 = vcmp.eq.s32.totalorder %v851_v2, %v81_v40 }
  0x8b   :  { %v75_v17 = vmul.f32 %v871_v16, %v60_v13  ;;  %v181_v62 = vsel %vm180_vm7, -1.0, %v837_v61 }
  0x8d   :  { %76 = vst [vmem:[#allocation2] sm:$0xff] %v75_v17 }
  0x94   :  { %v197_v21 = vld [vmem:[#allocation2 + $0x1] ss:$0 sm:$0xff]  ;;  %v207_v24 = vld [vmem:[#allocation2 + $0x2] ss:$0 sm:$0xff]  ;;  %v217_v29 = vld [vmem:[#allocation2 + $0x3] ss:$0 sm:$0xff] }
  0x95   :  { %v198_v22 = vxor.u32 2147483648, %v197_v21  ;;  %v208_v26 = vxor.u32 2147483648, %v207_v24  ;;  %v218_v31 = vxor.u32 2147483648, %v217_v29  ;;  %v227_v34 = vld [vmem:[#allocation2 + $0x4] ss:$0 sm:$0xff] }
  0x96   :  { %v228_v36 = vxor.u32 2147483648, %v227_v34  ;;  %v237_v42 = vld [vmem:[#allocation2 + $0x5] ss:$0 sm:$0xff]  ;;  %v247_v60 = vld [vmem:[#allocation2 + $0x6] ss:$0 sm:$0xff] }
  0x97   :  { %v202_v23 = vmul.f32 %v198_v22, %v174_v20  ;;  %v238_v44 = vxor.u32 2147483648, %v237_v42  ;;  %v248_v1 = vxor.u32 2147483648, %v247_v60  ;;  %v257_v9 = vld [vmem:[#allocation2 + $0x7] ss:$0 sm:$0xff] }
  0x98   :  { %v258_v11 = vxor.u32 2147483648, %v257_v9 }
  0x99   :  { %203 = vadd.xlane.f32.xlu0 %v202_v23 }
 0x10c   :  { %v204_v25 = vpop.xlane.xlu0 %203 }
 0x10d   :  { %v205_v27 = vsel %vm201_vm10, %v204_v25, %v174_v20  ;;  %vm261_vm10 = vcmp.eq.s32.totalorder %v851_v2, 7 }
 0x10e   :  { %v212_v28 = vmul.f32 %v208_v26, %v205_v27 }
 0x110   :  { %213 = vadd.xlane.f32.xlu1 %v212_v28 }
 0x183   :  { %v214_v30 = vpop.xlane.xlu1 %213 }
 0x184   :  { %v215_v32 = vsel %vm211_vm11, %v214_v30, %v205_v27  ;;  %vm271_vm11 = vcmp.eq.s32.totalorder %v851_v2, 8 }
 0x185   :  { %v222_v33 = vmul.f32 %v218_v31, %v215_v32 }
 0x187   :  { %223 = vadd.xlane.f32.xlu1 %v222_v33 }
 0x18f   :  { %85 = vadd.xlane.f32.xlu1 %v84_v41 }
 0x1fa   :  { %v224_v35 = vpop.xlane.xlu1 %223 }
 0x1fb   :  { %v225_v37 = vsel %vm221_vm12, %v224_v35, %v215_v32  ;;  %vm285_vm12 = vcmp.eq.s32.totalorder %v851_v2, 9 }
 0x1fc   :  { %v232_v38 = vmul.f32 %v228_v36, %v225_v37 }
 0x1fe   :  { %233 = vadd.xlane.f32.xlu2 %v232_v38 }
 0x202   :  { %v886_v47 = vpop.xlane.xlu1 %85 }
 0x203   :  { %830 = vrcp.f32 %v886_v47  ;;  %v101_v50 = vand.u32 2147483648, %v886_v47  ;;  %vm95_vm0 = vweird.f32 %v886_v47  ;;  %v99_v52 = vand.u32 2147483647, %v886_v47 }
 0x205   :  { %v102_v54 = vor.u32 1.1754944e-38, %v101_v50  ;;  %vm100_vm6 = vcmp.eq.f32.partialorder %v99_v52, 8.507059e+37 }
 0x209   :  { %v831_v48 = vpop.eup %830 }
 0x20a   :  { %v91_v49 = vmul.f32 %v831_v48, %v886_v47  ;;  %vm96_vm2 = vweird.f32 %v831_v48 }
 0x20b   :  { %vm97_vm4 = vmor %vm95_vm0, %vm96_vm2 }
 0x20c   :  { %v92_v51 = vsub.f32 1.0, %v91_v49 }
 0x20e   :  { %v93_v53 = vmul.f32 %v831_v48, %v92_v51 }
 0x210   :  { %v94_v55 = vadd.f32 %v831_v48, %v93_v53 }
 0x212   :  { %v98_v57 = vsel %vm97_vm4, %v831_v48, %v94_v55 }
 0x213   :  { %v898_v58 = vsel %vm100_vm6, %v102_v54, %v98_v57  ;;  %v40_v57 = vld [vmem:[%s1040_s0 + $0x10] sm:$0xff] }
 0x214   :  { %v104_v59 = vmul.f32 %v898_v58, %v89_v56  ;;  %v110_v56 = vadd.s32 16, %v853_v3 }
 0x216   :  { %105 = vst [vmem:[#allocation2 + $0x8] sm:$0xff] %v104_v59  ;;  %vm111_vm2 = vcmp.eq.s32.totalorder %v110_v56, %v851_v2  ;;  %vm116_vm4 = vcmp.ge.s32.totalorder %v110_v56, %v851_v2 }
 0x217   :  { %v113_v59 = vsel %vm111_vm2, %v40_v57, 0.0  ;;  %vm419_vm2 = vcmp.eq.s32.totalorder %v851_v2, 18 }
 0x21d   :  { %v267_v63 = vld [vmem:[#allocation2 + $0x8] ss:$0 sm:$0xff]  ;;  %v281_v18 = vld [vmem:[#allocation2 + $0x9] ss:$0 sm:$0xff]  ;;  %v295_v26 = vld [vmem:[#allocation2 + $0xa] ss:$0 sm:$0xff] }
 0x21e   :  { %v268_v4 = vxor.u32 2147483648, %v267_v63  ;;  %v282_v20 = vxor.u32 2147483648, %v281_v18  ;;  %v296_v28 = vxor.u32 2147483648, %v295_v26  ;;  %v309_v34 = vld [vmem:[#allocation2 + $0xb] ss:$0 sm:$0xff] }
 0x21f   :  { %v310_v36 = vxor.u32 2147483648, %v309_v34  ;;  %v323_v42 = vld [vmem:[#allocation2 + $0xc] ss:$0 sm:$0xff]  ;;  %v337_v51 = vld [vmem:[#allocation2 + $0xd] ss:$0 sm:$0xff] }
 0x220   :  { %v276_v8 = vmul.f32 %v268_v4, %v181_v62  ;;  %v338_v53 = vxor.u32 2147483648, %v337_v51 }
 0x222   :  { %277 = vadd.xlane.f32.xlu1 %v276_v8 }
 0x271   :  { %v234_v43 = vpop.xlane.xlu2 %233 }
 0x272   :  { %v235_v45 = vsel %vm231_vm14, %v234_v43, %v225_v37  ;;  %vm313_vm14 = vcmp.eq.s32.totalorder %v851_v2, 11 }
 0x273   :  { %v242_v46 = vmul.f32 %v238_v44, %v235_v45  ;;  %v324_v44 = vxor.u32 2147483648, %v323_v42 }
 0x275   :  { %243 = vadd.xlane.f32.xlu2 %v242_v46 }
 0x295   :  { %v278_v19 = vpop.xlane.xlu1 %277 }
 0x296   :  { %v279_v21 = vsel %vm271_vm11, %v278_v19, %v181_v62 }
 0x297   :  { %v290_v22 = vmul.f32 %v282_v20, %v279_v21 }
 0x2e8   :  { %v244_v0 = vpop.xlane.xlu2 %243 }
 0x2e9   :  { %v245_v6 = vsel %vm241_vm8, %v244_v0, %v235_v45  ;;  %v351_v0 = vld [vmem:[#allocation2 + $0xe] ss:$0 sm:$0xff]  ;;  %vm117_vm8 = vmand %vm116_vm4, %vm49_vm1  ;;  %vm455_vm4 = vcmp.eq.s32.totalorder %v851_v2, 20 }
 0x2ea   :  { %v252_v7 = vmul.f32 %v248_v1, %v245_v6  ;;  %v118_v18 = vsel %vm117_vm8, %v40_v57, 0.0 }
 0x2ec   :  { %253 = vadd.xlane.f32.xlu0 %v252_v7 }
 0x35f   :  { %v254_v10 = vpop.xlane.xlu0 %253 }
 0x360   :  { %v255_v12 = vsel %vm251_vm9, %v254_v10, %v245_v6 }
 0x361   :  { %v262_v13 = vmul.f32 %v258_v11, %v255_v12 }
 0x363   :  { %263 = vadd.xlane.f32.xlu2 %v262_v13 }
 0x3d6   :  { %v264_v14 = vpop.xlane.xlu2 %263 }
 0x3d7   :  { %v265_v15 = vsel %vm261_vm10, %v264_v14, %v255_v12 }
 0x3d8   :  { %v272_v17 = vmul.f32 %v268_v4, %v265_v15  ;;  %v352_v4 = vxor.u32 2147483648, %v351_v0 }
 0x3da   :  { %273 = vadd.xlane.f32.xlu0 %v272_v17 }
 0x3e2   :  { %291 = vadd.xlane.f32.xlu0 %v290_v22 }
 0x44d   :  { %v274_v23 = vpop.xlane.xlu0 %273 }
 0x44e   :  { %v275_v24 = vsel %vm271_vm11, %v274_v23, %v265_v15  ;;  %vm355_vm11 = vcmp.eq.s32.totalorder %v851_v2, 14 }
 0x44f   :  { %v286_v25 = vmul.f32 %v282_v20, %v275_v24 }
 0x451   :  { %287 = vadd.xlane.f32.xlu2 %v286_v25  ;;  %v365_v25 = vld [vmem:[#allocation2 + $0xf] ss:$0 sm:$0xff] }
 0x455   :  { %v292_v27 = vpop.xlane.xlu0 %291 }
 0x456   :  { %v293_v29 = vsel %vm285_vm12, %v292_v27, %v279_v21  ;;  %v366_v27 = vxor.u32 2147483648, %v365_v25 }
 0x457   :  { %v304_v30 = vmul.f32 %v296_v28, %v293_v29 }
 0x459   :  { %305 = vadd.xlane.f32.xlu2 %v304_v30 }
 0x4c4   :  { %v288_v31 = vpop.xlane.xlu2 %287 }
 0x4c5   :  { %v289_v32 = vsel %vm285_vm12, %v288_v31, %v275_v24  ;;  %vm187_vm12 = vcmp.eq.s32.totalorder %v851_v2, %v110_v56 }
 0x4c6   :  { %v300_v33 = vmul.f32 %v296_v28, %v289_v32 }
 0x4c8   :  { %301 = vadd.xlane.f32.xlu1 %v300_v33 }
 0x4cc   :  { %v306_v35 = vpop.xlane.xlu2 %305 }
 0x4cd   :  { %v307_v37 = vsel %vm299_vm13, %v306_v35, %v293_v29 }
 0x4ce   :  { %v318_v38 = vmul.f32 %v310_v36, %v307_v37 }
 0x4d0   :  { %319 = vadd.xlane.f32.xlu1 %v318_v38 }
 0x53b   :  { %v302_v39 = vpop.xlane.xlu1 %301 }
 0x53c   :  { %v303_v40 = vsel %vm299_vm13, %v302_v39, %v289_v32  ;;  %v188_v32 = vsel %vm187_vm12, -1.0, %v837_v61  ;;  %vm369_vm13 = vcmp.eq.s32.totalorder %v851_v2, 15 }
 0x53d   :  { %v314_v41 = vmul.f32 %v310_v36, %v303_v40 }
 0x53f   :  { %315 = vadd.xlane.f32.xlu0 %v314_v41 }
 0x543   :  { %v320_v43 = vpop.xlane.xlu1 %319 }
 0x544   :  { %v321_v45 = vsel %vm313_vm14, %v320_v43, %v307_v37 }
 0x545   :  { %v332_v46 = vmul.f32 %v324_v44, %v321_v45 }
 0x547   :  { %333 = vadd.xlane.f32.xlu0 %v332_v46 }
 0x5b2   :  { %v316_v48 = vpop.xlane.xlu0 %315 }
 0x5b3   :  { %v317_v49 = vsel %vm313_vm14, %v316_v48, %v303_v40  ;;  %vm383_vm14 = vcmp.eq.s32.totalorder %v851_v2, 16 }
 0x5b4   :  { %v328_v50 = vmul.f32 %v324_v44, %v317_v49 }
 0x5b6   :  { %329 = vadd.xlane.f32.xlu2 %v328_v50 }
 0x5ba   :  { %v334_v52 = vpop.xlane.xlu0 %333 }
 0x5bb   :  { %v335_v54 = vsel %vm327_vm15, %v334_v52, %v321_v45 }
 0x5bc   :  { %v346_v55 = vmul.f32 %v338_v53, %v335_v54 }
 0x5be   :  { %347 = vadd.xlane.f32.xlu2 %v346_v55 }
 0x5c6   :  { %114 = vadd.xlane.f32.xlu2 %v113_v59 }
 0x629   :  { %v330_v60 = vpop.xlane.xlu2 %329 }
 0x62a   :  { %v331_v62 = vsel %vm327_vm15, %v330_v60, %v317_v49  ;;  %vm401_vm15 = vcmp.eq.s32.totalorder %v851_v2, 17 }
 0x62b   :  { %v342_v63 = vmul.f32 %v338_v53, %v331_v62 }
 0x62d   :  { %343 = vadd.xlane.f32.xlu1 %v342_v63 }
 0x631   :  { %v348_v1 = vpop.xlane.xlu2 %347 }
 0x632   :  { %v349_v6 = vsel %vm341_vm3, %v348_v1, %v335_v54 }
 0x633   :  { %v360_v7 = vmul.f32 %v352_v4, %v349_v6 }
 0x635   :  { %361 = vadd.xlane.f32.xlu1 %v360_v7 }
 0x639   :  { %v919_v8 = vpop.xlane.xlu2 %114 }
 0x63a   :  { %832 = vrcp.f32 %v919_v8  ;;  %v130_v11 = vand.u32 2147483648, %v919_v8  ;;  %vm124_vm6 = vweird.f32 %v919_v8  ;;  %v128_v13 = vand.u32 2147483647, %v919_v8 }
 0x63c   :  { %v131_v15 = vor.u32 1.1754944e-38, %v130_v11  ;;  %vm129_vm10 = vcmp.eq.f32.partialorder %v128_v13, 8.507059e+37 }
 0x640   :  { %v833_v9 = vpop.eup %832 }
 0x641   :  { %v120_v10 = vmul.f32 %v833_v9, %v919_v8  ;;  %vm125_vm7 = vweird.f32 %v833_v9 }
 0x642   :  { %vm126_vm9 = vmor %vm124_vm6, %vm125_vm7  ;;  %vm473_vm7 = vcmp.eq.s32.totalorder %v851_v2, 21 }
 0x643   :  { %v121_v12 = vsub.f32 1.0, %v120_v10 }
 0x645   :  { %v122_v14 = vmul.f32 %v833_v9, %v121_v12 }
 0x647   :  { %v123_v17 = vadd.f32 %v833_v9, %v122_v14 }
 0x649   :  { %v127_v19 = vsel %vm126_vm9, %v833_v9, %v123_v17  ;;  %vm491_vm9 = vcmp.eq.s32.totalorder %v851_v2, 22 }
 0x64a   :  { %v931_v20 = vsel %vm129_vm10, %v131_v15, %v127_v19 }
 0x64b   :  { %v133_v21 = vmul.f32 %v931_v20, %v118_v18 }
 0x64d   :  { %134 = vst [vmem:[#allocation2 + $0x10] sm:$0xff] %v133_v21 }
 0x654   :  { %v379_v29 = vld [vmem:[#allocation2 + $0x10] ss:$0 sm:$0xff]  ;;  %v397_v40 = vld [vmem:[#allocation2 + $0x11] ss:$0 sm:$0xff]  ;;  %v415_v52 = vld [vmem:[#allocation2 + $0x12] ss:$0 sm:$0xff] }
 0x655   :  { %v380_v31 = vxor.u32 2147483648, %v379_v29  ;;  %v398_v41 = vxor.u32 2147483648, %v397_v40  ;;  %v416_v54 = vxor.u32 2147483648, %v415_v52  ;;  %v433_v1 = vld [vmem:[#allocation2 + $0x13] ss:$0 sm:$0xff] }
 0x656   :  { %v451_v17 = vld [vmem:[#allocation2 + $0x14] ss:$0 sm:$0xff]  ;;  %v469_v29 = vld [vmem:[#allocation2 + $0x15] ss:$0 sm:$0xff]  ;;  %v487_v40 = vld [vmem:[#allocation2 + $0x16] ss:$0 sm:$0xff] }
 0x657   :  { %v392_v33 = vmul.f32 %v380_v31, %v188_v32  ;;  %v452_v19 = vxor.u32 2147483648, %v451_v17 }
 0x6a0   :  { %v344_v22 = vpop.xlane.xlu1 %343 }
 0x6a1   :  { %v345_v23 = vsel %vm341_vm3, %v344_v22, %v331_v62  ;;  %vm437_vm3 = vcmp.eq.s32.totalorder %v851_v2, 19 }
 0x6a2   :  { %v356_v24 = vmul.f32 %v352_v4, %v345_v23 }
 0x6a4   :  { %357 = vadd.xlane.f32.xlu0 %v356_v24 }
 0x6a8   :  { %v362_v26 = vpop.xlane.xlu1 %361 }
 0x6a9   :  { %v363_v28 = vsel %vm355_vm11, %v362_v26, %v349_v6  ;;  %v434_v6 = vxor.u32 2147483648, %v433_v1 }
 0x6aa   :  { %v374_v30 = vmul.f32 %v366_v27, %v363_v28 }
 0x6ac   :  { %375 = vadd.xlane.f32.xlu1 %v374_v30 }
 0x6b4   :  { %393 = vadd.xlane.f32.xlu1 %v392_v33 }
 0x717   :  { %v358_v34 = vpop.xlane.xlu0 %357 }
 0x718   :  { %v359_v35 = vsel %vm355_vm11, %v358_v34, %v345_v23 }
 0x719   :  { %v370_v36 = vmul.f32 %v366_v27, %v359_v35 }
 0x71b   :  { %371 = vadd.xlane.f32.xlu0 %v370_v36 }
 0x71f   :  { %v376_v37 = vpop.xlane.xlu1 %375 }
 0x720   :  { %v377_v38 = vsel %vm369_vm13, %v376_v37, %v363_v28 }
 0x721   :  { %v388_v39 = vmul.f32 %v380_v31, %v377_v38 }
 0x723   :  { %389 = vadd.xlane.f32.xlu0 %v388_v39 }
 0x727   :  { %v394_v42 = vpop.xlane.xlu1 %393 }
 0x728   :  { %v395_v43 = vsel %vm383_vm14, %v394_v42, %v188_v32  ;;  %v488_v42 = vxor.u32 2147483648, %v487_v40 }
 0x729   :  { %v410_v44 = vmul.f32 %v398_v41, %v395_v43 }
 0x72b   :  { %411 = vadd.xlane.f32.xlu1 %v410_v44 }
 0x78e   :  { %v372_v45 = vpop.xlane.xlu0 %371 }
 0x78f   :  { %v373_v46 = vsel %vm369_vm13, %v372_v45, %v359_v35 }
 0x790   :  { %v384_v48 = vmul.f32 %v380_v31, %v373_v46  ;;  %v470_v31 = vxor.u32 2147483648, %v469_v29 }
 0x792   :  { %385 = vadd.xlane.f32.xlu2 %v384_v48 }
 0x796   :  { %v390_v49 = vpop.xlane.xlu0 %389 }
 0x797   :  { %v391_v50 = vsel %vm383_vm14, %v390_v49, %v377_v38 }
 0x798   :  { %v406_v51 = vmul.f32 %v398_v41, %v391_v50 }
 0x79a   :  { %407 = vadd.xlane.f32.xlu0 %v406_v51 }
 0x79e   :  { %v412_v53 = vpop.xlane.xlu1 %411 }
 0x79f   :  { %v413_v55 = vsel %vm401_vm15, %v412_v53, %v395_v43 }
 0x7a0   :  { %v428_v56 = vmul.f32 %v416_v54, %v413_v55 }
 0x7a2   :  { %429 = vadd.xlane.f32.xlu1 %v428_v56  ;;  %v505_v56 = vld [vmem:[#allocation2 + $0x17] ss:$0 sm:$0xff] }
 0x805   :  { %v386_v57 = vpop.xlane.xlu2 %385 }
 0x806   :  { %v387_v59 = vsel %vm383_vm14, %v386_v57, %v373_v46  ;;  %v42_v57 = vld [vmem:[%s1040_s0 + $0x18] sm:$0xff] }
 0x807   :  { %v402_v60 = vmul.f32 %v398_v41, %v387_v59 }
 0x809   :  { %403 = vadd.xlane.f32.xlu2 %v402_v60  ;;  %v506_v60 = vxor.u32 2147483648, %v505_v56 }
 0x80d   :  { %v408_v62 = vpop.xlane.xlu0 %407 }
 0x80e   :  { %v409_v63 = vsel %vm401_vm15, %v408_v62, %v391_v50 }
 0x80f   :  { %v424_v0 = vmul.f32 %v416_v54, %v409_v63 }
 0x811   :  { %425 = vadd.xlane.f32.xlu0 %v424_v0 }
 0x815   :  { %v430_v4 = vpop.xlane.xlu1 %429 }
 0x816   :  { %v431_v7 = vsel %vm419_vm2, %v430_v4, %v413_v55  ;;  %v139_v55 = vadd.s32 24, %v853_v3 }
 0x817   :  { %v446_v9 = vmul.f32 %v434_v6, %v431_v7 }
 0x818   :  { %vm140_vm8 = vcmp.eq.s32.totalorder %v139_v55, %v851_v2  ;;  %vm145_vm10 = vcmp.ge.s32.totalorder %v139_v55, %v851_v2 }
 0x819   :  { %447 = vadd.xlane.f32.xlu1 %v446_v9  ;;  %vm146_vm13 = vmand %vm145_vm10, %vm49_vm1  ;;  %vm194_vm1 = vcmp.eq.s32.totalorder %v851_v2, %v139_v55  ;;  %vm637_vm10 = vcmp.eq.s32.totalorder %v851_v2, 29 }
 0x87c   :  { %v404_v10 = vpop.xlane.xlu2 %403 }
 0x87d   :  { %v405_v11 = vsel %vm401_vm15, %v404_v10, %v387_v59 }
 0x87e   :  { %v420_v12 = vmul.f32 %v416_v54, %v405_v11 }
 0x880   :  { %421 = vadd.xlane.f32.xlu2 %v420_v12 }
 0x884   :  { %v426_v13 = vpop.xlane.xlu0 %425 }
 0x885   :  { %v427_v14 = vsel %vm419_vm2, %v426_v13, %v409_v63  ;;  %v142_v63 = vsel %vm140_vm8, %v42_v57, 0.0  ;;  %vm593_vm8 = vcmp.eq.s32.totalorder %v851_v2, 27 }
 0x886   :  { %v442_v15 = vmul.f32 %v434_v6, %v427_v14 }
 0x888   :  { %443 = vadd.xlane.f32.xlu0 %v442_v15 }
 0x88c   :  { %v448_v18 = vpop.xlane.xlu1 %447 }
 0x88d   :  { %v449_v21 = vsel %vm437_vm3, %v448_v18, %v431_v7 }
 0x88e   :  { %v464_v22 = vmul.f32 %v452_v19, %v449_v21 }
 0x890   :  { %465 = vadd.xlane.f32.xlu1 %v464_v22 }
 0x8f3   :  { %v422_v23 = vpop.xlane.xlu2 %421 }
 0x8f4   :  { %v423_v24 = vsel %vm419_vm2, %v422_v23, %v405_v11  ;;  %vm509_vm2 = vcmp.eq.s32.totalorder %v851_v2, 23 }
 0x8f5   :  { %v438_v25 = vmul.f32 %v434_v6, %v423_v24 }
 0x8f7   :  { %439 = vadd.xlane.f32.xlu2 %v438_v25 }
 0x8fb   :  { %v444_v26 = vpop.xlane.xlu0 %443 }
 0x8fc   :  { %v445_v27 = vsel %vm437_vm3, %v444_v26, %v427_v14 }
 0x8fd   :  { %v460_v28 = vmul.f32 %v452_v19, %v445_v27 }
 0x8ff   :  { %461 = vadd.xlane.f32.xlu0 %v460_v28 }
 0x903   :  { %v466_v30 = vpop.xlane.xlu1 %465 }
 0x904   :  { %v467_v32 = vsel %vm455_vm4, %v466_v30, %v449_v21  ;;  %v147_v21 = vsel %vm146_vm13, %v42_v57, 0.0  ;;  %vm681_vm13 = vcmp.eq.s32.totalorder %v851_v2, 31 }
 0x905   :  { %v482_v33 = vmul.f32 %v470_v31, %v467_v32 }
 0x907   :  { %483 = vadd.xlane.f32.xlu1 %v482_v33 }
 0x96a   :  { %v440_v34 = vpop.xlane.xlu2 %439 }
 0x96b   :  { %v441_v35 = vsel %vm437_vm3, %v440_v34, %v423_v24  ;;  %vm527_vm3 = vcmp.eq.s32.totalorder %v851_v2, 24 }
 0x96c   :  { %v456_v36 = vmul.f32 %v452_v19, %v441_v35 }
 0x96e   :  { %457 = vadd.xlane.f32.xlu2 %v456_v36  ;;  %v195_v36 = vsel %vm194_vm1, -1.0, %v837_v61 }
 0x972   :  { %v462_v37 = vpop.xlane.xlu0 %461 }
 0x973   :  { %v463_v38 = vsel %vm455_vm4, %v462_v37, %v445_v27 }
 0x974   :  { %v478_v39 = vmul.f32 %v470_v31, %v463_v38 }
 0x976   :  { %479 = vadd.xlane.f32.xlu0 %v478_v39 }
 0x97a   :  { %v484_v41 = vpop.xlane.xlu1 %483 }
 0x97b   :  { %v485_v43 = vsel %vm473_vm7, %v484_v41, %v467_v32 }
 0x97c   :  { %v500_v44 = vmul.f32 %v488_v42, %v485_v43 }
 0x97e   :  { %501 = vadd.xlane.f32.xlu1 %v500_v44 }
 0x9e1   :  { %v458_v45 = vpop.xlane.xlu2 %457 }
 0x9e2   :  { %v459_v46 = vsel %vm455_vm4, %v458_v45, %v441_v35  ;;  %vm549_vm4 = vcmp.eq.s32.totalorder %v851_v2, 25 }
 0x9e3   :  { %v474_v48 = vmul.f32 %v470_v31, %v459_v46 }
 0x9e5   :  { %475 = vadd.xlane.f32.xlu2 %v474_v48 }
 0x9e9   :  { %v480_v49 = vpop.xlane.xlu0 %479 }
 0x9ea   :  { %v481_v50 = vsel %vm473_vm7, %v480_v49, %v463_v38 }
 0x9eb   :  { %v496_v51 = vmul.f32 %v488_v42, %v481_v50 }
 0x9ed   :  { %497 = vadd.xlane.f32.xlu0 %v496_v51 }
 0x9f1   :  { %v502_v1 = vpop.xlane.xlu1 %501 }
 0x9f2   :  { %v503_v4 = vsel %vm491_vm9, %v502_v1, %v485_v43 }
 0x9f3   :  { %v518_v3 = vmul.f32 %v506_v60, %v503_v4 }
 0xa58   :  { %v476_v52 = vpop.xlane.xlu2 %475 }
 0xa59   :  { %v477_v53 = vsel %vm473_vm7, %v476_v52, %v459_v46  ;;  %vm571_vm7 = vcmp.eq.s32.totalorder %v851_v2, 26 }
 0xa5a   :  { %v492_v54 = vmul.f32 %v488_v42, %v477_v53 }
 0xa5c   :  { %493 = vadd.xlane.f32.xlu2 %v492_v54 }
 0xa60   :  { %v498_v59 = vpop.xlane.xlu0 %497 }
 0xa61   :  { %v499_v62 = vsel %vm491_vm9, %v498_v59, %v481_v50 }
 0xa62   :  { %v514_v0 = vmul.f32 %v506_v60, %v499_v62 }
 0xa64   :  { %143 = vadd.xlane.f32.xlu2 %v142_v63  ;;  %515 = vadd.xlane.f32.xlu1 %v514_v0 }
 0xa6c   :  { %519 = vadd.xlane.f32.xlu2 %v518_v3 }
 0xacf   :  { %v494_v6 = vpop.xlane.xlu2 %493 }
 0xad0   :  { %v495_v7 = vsel %vm491_vm9, %v494_v6, %v477_v53  ;;  %vm615_vm9 = vcmp.eq.s32.totalorder %v851_v2, 28 }
 0xad1   :  { %v510_v9 = vmul.f32 %v506_v60, %v495_v7 }
 0xad3   :  { %511 = vadd.xlane.f32.xlu0 %v510_v9 }
 0xad7   :  { %v982_v10 = vpop.xlane.xlu2 %143  ;;  %v516_v25 = vpop.xlane.xlu1 %515 }
 0xad8   :  { %834 = vrcp.f32 %v982_v10  ;;  %v159_v13 = vand.u32 2147483648, %v982_v10  ;;  %vm153_vm11 = vweird.f32 %v982_v10  ;;  %v157_v15 = vand.u32 2147483647, %v982_v10 }
 0xad9   :  { %v517_v29 = vsel %vm509_vm2, %v516_v25, %v499_v62 }
 0xada   :  { %v160_v18 = vor.u32 1.1754944e-38, %v159_v13  ;;  %vm158_vm15 = vcmp.eq.f32.partialorder %v157_v15, 8.507059e+37 }
 0xade   :  { %v835_v11 = vpop.eup %834 }
 0xadf   :  { %v149_v12 = vmul.f32 %v835_v11, %v982_v10  ;;  %vm154_vm12 = vweird.f32 %v835_v11  ;;  %v520_v26 = vpop.xlane.xlu2 %519 }
 0xae0   :  { %vm155_vm14 = vmor %vm153_vm11, %vm154_vm12  ;;  %v521_v30 = vsel %vm509_vm2, %v520_v26, %v503_v4  ;;  %vm659_vm12 = vcmp.eq.s32.totalorder %v851_v2, 30 }
 0xae1   :  { %v150_v14 = vsub.f32 1.0, %v149_v12 }
 0xae3   :  { %v151_v17 = vmul.f32 %v835_v11, %v150_v14 }
 0xae5   :  { %v152_v19 = vadd.f32 %v835_v11, %v151_v17 }
 0xae7   :  { %v156_v22 = vsel %vm155_vm14, %v835_v11, %v152_v19 }
 0xae8   :  { %v994_v23 = vsel %vm158_vm15, %v160_v18, %v156_v22 }
 0xae9   :  { %v162_v24 = vmul.f32 %v994_v23, %v147_v21 }
 0xaeb   :  { %163 = vst [vmem:[#allocation2 + $0x18] sm:$0xff] %v162_v24 }
 0xaf2   :  { %v523_v27 = vld [vmem:[#allocation2 + $0x18] ss:$0 sm:$0xff]  ;;  %v545_v38 = vld [vmem:[#allocation2 + $0x19] ss:$0 sm:$0xff]  ;;  %v567_v52 = vld [vmem:[#allocation2 + $0x1a] ss:$0 sm:$0xff] }
 0xaf3   :  { %v524_v28 = vxor.u32 2147483648, %v523_v27  ;;  %v546_v41 = vxor.u32 2147483648, %v545_v38  ;;  %v568_v55 = vxor.u32 2147483648, %v567_v52  ;;  %v589_v6 = vld [vmem:[#allocation2 + $0x1b] ss:$0 sm:$0xff] }
 0xaf4   :  { %v590_v11 = vxor.u32 2147483648, %v589_v6  ;;  %v611_v25 = vld [vmem:[#allocation2 + $0x1c] ss:$0 sm:$0xff] }
 0xaf5   :  { %v536_v31 = vmul.f32 %v524_v28, %v521_v30  ;;  %v532_v32 = vmul.f32 %v524_v28, %v517_v29  ;;  %v540_v37 = vmul.f32 %v524_v28, %v195_v36 }
 0xaf7   :  { %537 = vadd.xlane.f32.xlu2 %v536_v31  ;;  %533 = vadd.xlane.f32.xlu1 %v532_v32 }
 0xb46   :  { %v512_v33 = vpop.xlane.xlu0 %511 }
 0xb47   :  { %v513_v34 = vsel %vm509_vm2, %v512_v33, %v495_v7 }
 0xb48   :  { %v528_v35 = vmul.f32 %v524_v28, %v513_v34  ;;  %v612_v28 = vxor.u32 2147483648, %v611_v25 }
 0xb4a   :  { %529 = vadd.xlane.f32.xlu0 %v528_v35 }
 0xb52   :  { %541 = vadd.xlane.f32.xlu0 %v540_v37 }
 0xb6a   :  { %v538_v39 = vpop.xlane.xlu2 %537  ;;  %v534_v40 = vpop.xlane.xlu1 %533 }
 0xb6b   :  { %v539_v42 = vsel %vm527_vm3, %v538_v39, %v521_v30  ;;  %v535_v43 = vsel %vm527_vm3, %v534_v40, %v517_v29  ;;  %v633_v39 = vld [vmem:[#allocation2 + $0x1d] ss:$0 sm:$0xff] }
 0xb6c   :  { %v554_v44 = vmul.f32 %v546_v41, %v535_v43  ;;  %v558_v45 = vmul.f32 %v546_v41, %v539_v42 }
 0xb6e   :  { %555 = vadd.xlane.f32.xlu2 %v554_v44  ;;  %559 = vadd.xlane.f32.xlu0 %v558_v45 }
 0xbbd   :  { %v530_v46 = vpop.xlane.xlu0 %529 }
 0xbbe   :  { %v531_v48 = vsel %vm527_vm3, %v530_v46, %v513_v34 }
 0xbbf   :  { %v550_v49 = vmul.f32 %v546_v41, %v531_v48 }
 0xbc1   :  { %551 = vadd.xlane.f32.xlu1 %v550_v49 }
 0xbc5   :  { %v542_v50 = vpop.xlane.xlu0 %541 }
 0xbc6   :  { %v543_v61 = vsel %vm527_vm3, %v542_v50, %v195_v36 }
 0xbc7   :  { %v562_v51 = vmul.f32 %v546_v41, %v543_v61 }
 0xbc9   :  { %563 = vadd.xlane.f32.xlu1 %v562_v51 }
 0xbe1   :  { %v556_v53 = vpop.xlane.xlu2 %555  ;;  %v560_v54 = vpop.xlane.xlu0 %559 }
 0xbe2   :  { %v557_v56 = vsel %vm549_vm4, %v556_v53, %v535_v43  ;;  %v561_v57 = vsel %vm549_vm4, %v560_v54, %v539_v42  ;;  %v634_v42 = vxor.u32 2147483648, %v633_v39  ;;  %v655_v53 = vld [vmem:[#allocation2 + $0x1e] ss:$0 sm:$0xff] }
 0xbe3   :  { %v576_v59 = vmul.f32 %v568_v55, %v557_v56  ;;  %v580_v60 = vmul.f32 %v568_v55, %v561_v57 }
 0xbe5   :  { %577 = vadd.xlane.f32.xlu0 %v576_v59  ;;  %581 = vadd.xlane.f32.xlu1 %v580_v60 }
 0xc34   :  { %v552_v62 = vpop.xlane.xlu1 %551 }
 0xc35   :  { %v553_v63 = vsel %vm549_vm4, %v552_v62, %v531_v48 }
 0xc36   :  { %v572_v0 = vmul.f32 %v568_v55, %v553_v63 }
 0xc38   :  { %573 = vadd.xlane.f32.xlu2 %v572_v0 }
 0xc3c   :  { %v564_v1 = vpop.xlane.xlu1 %563 }
 0xc3d   :  { %v565_v4 = vsel %vm549_vm4, %v564_v1, %v543_v61 }
 0xc3e   :  { %v584_v3 = vmul.f32 %v568_v55, %v565_v4 }
 0xc40   :  { %585 = vadd.xlane.f32.xlu2 %v584_v3 }
 0xc58   :  { %v582_v7 = vpop.xlane.xlu1 %581  ;;  %v578_v9 = vpop.xlane.xlu0 %577 }
 0xc59   :  { %v583_v12 = vsel %vm571_vm7, %v582_v7, %v561_v57  ;;  %v579_v13 = vsel %vm571_vm7, %v578_v9, %v557_v56  ;;  %v656_v56 = vxor.u32 2147483648, %v655_v53  ;;  %v677_v7 = vld [vmem:[#allocation2 + $0x1f] ss:$0 sm:$0xff] }
 0xc5a   :  { %v602_v14 = vmul.f32 %v590_v11, %v583_v12  ;;  %v598_v15 = vmul.f32 %v590_v11, %v579_v13 }
 0xc5c   :  { %603 = vadd.xlane.f32.xlu2 %v602_v14  ;;  %599 = vadd.xlane.f32.xlu1 %v598_v15 }
 0xcab   :  { %v574_v17 = vpop.xlane.xlu2 %573 }
 0xcac   :  { %v575_v18 = vsel %vm571_vm7, %v574_v17, %v553_v63 }
 0xcad   :  { %v594_v19 = vmul.f32 %v590_v11, %v575_v18 }
 0xcaf   :  { %595 = vadd.xlane.f32.xlu0 %v594_v19 }
 0xcb3   :  { %v586_v21 = vpop.xlane.xlu2 %585 }
 0xcb4   :  { %v587_v22 = vsel %vm571_vm7, %v586_v21, %v565_v4 }
 0xcb5   :  { %v606_v24 = vmul.f32 %v590_v11, %v587_v22 }
 0xcb7   :  { %607 = vadd.xlane.f32.xlu0 %v606_v24 }
 0xccf   :  { %v604_v26 = vpop.xlane.xlu2 %603  ;;  %v600_v27 = vpop.xlane.xlu1 %599 }
 0xcd0   :  { %v605_v29 = vsel %vm593_vm8, %v604_v26, %v583_v12  ;;  %v601_v30 = vsel %vm593_vm8, %v600_v27, %v579_v13  ;;  %v678_v12 = vxor.u32 2147483648, %v677_v7 }
 0xcd1   :  { %v624_v31 = vmul.f32 %v612_v28, %v605_v29  ;;  %v620_v32 = vmul.f32 %v612_v28, %v601_v30 }
 0xcd3   :  { %625 = vadd.xlane.f32.xlu0 %v624_v31  ;;  %621 = vadd.xlane.f32.xlu2 %v620_v32 }
 0xd22   :  { %v596_v33 = vpop.xlane.xlu0 %595 }
 0xd23   :  { %v597_v34 = vsel %vm593_vm8, %v596_v33, %v575_v18 }
 0xd24   :  { %v616_v35 = vmul.f32 %v612_v28, %v597_v34 }
 0xd26   :  { %617 = vadd.xlane.f32.xlu1 %v616_v35 }
 0xd2a   :  { %v608_v36 = vpop.xlane.xlu0 %607 }
 0xd2b   :  { %v609_v37 = vsel %vm593_vm8, %v608_v36, %v587_v22 }
 0xd2c   :  { %v628_v38 = vmul.f32 %v612_v28, %v609_v37 }
 0xd2e   :  { %629 = vadd.xlane.f32.xlu1 %v628_v38 }
 0xd46   :  { %v622_v40 = vpop.xlane.xlu2 %621  ;;  %v626_v41 = vpop.xlane.xlu0 %625 }
 0xd47   :  { %v623_v43 = vsel %vm615_vm9, %v622_v40, %v601_v30  ;;  %v627_v44 = vsel %vm615_vm9, %v626_v41, %v605_v29 }
 0xd48   :  { %v642_v45 = vmul.f32 %v634_v42, %v623_v43  ;;  %v646_v46 = vmul.f32 %v634_v42, %v627_v44 }
 0xd4a   :  { %643 = vadd.xlane.f32.xlu0 %v642_v45  ;;  %647 = vadd.xlane.f32.xlu1 %v646_v46 }
 0xd99   :  { %v618_v48 = vpop.xlane.xlu1 %617 }
 0xd9a   :  { %v619_v49 = vsel %vm615_vm9, %v618_v48, %v597_v34 }
 0xd9b   :  { %v638_v50 = vmul.f32 %v634_v42, %v619_v49 }
 0xd9d   :  { %639 = vadd.xlane.f32.xlu2 %v638_v50 }
 0xda1   :  { %v630_v61 = vpop.xlane.xlu1 %629 }
 0xda2   :  { %v631_v51 = vsel %vm615_vm9, %v630_v61, %v609_v37 }
 0xda3   :  { %v650_v52 = vmul.f32 %v634_v42, %v631_v51 }
 0xda5   :  { %651 = vadd.xlane.f32.xlu2 %v650_v52 }
 0xdbd   :  { %v648_v54 = vpop.xlane.xlu1 %647  ;;  %v644_v55 = vpop.xlane.xlu0 %643 }
 0xdbe   :  { %v649_v57 = vsel %vm637_vm10, %v648_v54, %v627_v44  ;;  %v645_v59 = vsel %vm637_vm10, %v644_v55, %v623_v43 }
 0xdbf   :  { %v668_v60 = vmul.f32 %v656_v56, %v649_v57  ;;  %v664_v62 = vmul.f32 %v656_v56, %v645_v59 }
 0xdc1   :  { %669 = vadd.xlane.f32.xlu2 %v668_v60  ;;  %665 = vadd.xlane.f32.xlu1 %v664_v62 }
 0xe10   :  { %v640_v63 = vpop.xlane.xlu2 %639 }
 0xe11   :  { %v641_v0 = vsel %vm637_vm10, %v640_v63, %v619_v49 }
 0xe12   :  { %v660_v1 = vmul.f32 %v656_v56, %v641_v0 }
 0xe14   :  { %661 = vadd.xlane.f32.xlu0 %v660_v1 }
 0xe18   :  { %v652_v4 = vpop.xlane.xlu2 %651 }
 0xe19   :  { %v653_v3 = vsel %vm637_vm10, %v652_v4, %v631_v51 }
 0xe1a   :  { %v672_v6 = vmul.f32 %v656_v56, %v653_v3 }
 0xe1c   :  { %673 = vadd.xlane.f32.xlu0 %v672_v6 }
 0xe34   :  { %v670_v9 = vpop.xlane.xlu2 %669  ;;  %v666_v11 = vpop.xlane.xlu1 %665 }
 0xe35   :  { %v671_v13 = vsel %vm659_vm12, %v670_v9, %v649_v57  ;;  %v667_v14 = vsel %vm659_vm12, %v666_v11, %v645_v59 }
 0xe36   :  { %v690_v15 = vmul.f32 %v678_v12, %v671_v13  ;;  %v686_v17 = vmul.f32 %v678_v12, %v667_v14 }
 0xe38   :  { %691 = vadd.xlane.f32.xlu0 %v690_v15  ;;  %687 = vadd.xlane.f32.xlu2 %v686_v17 }
 0xe87   :  { %v662_v18 = vpop.xlane.xlu0 %661 }
 0xe88   :  { %v663_v19 = vsel %vm659_vm12, %v662_v18, %v641_v0 }
 0xe89   :  { %v682_v21 = vmul.f32 %v678_v12, %v663_v19 }
 0xe8b   :  { %683 = vadd.xlane.f32.xlu1 %v682_v21 }
 0xe8f   :  { %v674_v22 = vpop.xlane.xlu0 %673 }
 0xe90   :  { %v675_v24 = vsel %vm659_vm12, %v674_v22, %v653_v3 }
 0xe91   :  { %v694_v25 = vmul.f32 %v678_v12, %v675_v24 }
 0xe93   :  { %695 = vadd.xlane.f32.xlu1 %v694_v25 }
 0xeab   :  { %v688_v26 = vpop.xlane.xlu2 %687  ;;  %v692_v27 = vpop.xlane.xlu0 %691 }
 0xeac   :  { %v689_v28 = vsel %vm681_vm13, %v688_v26, %v667_v14  ;;  %v693_v29 = vsel %vm681_vm13, %v692_v27, %v671_v13 }
 0xead   :  { %v730_v30 = vmul.f32 %v689_v28, %v898_v58  ;;  %v749_v31 = vmul.f32 %v693_v29, %v931_v20 }
 0xeaf   :  { %v732_v32 = vsel %vm95_vm0, %v689_v28, %v730_v30  ;;  %v751_v33 = vsel %vm124_vm6, %v693_v29, %v749_v31 }
 0xeb0   :  { %810 = vst [vmem:[%s1041_s1 + $0x8] sm:$0xff] %v732_v32 }
 0xeb1   :  { %812 = vst [vmem:[%s1041_s1 + $0x10] sm:$0xff] %v751_v33 }
 0xefe   :  { %v684_v34 = vpop.xlane.xlu1 %683 }
 0xeff   :  { %v685_v58 = vsel %vm681_vm13, %v684_v34, %v663_v19 }
 0xf00   :  { %v712_v20 = vmul.f32 %v685_v58, %v871_v16 }
 0xf02   :  { %v714_v47 = vsel %vm66_vm5, %v685_v58, %v712_v20 }
 0xf03   :  { %808 = vst [vmem:[%s1041_s1] sm:$0xff] %v714_v47 }
 0xf06   :  { %v696_v8 = vpop.xlane.xlu1 %695 }
 0xf07   :  { %v697_v35 = vsel %vm681_vm13, %v696_v8, %v675_v24 }
 0xf08   :  { %v768_v36 = vmul.f32 %v697_v35, %v994_v23 }
 0xf0a   :  { %v770_v37 = vsel %vm153_vm11, %v697_v35, %v768_v36 }
 0xf0b   :  { %814 = vst [vmem:[%s1041_s1 + $0x18] sm:$0xff] %v770_v37 }

// kernel: custom-call.35
= control target key start
LH: loop header
LB: loop body
LE: loop exit
PB: predicated region body
PF: predicated region fallthrough
CT: control target
= control target key end

     0   :  { %v47_v0 = vlaneseq  ;;  %v835_v19 = vmov -1.0   ;;  %s1141_s0 = inlined_call_operand.vmem [shape: f32[1,32,32], index: 0, kind: input, shape index: {}]   ;;  %s1142_s1 = inlined_call_operand.vmem [shape: f32[1,32,32], index: 1, kind: output, shape index: {}]  }
   0x1   :  { %v42_v3 = vld [vmem:[%s1141_s0 + $0x18] sm:$0xff]  ;;  %v40_v35 = vld [vmem:[%s1141_s0 + $0x10] sm:$0xff] }
   0x2   :  { %v847_v1 = vand.u32 127, %v47_v0  ;;  %v849_v2 = vshrl.u32 %v47_v0, 7 }
   0x4   :  { %v139_v4 = vadd.s32 24, %v849_v2  ;;  %vm49_vm1 = vcmp.lt.s32.totalorder %v847_v1, 32  ;;  %vm193_vm8 = vcmp.eq.s32.totalorder %v847_v1, 31  ;;  %vm201_vm10 = vcmp.eq.s32.totalorder %v847_v1, 30 }
   0x5   :  { %v194_v20 = vsel %vm193_vm8, 1.0, %v835_v19  ;;  %vm211_vm11 = vcmp.eq.s32.totalorder %v847_v1, 29  ;;  %v110_v36 = vadd.s32 16, %v849_v2  ;;  %vm221_vm13 = vcmp.eq.s32.totalorder %v847_v1, 28 }
   0x6   :  { %vm140_vm0 = vcmp.eq.s32.totalorder %v139_v4, %v847_v1  ;;  %vm145_vm2 = vcmp.le.s32.totalorder %v139_v4, %v847_v1  ;;  %vm190_vm9 = vcmp.eq.s32.totalorder %v847_v1, %v139_v4 }
   0x7   :  { %v142_v5 = vsel %vm140_vm0, %v42_v3, 0.0  ;;  %vm146_vm3 = vmand %vm145_vm2, %vm49_vm1  ;;  %v195_v21 = vsel %vm190_vm9, %v194_v20, 0.0  ;;  %vm111_vm12 = vcmp.eq.s32.totalorder %v110_v36, %v847_v1  ;;  %vm116_vm14 = vcmp.le.s32.totalorder %v110_v36, %v847_v1 }
   0x8   :  { %143 = vadd.xlane.f32.xlu0 %v142_v5  ;;  %v147_v14 = vsel %vm146_vm3, %v42_v3, 0.0  ;;  %v113_v37 = vsel %vm111_vm12, %v40_v35, 0.0  ;;  %vm117_vm2 = vmand %vm116_vm14, %vm49_vm1  ;;  %vm183_vm8 = vcmp.eq.s32.totalorder %v847_v1, %v110_v36  ;;  %vm251_vm9 = vcmp.eq.s32.totalorder %v847_v1, 25 }
   0x9   :  { %v118_v52 = vsel %vm117_vm2, %v40_v35, 0.0  ;;  %vm285_vm12 = vcmp.eq.s32.totalorder %v847_v1, 22  ;;  %vm313_vm14 = vcmp.eq.s32.totalorder %v847_v1, 20  ;;  %vm341_vm2 = vcmp.eq.s32.totalorder %v847_v1, 18 }
  0x7b   :  { %v856_v6 = vpop.xlane.xlu0 %143 }
  0x7c   :  { %827 = vrcp.f32 %v856_v6  ;;  %v159_v10 = vand.u32 2147483648, %v856_v6  ;;  %v157_v12 = vand.u32 2147483647, %v856_v6  ;;  %vm153_vm5 = vweird.f32 %v856_v6 }
  0x7e   :  { %v160_v15 = vor.u32 1.1754944e-38, %v159_v10  ;;  %vm158_vm7 = vcmp.eq.f32.partialorder %v157_v12, 8.507059e+37 }
  0x82   :  { %v828_v7 = vpop.eup %827 }
  0x83   :  { %v149_v8 = vmul.f32 %v828_v7, %v856_v6  ;;  %vm154_vm4 = vweird.f32 %v828_v7 }
  0x84   :  { %vm155_vm6 = vmor %vm153_vm5, %vm154_vm4 }
  0x85   :  { %v150_v9 = vsub.f32 1.0, %v149_v8 }
  0x87   :  { %v151_v11 = vmul.f32 %v828_v7, %v150_v9 }
  0x89   :  { %v152_v13 = vadd.f32 %v828_v7, %v151_v11 }
  0x8b   :  { %v156_v16 = vsel %vm155_vm6, %v828_v7, %v152_v13  ;;  %vm231_vm6 = vcmp.eq.s32.totalorder %v847_v1, 27  ;;  %v836_v7 = vmov 0.0  }
  0x8c   :  { %v869_v17 = vsel %vm158_vm7, %v160_v15, %v156_v16  ;;  %vm241_vm7 = vcmp.eq.s32.totalorder %v847_v1, 26  ;;  %v184_v8 = vsel %vm183_vm8, -1.0, %v836_v7 }
  0x8d   :  { %v162_v18 = vmul.f32 %v869_v17, %v147_v14 }
  0x8f   :  { %163 = vst [vmem:[#allocation2 + $0x18] sm:$0xff] %v162_v18 }
  0x96   :  { %v197_v22 = vld [vmem:[#allocation2 + $0x1e] ss:$0 sm:$0xff]  ;;  %v207_v25 = vld [vmem:[#allocation2 + $0x1d] ss:$0 sm:$0xff]  ;;  %v217_v30 = vld [vmem:[#allocation2 + $0x1c] ss:$0 sm:$0xff] }
  0x97   :  { %v198_v23 = vxor.u32 2147483648, %v197_v22  ;;  %v208_v27 = vxor.u32 2147483648, %v207_v25  ;;  %v218_v32 = vxor.u32 2147483648, %v217_v30  ;;  %v227_v38 = vld [vmem:[#allocation2 + $0x1b] ss:$0 sm:$0xff] }
  0x98   :  { %v228_v40 = vxor.u32 2147483648, %v227_v38  ;;  %v237_v56 = vld [vmem:[#allocation2 + $0x1a] ss:$0 sm:$0xff]  ;;  %v247_v61 = vld [vmem:[#allocation2 + $0x19] ss:$0 sm:$0xff] }
  0x99   :  { %v202_v24 = vmul.f32 %v198_v23, %v195_v21  ;;  %v238_v58 = vxor.u32 2147483648, %v237_v56  ;;  %v248_v63 = vxor.u32 2147483648, %v247_v61  ;;  %v257_v10 = vld [vmem:[#allocation2 + $0x18] ss:$0 sm:$0xff] }
  0x9a   :  { %v258_v12 = vxor.u32 2147483648, %v257_v10 }
  0x9b   :  { %203 = vadd.xlane.f32.xlu0 %v202_v24 }
 0x10e   :  { %v204_v26 = vpop.xlane.xlu0 %203 }
 0x10f   :  { %v205_v28 = vsel %vm201_vm10, %v204_v26, %v195_v21  ;;  %vm271_vm10 = vcmp.eq.s32.totalorder %v847_v1, 23 }
 0x110   :  { %v212_v29 = vmul.f32 %v208_v27, %v205_v28 }
 0x112   :  { %213 = vadd.xlane.f32.xlu1 %v212_v29 }
 0x185   :  { %v214_v31 = vpop.xlane.xlu1 %213 }
 0x186   :  { %v215_v33 = vsel %vm211_vm11, %v214_v31, %v205_v28  ;;  %vm261_vm11 = vcmp.eq.s32.totalorder %v847_v1, 24 }
 0x187   :  { %v222_v34 = vmul.f32 %v218_v32, %v215_v33 }
 0x189   :  { %223 = vadd.xlane.f32.xlu1 %v222_v34 }
 0x191   :  { %114 = vadd.xlane.f32.xlu1 %v113_v37 }
 0x1fc   :  { %v224_v39 = vpop.xlane.xlu1 %223 }
 0x1fd   :  { %v225_v41 = vsel %vm221_vm13, %v224_v39, %v215_v33  ;;  %vm299_vm13 = vcmp.eq.s32.totalorder %v847_v1, 21 }
 0x1fe   :  { %v232_v42 = vmul.f32 %v228_v40, %v225_v41 }
 0x200   :  { %233 = vadd.xlane.f32.xlu2 %v232_v42 }
 0x204   :  { %v882_v43 = vpop.xlane.xlu1 %114 }
 0x205   :  { %829 = vrcp.f32 %v882_v43  ;;  %v130_v46 = vand.u32 2147483648, %v882_v43  ;;  %vm124_vm15 = vweird.f32 %v882_v43  ;;  %v128_v48 = vand.u32 2147483647, %v882_v43 }
 0x207   :  { %v131_v50 = vor.u32 1.1754944e-38, %v130_v46  ;;  %vm129_vm4 = vcmp.eq.f32.partialorder %v128_v48, 8.507059e+37 }
 0x20b   :  { %v830_v44 = vpop.eup %829 }
 0x20c   :  { %v120_v45 = vmul.f32 %v830_v44, %v882_v43  ;;  %vm125_vm0 = vweird.f32 %v830_v44 }
 0x20d   :  { %vm126_vm3 = vmor %vm124_vm15, %vm125_vm0  ;;  %vm327_vm0 = vcmp.eq.s32.totalorder %v847_v1, 19 }
 0x20e   :  { %v121_v47 = vsub.f32 1.0, %v120_v45 }
 0x210   :  { %v122_v49 = vmul.f32 %v830_v44, %v121_v47 }
 0x212   :  { %v123_v51 = vadd.f32 %v830_v44, %v122_v49 }
 0x214   :  { %v127_v53 = vsel %vm126_vm3, %v830_v44, %v123_v51  ;;  %vm355_vm3 = vcmp.eq.s32.totalorder %v847_v1, 17 }
 0x215   :  { %v894_v54 = vsel %vm129_vm4, %v131_v50, %v127_v53 }
 0x216   :  { %v133_v55 = vmul.f32 %v894_v54, %v118_v52 }
 0x218   :  { %134 = vst [vmem:[#allocation2 + $0x10] sm:$0xff] %v133_v55 }
 0x21f   :  { %v267_v3 = vld [vmem:[#allocation2 + $0x17] ss:$0 sm:$0xff]  ;;  %v281_v15 = vld [vmem:[#allocation2 + $0x16] ss:$0 sm:$0xff]  ;;  %v295_v24 = vld [vmem:[#allocation2 + $0x15] ss:$0 sm:$0xff] }
 0x220   :  { %v268_v5 = vxor.u32 2147483648, %v267_v3  ;;  %v282_v16 = vxor.u32 2147483648, %v281_v15  ;;  %v296_v26 = vxor.u32 2147483648, %v295_v24  ;;  %v309_v32 = vld [vmem:[#allocation2 + $0x14] ss:$0 sm:$0xff] }
 0x221   :  { %v310_v34 = vxor.u32 2147483648, %v309_v32  ;;  %v323_v40 = vld [vmem:[#allocation2 + $0x13] ss:$0 sm:$0xff]  ;;  %v337_v49 = vld [vmem:[#allocation2 + $0x12] ss:$0 sm:$0xff] }
 0x222   :  { %v272_v9 = vmul.f32 %v268_v5, %v184_v8  ;;  %v324_v42 = vxor.u32 2147483648, %v323_v40  ;;  %v338_v51 = vxor.u32 2147483648, %v337_v49 }
 0x273   :  { %v234_v57 = vpop.xlane.xlu2 %233 }
 0x274   :  { %v235_v59 = vsel %vm231_vm6, %v234_v57, %v225_v41 }
 0x275   :  { %v242_v60 = vmul.f32 %v238_v58, %v235_v59  ;;  %v351_v58 = vld [vmem:[#allocation2 + $0x11] ss:$0 sm:$0xff] }
 0x277   :  { %243 = vadd.xlane.f32.xlu2 %v242_v60  ;;  %v352_v60 = vxor.u32 2147483648, %v351_v58 }
 0x2ea   :  { %v244_v62 = vpop.xlane.xlu2 %243 }
 0x2eb   :  { %v245_v0 = vsel %vm241_vm7, %v244_v62, %v235_v59 }
 0x2ec   :  { %v252_v4 = vmul.f32 %v248_v63, %v245_v0 }
 0x2ee   :  { %253 = vadd.xlane.f32.xlu0 %v252_v4  ;;  %v81_v4 = vadd.s32 8, %v849_v2 }
 0x2f0   :  { %vm82_vm4 = vcmp.eq.s32.totalorder %v81_v4, %v847_v1  ;;  %vm87_vm6 = vcmp.le.s32.totalorder %v81_v4, %v847_v1 }
 0x2f6   :  { %273 = vadd.xlane.f32.xlu0 %v272_v9 }
 0x361   :  { %v254_v11 = vpop.xlane.xlu0 %253 }
 0x362   :  { %v255_v13 = vsel %vm251_vm9, %v254_v11, %v245_v0  ;;  %vm88_vm9 = vmand %vm87_vm6, %vm49_vm1  ;;  %vm473_vm6 = vcmp.eq.s32.totalorder %v847_v1, 10 }
 0x363   :  { %v262_v14 = vmul.f32 %v258_v12, %v255_v13 }
 0x365   :  { %263 = vadd.xlane.f32.xlu2 %v262_v14 }
 0x369   :  { %v274_v18 = vpop.xlane.xlu0 %273 }
 0x36a   :  { %v275_v19 = vsel %vm271_vm10, %v274_v18, %v184_v8  ;;  %v38_v8 = vld [vmem:[%s1141_s0 + $0x8] sm:$0xff] }
 0x36b   :  { %v286_v20 = vmul.f32 %v282_v16, %v275_v19  ;;  %v84_v12 = vsel %vm82_vm4, %v38_v8, 0.0  ;;  %vm455_vm4 = vcmp.eq.s32.totalorder %v847_v1, 11 }
 0x36d   :  { %287 = vadd.xlane.f32.xlu2 %v286_v20 }
 0x3d8   :  { %v264_v21 = vpop.xlane.xlu2 %263 }
 0x3d9   :  { %v265_v22 = vsel %vm261_vm11, %v264_v21, %v255_v13 }
 0x3da   :  { %v276_v23 = vmul.f32 %v268_v5, %v265_v22  ;;  %v365_v5 = vld [vmem:[#allocation2 + $0x10] ss:$0 sm:$0xff] }
 0x3db   :  { %v366_v10 = vxor.u32 2147483648, %v365_v5 }
 0x3dc   :  { %277 = vadd.xlane.f32.xlu1 %v276_v23 }
 0x3e0   :  { %v288_v25 = vpop.xlane.xlu2 %287 }
 0x3e1   :  { %v289_v27 = vsel %vm285_vm12, %v288_v25, %v275_v19 }
 0x3e2   :  { %v300_v28 = vmul.f32 %v296_v26, %v289_v27 }
 0x3e4   :  { %301 = vadd.xlane.f32.xlu1 %v300_v28 }
 0x44f   :  { %v278_v29 = vpop.xlane.xlu1 %277 }
 0x450   :  { %v279_v30 = vsel %vm271_vm10, %v278_v29, %v265_v22 }
 0x451   :  { %v290_v31 = vmul.f32 %v282_v16, %v279_v30 }
 0x453   :  { %291 = vadd.xlane.f32.xlu0 %v290_v31 }
 0x457   :  { %v302_v33 = vpop.xlane.xlu1 %301 }
 0x458   :  { %v303_v35 = vsel %vm299_vm13, %v302_v33, %v289_v27  ;;  %v89_v27 = vsel %vm88_vm9, %v38_v8, 0.0  ;;  %vm491_vm9 = vcmp.eq.s32.totalorder %v847_v1, 9 }
 0x459   :  { %v314_v36 = vmul.f32 %v310_v34, %v303_v35 }
 0x45b   :  { %315 = vadd.xlane.f32.xlu0 %v314_v36 }
 0x4c6   :  { %v292_v37 = vpop.xlane.xlu0 %291 }
 0x4c7   :  { %v293_v38 = vsel %vm285_vm12, %v292_v37, %v279_v30  ;;  %vm176_vm12 = vcmp.eq.s32.totalorder %v847_v1, %v81_v4 }
 0x4c8   :  { %v304_v39 = vmul.f32 %v296_v26, %v293_v38  ;;  %v177_v33 = vsel %vm176_vm12, -1.0, %v836_v7 }
 0x4ca   :  { %305 = vadd.xlane.f32.xlu2 %v304_v39 }
 0x4ce   :  { %v316_v41 = vpop.xlane.xlu0 %315 }
 0x4cf   :  { %v317_v44 = vsel %vm313_vm14, %v316_v41, %v303_v35 }
 0x4d0   :  { %v328_v45 = vmul.f32 %v324_v42, %v317_v44 }
 0x4d2   :  { %329 = vadd.xlane.f32.xlu2 %v328_v45 }
 0x53d   :  { %v306_v46 = vpop.xlane.xlu2 %305 }
 0x53e   :  { %v307_v47 = vsel %vm299_vm13, %v306_v46, %v293_v38  ;;  %vm369_vm13 = vcmp.eq.s32.totalorder %v847_v1, 16 }
 0x53f   :  { %v318_v48 = vmul.f32 %v310_v34, %v307_v47 }
 0x541   :  { %319 = vadd.xlane.f32.xlu1 %v318_v48 }
 0x545   :  { %v330_v50 = vpop.xlane.xlu2 %329 }
 0x546   :  { %v331_v52 = vsel %vm327_vm0, %v330_v50, %v317_v44 }
 0x547   :  { %v342_v53 = vmul.f32 %v338_v51, %v331_v52 }
 0x549   :  { %343 = vadd.xlane.f32.xlu1 %v342_v53 }
 0x5b4   :  { %v320_v55 = vpop.xlane.xlu1 %319 }
 0x5b5   :  { %v321_v56 = vsel %vm313_vm14, %v320_v55, %v307_v47  ;;  %vm383_vm14 = vcmp.eq.s32.totalorder %v847_v1, 15 }
 0x5b6   :  { %v332_v57 = vmul.f32 %v324_v42, %v321_v56 }
 0x5b8   :  { %333 = vadd.xlane.f32.xlu0 %v332_v57 }
 0x5bc   :  { %v344_v59 = vpop.xlane.xlu1 %343 }
 0x5bd   :  { %v345_v61 = vsel %vm341_vm2, %v344_v59, %v331_v52 }
 0x5be   :  { %v356_v62 = vmul.f32 %v352_v60, %v345_v61 }
 0x5c0   :  { %357 = vadd.xlane.f32.xlu0 %v356_v62 }
 0x62b   :  { %v334_v63 = vpop.xlane.xlu0 %333 }
 0x62c   :  { %v335_v0 = vsel %vm327_vm0, %v334_v63, %v321_v56  ;;  %vm401_vm0 = vcmp.eq.s32.totalorder %v847_v1, 14 }
 0x62d   :  { %v346_v3 = vmul.f32 %v338_v51, %v335_v0 }
 0x62f   :  { %347 = vadd.xlane.f32.xlu2 %v346_v3 }
 0x633   :  { %v358_v9 = vpop.xlane.xlu0 %357 }
 0x634   :  { %v359_v11 = vsel %vm355_vm3, %v358_v9, %v345_v61 }
 0x635   :  { %v370_v13 = vmul.f32 %v366_v10, %v359_v11 }
 0x637   :  { %371 = vadd.xlane.f32.xlu0 %v370_v13  ;;  %85 = vadd.xlane.f32.xlu2 %v84_v12 }
 0x6a2   :  { %v348_v14 = vpop.xlane.xlu2 %347 }
 0x6a3   :  { %v349_v15 = vsel %vm341_vm2, %v348_v14, %v335_v0  ;;  %vm419_vm2 = vcmp.eq.s32.totalorder %v847_v1, 13 }
 0x6a4   :  { %v360_v16 = vmul.f32 %v352_v60, %v349_v15 }
 0x6a6   :  { %361 = vadd.xlane.f32.xlu1 %v360_v16 }
 0x6aa   :  { %v941_v18 = vpop.xlane.xlu2 %85  ;;  %v372_v31 = vpop.xlane.xlu0 %371 }
 0x6ab   :  { %831 = vrcp.f32 %v941_v18  ;;  %v101_v21 = vand.u32 2147483648, %v941_v18  ;;  %vm95_vm7 = vweird.f32 %v941_v18  ;;  %v99_v23 = vand.u32 2147483647, %v941_v18 }
 0x6ac   :  { %v373_v35 = vsel %vm369_vm13, %v372_v31, %v359_v11 }
 0x6ad   :  { %v102_v25 = vor.u32 1.1754944e-38, %v101_v21  ;;  %vm100_vm11 = vcmp.eq.f32.partialorder %v99_v23, 8.507059e+37 }
 0x6b1   :  { %v832_v19 = vpop.eup %831 }
 0x6b2   :  { %v91_v20 = vmul.f32 %v832_v19, %v941_v18  ;;  %vm96_vm8 = vweird.f32 %v832_v19 }
 0x6b3   :  { %vm97_vm10 = vmor %vm95_vm7, %vm96_vm8  ;;  %vm53_vm8 = vcmp.eq.s32.totalorder %v849_v2, %v847_v1 }
 0x6b4   :  { %v92_v22 = vsub.f32 1.0, %v91_v20 }
 0x6b6   :  { %v93_v24 = vmul.f32 %v832_v19, %v92_v22 }
 0x6b8   :  { %v94_v26 = vadd.f32 %v832_v19, %v93_v24 }
 0x6ba   :  { %v98_v28 = vsel %vm97_vm10, %v832_v19, %v94_v26  ;;  %vm58_vm10 = vcmp.le.s32.totalorder %v849_v2, %v847_v1 }
 0x6bb   :  { %v953_v29 = vsel %vm100_vm11, %v102_v25, %v98_v28 }
 0x6bc   :  { %v104_v30 = vmul.f32 %v953_v29, %v89_v27 }
 0x6be   :  { %105 = vst [vmem:[#allocation2 + $0x8] sm:$0xff] %v104_v30 }
 0x6c5   :  { %v379_v32 = vld [vmem:[#allocation2 + $0xf] ss:$0 sm:$0xff]  ;;  %v397_v41 = vld [vmem:[#allocation2 + $0xe] ss:$0 sm:$0xff]  ;;  %v415_v53 = vld [vmem:[#allocation2 + $0xd] ss:$0 sm:$0xff] }
 0x6c6   :  { %v380_v34 = vxor.u32 2147483648, %v379_v32  ;;  %v398_v42 = vxor.u32 2147483648, %v397_v41  ;;  %v416_v57 = vxor.u32 2147483648, %v415_v53  ;;  %v433_v3 = vld [vmem:[#allocation2 + $0xc] ss:$0 sm:$0xff] }
 0x6c7   :  { %v434_v8 = vxor.u32 2147483648, %v433_v3  ;;  %v451_v16 = vld [vmem:[#allocation2 + $0xb] ss:$0 sm:$0xff]  ;;  %v469_v30 = vld [vmem:[#allocation2 + $0xa] ss:$0 sm:$0xff] }
 0x6c8   :  { %v388_v36 = vmul.f32 %v380_v34, %v373_v35  ;;  %v384_v37 = vmul.f32 %v380_v34, %v177_v33  ;;  %v452_v21 = vxor.u32 2147483648, %v451_v16  ;;  %v487_v41 = vld [vmem:[#allocation2 + $0x9] ss:$0 sm:$0xff] }
 0x6ca   :  { %389 = vadd.xlane.f32.xlu0 %v388_v36  ;;  %385 = vadd.xlane.f32.xlu2 %v384_v37 }
 0x719   :  { %v362_v38 = vpop.xlane.xlu1 %361 }
 0x71a   :  { %v363_v39 = vsel %vm355_vm3, %v362_v38, %v349_v15  ;;  %vm437_vm3 = vcmp.eq.s32.totalorder %v847_v1, 12 }
 0x71b   :  { %v374_v40 = vmul.f32 %v366_v10, %v363_v39 }
 0x71d   :  { %375 = vadd.xlane.f32.xlu1 %v374_v40 }
 0x73d   :  { %v390_v44 = vpop.xlane.xlu0 %389  ;;  %v386_v45 = vpop.xlane.xlu2 %385 }
 0x73e   :  { %v391_v46 = vsel %vm383_vm14, %v390_v44, %v373_v35  ;;  %v387_v47 = vsel %vm383_vm14, %v386_v45, %v177_v33  ;;  %v470_v33 = vxor.u32 2147483648, %v469_v30  ;;  %v488_v45 = vxor.u32 2147483648, %v487_v41 }
 0x73f   :  { %v406_v48 = vmul.f32 %v398_v42, %v391_v46  ;;  %v402_v49 = vmul.f32 %v398_v42, %v387_v47 }
 0x741   :  { %407 = vadd.xlane.f32.xlu0 %v406_v48  ;;  %403 = vadd.xlane.f32.xlu2 %v402_v49 }
 0x790   :  { %v376_v50 = vpop.xlane.xlu1 %375 }
 0x791   :  { %v377_v51 = vsel %vm369_vm13, %v376_v50, %v363_v39  ;;  %v36_v50 = vld [vmem:[%s1141_s0] sm:$0xff]  ;;  %vm59_vm13 = vmand %vm58_vm10, %vm49_vm1  ;;  %vm509_vm1 = vcmp.eq.s32.totalorder %v847_v1, 8  ;;  %vm637_vm10 = vcmp.eq.s32.totalorder %v847_v1, 2 }
 0x792   :  { %v392_v52 = vmul.f32 %v380_v34, %v377_v51 }
 0x794   :  { %393 = vadd.xlane.f32.xlu1 %v392_v52 }
 0x7b4   :  { %v408_v55 = vpop.xlane.xlu0 %407  ;;  %v404_v56 = vpop.xlane.xlu2 %403 }
 0x7b5   :  { %v409_v58 = vsel %vm401_vm0, %v408_v55, %v391_v46  ;;  %v405_v59 = vsel %vm401_vm0, %v404_v56, %v387_v47  ;;  %v505_v56 = vld [vmem:[#allocation2 + $0x8] ss:$0 sm:$0xff] }
 0x7b6   :  { %v424_v60 = vmul.f32 %v416_v57, %v409_v58  ;;  %v420_v61 = vmul.f32 %v416_v57, %v405_v59 }
 0x7b8   :  { %425 = vadd.xlane.f32.xlu0 %v424_v60  ;;  %421 = vadd.xlane.f32.xlu2 %v420_v61 }
 0x807   :  { %v394_v62 = vpop.xlane.xlu1 %393 }
 0x808   :  { %v395_v63 = vsel %vm383_vm14, %v394_v62, %v377_v51  ;;  %v55_v51 = vsel %vm53_vm8, %v36_v50, 0.0  ;;  %vm593_vm8 = vcmp.eq.s32.totalorder %v847_v1, 4 }
 0x809   :  { %v410_v0 = vmul.f32 %v398_v42, %v395_v63 }
 0x80b   :  { %411 = vadd.xlane.f32.xlu1 %v410_v0 }
 0x82b   :  { %v426_v4 = vpop.xlane.xlu0 %425  ;;  %v422_v5 = vpop.xlane.xlu2 %421 }
 0x82c   :  { %v427_v9 = vsel %vm419_vm2, %v426_v4, %v409_v58  ;;  %v423_v10 = vsel %vm419_vm2, %v422_v5, %v405_v59  ;;  %v506_v58 = vxor.u32 2147483648, %v505_v56 }
 0x82d   :  { %v442_v11 = vmul.f32 %v434_v8, %v427_v9  ;;  %v438_v12 = vmul.f32 %v434_v8, %v423_v10 }
 0x82f   :  { %443 = vadd.xlane.f32.xlu0 %v442_v11  ;;  %439 = vadd.xlane.f32.xlu2 %v438_v12 }
 0x87e   :  { %v412_v13 = vpop.xlane.xlu1 %411 }
 0x87f   :  { %v413_v14 = vsel %vm401_vm0, %v412_v13, %v395_v63 }
 0x880   :  { %v428_v15 = vmul.f32 %v416_v57, %v413_v14 }
 0x882   :  { %429 = vadd.xlane.f32.xlu1 %v428_v15 }
 0x8a2   :  { %v444_v19 = vpop.xlane.xlu0 %443  ;;  %v440_v20 = vpop.xlane.xlu2 %439 }
 0x8a3   :  { %v445_v22 = vsel %vm437_vm3, %v444_v19, %v427_v9  ;;  %v441_v23 = vsel %vm437_vm3, %v440_v20, %v423_v10  ;;  %v60_v10 = vsel %vm59_vm13, %v36_v50, 0.0  ;;  %vm680_vm13 = vcmp.eq.s32.totalorder %v847_v1, 0 }
 0x8a4   :  { %v460_v24 = vmul.f32 %v452_v21, %v445_v22  ;;  %v456_v25 = vmul.f32 %v452_v21, %v441_v23 }
 0x8a6   :  { %461 = vadd.xlane.f32.xlu0 %v460_v24  ;;  %457 = vadd.xlane.f32.xlu2 %v456_v25 }
 0x8f5   :  { %v430_v26 = vpop.xlane.xlu1 %429 }
 0x8f6   :  { %v431_v27 = vsel %vm419_vm2, %v430_v26, %v413_v14  ;;  %vm169_vm2 = vcmp.eq.s32.totalorder %v847_v1, %v849_v2 }
 0x8f7   :  { %v446_v28 = vmul.f32 %v434_v8, %v431_v27  ;;  %v170_v14 = vsel %vm169_vm2, -1.0, %v836_v7 }
 0x8f9   :  { %447 = vadd.xlane.f32.xlu1 %v446_v28 }
 0x919   :  { %v462_v31 = vpop.xlane.xlu0 %461  ;;  %v458_v32 = vpop.xlane.xlu2 %457 }
 0x91a   :  { %v463_v34 = vsel %vm455_vm4, %v462_v31, %v445_v22  ;;  %v459_v35 = vsel %vm455_vm4, %v458_v32, %v441_v23 }
 0x91b   :  { %v478_v36 = vmul.f32 %v470_v33, %v463_v34  ;;  %v474_v37 = vmul.f32 %v470_v33, %v459_v35 }
 0x91d   :  { %479 = vadd.xlane.f32.xlu0 %v478_v36  ;;  %475 = vadd.xlane.f32.xlu2 %v474_v37 }
 0x96c   :  { %v448_v38 = vpop.xlane.xlu1 %447 }
 0x96d   :  { %v449_v39 = vsel %vm437_vm3, %v448_v38, %v431_v27  ;;  %vm527_vm3 = vcmp.eq.s32.totalorder %v847_v1, 7 }
 0x96e   :  { %v464_v40 = vmul.f32 %v452_v21, %v449_v39 }
 0x970   :  { %465 = vadd.xlane.f32.xlu1 %v464_v40 }
 0x990   :  { %v480_v42 = vpop.xlane.xlu0 %479  ;;  %v476_v44 = vpop.xlane.xlu2 %475 }
 0x991   :  { %v481_v46 = vsel %vm473_vm6, %v480_v42, %v463_v34  ;;  %v477_v47 = vsel %vm473_vm6, %v476_v44, %v459_v35 }
 0x992   :  { %v496_v48 = vmul.f32 %v488_v45, %v481_v46  ;;  %v492_v49 = vmul.f32 %v488_v45, %v477_v47 }
 0x994   :  { %497 = vadd.xlane.f32.xlu0 %v496_v48  ;;  %493 = vadd.xlane.f32.xlu2 %v492_v49 }
 0x99c   :  { %56 = vadd.xlane.f32.xlu2 %v55_v51 }
 0x9e3   :  { %v466_v52 = vpop.xlane.xlu1 %465 }
 0x9e4   :  { %v467_v53 = vsel %vm455_vm4, %v466_v52, %v449_v39  ;;  %vm549_vm4 = vcmp.eq.s32.totalorder %v847_v1, 6 }
 0x9e5   :  { %v482_v55 = vmul.f32 %v470_v33, %v467_v53 }
 0x9e7   :  { %483 = vadd.xlane.f32.xlu1 %v482_v55 }
 0xa07   :  { %v494_v57 = vpop.xlane.xlu2 %493  ;;  %v498_v23 = vpop.xlane.xlu0 %497 }
 0xa08   :  { %v495_v59 = vsel %vm491_vm9, %v494_v57, %v477_v47  ;;  %v499_v24 = vsel %vm491_vm9, %v498_v23, %v481_v46 }
 0xa09   :  { %v510_v60 = vmul.f32 %v506_v58, %v495_v59  ;;  %v514_v25 = vmul.f32 %v506_v58, %v499_v24 }
 0xa0b   :  { %511 = vadd.xlane.f32.xlu0 %v510_v60 }
 0xa0f   :  { %v1013_v61 = vpop.xlane.xlu2 %56 }
 0xa10   :  { %833 = vrcp.f32 %v1013_v61  ;;  %v72_v0 = vand.u32 2147483648, %v1013_v61  ;;  %vm66_vm11 = vweird.f32 %v1013_v61  ;;  %v70_v4 = vand.u32 2147483647, %v1013_v61 }
 0xa12   :  { %v73_v8 = vor.u32 1.1754944e-38, %v72_v0  ;;  %vm71_vm0 = vcmp.eq.f32.partialorder %v70_v4, 8.507059e+37 }
 0xa16   :  { %v834_v62 = vpop.eup %833 }
 0xa17   :  { %v62_v63 = vmul.f32 %v834_v62, %v1013_v61  ;;  %vm67_vm12 = vweird.f32 %v834_v62 }
 0xa18   :  { %vm68_vm14 = vmor %vm66_vm11, %vm67_vm12  ;;  %vm659_vm12 = vcmp.eq.s32.totalorder %v847_v1, 1 }
 0xa19   :  { %v63_v3 = vsub.f32 1.0, %v62_v63 }
 0xa1b   :  { %v64_v5 = vmul.f32 %v834_v62, %v63_v3 }
 0xa1d   :  { %v65_v9 = vadd.f32 %v834_v62, %v64_v5 }
 0xa1f   :  { %v69_v11 = vsel %vm68_vm14, %v834_v62, %v65_v9 }
 0xa20   :  { %v1026_v12 = vsel %vm71_vm0, %v73_v8, %v69_v11 }
 0xa21   :  { %v75_v13 = vmul.f32 %v1026_v12, %v60_v10 }
 0xa23   :  { %76 = vst [vmem:[#allocation2] sm:$0xff] %v75_v13 }
 0xa2a   :  { %v523_v15 = vld [vmem:[#allocation2 + $0x7] ss:$0 sm:$0xff]  ;;  %v545_v27 = vld [vmem:[#allocation2 + $0x6] ss:$0 sm:$0xff]  ;;  %v567_v42 = vld [vmem:[#allocation2 + $0x5] ss:$0 sm:$0xff] }
 0xa2b   :  { %v524_v16 = vxor.u32 2147483648, %v523_v15  ;;  %v546_v28 = vxor.u32 2147483648, %v545_v27  ;;  %v568_v44 = vxor.u32 2147483648, %v567_v42 }
 0xa2d   :  { %v528_v19 = vmul.f32 %v524_v16, %v170_v14 }
 0xa2f   :  { %529 = vadd.xlane.f32.xlu0 %v528_v19 }
 0xa5a   :  { %v484_v20 = vpop.xlane.xlu1 %483 }
 0xa5b   :  { %v485_v21 = vsel %vm473_vm6, %v484_v20, %v467_v53  ;;  %vm571_vm6 = vcmp.eq.s32.totalorder %v847_v1, 5 }
 0xa5c   :  { %v500_v22 = vmul.f32 %v488_v45, %v485_v21 }
 0xa5e   :  { %501 = vadd.xlane.f32.xlu1 %v500_v22 }
 0xa66   :  { %515 = vadd.xlane.f32.xlu1 %v514_v25 }
 0xa7e   :  { %v512_v2 = vpop.xlane.xlu0 %511 }
 0xa7f   :  { %v513_v7 = vsel %vm509_vm1, %v512_v2, %v495_v59 }
 0xa80   :  { %v532_v26 = vmul.f32 %v524_v16, %v513_v7 }
 0xa82   :  { %533 = vadd.xlane.f32.xlu1 %v532_v26 }
 0xaa2   :  { %v530_v30 = vpop.xlane.xlu0 %529 }
 0xaa3   :  { %v531_v31 = vsel %vm527_vm3, %v530_v30, %v170_v14  ;;  %v611_v14 = vld [vmem:[#allocation2 + $0x3] ss:$0 sm:$0xff] }
 0xaa4   :  { %v550_v32 = vmul.f32 %v546_v28, %v531_v31 }
 0xaa6   :  { %551 = vadd.xlane.f32.xlu1 %v550_v32 }
 0xad1   :  { %v502_v33 = vpop.xlane.xlu1 %501 }
 0xad2   :  { %v503_v34 = vsel %vm491_vm9, %v502_v33, %v485_v21  ;;  %vm615_vm9 = vcmp.eq.s32.totalorder %v847_v1, 3 }
 0xad3   :  { %v518_v35 = vmul.f32 %v506_v58, %v503_v34  ;;  %v589_v58 = vld [vmem:[#allocation2 + $0x4] ss:$0 sm:$0xff] }
 0xad4   :  { %v590_v60 = vxor.u32 2147483648, %v589_v58 }
 0xad5   :  { %519 = vadd.xlane.f32.xlu2 %v518_v35 }
 0xad9   :  { %v516_v36 = vpop.xlane.xlu1 %515 }
 0xada   :  { %v517_v37 = vsel %vm509_vm1, %v516_v36, %v499_v24 }
 0xadb   :  { %v536_v38 = vmul.f32 %v524_v16, %v517_v37 }
 0xadd   :  { %537 = vadd.xlane.f32.xlu2 %v536_v38 }
 0xaf5   :  { %v534_v39 = vpop.xlane.xlu1 %533 }
 0xaf6   :  { %v535_v40 = vsel %vm527_vm3, %v534_v39, %v513_v7 }
 0xaf7   :  { %v554_v41 = vmul.f32 %v546_v28, %v535_v40 }
 0xaf9   :  { %555 = vadd.xlane.f32.xlu2 %v554_v41 }
 0xb19   :  { %v552_v45 = vpop.xlane.xlu1 %551 }
 0xb1a   :  { %v553_v46 = vsel %vm549_vm4, %v552_v45, %v531_v31 }
 0xb1b   :  { %v572_v47 = vmul.f32 %v568_v44, %v553_v46 }
 0xb1d   :  { %573 = vadd.xlane.f32.xlu2 %v572_v47 }
 0xb48   :  { %v520_v48 = vpop.xlane.xlu2 %519 }
 0xb49   :  { %v521_v49 = vsel %vm509_vm1, %v520_v48, %v503_v34 }
 0xb4a   :  { %v540_v50 = vmul.f32 %v524_v16, %v521_v49  ;;  %v612_v16 = vxor.u32 2147483648, %v611_v14 }
 0xb4c   :  { %541 = vadd.xlane.f32.xlu0 %v540_v50 }
 0xb50   :  { %v538_v51 = vpop.xlane.xlu2 %537 }
 0xb51   :  { %v539_v52 = vsel %vm527_vm3, %v538_v51, %v517_v37 }
 0xb52   :  { %v558_v53 = vmul.f32 %v546_v28, %v539_v52 }
 0xb54   :  { %559 = vadd.xlane.f32.xlu0 %v558_v53 }
 0xb6c   :  { %v556_v55 = vpop.xlane.xlu2 %555 }
 0xb6d   :  { %v557_v56 = vsel %vm549_vm4, %v556_v55, %v535_v40 }
 0xb6e   :  { %v576_v57 = vmul.f32 %v568_v44, %v557_v56 }
 0xb70   :  { %577 = vadd.xlane.f32.xlu0 %v576_v57 }
 0xb90   :  { %v574_v59 = vpop.xlane.xlu2 %573 }
 0xb91   :  { %v575_v62 = vsel %vm571_vm6, %v574_v59, %v553_v46  ;;  %v676_v59 = vld [vmem:[#allocation2] ss:$0 sm:$0xff] }
 0xb92   :  { %v594_v63 = vmul.f32 %v590_v60, %v575_v62 }
 0xb94   :  { %595 = vadd.xlane.f32.xlu0 %v594_v63 }
 0xbbf   :  { %v542_v0 = vpop.xlane.xlu0 %541 }
 0xbc0   :  { %v543_v3 = vsel %vm527_vm3, %v542_v0, %v521_v49 }
 0xbc1   :  { %v562_v4 = vmul.f32 %v546_v28, %v543_v3  ;;  %v633_v28 = vld [vmem:[#allocation2 + $0x2] ss:$0 sm:$0xff] }
 0xbc2   :  { %v634_v31 = vxor.u32 2147483648, %v633_v28 }
 0xbc3   :  { %563 = vadd.xlane.f32.xlu1 %v562_v4 }
 0xbc7   :  { %v560_v5 = vpop.xlane.xlu0 %559 }
 0xbc8   :  { %v561_v8 = vsel %vm549_vm4, %v560_v5, %v539_v52 }
 0xbc9   :  { %v580_v9 = vmul.f32 %v568_v44, %v561_v8 }
 0xbcb   :  { %581 = vadd.xlane.f32.xlu1 %v580_v9 }
 0xbe3   :  { %v578_v10 = vpop.xlane.xlu0 %577 }
 0xbe4   :  { %v579_v11 = vsel %vm571_vm6, %v578_v10, %v557_v56 }
 0xbe5   :  { %v598_v13 = vmul.f32 %v590_v60, %v579_v11 }
 0xbe7   :  { %599 = vadd.xlane.f32.xlu1 %v598_v13 }
 0xc07   :  { %v596_v15 = vpop.xlane.xlu0 %595 }
 0xc08   :  { %v597_v19 = vsel %vm593_vm8, %v596_v15, %v575_v62  ;;  %v677_v62 = vxor.u32 2147483648, %v676_v59 }
 0xc09   :  { %v616_v20 = vmul.f32 %v612_v16, %v597_v19 }
 0xc0b   :  { %617 = vadd.xlane.f32.xlu1 %v616_v20 }
 0xc36   :  { %v564_v21 = vpop.xlane.xlu1 %563 }
 0xc37   :  { %v565_v22 = vsel %vm549_vm4, %v564_v21, %v543_v3 }
 0xc38   :  { %v584_v23 = vmul.f32 %v568_v44, %v565_v22  ;;  %v655_v44 = vld [vmem:[#allocation2 + $0x1] ss:$0 sm:$0xff] }
 0xc39   :  { %v656_v46 = vxor.u32 2147483648, %v655_v44 }
 0xc3a   :  { %585 = vadd.xlane.f32.xlu2 %v584_v23 }
 0xc3e   :  { %v582_v24 = vpop.xlane.xlu1 %581 }
 0xc3f   :  { %v583_v25 = vsel %vm571_vm6, %v582_v24, %v561_v8 }
 0xc40   :  { %v602_v2 = vmul.f32 %v590_v60, %v583_v25 }
 0xc42   :  { %603 = vadd.xlane.f32.xlu2 %v602_v2 }
 0xc5a   :  { %v600_v7 = vpop.xlane.xlu1 %599 }
 0xc5b   :  { %v601_v26 = vsel %vm593_vm8, %v600_v7, %v579_v11 }
 0xc5c   :  { %v620_v27 = vmul.f32 %v612_v16, %v601_v26 }
 0xc5e   :  { %621 = vadd.xlane.f32.xlu2 %v620_v27 }
 0xc7e   :  { %v618_v30 = vpop.xlane.xlu1 %617 }
 0xc7f   :  { %v619_v32 = vsel %vm615_vm9, %v618_v30, %v597_v19 }
 0xc80   :  { %v638_v33 = vmul.f32 %v634_v31, %v619_v32 }
 0xc82   :  { %639 = vadd.xlane.f32.xlu2 %v638_v33 }
 0xcad   :  { %v586_v34 = vpop.xlane.xlu2 %585 }
 0xcae   :  { %v587_v35 = vsel %vm571_vm6, %v586_v34, %v565_v22 }
 0xcaf   :  { %v606_v36 = vmul.f32 %v590_v60, %v587_v35 }
 0xcb1   :  { %607 = vadd.xlane.f32.xlu0 %v606_v36 }
 0xcb5   :  { %v604_v37 = vpop.xlane.xlu2 %603 }
 0xcb6   :  { %v605_v38 = vsel %vm593_vm8, %v604_v37, %v583_v25 }
 0xcb7   :  { %v624_v39 = vmul.f32 %v612_v16, %v605_v38 }
 0xcb9   :  { %625 = vadd.xlane.f32.xlu0 %v624_v39 }
 0xcd1   :  { %v622_v40 = vpop.xlane.xlu2 %621 }
 0xcd2   :  { %v623_v41 = vsel %vm615_vm9, %v622_v40, %v601_v26 }
 0xcd3   :  { %v642_v42 = vmul.f32 %v634_v31, %v623_v41 }
 0xcd5   :  { %643 = vadd.xlane.f32.xlu0 %v642_v42 }
 0xcf5   :  { %v640_v45 = vpop.xlane.xlu2 %639 }
 0xcf6   :  { %v641_v47 = vsel %vm637_vm10, %v640_v45, %v619_v32 }
 0xcf7   :  { %v660_v48 = vmul.f32 %v656_v46, %v641_v47 }
 0xcf9   :  { %661 = vadd.xlane.f32.xlu0 %v660_v48 }
 0xd24   :  { %v608_v49 = vpop.xlane.xlu0 %607 }
 0xd25   :  { %v609_v50 = vsel %vm593_vm8, %v608_v49, %v587_v35 }
 0xd26   :  { %v628_v51 = vmul.f32 %v612_v16, %v609_v50 }
 0xd28   :  { %629 = vadd.xlane.f32.xlu1 %v628_v51 }
 0xd2c   :  { %v626_v52 = vpop.xlane.xlu0 %625 }
 0xd2d   :  { %v627_v53 = vsel %vm615_vm9, %v626_v52, %v605_v38 }
 0xd2e   :  { %v646_v55 = vmul.f32 %v634_v31, %v627_v53 }
 0xd30   :  { %647 = vadd.xlane.f32.xlu1 %v646_v55 }
 0xd48   :  { %v644_v56 = vpop.xlane.xlu0 %643 }
 0xd49   :  { %v645_v57 = vsel %vm637_vm10, %v644_v56, %v623_v41 }
 0xd4a   :  { %v664_v58 = vmul.f32 %v656_v46, %v645_v57 }
 0xd4c   :  { %665 = vadd.xlane.f32.xlu1 %v664_v58 }
 0xd6c   :  { %v662_v60 = vpop.xlane.xlu0 %661 }
 0xd6d   :  { %v663_v63 = vsel %vm659_vm12, %v662_v60, %v641_v47 }
 0xd6e   :  { %v681_v0 = vmul.f32 %v677_v62, %v663_v63 }
 0xd70   :  { %682 = vadd.xlane.f32.xlu1 %v681_v0 }
 0xd9b   :  { %v630_v3 = vpop.xlane.xlu1 %629 }
 0xd9c   :  { %v631_v4 = vsel %vm615_vm9, %v630_v3, %v609_v50 }
 0xd9d   :  { %v650_v5 = vmul.f32 %v634_v31, %v631_v4 }
 0xd9f   :  { %651 = vadd.xlane.f32.xlu2 %v650_v5 }
 0xda3   :  { %v648_v8 = vpop.xlane.xlu1 %647 }
 0xda4   :  { %v649_v9 = vsel %vm637_vm10, %v648_v8, %v627_v53 }
 0xda5   :  { %v668_v10 = vmul.f32 %v656_v46, %v649_v9 }
 0xda7   :  { %669 = vadd.xlane.f32.xlu2 %v668_v10 }
 0xdbf   :  { %v666_v11 = vpop.xlane.xlu1 %665 }
 0xdc0   :  { %v667_v13 = vsel %vm659_vm12, %v666_v11, %v645_v57 }
 0xdc1   :  { %v685_v14 = vmul.f32 %v677_v62, %v667_v13 }
 0xdc3   :  { %686 = vadd.xlane.f32.xlu2 %v685_v14 }
 0xde3   :  { %v683_v15 = vpop.xlane.xlu1 %682 }
 0xde4   :  { %v684_v16 = vsel %vm680_vm13, %v683_v15, %v663_v63 }
 0xde5   :  { %v711_v19 = vmul.f32 %v684_v16, %v1026_v12 }
 0xde7   :  { %v713_v20 = vsel %vm66_vm11, %v684_v16, %v711_v19 }
 0xde8   :  { %807 = vst [vmem:[%s1142_s1] sm:$0xff] %v713_v20 }
 0xe12   :  { %v652_v21 = vpop.xlane.xlu2 %651 }
 0xe13   :  { %v653_v22 = vsel %vm637_vm10, %v652_v21, %v631_v4 }
 0xe14   :  { %v672_v23 = vmul.f32 %v656_v46, %v653_v22 }
 0xe16   :  { %673 = vadd.xlane.f32.xlu0 %v672_v23 }
 0xe1a   :  { %v670_v24 = vpop.xlane.xlu2 %669 }
 0xe1b   :  { %v671_v25 = vsel %vm659_vm12, %v670_v24, %v649_v9 }
 0xe1c   :  { %v689_v2 = vmul.f32 %v677_v62, %v671_v25 }
 0xe1e   :  { %690 = vadd.xlane.f32.xlu0 %v689_v2 }
 0xe36   :  { %v687_v12 = vpop.xlane.xlu2 %686 }
 0xe37   :  { %v688_v61 = vsel %vm680_vm13, %v687_v12, %v667_v13 }
 0xe38   :  { %v729_v7 = vmul.f32 %v688_v61, %v953_v29 }
 0xe3a   :  { %v731_v26 = vsel %vm95_vm7, %v688_v61, %v729_v7 }
 0xe3b   :  { %809 = vst [vmem:[%s1142_s1 + $0x8] sm:$0xff] %v731_v26 }
 0xe89   :  { %v674_v27 = vpop.xlane.xlu0 %673 }
 0xe8a   :  { %v675_v28 = vsel %vm659_vm12, %v674_v27, %v653_v22 }
 0xe8b   :  { %v693_v30 = vmul.f32 %v677_v62, %v675_v28 }
 0xe8d   :  { %694 = vadd.xlane.f32.xlu1 %v693_v30 }
 0xe91   :  { %v691_v31 = vpop.xlane.xlu0 %690 }
 0xe92   :  { %v692_v32 = vsel %vm680_vm13, %v691_v31, %v671_v25 }
 0xe93   :  { %v748_v33 = vmul.f32 %v692_v32, %v894_v54 }
 0xe95   :  { %v750_v18 = vsel %vm124_vm15, %v692_v32, %v748_v33 }
 0xe96   :  { %811 = vst [vmem:[%s1142_s1 + $0x10] sm:$0xff] %v750_v18 }
 0xf00   :  { %v695_v29 = vpop.xlane.xlu1 %694 }
 0xf01   :  { %v696_v34 = vsel %vm680_vm13, %v695_v29, %v675_v28 }
 0xf02   :  { %v767_v35 = vmul.f32 %v696_v34, %v869_v17 }
 0xf04   :  { %v769_v36 = vsel %vm153_vm5, %v696_v34, %v767_v35 }
 0xf05   :  { %813 = vst [vmem:[%s1142_s1 + $0x18] sm:$0xff] %v769_v36 }

// kernel: model_forward.42
= control target key start
LH: loop header
LB: loop body
LE: loop exit
PB: predicated region body
PF: predicated region fallthrough
CT: control target
= control target key end

     0   :  { %vm42_vm0 = vcmask 261120   ;;  %s127_s2 = inlined_call_operand.vmem [shape: f32[32,32], index: 2, kind: input, shape index: {}]   ;;  %s128_s0 = inlined_call_operand.vmem [shape: f32[32,32], index: 0, kind: input, shape index: {}]   ;;  %s129_s1 = inlined_call_operand.vmem [shape: f32[32,32], index: 1, kind: input, shape index: {}]   ;;  %s130_s3 = inlined_call_operand.vmem [shape: f32[32,32], index: 3, kind: output, shape index: {}]  }
   0x1   :  { %v18_v0 = vld [vmem:[%s127_s2] sm:$0xff]  ;;  %v19_v2 = vld [vmem:[%s127_s2 + $0x8] sm:$0xff]  ;;  %v20_v4 = vld [vmem:[%s127_s2 + $0x10] sm:$0xff] }
   0x2   :  { %v22_v1 = vmul.f32 1.442695, %v18_v0  ;;  %v24_v3 = vmul.f32 1.442695, %v19_v2  ;;  %v26_v5 = vmul.f32 1.442695, %v20_v4 }
   0x3   :  { %v21_v6 = vld [vmem:[%s127_s2 + $0x18] sm:$0xff]  ;;  %v30_v8 = vld [vmem:[%s128_s0] sm:$0xff]  ;;  %v31_v9 = vld [vmem:[%s128_s0 + $0x8] sm:$0xff] }
   0x4   :  { %51 = vpow2.f32 %v22_v1  ;;  %v28_v7 = vmul.f32 1.442695, %v21_v6  ;;  %v14_v11 = vld [vmem:[%s129_s1] sm:$0xff]  ;;  %v32_v12 = vld [vmem:[%s128_s0 + $0x10] sm:$0xff]  ;;  %v15_v15 = vld [vmem:[%s129_s1 + $0x8] sm:$0xff] }
   0x5   :  { %53 = vpow2.f32 %v24_v3  ;;  %v33_v16 = vld [vmem:[%s128_s0 + $0x18] sm:$0xff]  ;;  %v16_v19 = vld [vmem:[%s129_s1 + $0x10] sm:$0xff] }
   0x6   :  { %55 = vpow2.f32 %v26_v5  ;;  %v17_v23 = vld [vmem:[%s129_s1 + $0x18] sm:$0xff] }
   0x7   :  { %57 = vpow2.f32 %v28_v7 }
   0xa   :  { %v52_v10 = vpop.eup %51 }
   0xb   :  { %v54_v13 = vpop.eup %53  ;;  %v34_v14 = vmul.f32 %v52_v10, %v30_v8 }
   0xc   :  { %v56_v17 = vpop.eup %55  ;;  %v35_v18 = vmul.f32 %v54_v13, %v31_v9 }
   0xd   :  { %v58_v20 = vpop.eup %57  ;;  %v38_v21 = vadd.f32 %v34_v14, %v14_v11  ;;  %v36_v22 = vmul.f32 %v56_v17, %v32_v12 }
   0xe   :  { %v39_v24 = vadd.f32 %v35_v18, %v15_v15  ;;  %v37_v25 = vmul.f32 %v58_v20, %v33_v16 }
   0xf   :  { %43 = vst.msk [vmem:[%s130_s3] sm:$0xff] %vm42_vm0, %v38_v21  ;;  %v40_v26 = vadd.f32 %v36_v22, %v16_v19 }
  0x10   :  { %44 = vst.msk [vmem:[%s130_s3 + $0x8] sm:$0xff] %vm42_vm0, %v39_v24  ;;  %v41_v27 = vadd.f32 %v37_v25, %v17_v23 }
  0x11   :  { %45 = vst.msk [vmem:[%s130_s3 + $0x10] sm:$0xff] %vm42_vm0, %v40_v26 }
  0x12   :  { %46 = vst.msk [vmem:[%s130_s3 + $0x18] sm:$0xff] %vm42_vm0, %v41_v27 }

// kernel: model_forward.44
= control target key start
LH: loop header
LB: loop body
LE: loop exit
PB: predicated region body
PF: predicated region fallthrough
CT: control target
= control target key end

     0   :  { %v828_v8 = vmov 0   ;;  %vm392_vm0 = vcmask 523264   ;;  %vm568_vm13 = vcmask 261120   ;;  %s1051_s2 = inlined_call_operand.vmem [shape: bf16[576,32], index: 2, kind: input, shape index: {}]   ;;  %s1052_s1 = inlined_call_operand.vmem [shape: f32[32,1], index: 1, kind: input, shape index: {}]   ;;  %s1053_s0 = inlined_call_operand.vmem [shape: bf16[32,576], index: 0, kind: input, shape index: {}]   ;;  %s1054_s3 = inlined_call_operand.vmem [shape: f32[16,32], index: 3, kind: input, shape index: {}]   ;;  %s1055_s4 = inlined_call_operand.vmem [shape: f32[16,32], index: 4, kind: output, shape index: {}]  }
   0x1   :  { %v780_v0 = vld [vmem:[%s1051_s2 + $0x38] sm:$0xff]  ;;  %v779_v4 = vld [vmem:[%s1051_s2 + $0x30] sm:$0xff]  ;;  %814 = vset.pattern.permute.xlu0 %v828_v8  ;;  %815 = vset.pattern.permute.xlu1 %v828_v8  ;;  %v778_v9 = vld [vmem:[%s1051_s2 + $0x28] sm:$0xff] }
   0x2   :  { %v788_v1 = vld [vmem:[%s1051_s2 + $0x78] sm:$0xff]  ;;  %399 = vmatpush.bf16.msra.mxu0 %v780_v0  ;;  %v787_v5 = vld [vmem:[%s1051_s2 + $0x70] sm:$0xff]  ;;  %v786_v10 = vld [vmem:[%s1051_s2 + $0x68] sm:$0xff] }
   0x3   :  { %v796_v2 = vld [vmem:[%s1051_s2 + $0xb8] sm:$0xff]  ;;  %418 = vmatpush.bf16.msra.mxu1 %v788_v1  ;;  %v795_v6 = vld [vmem:[%s1051_s2 + $0xb0] sm:$0xff]  ;;  %v794_v11 = vld [vmem:[%s1051_s2 + $0xa8] sm:$0xff] }
   0x4   :  { %v804_v3 = vld [vmem:[%s1051_s2 + $0xf8] sm:$0xff]  ;;  %437 = vmatpush.bf16.msra.mxu2 %v796_v2  ;;  %v803_v7 = vld [vmem:[%s1051_s2 + $0xf0] sm:$0xff]  ;;  %v802_v12 = vld [vmem:[%s1051_s2 + $0xe8] sm:$0xff] }
   0x5   :  { %456 = vmatpush.bf16.msra.mxu3 %v804_v3  ;;  %v777_v13 = vld [vmem:[%s1051_s2 + $0x20] sm:$0xff]  ;;  %v776_v17 = vld [vmem:[%s1051_s2 + $0x18] sm:$0xff]  ;;  %v775_v22 = vld [vmem:[%s1051_s2 + $0x10] sm:$0xff] }
   0x6   :  { %400 = vmatpush.bf16.msra.mxu0 %v779_v4  ;;  %v785_v14 = vld [vmem:[%s1051_s2 + $0x60] sm:$0xff]  ;;  %v784_v18 = vld [vmem:[%s1051_s2 + $0x58] sm:$0xff]  ;;  %v783_v23 = vld [vmem:[%s1051_s2 + $0x50] sm:$0xff] }
   0x7   :  { %419 = vmatpush.bf16.msra.mxu1 %v787_v5  ;;  %v793_v15 = vld [vmem:[%s1051_s2 + $0xa0] sm:$0xff]  ;;  %v792_v20 = vld [vmem:[%s1051_s2 + $0x98] sm:$0xff]  ;;  %v791_v24 = vld [vmem:[%s1051_s2 + $0x90] sm:$0xff] }
   0x8   :  { %438 = vmatpush.bf16.msra.mxu2 %v795_v6  ;;  %v801_v16 = vld [vmem:[%s1051_s2 + $0xe0] sm:$0xff]  ;;  %v800_v21 = vld [vmem:[%s1051_s2 + $0xd8] sm:$0xff]  ;;  %v799_v25 = vld [vmem:[%s1051_s2 + $0xd0] sm:$0xff] }
   0x9   :  { %457 = vmatpush.bf16.msra.mxu3 %v803_v7  ;;  %v102_v19 = vld [vmem:[%s1052_s1] sm:$0xff]  ;;  %v104_v26 = vld [vmem:[%s1052_s1 + $0x10] sm:$0xff]  ;;  %v103_v27 = vld [vmem:[%s1052_s1 + $0x8] sm:$0xff] }
   0xa   :  { %401 = vmatpush.bf16.msra.mxu0 %v778_v9  ;;  %108 = vperm.xlu0 %814, %v102_v19   ;;  %v774_v28 = vld [vmem:[%s1051_s2 + $0x8] sm:$0xff]  ;;  %v773_v32 = vld [vmem:[%s1051_s2] sm:$0xff]  ;;  %v765_v37 = vld [vmem:[%s1053_s0 + $0x10] sm:$0xf0] }
   0xb   :  { %420 = vmatpush.bf16.msra.mxu1 %v786_v10  ;;  %118 = vperm.xlu1 %815, %v104_v26   ;;  %v782_v29 = vld [vmem:[%s1051_s2 + $0x48] sm:$0xff]  ;;  %v781_v33 = vld [vmem:[%s1051_s2 + $0x40] sm:$0xff]  ;;  %v579_v39 = vld [vmem:[%s1053_s0 + $0x14] sm:$0xf0] }
   0xc   :  { %439 = vmatpush.bf16.msra.mxu2 %v794_v11  ;;  %v790_v30 = vld [vmem:[%s1051_s2 + $0x88] sm:$0xff]  ;;  %v789_v34 = vld [vmem:[%s1051_s2 + $0x80] sm:$0xff]  ;;  %v766_v41 = vld [vmem:[%s1053_s0 + $0x18] sm:$0xf0] }
   0xd   :  { %458 = vmatpush.bf16.msra.mxu3 %v802_v12  ;;  %v798_v31 = vld [vmem:[%s1051_s2 + $0xc8] sm:$0xff]  ;;  %v797_v35 = vld [vmem:[%s1051_s2 + $0xc0] sm:$0xff]  ;;  %v808_v44 = vld [vmem:[%s1051_s2 + $0x118] sm:$0xff] }
   0xe   :  { %402 = vmatpush.bf16.msra.mxu0 %v777_v13  ;;  %v577_v36 = vld [vmem:[%s1053_s0] sm:$0xf]  ;;  %v763_v38 = vld [vmem:[%s1053_s0 + $0x4] sm:$0xf]  ;;  %v585_v40 = vld [vmem:[%s1053_s0 + $0x8] sm:$0xf] }
   0xf   :  { %421 = vmatpush.bf16.msra.mxu1 %v785_v14  ;;  %v764_v42 = vld [vmem:[%s1053_s0 + $0xc] sm:$0xf]  ;;  %v587_v43 = vld [vmem:[%s1053_s0 + $0x1c] sm:$0xf0]  ;;  %v578_v45 = vor.u32 %v765_v37, %v577_v36  ;;  %v582_v46 = vor.u32 %v763_v38, %v579_v39  ;;  %v586_v47 = vor.u32 %v766_v41, %v585_v40  ;;  %v807_v49 = vld [vmem:[%s1051_s2 + $0x110] sm:$0xff] }
  0x10   :  { %440 = vmatpush.bf16.msra.mxu2 %v793_v15  ;;  %v590_v48 = vor.u32 %v764_v42, %v587_v43  ;;  %v105_v50 = vld [vmem:[%s1052_s1 + $0x18] sm:$0xff]  ;;  %v806_v51 = vld [vmem:[%s1051_s2 + $0x108] sm:$0xff]  ;;  %v805_v52 = vld [vmem:[%s1051_s2 + $0x100] sm:$0xff] }
  0x11   :  { %459 = vmatpush.bf16.msra.mxu3 %v801_v16  ;;  %v597_v53 = vld [vmem:[%s1053_s0 + $0x28] sm:$0xf]  ;;  %v770_v54 = vld [vmem:[%s1053_s0 + $0x38] sm:$0xf0]  ;;  %v768_v55 = vld [vmem:[%s1053_s0 + $0x2c] sm:$0xf] }
  0x12   :  { %403 = vmatpush.bf16.msra.mxu0 %v776_v17  ;;  %113 = vperm.xlu0 %814, %v103_v27   ;;  %v599_v56 = vld [vmem:[%s1053_s0 + $0x3c] sm:$0xf0]  ;;  %v605_v57 = vld [vmem:[%s1053_s0 + $0x30] sm:$0xf]  ;;  %v771_v58 = vld [vmem:[%s1053_s0 + $0x40] sm:$0xf0]  ;;  %v598_v61 = vor.u32 %v770_v54, %v597_v53 }
  0x13   :  { %422 = vmatpush.bf16.msra.mxu1 %v784_v18  ;;  %123 = vperm.xlu1 %815, %v105_v50   ;;  %v769_v59 = vld [vmem:[%s1053_s0 + $0x34] sm:$0xf]  ;;  %v607_v60 = vld [vmem:[%s1053_s0 + $0x44] sm:$0xf0]  ;;  %v602_v62 = vor.u32 %v768_v55, %v599_v56  ;;  %v606_v63 = vor.u32 %v771_v58, %v605_v57  ;;  %v593_v1 = vld [vmem:[%s1053_s0 + $0x10] sm:$0xf] }
  0x14   :  { %441 = vmatpush.bf16.msra.mxu2 %v792_v20  ;;  %v610_v0 = vor.u32 %v769_v59, %v607_v60  ;;  %v767_v2 = vld [vmem:[%s1053_s0 + $0x20] sm:$0xf0]  ;;  %v613_v3 = vld [vmem:[%s1053_s0 + $0x38] sm:$0xf]  ;;  %v772_v4 = vld [vmem:[%s1053_s0 + $0x48] sm:$0xf0] }
  0x15   :  { %460 = vmatpush.bf16.msra.mxu3 %v800_v21  ;;  %v594_v5 = vor.u32 %v767_v2, %v593_v1  ;;  %v614_v6 = vor.u32 %v772_v4, %v613_v3 }
  0x16   :  { %404 = vmatpush.bf16.msra.mxu0 %v775_v22 }
  0x17   :  { %423 = vmatpush.bf16.msra.mxu1 %v783_v23 }
  0x18   :  { %442 = vmatpush.bf16.msra.mxu2 %v791_v24 }
  0x19   :  { %461 = vmatpush.bf16.msra.mxu3 %v799_v25 }
  0x1a   :  { %405 = vmatpush.bf16.msra.mxu0 %v774_v28 }
  0x1b   :  { %424 = vmatpush.bf16.msra.mxu1 %v782_v29 }
  0x1c   :  { %443 = vmatpush.bf16.msra.mxu2 %v790_v30 }
  0x1d   :  { %462 = vmatpush.bf16.msra.mxu3 %v798_v31 }
  0x1e   :  { %406 = vmatpush.bf16.msra.mxu0 %v773_v32 }
  0x1f   :  { %425 = vmatpush.bf16.msra.mxu1 %v781_v33 }
  0x20   :  { %444 = vmatpush.bf16.msra.mxu2 %v789_v34 }
  0x21   :  { %463 = vmatpush.bf16.msra.mxu3 %v797_v35  ;;  %407 = vmatmul.bf16.vlgmr.msra.gmra.mxu0 %v578_v45 }
  0x22   :  { %479 = vmatpush.bf16.msrb.mxu0 %v808_v44  ;;  %426 = vmatmul.bf16.vlgmr.msra.gmra.mxu1 %v582_v46 }
  0x23   :  { %809 = vmatpush.bf16.msrb.mxu1 %v808_v44  ;;  %445 = vmatmul.bf16.vlgmr.msra.gmra.mxu2 %v586_v47 }
  0x24   :  { %464 = vmatmul.bf16.vlgmr.msra.gmra.mxu3 %v590_v48 }
  0x26   :  { %480 = vmatpush.bf16.msrb.mxu0 %v807_v49 }
  0x27   :  { %810 = vmatpush.bf16.msrb.mxu1 %v807_v49 }
  0x2a   :  { %481 = vmatpush.bf16.msrb.mxu0 %v806_v51 }
  0x2b   :  { %811 = vmatpush.bf16.msrb.mxu1 %v806_v51 }
  0x2e   :  { %482 = vmatpush.bf16.msrb.mxu0 %v805_v52 }
  0x2f   :  { %812 = vmatpush.bf16.msrb.mxu1 %v805_v52 }
  0x31   :  { %412 = vmatmul.bf16.gmra.mxu0 %v598_v61 }
  0x32   :  { %431 = vmatmul.bf16.gmra.mxu1 %v602_v62 }
  0x33   :  { %450 = vmatmul.bf16.gmra.mxu2 %v606_v63 }
  0x34   :  { %469 = vmatmul.bf16.gmra.mxu3 %v610_v0 }
  0x41   :  { %759 = vmatmul.msk.bf16.vlgmr.msrb.gmra.mxu0 %vm392_vm0, %v594_v5 }
  0x42   :  { %760 = vmatmul.msk.bf16.vlgmr.msrb.gmra.mxu1 %vm392_vm0, %v614_v6 }
  0x7c   :  { %v109_v9 = vpop.permute.xlu0 %108 }
  0x7d   :  { %v119_v52 = vpop.permute.xlu1 %118 }
  0x84   :  { %v114_v16 = vpop.permute.xlu0 %113 }
  0x85   :  { %v124_v6 = vpop.permute.xlu1 %123 }
  0x9e   :  { %v408_v7 = vpop.f32.mrf.mxu0 }
  0x9f   :  { %v409_v11 = vadd.f32 %v408_v7, %v109_v9  ;;  %v427_v12 = vpop.f32.mrf.mxu1 }
  0xa1   :  { %v428_v15 = vadd.f32 %v427_v12, %v409_v11 }
  0xa6   :  { %v410_v8 = vpop.f32.mrf.mxu0  ;;  %v446_v13 = vpop.f32.mrf.mxu2 }
  0xa7   :  { %v465_v17 = vpop.f32.mrf.mxu3  ;;  %v447_v18 = vadd.f32 %v446_v13, %v428_v15  ;;  %v411_v19 = vadd.f32 %v410_v8, %v114_v16  ;;  %v429_v20 = vpop.f32.mrf.mxu1  ;;  %v534_v13 = vld [vmem:[%s1054_s3] sm:$0xff] }
  0xa9   :  { %v466_v21 = vadd.f32 %v465_v17, %v447_v18  ;;  %v430_v24 = vadd.f32 %v429_v20, %v411_v19 }
  0xae   :  { %v413_v10 = vpop.f32.mrf.mxu0  ;;  %v448_v22 = vpop.f32.mrf.mxu2 }
  0xaf   :  { %v449_v26 = vadd.f32 %v448_v22, %v430_v24  ;;  %v467_v28 = vpop.f32.mrf.mxu3  ;;  %v432_v42 = vpop.f32.mrf.mxu1  ;;  %v414_v58 = vadd.f32 %v413_v10, %v119_v52 }
  0xb1   :  { %v468_v30 = vadd.f32 %v467_v28, %v449_v26  ;;  %v433_v2 = vadd.f32 %v432_v42, %v414_v58 }
  0xb6   :  { %v1034_v14 = vpop.f32.mrf.mxu0  ;;  %v451_v62 = vpop.f32.mrf.mxu2 }
  0xb7   :  { %v434_v55 = vpop.f32.mrf.mxu1  ;;  %v452_v5 = vadd.f32 %v451_v62, %v433_v2  ;;  %v470_v7 = vpop.f32.mrf.mxu3  ;;  %v416_v12 = vadd.f32 %v1034_v14, %v124_v6 }
  0xb9   :  { %v471_v17 = vadd.f32 %v470_v7, %v452_v5  ;;  %v435_v24 = vadd.f32 %v434_v55, %v416_v12 }
  0xbe   :  { %v484_v23 = vpop.f32.mrf.mxu0 }
  0xbf   :  { %v485_v25 = vadd.f32 %v484_v23, %v466_v21  ;;  %v489_v10 = vpop.f32.mrf.mxu1  ;;  %v453_v21 = vpop.f32.mrf.mxu2 }
  0xc0   :  { %v490_v22 = vadd.f32 %v489_v10, %v471_v17 }
  0xc1   :  { %v494_v27 = vadd.f32 2.0, %v485_v25 }
  0xc3   :  { %v761_v29 = vmul.f32 -1.442695, %v494_v27  ;;  %v454_v27 = vadd.f32 %v453_v21, %v435_v24 }
  0xc5   :  { %816 = vpow2.f32 %v761_v29 }
  0xc6   :  { %v486_v31 = vpop.f32.mrf.mxu0 }
  0xc7   :  { %v487_v32 = vadd.f32 %v486_v31, %v468_v30  ;;  %v472_v30 = vpop.f32.mrf.mxu3 }
  0xc9   :  { %v495_v33 = vadd.f32 2.0, %v487_v32  ;;  %v491_v32 = vpop.f32.mrf.mxu1 }
  0xcb   :  { %v817_v34 = vpop.eup %816  ;;  %v762_v35 = vmul.f32 -1.442695, %v495_v33  ;;  %v535_v33 = vld [vmem:[%s1054_s3 + $0x8] sm:$0xff] }
  0xcc   :  { %v502_v36 = vadd.f32 1.0, %v817_v34 }
  0xcd   :  { %818 = vpow2.f32 %v762_v35  ;;  %v473_v35 = vadd.f32 %v472_v30, %v454_v27 }
  0xce   :  { %820 = vrcp.f32 %v502_v36  ;;  %v515_v43 = vand.u32 2147483648, %v502_v36  ;;  %v513_v45 = vand.u32 2147483647, %v502_v36  ;;  %vm509_vm2 = vweird.f32 %v502_v36 }
  0xd0   :  { %v516_v48 = vor.u32 1.1754944e-38, %v515_v43  ;;  %vm514_vm4 = vcmp.eq.f32.partialorder %v513_v45, 8.507059e+37 }
  0xd3   :  { %v819_v37 = vpop.eup %818 }
  0xd4   :  { %v821_v38 = vpop.eup %820  ;;  %v503_v39 = vadd.f32 1.0, %v819_v37 }
  0xd5   :  { %v505_v40 = vmul.f32 %v821_v38, %v502_v36  ;;  %vm510_vm1 = vweird.f32 %v821_v38 }
  0xd6   :  { %822 = vrcp.f32 %v503_v39  ;;  %vm511_vm3 = vmor %vm509_vm2, %vm510_vm1  ;;  %v530_v54 = vand.u32 2147483648, %v503_v39  ;;  %v528_v57 = vand.u32 2147483647, %v503_v39  ;;  %vm524_vm6 = vweird.f32 %v503_v39 }
  0xd7   :  { %v506_v41 = vsub.f32 1.0, %v505_v40 }
  0xd8   :  { %v531_v61 = vor.u32 1.1754944e-38, %v530_v54  ;;  %vm529_vm8 = vcmp.eq.f32.partialorder %v528_v57, 8.507059e+37 }
  0xd9   :  { %v507_v44 = vmul.f32 %v821_v38, %v506_v41 }
  0xdb   :  { %v508_v46 = vadd.f32 %v821_v38, %v507_v44 }
  0xdc   :  { %v823_v47 = vpop.eup %822 }
  0xdd   :  { %v512_v49 = vsel %vm511_vm3, %v821_v38, %v508_v46  ;;  %v520_v50 = vmul.f32 %v823_v47, %v503_v39  ;;  %vm525_vm5 = vweird.f32 %v823_v47  ;;  %v492_v38 = vadd.f32 %v491_v32, %v473_v35 }
  0xde   :  { %v517_v51 = vsel %vm514_vm4, %v516_v48, %v512_v49  ;;  %vm526_vm7 = vmor %vm524_vm6, %vm525_vm5 }
  0xdf   :  { %824 = vrcp.f32 %v517_v51  ;;  %v521_v53 = vsub.f32 1.0, %v520_v50  ;;  %v547_v4 = vand.u32 2147483648, %v517_v51  ;;  %v545_v9 = vand.u32 2147483647, %v517_v51 }
  0xe0   :  { %vm541_vm10 = vweird.f32 %v517_v51 }
  0xe1   :  { %v522_v56 = vmul.f32 %v823_v47, %v521_v53  ;;  %v548_v15 = vor.u32 1.1754944e-38, %v547_v4  ;;  %vm546_vm12 = vcmp.eq.f32.partialorder %v545_v9, 8.507059e+37 }
  0xe3   :  { %v523_v59 = vadd.f32 %v823_v47, %v522_v56 }
  0xe5   :  { %v825_v60 = vpop.eup %824  ;;  %v527_v0 = vsel %vm526_vm7, %v823_v47, %v523_v59 }
  0xe6   :  { %v537_v63 = vmul.f32 %v825_v60, %v517_v51  ;;  %v532_v1 = vsel %vm529_vm8, %v531_v61, %v527_v0  ;;  %vm542_vm9 = vweird.f32 %v825_v60 }
  0xe7   :  { %826 = vrcp.f32 %v532_v1  ;;  %vm543_vm11 = vmor %vm541_vm10, %vm542_vm9  ;;  %v562_v14 = vand.u32 2147483648, %v532_v1  ;;  %v560_v29 = vand.u32 2147483647, %v532_v1  ;;  %vm556_vm15 = vweird.f32 %v532_v1 }
  0xe8   :  { %v538_v3 = vsub.f32 1.0, %v537_v63 }
  0xe9   :  { %v563_v34 = vor.u32 1.1754944e-38, %v562_v14  ;;  %vm561_vm1 = vcmp.eq.f32.partialorder %v560_v29, 8.507059e+37 }
  0xea   :  { %v539_v8 = vmul.f32 %v825_v60, %v538_v3 }
  0xec   :  { %v540_v11 = vadd.f32 %v825_v60, %v539_v8 }
  0xed   :  { %v827_v16 = vpop.eup %826 }
  0xee   :  { %v544_v18 = vsel %vm543_vm11, %v825_v60, %v540_v11  ;;  %v552_v20 = vmul.f32 %v827_v16, %v532_v1  ;;  %vm557_vm14 = vweird.f32 %v827_v16 }
  0xef   :  { %v549_v19 = vsel %vm546_vm12, %v548_v15, %v544_v18  ;;  %vm558_vm0 = vmor %vm556_vm15, %vm557_vm14 }
  0xf0   :  { %v550_v23 = vmul.f32 %v549_v19, %v534_v13  ;;  %v553_v25 = vsub.f32 1.0, %v552_v20 }
  0xf2   :  { %v566_v26 = vsub.f32 %v550_v23, %v490_v22  ;;  %v554_v28 = vmul.f32 %v827_v16, %v553_v25 }
  0xf4   :  { %569 = vst.msk [vmem:[%s1055_s4] sm:$0xff] %vm568_vm13, %v566_v26  ;;  %v555_v31 = vadd.f32 %v827_v16, %v554_v28 }
  0xf6   :  { %v559_v36 = vsel %vm558_vm0, %v827_v16, %v555_v31 }
  0xf7   :  { %v564_v37 = vsel %vm561_vm1, %v563_v34, %v559_v36 }
  0xf8   :  { %v565_v39 = vmul.f32 %v564_v37, %v535_v33 }
  0xfa   :  { %v567_v40 = vsub.f32 %v565_v39, %v492_v38 }
  0xfc   :  { %570 = vst.msk [vmem:[%s1055_s4 + $0x8] sm:$0xff] %vm568_vm13, %v567_v40 }

// kernel: model_forward.51
= control target key start
LH: loop header
LB: loop body
LE: loop exit
PB: predicated region body
PF: predicated region fallthrough
CT: control target
= control target key end

     0   :  { %v680_v12 = vmov 0   ;;  %vm349_vm0 = vcmask 523264   ;;  %s856_s2 = inlined_call_operand.vmem [shape: bf16[576,128], index: 2, kind: input, shape index: {}]   ;;  %s857_s1 = inlined_call_operand.vmem [shape: f32[16,1], index: 1, kind: input, shape index: {}]   ;;  %s858_s0 = inlined_call_operand.vmem [shape: bf16[16,576], index: 0, kind: input, shape index: {}]   ;;  %s859_s3 = inlined_call_operand.vmem [shape: f32[8,128], index: 3, kind: input, shape index: {}]   ;;  %s860_s4 = inlined_call_operand.vmem [shape: f32[8,128], index: 4, kind: output, shape index: {}]  }
   0x1   :  { %v643_v0 = vld [vmem:[%s856_s2 + $0x38] sm:$0xff]  ;;  %v642_v4 = vld [vmem:[%s856_s2 + $0x30] sm:$0xff]  ;;  %v641_v8 = vld [vmem:[%s856_s2 + $0x28] sm:$0xff]  ;;  %673 = vset.pattern.permute.xlu0 %v680_v12 }
   0x2   :  { %v659_v1 = vld [vmem:[%s856_s2 + $0xb8] sm:$0xff]  ;;  %353 = vmatpush.bf16.msra.mxu0 %v643_v0  ;;  %v658_v5 = vld [vmem:[%s856_s2 + $0xb0] sm:$0xff]  ;;  %v657_v9 = vld [vmem:[%s856_s2 + $0xa8] sm:$0xff] }
   0x3   :  { %v667_v2 = vld [vmem:[%s856_s2 + $0xf8] sm:$0xff]  ;;  %381 = vmatpush.bf16.msra.mxu2 %v659_v1  ;;  %v666_v6 = vld [vmem:[%s856_s2 + $0xf0] sm:$0xff]  ;;  %v665_v10 = vld [vmem:[%s856_s2 + $0xe8] sm:$0xff] }
   0x4   :  { %v651_v3 = vld [vmem:[%s856_s2 + $0x78] sm:$0xff]  ;;  %395 = vmatpush.bf16.msra.mxu3 %v667_v2  ;;  %v650_v7 = vld [vmem:[%s856_s2 + $0x70] sm:$0xff]  ;;  %v649_v11 = vld [vmem:[%s856_s2 + $0x68] sm:$0xff] }
   0x5   :  { %367 = vmatpush.bf16.msra.mxu1 %v651_v3  ;;  %v640_v13 = vld [vmem:[%s856_s2 + $0x20] sm:$0xff]  ;;  %v639_v17 = vld [vmem:[%s856_s2 + $0x18] sm:$0xff]  ;;  %v638_v22 = vld [vmem:[%s856_s2 + $0x10] sm:$0xff] }
   0x6   :  { %354 = vmatpush.bf16.msra.mxu0 %v642_v4  ;;  %v656_v14 = vld [vmem:[%s856_s2 + $0xa0] sm:$0xff]  ;;  %v655_v18 = vld [vmem:[%s856_s2 + $0x98] sm:$0xff]  ;;  %v654_v23 = vld [vmem:[%s856_s2 + $0x90] sm:$0xff] }
   0x7   :  { %382 = vmatpush.bf16.msra.mxu2 %v658_v5  ;;  %v664_v15 = vld [vmem:[%s856_s2 + $0xe0] sm:$0xff]  ;;  %v663_v20 = vld [vmem:[%s856_s2 + $0xd8] sm:$0xff]  ;;  %v662_v24 = vld [vmem:[%s856_s2 + $0xd0] sm:$0xff] }
   0x8   :  { %396 = vmatpush.bf16.msra.mxu3 %v666_v6  ;;  %v648_v16 = vld [vmem:[%s856_s2 + $0x60] sm:$0xff]  ;;  %v647_v21 = vld [vmem:[%s856_s2 + $0x58] sm:$0xff]  ;;  %v646_v25 = vld [vmem:[%s856_s2 + $0x50] sm:$0xff] }
   0x9   :  { %368 = vmatpush.bf16.msra.mxu1 %v650_v7  ;;  %v96_v19 = vld [vmem:[%s857_s1] sm:$0xff]  ;;  %v97_v26 = vld [vmem:[%s857_s1 + $0x8] sm:$0xff]  ;;  %v633_v36 = vld [vmem:[%s858_s0 + $0x10] sm:$0xf0] }
   0xa   :  { %355 = vmatpush.bf16.msra.mxu0 %v641_v8  ;;  %100 = vperm.xlu0 %673, %v96_v19   ;;  %v637_v27 = vld [vmem:[%s856_s2 + $0x8] sm:$0xff]  ;;  %v636_v31 = vld [vmem:[%s856_s2] sm:$0xff]  ;;  %v634_v38 = vld [vmem:[%s858_s0 + $0x18] sm:$0xf0] }
   0xb   :  { %383 = vmatpush.bf16.msra.mxu2 %v657_v9  ;;  %v653_v28 = vld [vmem:[%s856_s2 + $0x88] sm:$0xff]  ;;  %v652_v32 = vld [vmem:[%s856_s2 + $0x80] sm:$0xff]  ;;  %v469_v42 = vld [vmem:[%s858_s0 + $0x14] sm:$0xf0] }
   0xc   :  { %397 = vmatpush.bf16.msra.mxu3 %v665_v10  ;;  %v661_v29 = vld [vmem:[%s856_s2 + $0xc8] sm:$0xff]  ;;  %v660_v33 = vld [vmem:[%s856_s2 + $0xc0] sm:$0xff]  ;;  %v671_v43 = vld [vmem:[%s856_s2 + $0x118] sm:$0xff] }
   0xd   :  { %369 = vmatpush.bf16.msra.mxu1 %v649_v11  ;;  %v645_v30 = vld [vmem:[%s856_s2 + $0x48] sm:$0xff]  ;;  %v644_v34 = vld [vmem:[%s856_s2 + $0x40] sm:$0xff]  ;;  %v670_v48 = vld [vmem:[%s856_s2 + $0x110] sm:$0xff] }
   0xe   :  { %356 = vmatpush.bf16.msra.mxu0 %v640_v13  ;;  %v467_v35 = vld [vmem:[%s858_s0] sm:$0xf]  ;;  %v475_v37 = vld [vmem:[%s858_s0 + $0x8] sm:$0xf]  ;;  %v632_v39 = vld [vmem:[%s858_s0 + $0xc] sm:$0xf] }
   0xf   :  { %384 = vmatpush.bf16.msra.mxu2 %v656_v14  ;;  %v477_v40 = vld [vmem:[%s858_s0 + $0x1c] sm:$0xf0]  ;;  %v631_v41 = vld [vmem:[%s858_s0 + $0x4] sm:$0xf]  ;;  %v468_v44 = vor.u32 %v633_v36, %v467_v35  ;;  %v476_v45 = vor.u32 %v634_v38, %v475_v37  ;;  %v669_v49 = vld [vmem:[%s856_s2 + $0x108] sm:$0xff] }
  0x10   :  { %398 = vmatpush.bf16.msra.mxu3 %v664_v15  ;;  %v480_v46 = vor.u32 %v632_v39, %v477_v40  ;;  %v472_v47 = vor.u32 %v631_v41, %v469_v42  ;;  %v668_v50 = vld [vmem:[%s856_s2 + $0x100] sm:$0xff]  ;;  %v483_v51 = vld [vmem:[%s858_s0 + $0x10] sm:$0xf] }
  0x11   :  { %370 = vmatpush.bf16.msra.mxu1 %v648_v16  ;;  %v635_v52 = vld [vmem:[%s858_s0 + $0x20] sm:$0xf0] }
  0x12   :  { %357 = vmatpush.bf16.msra.mxu0 %v639_v17  ;;  %105 = vperm.xlu0 %673, %v97_v26   ;;  %v484_v53 = vor.u32 %v635_v52, %v483_v51 }
  0x13   :  { %385 = vmatpush.bf16.msra.mxu2 %v655_v18 }
  0x14   :  { %399 = vmatpush.bf16.msra.mxu3 %v663_v20 }
  0x15   :  { %371 = vmatpush.bf16.msra.mxu1 %v647_v21 }
  0x16   :  { %358 = vmatpush.bf16.msra.mxu0 %v638_v22 }
  0x17   :  { %386 = vmatpush.bf16.msra.mxu2 %v654_v23 }
  0x18   :  { %400 = vmatpush.bf16.msra.mxu3 %v662_v24 }
  0x19   :  { %372 = vmatpush.bf16.msra.mxu1 %v646_v25 }
  0x1a   :  { %359 = vmatpush.bf16.msra.mxu0 %v637_v27 }
  0x1b   :  { %387 = vmatpush.bf16.msra.mxu2 %v653_v28 }
  0x1c   :  { %401 = vmatpush.bf16.msra.mxu3 %v661_v29 }
  0x1d   :  { %373 = vmatpush.bf16.msra.mxu1 %v645_v30 }
  0x1e   :  { %360 = vmatpush.bf16.msra.mxu0 %v636_v31  ;;  %v443_v31 = vld [vmem:[%s859_s3] sm:$0xff] }
  0x1f   :  { %388 = vmatpush.bf16.msra.mxu2 %v652_v32 }
  0x20   :  { %402 = vmatpush.bf16.msra.mxu3 %v660_v33 }
  0x21   :  { %374 = vmatpush.bf16.msra.mxu1 %v644_v34  ;;  %361 = vmatmul.bf16.vlgmr.msra.gmra.mxu0 %v468_v44 }
  0x22   :  { %413 = vmatpush.bf16.msrb.mxu0 %v671_v43  ;;  %389 = vmatmul.bf16.vlgmr.msra.gmra.mxu2 %v476_v45 }
  0x23   :  { %403 = vmatmul.bf16.vlgmr.msra.gmra.mxu3 %v480_v46 }
  0x24   :  { %375 = vmatmul.bf16.vlgmr.msra.gmra.mxu1 %v472_v47 }
  0x26   :  { %414 = vmatpush.bf16.msrb.mxu0 %v670_v48 }
  0x2a   :  { %415 = vmatpush.bf16.msrb.mxu0 %v669_v49 }
  0x2e   :  { %416 = vmatpush.bf16.msrb.mxu0 %v668_v50 }
  0x31   :  { %629 = vmatmul.msk.bf16.vlgmr.msrb.gmra.mxu0 %vm349_vm0, %v484_v53 }
  0x7c   :  { %v101_v55 = vpop.permute.xlu0 %100 }
  0x84   :  { %v106_v16 = vpop.permute.xlu0 %105 }
  0x9e   :  { %v362_v54 = vpop.f32.mrf.mxu0 }
  0x9f   :  { %v363_v56 = vadd.f32 %v362_v54, %v101_v55 }
  0xa1   :  { %v376_v57 = vpop.f32.mrf.mxu1 }
  0xa2   :  { %v377_v60 = vadd.f32 %v376_v57, %v363_v56 }
  0xa5   :  { %v390_v58 = vpop.f32.mrf.mxu2 }
  0xa6   :  { %v364_v59 = vpop.f32.mrf.mxu0  ;;  %v391_v61 = vadd.f32 %v390_v58, %v377_v60  ;;  %v404_v62 = vpop.f32.mrf.mxu3 }
  0xa7   :  { %v365_v17 = vadd.f32 %v364_v59, %v106_v16 }
  0xa8   :  { %v405_v63 = vadd.f32 %v404_v62, %v391_v61 }
  0xa9   :  { %v378_v19 = vpop.f32.mrf.mxu1 }
  0xaa   :  { %v379_v22 = vadd.f32 %v378_v19, %v365_v17 }
  0xad   :  { %v392_v21 = vpop.f32.mrf.mxu2 }
  0xae   :  { %v418_v0 = vpop.f32.mrf.mxu0  ;;  %v393_v25 = vadd.f32 %v392_v21, %v379_v22  ;;  %v406_v29 = vpop.f32.mrf.mxu3 }
  0xaf   :  { %v419_v1 = vadd.f32 %v418_v0, %v405_v63 }
  0xb0   :  { %v407_v33 = vadd.f32 %v406_v29, %v393_v25 }
  0xb1   :  { %v423_v2 = vadd.f32 2.0, %v419_v1 }
  0xb3   :  { %v630_v3 = vmul.f32 -1.442695, %v423_v2 }
  0xb5   :  { %674 = vpow2.f32 %v630_v3 }
  0xb6   :  { %v420_v30 = vpop.f32.mrf.mxu0 }
  0xb7   :  { %v421_v36 = vadd.f32 %v420_v30, %v407_v33 }
  0xbb   :  { %v675_v4 = vpop.eup %674 }
  0xbc   :  { %v427_v5 = vadd.f32 1.0, %v675_v4 }
  0xbe   :  { %676 = vrcp.f32 %v427_v5  ;;  %v439_v9 = vand.u32 2147483648, %v427_v5  ;;  %v437_v11 = vand.u32 2147483647, %v427_v5  ;;  %vm433_vm2 = vweird.f32 %v427_v5 }
  0xc0   :  { %v440_v13 = vor.u32 1.1754944e-38, %v439_v9  ;;  %vm438_vm4 = vcmp.eq.f32.partialorder %v437_v11, 8.507059e+37 }
  0xc4   :  { %v677_v6 = vpop.eup %676 }
  0xc5   :  { %v429_v7 = vmul.f32 %v677_v6, %v427_v5  ;;  %vm434_vm1 = vweird.f32 %v677_v6 }
  0xc6   :  { %vm435_vm3 = vmor %vm433_vm2, %vm434_vm1 }
  0xc7   :  { %v430_v8 = vsub.f32 1.0, %v429_v7 }
  0xc9   :  { %v431_v10 = vmul.f32 %v677_v6, %v430_v8 }
  0xcb   :  { %v432_v12 = vadd.f32 %v677_v6, %v431_v10 }
  0xcd   :  { %v436_v14 = vsel %vm435_vm3, %v677_v6, %v432_v12 }
  0xce   :  { %v441_v15 = vsel %vm438_vm4, %v440_v13, %v436_v14 }
  0xcf   :  { %678 = vrcp.f32 %v441_v15  ;;  %v455_v24 = vand.u32 2147483648, %v441_v15  ;;  %v453_v27 = vand.u32 2147483647, %v441_v15  ;;  %vm449_vm6 = vweird.f32 %v441_v15 }
  0xd1   :  { %v456_v32 = vor.u32 1.1754944e-38, %v455_v24  ;;  %vm454_vm8 = vcmp.eq.f32.partialorder %v453_v27, 8.507059e+37 }
  0xd5   :  { %v679_v18 = vpop.eup %678 }
  0xd6   :  { %v445_v20 = vmul.f32 %v679_v18, %v441_v15  ;;  %vm450_vm5 = vweird.f32 %v679_v18 }
  0xd7   :  { %vm451_vm7 = vmor %vm449_vm6, %vm450_vm5 }
  0xd8   :  { %v446_v23 = vsub.f32 1.0, %v445_v20 }
  0xda   :  { %v447_v26 = vmul.f32 %v679_v18, %v446_v23 }
  0xdc   :  { %v448_v28 = vadd.f32 %v679_v18, %v447_v26 }
  0xde   :  { %v452_v34 = vsel %vm451_vm7, %v679_v18, %v448_v28 }
  0xdf   :  { %v457_v35 = vsel %vm454_vm8, %v456_v32, %v452_v34 }
  0xe0   :  { %v458_v37 = vmul.f32 %v457_v35, %v443_v31 }
  0xe2   :  { %v459_v38 = vsub.f32 %v458_v37, %v421_v36 }
  0xe4   :  { %460 = vst [vmem:[%s860_s4] sm:$0xff] %v459_v38 }

// kernel: model_forward.49
= control target key start
LH: loop header
LB: loop body
LE: loop exit
PB: predicated region body
PF: predicated region fallthrough
CT: control target
= control target key end

     0   :  { %v135_v1 = vmov 0   ;;  %vm77_vm0 = vcmask 1043456   ;;  %vm73_vm1 = vcmask 588800   ;;  %s191_s2 = inlined_call_operand.vmem [shape: bf16[72,128], index: 2, kind: input, shape index: {}]   ;;  %s192_s1 = inlined_call_operand.vmem [shape: f32[16,1], index: 1, kind: input, shape index: {}]   ;;  %s193_s0 = inlined_call_operand.vmem [shape: bf16[16,72], index: 0, kind: input, shape index: {}]   ;;  %s194_s3 = inlined_call_operand.vmem [shape: f32[8,128], index: 3, kind: input, shape index: {}]   ;;  %s195_s4 = inlined_call_operand.vmem [shape: f32[8,128], index: 4, kind: output, shape index: {}]  }
   0x1   :  { %v28_v0 = vld [vmem:[%s191_s2 + $0x20] sm:$0xf]  ;;  %132 = vset.pattern.permute.xlu0 %v135_v1  ;;  %v30_v3 = vld [vmem:[%s192_s1 + $0x8] sm:$0xff]  ;;  %v130_v6 = vld [vmem:[%s191_s2 + $0x18] sm:$0xff] }
   0x2   :  { %v63_v2 = vunpack.c.l.b16 %v28_v0  ;;  %38 = vperm.xlu0 %132, %v30_v3   ;;  %v29_v7 = vld [vmem:[%s192_s1] sm:$0xff]  ;;  %v129_v8 = vld [vmem:[%s191_s2 + $0x10] sm:$0xff]  ;;  %v128_v9 = vld [vmem:[%s191_s2 + $0x8] sm:$0xff] }
   0x3   :  { %v127_v10 = vld [vmem:[%s191_s2] sm:$0xff] }
   0x4   :  { %v68_v4 = vpack.c.b16 %v63_v2, %v63_v2  ;;  %v126_v11 = vld [vmem:[%s193_s0] sm:$0xff] }
   0x5   :  { %v97_v18 = vld [vmem:[%s194_s3] sm:$0xff] }
   0x6   :  { %v79_v5 = vsel %vm77_vm0, %v68_v4, 0 }
   0x7   :  { %84 = vmatpush.bf16.msra.mxu0 %v79_v5 }
   0xa   :  { %33 = vperm.xlu0 %132, %v29_v7  }
   0xb   :  { %85 = vmatpush.bf16.msra.mxu0 %v130_v6 }
   0xf   :  { %86 = vmatpush.bf16.msra.mxu0 %v129_v8 }
  0x13   :  { %87 = vmatpush.bf16.msra.mxu0 %v128_v9 }
  0x17   :  { %88 = vmatpush.bf16.msra.mxu0 %v127_v10 }
  0x1a   :  { %125 = vmatmul.msk.bf16.vlgmr.msra.gmra.mxu0 %vm73_vm1, %v126_v11 }
  0x74   :  { %v39_v13 = vpop.permute.xlu0 %38 }
  0x7c   :  { %v34_v17 = vpop.permute.xlu0 %33 }
  0x97   :  { %v90_v12 = vpop.f32.mrf.mxu0 }
  0x98   :  { %v91_v20 = vadd.f32 %v90_v12, %v34_v17 }
  0x9f   :  { %v92_v14 = vpop.f32.mrf.mxu0 }
  0xa0   :  { %v93_v15 = vadd.f32 %v92_v14, %v39_v13 }
  0xa2   :  { %v95_v16 = vmul.f32 1.442695, %v93_v15 }
  0xa4   :  { %133 = vpow2.f32 %v95_v16 }
  0xaa   :  { %v134_v19 = vpop.eup %133 }
  0xab   :  { %v98_v21 = vmul.f32 %v134_v19, %v97_v18 }
  0xad   :  { %v99_v22 = vadd.f32 %v98_v21, %v91_v20 }
  0xaf   :  { %100 = vst [vmem:[%s195_s4] sm:$0xff] %v99_v22 }

</bundles_post_ra>
